<compile_context>
chip_gen: v7x
topology: tpu7x:2x2x1
jax: 0.10.0
libtpu: 0.0.40
codegen_flags: <defaults>
</compile_context>

<pallas_src>
import jax
import jax.numpy as jnp
from jax.experimental import pallas as pl
from jax.experimental.pallas import tpu as pltpu

EPS = 1e-5
NUM_CLASSES = 55
PAD_OUT = 128     # lane-dense padded width of the 55-class head


def fc_kernel(x_ref, w1_ref, p1_ref, w2_ref, p2_ref, w3_ref, b3_ref,
              o_ref, acc_ref):
    k = pl.program_id(0)

    # Layer-1 partial matmul for this K-slab: int8 weights widened to bf16 on
    # the VPU, bf16 MXU operands, f32 accumulation.
    partial = jnp.dot(x_ref[...], w1_ref[...].astype(jnp.bfloat16),
                      preferred_element_type=jnp.float32)

    @pl.when(k == 0)
    def _first():
        acc_ref[...] = partial          # no zero-init + read-add on step 0

    @pl.when(k > 0)
    def _accumulate():
        acc_ref[...] += partial

    @pl.when(k == pl.num_programs(0) - 1)
    def _finalize():
        def batchnorm_train(h, gamma, beta):
            # Training-mode BN over the full batch: two-pass (PyTorch-parity)
            # biased variance, fused into a per-feature scale/shift.
            mean = jnp.mean(h, axis=0, keepdims=True)
            var = jnp.mean(jnp.square(h - mean), axis=0, keepdims=True)
            scale = gamma * jax.lax.rsqrt(var + EPS)   # rsqrt -> EUP
            return h * scale + (beta - mean * scale)

        # Packed per-layer params: rows = [dequant_scale, bias, gamma, beta].
        p1 = p1_ref[...]
        h = jnp.maximum(acc_ref[...] * p1[0:1] + p1[1:2], 0.0)
        h = batchnorm_train(h, p1[2:3], p1[3:4])

        # Layer 2: Linear(1024 -> 512) (int8 weights) + ReLU + BatchNorm1d(512)
        p2 = p2_ref[...]
        h = (jnp.dot(h.astype(jnp.bfloat16), w2_ref[...].astype(jnp.bfloat16),
                     preferred_element_type=jnp.float32) * p2[0:1] + p2[1:2])
        h = jnp.maximum(h, 0.0)
        h = batchnorm_train(h, p2[2:3], p2[3:4])

        # Layer 3: Linear(512 -> 55), lane-padded to 128 columns (bf16 weight).
        o_ref[...] = (jnp.dot(h.astype(jnp.bfloat16), w3_ref[...],
                              preferred_element_type=jnp.float32)
                      + b3_ref[...])


def _pick_tk(n, k_in):
    """Small batch => weight-DMA bound => single grid step (extra steps are
    pure ~0.35us overhead).  Larger batches get K slabs so the slab DMA can
    overlap real MXU time."""
    if n <= 256:
        return k_in
    if n <= 1024:
        return 1024
    return 512


def _vmem_limit_bytes(n, tk):
    dbl = 2  # BlockSpec double-buffering
    weights = dbl * (tk * 1024 * 1          # w1 slab (int8)
                     + 1024 * 512 * 1       # w2 (int8)
                     + 512 * PAD_OUT * 2)   # w3 (bf16)
    params = dbl * (8 * 1024 + 8 * 512 + 8 * PAD_OUT) * 4   # padded (4,F)/(1,F)
    io = dbl * (n * tk * 2 + n * PAD_OUT * 4)                # x slab + out
    scratch = n * 1024 * 4                                   # f32 accumulator
    act = n * (1024 + 512) * 4 + n * (1024 + 512) * 2        # f32 temps + bf16 copies
    need = weights + params + io + scratch + act + (6 << 20)  # headroom
    try:
        cap = pltpu.get_tpu_info().vmem_capacity_bytes - (8 << 20)
    except Exception:
        cap = 56 << 20   # safe under v7x's 64 MiB physical VMEM
    return max(16 << 20, min(need, cap))


def _quantize_per_channel_int8(w):
    """Symmetric per-output-channel int8 quantization of an (in, out) weight."""
    absmax = jnp.max(jnp.abs(w), axis=0, keepdims=True)          # (1, out)
    scale = jnp.where(absmax > 0, absmax / 127.0, 1.0).astype(jnp.float32)
    wq = jnp.clip(jnp.round(w / scale), -127.0, 127.0).astype(jnp.int8)
    return wq, scale


def prepare_params(params):
    """Quantize the two big weights to int8, pack per-layer scalars into one
    slab each, and pad/bf16-cast the 55-wide head to 128 lanes."""
    w1q, s1 = _quantize_per_channel_int8(params["w1"])
    w2q, s2 = _quantize_per_channel_int8(params["w2"])
    p1 = jnp.concatenate([s1, params["b1"], params["g1"], params["be1"]],
                         axis=0)                                  # (4, 1024)
    p2 = jnp.concatenate([s2, params["b2"], params["g2"], params["be2"]],
                         axis=0)                                  # (4, 512)
    w3 = jnp.zeros((512, PAD_OUT), jnp.float32).at[:, :NUM_CLASSES].set(
        params["w3"]).astype(jnp.bfloat16)
    b3 = jnp.zeros((1, PAD_OUT), jnp.float32).at[:, :NUM_CLASSES].set(
        params["b3"])
    return {"w1q": w1q, "p1": p1, "w2q": w2q, "p2": p2, "w3": w3, "b3": b3}


def fc_forward(x, prep):
    n, k_in = x.shape
    assert k_in == 2048
    tk = _pick_tk(n, k_in)
    assert k_in % tk == 0
    x = x.astype(jnp.bfloat16)          # MXU-native input dtype, halves x DMA
    const = lambda k: (0, 0)            # fetched once, VMEM-resident

    out = pl.pallas_call(
        fc_kernel,
        out_shape=jax.ShapeDtypeStruct((n, PAD_OUT), jnp.float32),
        grid_spec=pltpu.PrefetchScalarGridSpec(
            num_scalar_prefetch=0,
            grid=(k_in // tk,),
            in_specs=[
                pl.BlockSpec((n, tk), lambda k: (0, k)),      # x: K-slab
                pl.BlockSpec((tk, 1024), lambda k: (k, 0)),   # w1 int8: K-slab
                pl.BlockSpec((4, 1024), const),               # [s1,b1,g1,be1]
                pl.BlockSpec((1024, 512), const),             # w2 int8
                pl.BlockSpec((4, 512), const),                # [s2,b2,g2,be2]
                pl.BlockSpec((512, PAD_OUT), const),          # w3 (bf16, padded)
                pl.BlockSpec((1, PAD_OUT), const),            # b3 (padded)
            ],
            out_specs=pl.BlockSpec((n, PAD_OUT), const),
            scratch_shapes=[pltpu.VMEM((n, 1024), jnp.float32)],
        ),
        compiler_params=pltpu.CompilerParams(
            dimension_semantics=("arbitrary",),   # K-reduction axis
            vmem_limit_bytes=_vmem_limit_bytes(n, tk),
        ),
    )(x, prep["w1q"], prep["p1"], prep["w2q"], prep["p2"],
      prep["w3"], prep["b3"])
    return out[:, :NUM_CLASSES]


def init_params(key):
    """PyTorch-default-style init (Linear: U(-1/sqrt(in), 1/sqrt(in));
    BatchNorm: gamma=1, beta=0).  Weights stored as (in, out)."""
    dims = [(2048, 1024), (1024, 512), (512, NUM_CLASSES)]
    params = {}
    keys = jax.random.split(key, 2 * len(dims))
    for i, (fan_in, fan_out) in enumerate(dims):
        bound = 1.0 / jnp.sqrt(fan_in)
        params[f"w{i + 1}"] = jax.random.uniform(
            keys[2 * i], (fan_in, fan_out), minval=-bound, maxval=bound,
            dtype=jnp.float32)
        params[f"b{i + 1}"] = jax.random.uniform(
            keys[2 * i + 1], (1, fan_out), minval=-bound, maxval=bound,
            dtype=jnp.float32)
    params["g1"] = jnp.ones((1, 1024), jnp.float32)
    params["be1"] = jnp.zeros((1, 1024), jnp.float32)
    params["g2"] = jnp.ones((1, 512), jnp.float32)
    params["be2"] = jnp.zeros((1, 512), jnp.float32)
    return params


def fc_reference(x, prep):
    """Pure-JAX reference mirroring the kernel's precision choices
    (bf16 activations, int8 weights widened to bf16, f32 accumulation,
    training-mode two-pass BatchNorm)."""
    x = x.astype(jnp.bfloat16)

    def bn(h, gamma, beta):
        mean = jnp.mean(h, axis=0, keepdims=True)
        var = jnp.mean(jnp.square(h - mean), axis=0, keepdims=True)
        scale = gamma * jax.lax.rsqrt(var + EPS)
        return h * scale + (beta - mean * scale)

    p1, p2 = prep["p1"], prep["p2"]
    h = (jnp.dot(x, prep["w1q"].astype(jnp.bfloat16),
                 preferred_element_type=jnp.float32) * p1[0:1] + p1[1:2])
    h = bn(jnp.maximum(h, 0.0), p1[2:3], p1[3:4])
    h = (jnp.dot(h.astype(jnp.bfloat16), prep["w2q"].astype(jnp.bfloat16),
                 preferred_element_type=jnp.float32) * p2[0:1] + p2[1:2])
    h = bn(jnp.maximum(h, 0.0), p2[2:3], p2[3:4])
    out = (jnp.dot(h.astype(jnp.bfloat16), prep["w3"],
                   preferred_element_type=jnp.float32) + prep["b3"])
    return out[:, :NUM_CLASSES]


if __name__ == "__main__":
    key = jax.random.PRNGKey(0)
    k_x, k_p = jax.random.split(key)

    N = 16  # multiple of 16: clean bf16 sublane packing; feature dims fixed by the module
    x = jax.random.normal(k_x, (N, 2048), dtype=jnp.float32)
    params = init_params(k_p)
    prep = prepare_params(params)

    out = fc_forward(x, prep)
    out = jax.block_until_ready(out)

    ref = fc_reference(x, prep)
    assert out.shape == (N, NUM_CLASSES), out.shape
    max_err = float(jnp.max(jnp.abs(out - ref)))
    assert jnp.allclose(out, ref, atol=1e-3, rtol=1e-3), max_err

    print("KERNEL_OK")
</pallas_src>

<mosaic_0001>
module attributes {stable_mosaic.version = 11 : i64} {
  func.func @fc_kernel(%arg0: i32, %arg1: memref<16x2048xbf16, #tpu.memory_space<vmem>>, %arg2: memref<2048x1024xi8, #tpu.memory_space<vmem>>, %arg3: memref<4x1024xf32, #tpu.memory_space<vmem>>, %arg4: memref<1024x512xi8, #tpu.memory_space<vmem>>, %arg5: memref<4x512xf32, #tpu.memory_space<vmem>>, %arg6: memref<512x128xbf16, #tpu.memory_space<vmem>>, %arg7: memref<1x128xf32, #tpu.memory_space<vmem>>, %arg8: memref<16x128xf32, #tpu.memory_space<vmem>>, %arg9: memref<16x1024xf32, #tpu.memory_space<vmem>>) attributes {dimension_semantics = [#tpu.dimension_semantics<arbitrary>], iteration_bounds = array<i64: 1>, scalar_prefetch = 0 : i64, scratch_operands = 1 : i64, tpu.core_type = #tpu.core_type<tc>, window_params = [{transform_indices = @transform_0, window_bounds = array<i64: 16, 2048>}, {transform_indices = @transform_1, window_bounds = array<i64: 2048, 1024>}, {pipeline_mode = #tpu.pipeline_mode<synchronous>, transform_indices = @transform_2, window_bounds = array<i64: 4, 1024>}, {pipeline_mode = #tpu.pipeline_mode<synchronous>, transform_indices = @transform_3, window_bounds = array<i64: 1024, 512>}, {pipeline_mode = #tpu.pipeline_mode<synchronous>, transform_indices = @transform_4, window_bounds = array<i64: 4, 512>}, {pipeline_mode = #tpu.pipeline_mode<synchronous>, transform_indices = @transform_5, window_bounds = array<i64: 512, 128>}, {pipeline_mode = #tpu.pipeline_mode<synchronous>, transform_indices = @transform_6, window_bounds = array<i64: 1, 128>}, {pipeline_mode = #tpu.pipeline_mode<synchronous>, transform_indices = @transform_7, window_bounds = array<i64: 16, 128>}]} {
    %c0 = arith.constant 0 : index
    %c0_0 = arith.constant 0 : index
    %0 = vector.load %arg1[%c0, %c0_0] : memref<16x2048xbf16, #tpu.memory_space<vmem>>, vector<16x2048xbf16>
    %c0_1 = arith.constant 0 : index
    %c0_2 = arith.constant 0 : index
    %1 = vector.load %arg2[%c0_1, %c0_2] : memref<2048x1024xi8, #tpu.memory_space<vmem>>, vector<2048x1024xi8>
    %2 = arith.sitofp %1 : vector<2048x1024xi8> to vector<2048x1024xbf16>
    %cst = arith.constant dense<0.000000e+00> : vector<16x1024xf32>
    %3 = tpu.matmul %0, %2, %cst {dimension_numbers = #tpu.dot_dimension_numbers<[1], [0], [0], [1], [0, 0, 1, 1], [], []>} : vector<16x2048xbf16>, vector<2048x1024xbf16>, vector<16x1024xf32> -> vector<16x1024xf32>
    %c0_i32 = arith.constant 0 : i32
    %4 = arith.cmpi eq, %arg0, %c0_i32 : i32
    %5 = arith.extui %4 : i1 to i32
    %c0_i32_3 = arith.constant 0 : i32
    %6 = arith.cmpi ne, %5, %c0_i32_3 : i32
    scf.if %6 {
      %c0_8 = arith.constant 0 : index
      %c0_9 = arith.constant 0 : index
      %13 = vector.load %arg9[%c0_8, %c0_9] : memref<16x1024xf32, #tpu.memory_space<vmem>>, vector<16x1024xf32>
      tpu.vector_store %arg9[%c0_8, %c0_9], %3 {strides = array<i32>} : memref<16x1024xf32, #tpu.memory_space<vmem>>, vector<16x1024xf32>,
    } else {
    }
    %c0_i32_4 = arith.constant 0 : i32
    %7 = arith.cmpi sgt, %arg0, %c0_i32_4 : i32
    %8 = arith.extui %7 : i1 to i32
    %c0_i32_5 = arith.constant 0 : i32
    %9 = arith.cmpi ne, %8, %c0_i32_5 : i32
    scf.if %9 {
      %c0_8 = arith.constant 0 : index
      %c0_9 = arith.constant 0 : index
      %13 = vector.load %arg9[%c0_8, %c0_9] : memref<16x1024xf32, #tpu.memory_space<vmem>>, vector<16x1024xf32>
      %14 = arith.addf %13, %3 : vector<16x1024xf32>
      %c0_10 = arith.constant 0 : index
      %c0_11 = arith.constant 0 : index
      %15 = vector.load %arg9[%c0_10, %c0_11] : memref<16x1024xf32, #tpu.memory_space<vmem>>, vector<16x1024xf32>
      tpu.vector_store %arg9[%c0_10, %c0_11], %14 {strides = array<i32>} : memref<16x1024xf32, #tpu.memory_space<vmem>>, vector<16x1024xf32>,
    } else {
    }
    %c0_i32_6 = arith.constant 0 : i32
    %10 = arith.cmpi eq, %arg0, %c0_i32_6 : i32
    %11 = arith.extui %10 : i1 to i32
    %c0_i32_7 = arith.constant 0 : i32
    %12 = arith.cmpi ne, %11, %c0_i32_7 : i32
    scf.if %12 {
      %c0_8 = arith.constant 0 : index
      %c0_9 = arith.constant 0 : index
      %13 = vector.load %arg3[%c0_8, %c0_9] : memref<4x1024xf32, #tpu.memory_space<vmem>>, vector<4x1024xf32>
      %c0_10 = arith.constant 0 : index
      %c0_11 = arith.constant 0 : index
      %14 = vector.load %arg9[%c0_10, %c0_11] : memref<16x1024xf32, #tpu.memory_space<vmem>>, vector<16x1024xf32>
      %15 = vector.extract_strided_slice %13 {offsets = [0, 0], sizes = [1, 1024], strides = [1, 1]} : vector<4x1024xf32> to vector<1x1024xf32>
      %16 = vector.broadcast %15 : vector<1x1024xf32> to vector<16x1024xf32>
      %17 = arith.mulf %14, %16 : vector<16x1024xf32>
      %18 = vector.extract_strided_slice %13 {offsets = [1, 0], sizes = [1, 1024], strides = [1, 1]} : vector<4x1024xf32> to vector<1x1024xf32>
      %19 = vector.broadcast %18 : vector<1x1024xf32> to vector<16x1024xf32>
      %20 = arith.addf %17, %19 : vector<16x1024xf32>
      %cst_12 = arith.constant 0.000000e+00 : f32
      %21 = vector.broadcast %cst_12 : f32 to vector<16x1024xf32>
      %22 = arith.maximumf %20, %21 : vector<16x1024xf32>
      %23 = vector.extract_strided_slice %13 {offsets = [2, 0], sizes = [1, 1024], strides = [1, 1]} : vector<4x1024xf32> to vector<1x1024xf32>
      %24 = vector.extract_strided_slice %13 {offsets = [3, 0], sizes = [1, 1024], strides = [1, 1]} : vector<4x1024xf32> to vector<1x1024xf32>
      %cst_13 = arith.constant dense<0.000000e+00> : vector<1024xf32>
      %25 = vector.multi_reduction <add>, %22, %cst_13 [0] : vector<16x1024xf32> to vector<1024xf32>
      %26 = vector.shape_cast %25 : vector<1024xf32> to vector<1x1024xf32>
      %cst_14 = arith.constant 1.600000e+01 : f32
      %27 = vector.broadcast %cst_14 : f32 to vector<1x1024xf32>
      %28 = arith.divf %26, %27 : vector<1x1024xf32>
      %29 = vector.broadcast %28 : vector<1x1024xf32> to vector<16x1024xf32>
      %30 = arith.subf %22, %29 : vector<16x1024xf32>
      %31 = arith.mulf %30, %30 : vector<16x1024xf32>
      %cst_15 = arith.constant dense<0.000000e+00> : vector<1024xf32>
      %32 = vector.multi_reduction <add>, %31, %cst_15 [0] : vector<16x1024xf32> to vector<1024xf32>
      %33 = vector.shape_cast %32 : vector<1024xf32> to vector<1x1024xf32>
      %cst_16 = arith.constant 1.600000e+01 : f32
      %34 = vector.broadcast %cst_16 : f32 to vector<1x1024xf32>
      %35 = arith.divf %33, %34 : vector<1x1024xf32>
      %cst_17 = arith.constant 9.99999974E-6 : f32
      %36 = vector.broadcast %cst_17 : f32 to vector<1x1024xf32>
      %37 = arith.addf %35, %36 : vector<1x1024xf32>
      %38 = math.rsqrt %37 : vector<1x1024xf32>
      %39 = arith.mulf %23, %38 : vector<1x1024xf32>
      %40 = vector.broadcast %39 : vector<1x1024xf32> to vector<16x1024xf32>
      %41 = arith.mulf %22, %40 : vector<16x1024xf32>
      %42 = arith.mulf %28, %39 : vector<1x1024xf32>
      %43 = arith.subf %24, %42 : vector<1x1024xf32>
      %44 = vector.broadcast %43 : vector<1x1024xf32> to vector<16x1024xf32>
      %45 = arith.addf %41, %44 : vector<16x1024xf32>
      %c0_18 = arith.constant 0 : index
      %c0_19 = arith.constant 0 : index
      %46 = vector.load %arg5[%c0_18, %c0_19] : memref<4x512xf32, #tpu.memory_space<vmem>>, vector<4x512xf32>
      %47 = arith.truncf %45 : vector<16x1024xf32> to vector<16x1024xbf16>
      %c0_20 = arith.constant 0 : index
      %c0_21 = arith.constant 0 : index
      %48 = vector.load %arg4[%c0_20, %c0_21] : memref<1024x512xi8, #tpu.memory_space<vmem>>, vector<1024x512xi8>
      %49 = arith.sitofp %48 : vector<1024x512xi8> to vector<1024x512xbf16>
      %cst_22 = arith.constant dense<0.000000e+00> : vector<16x512xf32>
      %50 = tpu.matmul %47, %49, %cst_22 {dimension_numbers = #tpu.dot_dimension_numbers<[1], [0], [0], [1], [0, 0, 1, 1], [], []>} : vector<16x1024xbf16>, vector<1024x512xbf16>, vector<16x512xf32> -> vector<16x512xf32>
      %51 = vector.extract_strided_slice %46 {offsets = [0, 0], sizes = [1, 512], strides = [1, 1]} : vector<4x512xf32> to vector<1x512xf32>
      %52 = vector.broadcast %51 : vector<1x512xf32> to vector<16x512xf32>
      %53 = arith.mulf %50, %52 : vector<16x512xf32>
      %54 = vector.extract_strided_slice %46 {offsets = [1, 0], sizes = [1, 512], strides = [1, 1]} : vector<4x512xf32> to vector<1x512xf32>
      %55 = vector.broadcast %54 : vector<1x512xf32> to vector<16x512xf32>
      %56 = arith.addf %53, %55 : vector<16x512xf32>
      %cst_23 = arith.constant 0.000000e+00 : f32
      %57 = vector.broadcast %cst_23 : f32 to vector<16x512xf32>
      %58 = arith.maximumf %56, %57 : vector<16x512xf32>
      %59 = vector.extract_strided_slice %46 {offsets = [2, 0], sizes = [1, 512], strides = [1, 1]} : vector<4x512xf32> to vector<1x512xf32>
      %60 = vector.extract_strided_slice %46 {offsets = [3, 0], sizes = [1, 512], strides = [1, 1]} : vector<4x512xf32> to vector<1x512xf32>
      %cst_24 = arith.constant dense<0.000000e+00> : vector<512xf32>
      %61 = vector.multi_reduction <add>, %58, %cst_24 [0] : vector<16x512xf32> to vector<512xf32>
      %62 = vector.shape_cast %61 : vector<512xf32> to vector<1x512xf32>
      %cst_25 = arith.constant 1.600000e+01 : f32
      %63 = vector.broadcast %cst_25 : f32 to vector<1x512xf32>
      %64 = arith.divf %62, %63 : vector<1x512xf32>
      %65 = vector.broadcast %64 : vector<1x512xf32> to vector<16x512xf32>
      %66 = arith.subf %58, %65 : vector<16x512xf32>
      %67 = arith.mulf %66, %66 : vector<16x512xf32>
      %cst_26 = arith.constant dense<0.000000e+00> : vector<512xf32>
      %68 = vector.multi_reduction <add>, %67, %cst_26 [0] : vector<16x512xf32> to vector<512xf32>
      %69 = vector.shape_cast %68 : vector<512xf32> to vector<1x512xf32>
      %cst_27 = arith.constant 1.600000e+01 : f32
      %70 = vector.broadcast %cst_27 : f32 to vector<1x512xf32>
      %71 = arith.divf %69, %70 : vector<1x512xf32>
      %cst_28 = arith.constant 9.99999974E-6 : f32
      %72 = vector.broadcast %cst_28 : f32 to vector<1x512xf32>
      %73 = arith.addf %71, %72 : vector<1x512xf32>
      %74 = math.rsqrt %73 : vector<1x512xf32>
      %75 = arith.mulf %59, %74 : vector<1x512xf32>
      %76 = vector.broadcast %75 : vector<1x512xf32> to vector<16x512xf32>
      %77 = arith.mulf %58, %76 : vector<16x512xf32>
      %78 = arith.mulf %64, %75 : vector<1x512xf32>
      %79 = arith.subf %60, %78 : vector<1x512xf32>
      %80 = vector.broadcast %79 : vector<1x512xf32> to vector<16x512xf32>
      %81 = arith.addf %77, %80 : vector<16x512xf32>
      %82 = arith.truncf %81 : vector<16x512xf32> to vector<16x512xbf16>
      %c0_29 = arith.constant 0 : index
      %c0_30 = arith.constant 0 : index
      %83 = vector.load %arg6[%c0_29, %c0_30] : memref<512x128xbf16, #tpu.memory_space<vmem>>, vector<512x128xbf16>
      %cst_31 = arith.constant dense<0.000000e+00> : vector<16x128xf32>
      %84 = tpu.matmul %82, %83, %cst_31 {dimension_numbers = #tpu.dot_dimension_numbers<[1], [0], [0], [1], [0, 0, 1, 1], [], []>} : vector<16x512xbf16>, vector<512x128xbf16>, vector<16x128xf32> -> vector<16x128xf32>
      %c0_32 = arith.constant 0 : index
      %c0_33 = arith.constant 0 : index
      %85 = vector.load %arg7[%c0_32, %c0_33] : memref<1x128xf32, #tpu.memory_space<vmem>>, vector<1x128xf32>
      %86 = vector.broadcast %85 : vector<1x128xf32> to vector<16x128xf32>
      %87 = arith.addf %84, %86 : vector<16x128xf32>
      %c0_34 = arith.constant 0 : index
      %c0_35 = arith.constant 0 : index
      %88 = vector.load %arg8[%c0_34, %c0_35] : memref<16x128xf32, #tpu.memory_space<vmem>>, vector<16x128xf32>
      tpu.vector_store %arg8[%c0_34, %c0_35], %87 {strides = array<i32>} : memref<16x128xf32, #tpu.memory_space<vmem>>, vector<16x128xf32>,
    } else {
    }
    return
  }
  func.func @transform_0(%arg0: i32) -> (i32, i32) {
    %c0_i32 = arith.constant 0 : i32
    %c0_i32_0 = arith.constant 0 : i32
    return %c0_i32, %arg0 : i32, i32
  }
  func.func @transform_1(%arg0: i32) -> (i32, i32) {
    %c0_i32 = arith.constant 0 : i32
    %c0_i32_0 = arith.constant 0 : i32
    return %arg0, %c0_i32 : i32, i32
  }
  func.func @transform_2(%arg0: i32) -> (i32, i32) {
    %c0_i32 = arith.constant 0 : i32
    %c0_i32_0 = arith.constant 0 : i32
    %c0_i32_1 = arith.constant 0 : i32
    return %c0_i32, %c0_i32_0 : i32, i32
  }
  func.func @transform_3(%arg0: i32) -> (i32, i32) {
    %c0_i32 = arith.constant 0 : i32
    %c0_i32_0 = arith.constant 0 : i32
    %c0_i32_1 = arith.constant 0 : i32
    return %c0_i32, %c0_i32_0 : i32, i32
  }
  func.func @transform_4(%arg0: i32) -> (i32, i32) {
    %c0_i32 = arith.constant 0 : i32
    %c0_i32_0 = arith.constant 0 : i32
    %c0_i32_1 = arith.constant 0 : i32
    return %c0_i32, %c0_i32_0 : i32, i32
  }
  func.func @transform_5(%arg0: i32) -> (i32, i32) {
    %c0_i32 = arith.constant 0 : i32
    %c0_i32_0 = arith.constant 0 : i32
    %c0_i32_1 = arith.constant 0 : i32
    return %c0_i32, %c0_i32_0 : i32, i32
  }
  func.func @transform_6(%arg0: i32) -> (i32, i32) {
    %c0_i32 = arith.constant 0 : i32
    %c0_i32_0 = arith.constant 0 : i32
    %c0_i32_1 = arith.constant 0 : i32
    return %c0_i32, %c0_i32_0 : i32, i32
  }
  func.func @transform_7(%arg0: i32) -> (i32, i32) {
    %c0_i32 = arith.constant 0 : i32
    %c0_i32_0 = arith.constant 0 : i32
    %c0_i32_1 = arith.constant 0 : i32
    return %c0_i32, %c0_i32_0 : i32, i32
  }
}

</mosaic_0001>

<bundles_post_ra>
// kernel: tpu_custom_call.1
= control target key start
LH: loop header
LB: loop body
LE: loop exit
PB: predicated region body
PF: predicated region fallthrough
CT: control target
= control target key end

     0   :  { %12 = vsyncpa [#allocation4], 0  ;;  %s6461_s0 = inlined_call_operand.hbm [shape: bf16[16,2048], index: 0, kind: input, shape index: {}]   ;;  %s6462_s1 = inlined_call_operand.hbm [shape: s8[2048,1024], index: 1, kind: input, shape index: {}]   ;;  %s6463_s2 = inlined_call_operand.hbm [shape: f32[4,1024], index: 2, kind: input, shape index: {}]   ;;  %s6464_s3 = inlined_call_operand.hbm [shape: s8[1024,512], index: 3, kind: input, shape index: {}]   ;;  %s6465_s4 = inlined_call_operand.hbm [shape: f32[4,512], index: 4, kind: input, shape index: {}]   ;;  %s6466_s5 = inlined_call_operand.hbm [shape: bf16[512,128], index: 5, kind: input, shape index: {}]   ;;  %s6467_s6 = inlined_call_operand.hbm [shape: f32[1,128], index: 6, kind: input, shape index: {}]   ;;  %s6468_s7 = inlined_call_operand.hbm [shape: f32[16,128], index: 7, kind: output, shape index: {}]  }
   0x1   :  { %13 = vsyncpa [#allocation7], 0 }
   0x2   :  { %14 = vsyncpa [#allocation10], 0 }
   0x3   :  { %15 = vsyncpa [#allocation13], 0 }
   0x4   :  { %16 = vsyncpa [#allocation5], 0  ;;  %s5734_s24 = smov [#allocation6]   ;;  %s5735_s26 = smov [#allocation9]  }
   0x5   :  { %s34_s25 = sshll.u32 %s5734_s24, 4  ;;  %s56_s27 = sshll.u32 %s5735_s26, 4  ;;  %s35_s25 = int_to_ptr.vmem [resolvable:$true] %s34_s25  ;;  %s5789_s27 = int_to_ptr.vmem [resolvable:$true] %s56_s27 }
   0x6   :  { %s5548_s30 = scalar_lea.hbm %s6462_s1, 65536 }
   0x7   :  { %p5549_p0 = scmp.ne.s32.totalorder %s6462_s1, %s5548_s30  ;;  %p5552_p1 = scmp.lt.u32.totalorder %s5548_s30, %s6462_s1 }
   0x9   :  { %p5554_p2 = pnand %p5552_p1, %p5549_p0 }
   0xb   :  { %5557 = shalt.err (!%p5554_p2)
}
   0xc   :  { %s5558_s12 = scalar_lea.vmem %s35_s25, 65536  ;;  %p5563_p4 = scmp.lt.s32.totalorder %s35_s25, %s35_s25 }
   0xd   :  { %p5559_p3 = scmp.ne.s32.totalorder %s35_s25, %s5558_s12  ;;  %p5564_p5 = scmp.lt.s32.totalorder %s5558_s12, %s5558_s12 }
   0xf   :  { %p5565_p6 = por %p5564_p5, %p5563_p4 }
  0x11   :  { %p5566_p7 = pnand %p5565_p6, %p5559_p3 }
  0x13   :  { %5569 = shalt.err (!%p5566_p7)
}
  0x14   :  { %s5736_s13 = smov 1024   ;;  %s5737_s14 = smov 64  }
  0x15   :  { %40 = dma.hbm_to_vmem [thread:$0]  %s6462_s1, 65536, %s35_s25, [#allocation7], %s5736_s13, %s5736_s13, %s5737_s14  }
  0x16   :  { %s5570_s19 = scalar_lea.hbm %s6464_s3, 16384 }
  0x17   :  { %p5571_p8 = scmp.ne.s32.totalorder %s6464_s3, %s5570_s19  ;;  %p5574_p9 = scmp.lt.u32.totalorder %s5570_s19, %s6464_s3 }
  0x19   :  { %p5576_p10 = pnand %p5574_p9, %p5571_p8 }
  0x1b   :  { %5579 = shalt.err (!%p5576_p10)
}
  0x1c   :  { %s5580_s24 = scalar_lea.vmem %s5789_s27, 16384  ;;  %p5585_p12 = scmp.lt.s32.totalorder %s5789_s27, %s5789_s27 }
  0x1d   :  { %p5581_p11 = scmp.ne.s32.totalorder %s5789_s27, %s5580_s24  ;;  %p5586_p13 = scmp.lt.s32.totalorder %s5580_s24, %s5580_s24 }
  0x1f   :  { %p5587_p0 = por %p5586_p13, %p5585_p12 }
  0x21   :  { %p5588_p1 = pnand %p5587_p0, %p5581_p11 }
  0x23   :  { %5591 = shalt.err (!%p5588_p1)
}
  0x24   :  { %s5738_s1 = smov 512   ;;  %s5739_s25 = smov 32  }
  0x25   :  { %62 = dma.hbm_to_vmem [thread:$0]  %s6464_s3, 16384, %s5789_s27, [#allocation10], %s5738_s1, %s5738_s1, %s5739_s25  }
  0x26   :  { %s5740_s29 = smov [#allocation12]   ;;  %s5741_s8 = smov [#allocation3]  }
  0x27   :  { %s78_s30 = sshll.u32 %s5740_s29, 4  ;;  %s22_s9 = sshll.u32 %s5741_s8, 4  ;;  %s79_s30 = int_to_ptr.vmem [resolvable:$true] %s78_s30  ;;  %s23_s9 = int_to_ptr.vmem [resolvable:$true] %s22_s9 }
  0x28   :  { %s5592_s12 = scalar_lea.hbm %s6466_s5, 4096 }
  0x29   :  { %p5593_p2 = scmp.ne.s32.totalorder %s6466_s5, %s5592_s12  ;;  %p5596_p3 = scmp.lt.u32.totalorder %s5592_s12, %s6466_s5 }
  0x2b   :  { %p5598_p4 = pnand %p5596_p3, %p5593_p2 }
  0x2d   :  { %5601 = shalt.err (!%p5598_p4)
}
  0x2e   :  { %s5602_s3 = scalar_lea.vmem %s79_s30, 4096  ;;  %p5607_p6 = scmp.lt.s32.totalorder %s79_s30, %s79_s30 }
  0x2f   :  { %p5603_p5 = scmp.ne.s32.totalorder %s79_s30, %s5602_s3  ;;  %p5608_p7 = scmp.lt.s32.totalorder %s5602_s3, %s5602_s3 }
  0x31   :  { %p5609_p8 = por %p5608_p7, %p5607_p6 }
  0x33   :  { %p5610_p9 = pnand %p5609_p8, %p5603_p5 }
  0x35   :  { %5613 = shalt.err (!%p5610_p9)
}
  0x36   :  { %s5742_s27 = smov 4   ;;  %s5614_s23 = scalar_lea.hbm %s6461_s0, 2048 }
  0x37   :  { %84 = dma.hbm_to_vmem [thread:$0]  %s6466_s5, 4096, %s79_s30, [#allocation13], %s5737_s14, %s5737_s14, %s5742_s27  }
  0x38   :  { %p5615_p10 = scmp.ne.s32.totalorder %s6461_s0, %s5614_s23  ;;  %p5618_p11 = scmp.lt.u32.totalorder %s5614_s23, %s6461_s0 }
  0x3a   :  { %p5620_p12 = pnand %p5618_p11, %p5615_p10 }
  0x3c   :  { %5623 = shalt.err (!%p5620_p12)
}
  0x3d   :  { %s5624_s28 = scalar_lea.vmem %s23_s9, 2048  ;;  %p5629_p0 = scmp.lt.s32.totalorder %s23_s9, %s23_s9 }
  0x3e   :  { %p5625_p13 = scmp.ne.s32.totalorder %s23_s9, %s5624_s28  ;;  %p5630_p1 = scmp.lt.s32.totalorder %s5624_s28, %s5624_s28 }
  0x40   :  { %p5631_p2 = por %p5630_p1, %p5629_p0 }
  0x42   :  { %p5632_p3 = pnand %p5631_p2, %p5625_p13 }
  0x44   :  { %5635 = shalt.err (!%p5632_p3)
}
  0x45   :  { %28 = dma.hbm_to_vmem [thread:$0]  %s6461_s0, 2048, %s23_s9, [#allocation4], %s5736_s13, %s5736_s13, %s5737_s14  }
  0x46   :  { %s5743_s30 = smov [#allocation8]   ;;  %s5744_s10 = smov [#allocation11]  }
  0x47   :  { %s47_s8 = sshll.u32 %s5743_s30, 4  ;;  %s69_s11 = sshll.u32 %s5744_s10, 4  ;;  %s48_s8 = int_to_ptr.vmem [resolvable:$true] %s47_s8  ;;  %s70_s11 = int_to_ptr.vmem [resolvable:$true] %s69_s11 }
  0x48   :  { %s5636_s16 = scalar_lea.hbm %s6463_s2, 512 }
  0x49   :  { %p5637_p4 = scmp.ne.s32.totalorder %s6463_s2, %s5636_s16  ;;  %p5640_p5 = scmp.lt.u32.totalorder %s5636_s16, %s6463_s2 }
  0x4b   :  { %p5642_p6 = pnand %p5640_p5, %p5637_p4 }
  0x4d   :  { %5645 = shalt.err (!%p5642_p6)
}
  0x4e   :  { %s5646_s0 = scalar_lea.vmem %s48_s8, 512  ;;  %p5651_p8 = scmp.lt.s32.totalorder %s48_s8, %s48_s8 }
  0x4f   :  { %p5647_p7 = scmp.ne.s32.totalorder %s48_s8, %s5646_s0  ;;  %p5652_p9 = scmp.lt.s32.totalorder %s5646_s0, %s5646_s0 }
  0x51   :  { %p5653_p10 = por %p5652_p9, %p5651_p8 }
  0x53   :  { %p5654_p11 = pnand %p5653_p10, %p5647_p7 }
  0x55   :  { %5657 = shalt.err (!%p5654_p11)
}
  0x56   :  { %50 = dma.hbm_to_vmem [thread:$0]  %s6463_s2, 512, %s48_s8, [#allocation7]  }
  0x57   :  { %s5658_s20 = scalar_lea.hbm %s6465_s4, 256 }
  0x58   :  { %p5659_p12 = scmp.ne.s32.totalorder %s6465_s4, %s5658_s20  ;;  %p5662_p13 = scmp.lt.u32.totalorder %s5658_s20, %s6465_s4 }
  0x5a   :  { %p5664_p0 = pnand %p5662_p13, %p5659_p12 }
  0x5c   :  { %5667 = shalt.err (!%p5664_p0)
}
  0x5d   :  { %s5668_s1 = scalar_lea.vmem %s70_s11, 256  ;;  %p5673_p2 = scmp.lt.s32.totalorder %s70_s11, %s70_s11 }
  0x5e   :  { %p5669_p1 = scmp.ne.s32.totalorder %s70_s11, %s5668_s1  ;;  %p5674_p3 = scmp.lt.s32.totalorder %s5668_s1, %s5668_s1 }
  0x60   :  { %p5675_p4 = por %p5674_p3, %p5673_p2 }
  0x62   :  { %p5676_p5 = pnand %p5675_p4, %p5669_p1 }
  0x64   :  { %5679 = shalt.err (!%p5676_p5)
}
  0x65   :  { %72 = dma.hbm_to_vmem [thread:$0]  %s6465_s4, 256, %s70_s11, [#allocation10]  }
  0x66   :  { %s5745_s26 = smov [#allocation14]   ;;  %s5680_s30 = scalar_lea.hbm %s6467_s6, 16 }
  0x67   :  { %s91_s28 = sshll.u32 %s5745_s26, 4  ;;  %p5681_p6 = scmp.ne.s32.totalorder %s6467_s6, %s5680_s30  ;;  %s92_s28 = int_to_ptr.vmem [resolvable:$true] %s91_s28 }
  0x68   :  { %p5684_p7 = scmp.lt.u32.totalorder %s5680_s30, %s6467_s6 }
  0x6a   :  { %p5686_p8 = pnand %p5684_p7, %p5681_p6 }
  0x6c   :  { %5689 = shalt.err (!%p5686_p8)
}
  0x6d   :  { %s5690_s16 = scalar_lea.vmem %s92_s28, 16  ;;  %s5694_s4 = scalar_lea.vmem %s92_s28, 32 }
  0x6e   :  { %p5691_p9 = scmp.ne.s32.totalorder %s92_s28, %s5690_s16  ;;  %p5695_p10 = scmp.lt.s32.totalorder %s92_s28, %s92_s28 }
  0x6f   :  { %p5696_p11 = scmp.lt.s32.totalorder %s5694_s4, %s5690_s16 }
  0x71   :  { %p5697_p12 = por %p5696_p11, %p5695_p10 }
  0x73   :  { %p5698_p13 = pnand %p5697_p12, %p5691_p9 }
  0x75   :  { %5701 = shalt.err (!%p5698_p13)
}
  0x76   :  { %94 = dma.hbm_to_vmem [thread:$0]  %s6467_s6, 16, %s92_s28, [#allocation13]  }
  0x77   :  { %5724 = dma.done.wait [#allocation4], 2048  }
  0x78   :  { %5725 = vsyncadd [#allocation4], 4294965248 }
  0x79   :  { %5726 = dma.done.wait [#allocation7], 66048  }
  0x7a   :  { %5727 = vsyncadd [#allocation7], 4294901248 }
  0x7b   :  { %5728 = dma.done.wait [#allocation10], 16640  }
  0x7c   :  { %5729 = vsyncadd [#allocation10], 4294950656 }
  0x7d   :  { %5730 = dma.done.wait [#allocation13], 4112  }
  0x7e   :  { %5731 = vsyncadd [#allocation13], 4294963184  ;;  %v134_v0 = vld [vmem:[#allocation6 + $0x8] sm:$0xff]  ;;  %v136_v1 = vld [vmem:[#allocation6 + $0x18] sm:$0xff]  ;;  %s5746_s6 = smov [#allocation15]  }
  0x7f   :  { %v133_v2 = vld [vmem:[#allocation6] sm:$0xff]  ;;  %v646_v3 = vunpack.c.l.s8.bf16 %v134_v0  ;;  %v654_v4 = vunpack.c.h.s8.bf16 %v134_v0  ;;  %v648_v5 = vunpack.c.l.s8.bf16 %v136_v1  ;;  %v656_v6 = vunpack.c.h.s8.bf16 %v136_v1  ;;  %v135_v7 = vld [vmem:[#allocation6 + $0x10] sm:$0xff]  ;;  %v142_v10 = vld [vmem:[#allocation6 + $0x48] sm:$0xff]  ;;  %s5233_s18 = sshll.u32 %s5746_s6, 4  ;;  %s5234_s18 = int_to_ptr.vmem [resolvable:$true] %s5233_s18 }
  0x80   :  { %v645_v8 = vunpack.c.l.s8.bf16 %v133_v2  ;;  %v647_v9 = vunpack.c.l.s8.bf16 %v135_v7  ;;  %v144_v11 = vld [vmem:[#allocation6 + $0x58] sm:$0xff]  ;;  %v653_v12 = vunpack.c.h.s8.bf16 %v133_v2  ;;  %v655_v13 = vunpack.c.h.s8.bf16 %v135_v7  ;;  %v141_v16 = vld [vmem:[#allocation6 + $0x40] sm:$0xff]  ;;  %v143_v17 = vld [vmem:[#allocation6 + $0x50] sm:$0xff]  ;;  %s5702_s3 = scalar_lea.vmem %s5234_s18, 256  ;;  %p5707_p1 = scmp.lt.s32.totalorder %s5234_s18, %s5234_s18 }
  0x81   :  { %1749 = vmatprep.subr.bf16.mxu0 %v646_v3  ;;  %2093 = vmatprep.subr.bf16.mxu1 %v648_v5  ;;  %v662_v14 = vunpack.c.l.s8.bf16 %v142_v10  ;;  %v664_v15 = vunpack.c.l.s8.bf16 %v144_v11  ;;  %v661_v18 = vunpack.c.l.s8.bf16 %v141_v16  ;;  %v663_v19 = vunpack.c.l.s8.bf16 %v143_v17  ;;  %v150_v22 = vld [vmem:[#allocation6 + $0x88] sm:$0xff]  ;;  %v152_v23 = vld [vmem:[#allocation6 + $0x98] sm:$0xff]  ;;  %v149_v28 = vld [vmem:[#allocation6 + $0x80] sm:$0xff]  ;;  %p5703_p0 = scmp.ne.s32.totalorder %s5234_s18, %s5702_s3  ;;  %p5708_p2 = scmp.lt.s32.totalorder %s5702_s3, %s5702_s3 }
  0x82   :  { %1750 = vmatpush1.bf16.msra.mxu0 %v645_v8  ;;  %2094 = vmatpush1.bf16.msra.mxu1 %v647_v9  ;;  %v670_v20 = vunpack.c.h.s8.bf16 %v142_v10  ;;  %v672_v21 = vunpack.c.h.s8.bf16 %v144_v11  ;;  %v669_v24 = vunpack.c.h.s8.bf16 %v141_v16  ;;  %v671_v25 = vunpack.c.h.s8.bf16 %v143_v17  ;;  %v151_v29 = vld [vmem:[#allocation6 + $0x90] sm:$0xff]  ;;  %v5888_v30 = vld [vmem:[#allocation3] sm:$0xff]  ;;  %v158_v37 = vld [vmem:[#allocation6 + $0xc8] sm:$0xff] }
  0x83   :  { %1751 = vmatprep.subr.bf16.mxu0 %v654_v4  ;;  %2095 = vmatprep.subr.bf16.mxu1 %v656_v6  ;;  %v678_v26 = vunpack.c.l.s8.bf16 %v150_v22  ;;  %v680_v27 = vunpack.c.l.s8.bf16 %v152_v23  ;;  %v5890_v31 = vld [vmem:[#allocation3 + $0x40] sm:$0xff]  ;;  %v677_v32 = vunpack.c.l.s8.bf16 %v149_v28  ;;  %v679_v33 = vunpack.c.l.s8.bf16 %v151_v29  ;;  %v160_v38 = vld [vmem:[#allocation6 + $0xd8] sm:$0xff]  ;;  %v159_v44 = vld [vmem:[#allocation6 + $0xd0] sm:$0xff]  ;;  %p5709_p3 = por %p5708_p2, %p5707_p1 }
  0x84   :  { %v686_v34 = vunpack.c.h.s8.bf16 %v150_v22  ;;  %v688_v35 = vunpack.c.h.s8.bf16 %v152_v23  ;;  %v5894_v36 = vcombine.high %v5888_v30, %v5890_v31  ;;  %v685_v39 = vunpack.c.h.s8.bf16 %v149_v28  ;;  %v157_v43 = vld [vmem:[#allocation6 + $0xc0] sm:$0xff]  ;;  %v166_v49 = vld [vmem:[#allocation6 + $0x108] sm:$0xff]  ;;  %v168_v50 = vld [vmem:[#allocation6 + $0x118] sm:$0xff] }
  0x85   :  { %v687_v40 = vunpack.c.h.s8.bf16 %v151_v29  ;;  %v694_v41 = vunpack.c.l.s8.bf16 %v158_v37  ;;  %v696_v42 = vunpack.c.l.s8.bf16 %v160_v38  ;;  %v693_v45 = vunpack.c.l.s8.bf16 %v157_v43  ;;  %v165_v51 = vld [vmem:[#allocation6 + $0x100] sm:$0xff]  ;;  %v167_v52 = vld [vmem:[#allocation6 + $0x110] sm:$0xff]  ;;  %v174_v61 = vld [vmem:[#allocation6 + $0x148] sm:$0xff]  ;;  %p5710_p4 = pnand %p5709_p3, %p5703_p0 }
  0x86   :  { %1752 = vmatpush1.bf16.msra.mxu0 %v653_v12  ;;  %2096 = vmatpush1.bf16.msra.mxu1 %v655_v13  ;;  %v695_v46 = vunpack.c.l.s8.bf16 %v159_v44  ;;  %v702_v47 = vunpack.c.h.s8.bf16 %v158_v37  ;;  %v704_v48 = vunpack.c.h.s8.bf16 %v160_v38  ;;  %v701_v53 = vunpack.c.h.s8.bf16 %v157_v43  ;;  %v176_v62 = vld [vmem:[#allocation6 + $0x158] sm:$0xff]  ;;  %v173_v63 = vld [vmem:[#allocation6 + $0x140] sm:$0xff]  ;;  %v175_v0 = vld [vmem:[#allocation6 + $0x150] sm:$0xff] }
  0x87   :  { %1753 = vmatprep.subr.bf16.mxu0 %v662_v14  ;;  %2097 = vmatprep.subr.bf16.mxu1 %v664_v15  ;;  %v703_v54 = vunpack.c.h.s8.bf16 %v159_v44  ;;  %v710_v55 = vunpack.c.l.s8.bf16 %v166_v49  ;;  %v712_v56 = vunpack.c.l.s8.bf16 %v168_v50  ;;  %v709_v57 = vunpack.c.l.s8.bf16 %v165_v51  ;;  %v182_v9 = vld [vmem:[#allocation6 + $0x188] sm:$0xff]  ;;  %v184_v10 = vld [vmem:[#allocation6 + $0x198] sm:$0xff]  ;;  %v181_v11 = vld [vmem:[#allocation6 + $0x180] sm:$0xff] }
  0x88   :  { %1781 = vmatprep.mubr.bf16.mxu0 %v5894_v36  ;;  %2125 = vmatprep.mubr.bf16.mxu1 %v5894_v36  ;;  %v711_v58 = vunpack.c.l.s8.bf16 %v167_v52  ;;  %v718_v59 = vunpack.c.h.s8.bf16 %v166_v49  ;;  %v720_v60 = vunpack.c.h.s8.bf16 %v168_v50  ;;  %v717_v1 = vunpack.c.h.s8.bf16 %v165_v51  ;;  %v183_v12 = vld [vmem:[#allocation6 + $0x190] sm:$0xff]  ;;  %v192_v22 = vld [vmem:[#allocation6 + $0x1d8] sm:$0xff]  ;;  %v206_v51 = vld [vmem:[#allocation6 + $0x248] sm:$0xff] }
  0x89   :  { %v719_v2 = vunpack.c.h.s8.bf16 %v167_v52  ;;  %v726_v3 = vunpack.c.l.s8.bf16 %v174_v61  ;;  %v728_v4 = vunpack.c.l.s8.bf16 %v176_v62  ;;  %v725_v5 = vunpack.c.l.s8.bf16 %v173_v63  ;;  %v191_v28 = vld [vmem:[#allocation6 + $0x1d0] sm:$0xff]  ;;  %v200_v37 = vld [vmem:[#allocation6 + $0x218] sm:$0xff] }
  0x8a   :  { %1754 = vmatpush1.bf16.msra.mxu0 %v661_v18  ;;  %2098 = vmatpush1.bf16.msra.mxu1 %v663_v19  ;;  %v727_v6 = vunpack.c.l.s8.bf16 %v175_v0  ;;  %v734_v7 = vunpack.c.h.s8.bf16 %v174_v61  ;;  %v736_v8 = vunpack.c.h.s8.bf16 %v176_v62  ;;  %v733_v13 = vunpack.c.h.s8.bf16 %v173_v63  ;;  %v199_v43 = vld [vmem:[#allocation6 + $0x210] sm:$0xff]  ;;  %v208_v52 = vld [vmem:[#allocation6 + $0x258] sm:$0xff]  ;;  %v214_v62 = vld [vmem:[#allocation6 + $0x288] sm:$0xff] }
  0x8b   :  { %1755 = vmatprep.subr.bf16.mxu0 %v670_v20  ;;  %2099 = vmatprep.subr.bf16.mxu1 %v672_v21  ;;  %v735_v14 = vunpack.c.h.s8.bf16 %v175_v0  ;;  %v742_v15 = vunpack.c.l.s8.bf16 %v182_v9  ;;  %v744_v16 = vunpack.c.l.s8.bf16 %v184_v10  ;;  %v741_v17 = vunpack.c.l.s8.bf16 %v181_v11  ;;  %v190_v21 = vld [vmem:[#allocation6 + $0x1c8] sm:$0xff]  ;;  %v216_v63 = vld [vmem:[#allocation6 + $0x298] sm:$0xff] }
  0x8c   :  { %v743_v18 = vunpack.c.l.s8.bf16 %v183_v12  ;;  %v750_v19 = vunpack.c.h.s8.bf16 %v182_v9  ;;  %v752_v20 = vunpack.c.h.s8.bf16 %v184_v10  ;;  %v749_v23 = vunpack.c.h.s8.bf16 %v181_v11  ;;  %v222_v10 = vld [vmem:[#allocation6 + $0x2c8] sm:$0xff]  ;;  %v224_v11 = vld [vmem:[#allocation6 + $0x2d8] sm:$0xff] }
  0x8d   :  { %v5900_v44 = vcombine.low %v5888_v30, %v5890_v31  ;;  %v784_v50 = vunpack.c.h.s8.bf16 %v200_v37  ;;  %v783_v31 = vunpack.c.h.s8.bf16 %v199_v43  ;;  %v800_v61 = vunpack.c.h.s8.bf16 %v208_v52 }
  0x8e   :  { %1756 = vmatpush1.bf16.msra.mxu0 %v669_v24  ;;  %2100 = vmatpush1.bf16.msra.mxu1 %v671_v25  ;;  %v751_v24 = vunpack.c.h.s8.bf16 %v183_v12  ;;  %v758_v25 = vunpack.c.l.s8.bf16 %v190_v21  ;;  %v816_v9 = vunpack.c.h.s8.bf16 %v216_v63 }
  0x8f   :  { %1757 = vmatprep.subr.bf16.mxu0 %v678_v26  ;;  %2101 = vmatprep.subr.bf16.mxu1 %v680_v27  ;;  %v760_v26 = vunpack.c.l.s8.bf16 %v192_v22  ;;  %v189_v27 = vld [vmem:[#allocation6 + $0x1c0] sm:$0xff] }
  0x90   :  { %v757_v29 = vunpack.c.l.s8.bf16 %v189_v27  ;;  %v765_v38 = vunpack.c.h.s8.bf16 %v189_v27 }
  0x92   :  { %1758 = vmatpush1.bf16.msra.mxu0 %v677_v32  ;;  %2102 = vmatpush1.bf16.msra.mxu1 %v679_v33  ;;  %v759_v32 = vunpack.c.l.s8.bf16 %v191_v28  ;;  %v766_v33 = vunpack.c.h.s8.bf16 %v190_v21  ;;  %v832_v21 = vunpack.c.h.s8.bf16 %v224_v11 }
  0x93   :  { %1759 = vmatprep.subr.bf16.mxu0 %v686_v34  ;;  %2103 = vmatprep.subr.bf16.mxu1 %v688_v35  ;;  %v768_v34 = vunpack.c.h.s8.bf16 %v192_v22  ;;  %v198_v35 = vld [vmem:[#allocation6 + $0x208] sm:$0xff] }
  0x94   :  { %v782_v49 = vunpack.c.h.s8.bf16 %v198_v35  ;;  %v230_v22 = vld [vmem:[#allocation6 + $0x308] sm:$0xff] }
  0x96   :  { %1760 = vmatpush1.bf16.msra.mxu0 %v685_v39  ;;  %2104 = vmatpush1.bf16.msra.mxu1 %v687_v40  ;;  %v767_v39 = vunpack.c.h.s8.bf16 %v191_v28  ;;  %v774_v40 = vunpack.c.l.s8.bf16 %v198_v35  ;;  %v229_v28 = vld [vmem:[#allocation6 + $0x300] sm:$0xff] }
  0x97   :  { %1761 = vmatprep.subr.bf16.mxu0 %v694_v41  ;;  %2105 = vmatprep.subr.bf16.mxu1 %v696_v42  ;;  %v776_v41 = vunpack.c.l.s8.bf16 %v200_v37  ;;  %v197_v42 = vld [vmem:[#allocation6 + $0x200] sm:$0xff]  ;;  %v238_v37 = vld [vmem:[#allocation6 + $0x348] sm:$0xff] }
  0x98   :  { %v781_v30 = vunpack.c.h.s8.bf16 %v197_v42 }
  0x9a   :  { %1762 = vmatpush1.bf16.msra.mxu0 %v693_v45  ;;  %2106 = vmatpush1.bf16.msra.mxu1 %v695_v46  ;;  %v5902_v45 = vld [vmem:[#allocation3 + $0x8] sm:$0xff] }
  0x9b   :  { %1763 = vmatprep.subr.bf16.mxu0 %v702_v47  ;;  %2107 = vmatprep.subr.bf16.mxu1 %v704_v48  ;;  %v5904_v46 = vld [vmem:[#allocation3 + $0x48] sm:$0xff]  ;;  %v773_v47 = vunpack.c.l.s8.bf16 %v197_v42  ;;  %v775_v48 = vunpack.c.l.s8.bf16 %v199_v43  ;;  %v237_v43 = vld [vmem:[#allocation6 + $0x340] sm:$0xff] }
  0x9e   :  { %1764 = vmatpush1.bf16.msra.mxu0 %v701_v53  ;;  %2108 = vmatpush1.bf16.msra.mxu1 %v703_v54  ;;  %v5908_v53 = vcombine.high %v5902_v45, %v5904_v46  ;;  %v790_v54 = vunpack.c.l.s8.bf16 %v206_v51 }
  0x9f   :  { %1765 = vmatprep.subr.bf16.mxu0 %v710_v55  ;;  %2109 = vmatprep.subr.bf16.mxu1 %v712_v56  ;;  %v792_v55 = vunpack.c.l.s8.bf16 %v208_v52  ;;  %v205_v56 = vld [vmem:[#allocation6 + $0x240] sm:$0xff]  ;;  %v246_v52 = vld [vmem:[#allocation6 + $0x388] sm:$0xff] }
  0xa0   :  { %v797_v0 = vunpack.c.h.s8.bf16 %v205_v56 }
  0xa2   :  { %1766 = vmatpush1.bf16.msra.mxu0 %v709_v57  ;;  %2110 = vmatpush1.bf16.msra.mxu1 %v711_v58  ;;  %v207_v57 = vld [vmem:[#allocation6 + $0x250] sm:$0xff]  ;;  %v789_v58 = vunpack.c.l.s8.bf16 %v205_v56 }
  0xa3   :  { %1767 = vmatprep.subr.bf16.mxu0 %v718_v59  ;;  %2111 = vmatprep.subr.bf16.mxu1 %v720_v60  ;;  %v791_v59 = vunpack.c.l.s8.bf16 %v207_v57  ;;  %v798_v60 = vunpack.c.h.s8.bf16 %v206_v51 }
  0xa6   :  { %1768 = vmatpush1.bf16.msra.mxu0 %v717_v1  ;;  %2112 = vmatpush1.bf16.msra.mxu1 %v719_v2  ;;  %v799_v1 = vunpack.c.h.s8.bf16 %v207_v57  ;;  %v806_v2 = vunpack.c.l.s8.bf16 %v214_v62  ;;  %v245_v57 = vld [vmem:[#allocation6 + $0x380] sm:$0xff] }
  0xa7   :  { %1769 = vmatprep.subr.bf16.mxu0 %v726_v3  ;;  %2113 = vmatprep.subr.bf16.mxu1 %v728_v4  ;;  %v808_v3 = vunpack.c.l.s8.bf16 %v216_v63  ;;  %v213_v4 = vld [vmem:[#allocation6 + $0x280] sm:$0xff]  ;;  %v254_v63 = vld [vmem:[#allocation6 + $0x3c8] sm:$0xff] }
  0xa8   :  { %v813_v12 = vunpack.c.h.s8.bf16 %v213_v4 }
  0xaa   :  { %1770 = vmatpush1.bf16.msra.mxu0 %v725_v5  ;;  %2114 = vmatpush1.bf16.msra.mxu1 %v727_v6  ;;  %v215_v5 = vld [vmem:[#allocation6 + $0x290] sm:$0xff]  ;;  %v805_v6 = vunpack.c.l.s8.bf16 %v213_v4 }
  0xab   :  { %1771 = vmatprep.subr.bf16.mxu0 %v734_v7  ;;  %2115 = vmatprep.subr.bf16.mxu1 %v736_v8  ;;  %v807_v7 = vunpack.c.l.s8.bf16 %v215_v5  ;;  %v814_v8 = vunpack.c.h.s8.bf16 %v214_v62 }
  0xae   :  { %1772 = vmatpush1.bf16.msra.mxu0 %v733_v13  ;;  %2116 = vmatpush1.bf16.msra.mxu1 %v735_v14  ;;  %v815_v13 = vunpack.c.h.s8.bf16 %v215_v5  ;;  %v822_v14 = vunpack.c.l.s8.bf16 %v222_v10  ;;  %v253_v5 = vld [vmem:[#allocation6 + $0x3c0] sm:$0xff] }
  0xaf   :  { %1773 = vmatprep.subr.bf16.mxu0 %v742_v15  ;;  %2117 = vmatprep.subr.bf16.mxu1 %v744_v16  ;;  %v824_v15 = vunpack.c.l.s8.bf16 %v224_v11  ;;  %v221_v16 = vld [vmem:[#allocation6 + $0x2c0] sm:$0xff]  ;;  %v262_v11 = vld [vmem:[#allocation6 + $0x408] sm:$0xff] }
  0xb2   :  { %1774 = vmatpush1.bf16.msra.mxu0 %v741_v17  ;;  %2118 = vmatpush1.bf16.msra.mxu1 %v743_v18  ;;  %v223_v17 = vld [vmem:[#allocation6 + $0x2d0] sm:$0xff]  ;;  %v821_v18 = vunpack.c.l.s8.bf16 %v221_v16 }
  0xb3   :  { %1775 = vmatprep.subr.bf16.mxu0 %v750_v19  ;;  %2119 = vmatprep.subr.bf16.mxu1 %v752_v20  ;;  %v823_v19 = vunpack.c.l.s8.bf16 %v223_v17  ;;  %v830_v20 = vunpack.c.h.s8.bf16 %v222_v10 }
  0xb6   :  { %1776 = vmatpush1.bf16.msra.mxu0 %v749_v23  ;;  %2120 = vmatpush1.bf16.msra.mxu1 %v751_v24  ;;  %v232_v23 = vld [vmem:[#allocation6 + $0x318] sm:$0xff]  ;;  %v829_v24 = vunpack.c.h.s8.bf16 %v221_v16 }
  0xb7   :  { %1777 = vmatprep.subr.bf16.mxu0 %v758_v25  ;;  %2121 = vmatprep.subr.bf16.mxu1 %v760_v26  ;;  %v831_v25 = vunpack.c.h.s8.bf16 %v223_v17  ;;  %v838_v26 = vunpack.c.l.s8.bf16 %v230_v22  ;;  %v840_v27 = vunpack.c.l.s8.bf16 %v232_v23  ;;  %v848_v35 = vunpack.c.h.s8.bf16 %v232_v23  ;;  %v261_v17 = vld [vmem:[#allocation6 + $0x400] sm:$0xff] }
  0xba   :  { %1778 = vmatpush1.bf16.msra.mxu0 %v757_v29  ;;  %2122 = vmatpush1.bf16.msra.mxu1 %v759_v32  ;;  %v231_v29 = vld [vmem:[#allocation6 + $0x310] sm:$0xff]  ;;  %v837_v32 = vunpack.c.l.s8.bf16 %v229_v28 }
  0xbb   :  { %1779 = vmatprep.subr.bf16.mxu0 %v766_v33  ;;  %2123 = vmatprep.subr.bf16.mxu1 %v768_v34  ;;  %v839_v33 = vunpack.c.l.s8.bf16 %v231_v29  ;;  %v846_v34 = vunpack.c.h.s8.bf16 %v230_v22  ;;  %v901_v22 = vunpack.c.l.s8.bf16 %v261_v17 }
  0xbe   :  { %1780 = vmatpush1.bf16.msra.mxu0 %v765_v38  ;;  %2124 = vmatpush1.bf16.msra.mxu1 %v767_v39  ;;  %v240_v38 = vld [vmem:[#allocation6 + $0x358] sm:$0xff]  ;;  %v845_v39 = vunpack.c.h.s8.bf16 %v229_v28 }
  0xbf   :  { %1792 = vmatprep.subr.bf16.mxu0 %v774_v40  ;;  %2136 = vmatprep.subr.bf16.mxu1 %v776_v41  ;;  %v847_v40 = vunpack.c.h.s8.bf16 %v231_v29  ;;  %v854_v41 = vunpack.c.l.s8.bf16 %v238_v37  ;;  %v856_v42 = vunpack.c.l.s8.bf16 %v240_v38  ;;  %v864_v51 = vunpack.c.h.s8.bf16 %v240_v38 }
  0xc1   :  { %1782 = vmatmul.mubr.bf16.vlgmr.msra.gmra.mrb[0].mxu0 %v5900_v44  ;;  %2126 = vmatmul.mubr.bf16.vlgmr.msra.gmra.mrb[0].mxu1 %v5900_v44 }
  0xc2   :  { %1793 = vmatpush1.bf16.msra.mxu0 %v773_v47  ;;  %2137 = vmatpush1.bf16.msra.mxu1 %v775_v48  ;;  %v239_v47 = vld [vmem:[#allocation6 + $0x350] sm:$0xff]  ;;  %v853_v48 = vunpack.c.l.s8.bf16 %v237_v43 }
  0xc3   :  { %1794 = vmatprep.subr.bf16.mxu0 %v782_v49  ;;  %2138 = vmatprep.subr.bf16.mxu1 %v784_v50  ;;  %v855_v49 = vunpack.c.l.s8.bf16 %v239_v47  ;;  %v862_v50 = vunpack.c.h.s8.bf16 %v238_v37 }
  0xc4   :  { %1824 = vmatprep.mubr.bf16.mxu0 %v5908_v53  ;;  %2168 = vmatprep.mubr.bf16.mxu1 %v5908_v53 }
  0xc6   :  { %1795 = vmatpush1.bf16.msra.mxu0 %v781_v30  ;;  %2139 = vmatpush1.bf16.msra.mxu1 %v783_v31  ;;  %v248_v30 = vld [vmem:[#allocation6 + $0x398] sm:$0xff]  ;;  %v861_v31 = vunpack.c.h.s8.bf16 %v237_v43 }
  0xc7   :  { %1796 = vmatprep.subr.bf16.mxu0 %v790_v54  ;;  %2140 = vmatprep.subr.bf16.mxu1 %v792_v55  ;;  %v863_v54 = vunpack.c.h.s8.bf16 %v239_v47  ;;  %v870_v55 = vunpack.c.l.s8.bf16 %v246_v52  ;;  %v872_v56 = vunpack.c.l.s8.bf16 %v248_v30  ;;  %v880_v62 = vunpack.c.h.s8.bf16 %v248_v30 }
  0xca   :  { %1797 = vmatpush1.bf16.msra.mxu0 %v789_v58  ;;  %2141 = vmatpush1.bf16.msra.mxu1 %v791_v59  ;;  %v247_v58 = vld [vmem:[#allocation6 + $0x390] sm:$0xff]  ;;  %v869_v59 = vunpack.c.l.s8.bf16 %v245_v57 }
  0xcb   :  { %1798 = vmatprep.subr.bf16.mxu0 %v798_v60  ;;  %2142 = vmatprep.subr.bf16.mxu1 %v800_v61  ;;  %v871_v60 = vunpack.c.l.s8.bf16 %v247_v58  ;;  %v878_v61 = vunpack.c.h.s8.bf16 %v246_v52 }
  0xce   :  { %1799 = vmatpush1.bf16.msra.mxu0 %v797_v0  ;;  %2143 = vmatpush1.bf16.msra.mxu1 %v799_v1  ;;  %v256_v0 = vld [vmem:[#allocation6 + $0x3d8] sm:$0xff]  ;;  %v877_v1 = vunpack.c.h.s8.bf16 %v245_v57 }
  0xcf   :  { %1800 = vmatprep.subr.bf16.mxu0 %v806_v2  ;;  %2144 = vmatprep.subr.bf16.mxu1 %v808_v3  ;;  %v879_v2 = vunpack.c.h.s8.bf16 %v247_v58  ;;  %v886_v3 = vunpack.c.l.s8.bf16 %v254_v63  ;;  %v888_v4 = vunpack.c.l.s8.bf16 %v256_v0  ;;  %v896_v10 = vunpack.c.h.s8.bf16 %v256_v0 }
  0xd2   :  { %1801 = vmatpush1.bf16.msra.mxu0 %v805_v6  ;;  %2145 = vmatpush1.bf16.msra.mxu1 %v807_v7  ;;  %v255_v6 = vld [vmem:[#allocation6 + $0x3d0] sm:$0xff]  ;;  %v885_v7 = vunpack.c.l.s8.bf16 %v253_v5 }
  0xd3   :  { %1802 = vmatprep.subr.bf16.mxu0 %v814_v8  ;;  %2146 = vmatprep.subr.bf16.mxu1 %v816_v9  ;;  %v887_v8 = vunpack.c.l.s8.bf16 %v255_v6  ;;  %v894_v9 = vunpack.c.h.s8.bf16 %v254_v63 }
  0xd6   :  { %1803 = vmatpush1.bf16.msra.mxu0 %v813_v12  ;;  %2147 = vmatpush1.bf16.msra.mxu1 %v815_v13  ;;  %v264_v12 = vld [vmem:[#allocation6 + $0x418] sm:$0xff]  ;;  %v893_v13 = vunpack.c.h.s8.bf16 %v253_v5 }
  0xd7   :  { %1804 = vmatprep.subr.bf16.mxu0 %v822_v14  ;;  %2148 = vmatprep.subr.bf16.mxu1 %v824_v15  ;;  %v895_v14 = vunpack.c.h.s8.bf16 %v255_v6  ;;  %v902_v15 = vunpack.c.l.s8.bf16 %v262_v11  ;;  %v904_v16 = vunpack.c.l.s8.bf16 %v264_v12 }
  0xda   :  { %1805 = vmatpush1.bf16.msra.mxu0 %v821_v18  ;;  %2149 = vmatpush1.bf16.msra.mxu1 %v823_v19  ;;  %v263_v18 = vld [vmem:[#allocation6 + $0x410] sm:$0xff]  ;;  %v5916_v19 = vcombine.low %v5902_v45, %v5904_v46  ;;  %v909_v45 = vunpack.c.h.s8.bf16 %v261_v17 }
  0xdb   :  { %1806 = vmatprep.subr.bf16.mxu0 %v830_v20  ;;  %2150 = vmatprep.subr.bf16.mxu1 %v832_v21  ;;  %v5918_v20 = vld [vmem:[#allocation3 + $0x10] sm:$0xff]  ;;  %v903_v23 = vunpack.c.l.s8.bf16 %v263_v18  ;;  %v911_v46 = vunpack.c.h.s8.bf16 %v263_v18 }
  0xdc   :  { %v5920_v21 = vld [vmem:[#allocation3 + $0x50] sm:$0xff] }
  0xdd   :  { %v5924_v28 = vcombine.high %v5918_v20, %v5920_v21 }
  0xde   :  { %1807 = vmatpush1.bf16.msra.mxu0 %v829_v24  ;;  %2151 = vmatpush1.bf16.msra.mxu1 %v831_v25  ;;  %v910_v24 = vunpack.c.h.s8.bf16 %v262_v11  ;;  %v912_v25 = vunpack.c.h.s8.bf16 %v264_v12 }
  0xdf   :  { %1808 = vmatprep.subr.bf16.mxu0 %v838_v26  ;;  %2152 = vmatprep.subr.bf16.mxu1 %v840_v27  ;;  %v270_v26 = vld [vmem:[#allocation6 + $0x448] sm:$0xff]  ;;  %v272_v27 = vld [vmem:[#allocation6 + $0x458] sm:$0xff] }
  0xe0   :  { %v918_v29 = vunpack.c.l.s8.bf16 %v270_v26  ;;  %v926_v38 = vunpack.c.h.s8.bf16 %v270_v26 }
  0xe2   :  { %1809 = vmatpush1.bf16.msra.mxu0 %v837_v32  ;;  %2153 = vmatpush1.bf16.msra.mxu1 %v839_v33  ;;  %v920_v32 = vunpack.c.l.s8.bf16 %v272_v27  ;;  %v269_v33 = vld [vmem:[#allocation6 + $0x440] sm:$0xff] }
  0xe3   :  { %1810 = vmatprep.subr.bf16.mxu0 %v846_v34  ;;  %2154 = vmatprep.subr.bf16.mxu1 %v848_v35  ;;  %v271_v34 = vld [vmem:[#allocation6 + $0x450] sm:$0xff]  ;;  %v917_v35 = vunpack.c.l.s8.bf16 %v269_v33 }
  0xe4   :  { %v919_v37 = vunpack.c.l.s8.bf16 %v271_v34  ;;  %v927_v43 = vunpack.c.h.s8.bf16 %v271_v34 }
  0xe6   :  { %1811 = vmatpush1.bf16.msra.mxu0 %v845_v39  ;;  %2155 = vmatpush1.bf16.msra.mxu1 %v847_v40  ;;  %v928_v39 = vunpack.c.h.s8.bf16 %v272_v27  ;;  %v278_v40 = vld [vmem:[#allocation6 + $0x488] sm:$0xff] }
  0xe7   :  { %1812 = vmatprep.subr.bf16.mxu0 %v854_v41  ;;  %2156 = vmatprep.subr.bf16.mxu1 %v856_v42  ;;  %v280_v41 = vld [vmem:[#allocation6 + $0x498] sm:$0xff]  ;;  %v925_v42 = vunpack.c.h.s8.bf16 %v269_v33  ;;  %v934_v47 = vunpack.c.l.s8.bf16 %v278_v40  ;;  %v942_v30 = vunpack.c.h.s8.bf16 %v278_v40 }
  0xea   :  { %1813 = vmatpush1.bf16.msra.mxu0 %v853_v48  ;;  %2157 = vmatpush1.bf16.msra.mxu1 %v855_v49  ;;  %v936_v48 = vunpack.c.l.s8.bf16 %v280_v41  ;;  %v277_v49 = vld [vmem:[#allocation6 + $0x480] sm:$0xff] }
  0xeb   :  { %1814 = vmatprep.subr.bf16.mxu0 %v862_v50  ;;  %2158 = vmatprep.subr.bf16.mxu1 %v864_v51  ;;  %v279_v50 = vld [vmem:[#allocation6 + $0x490] sm:$0xff]  ;;  %v933_v51 = vunpack.c.l.s8.bf16 %v277_v49 }
  0xec   :  { %v935_v52 = vunpack.c.l.s8.bf16 %v279_v50  ;;  %v943_v57 = vunpack.c.h.s8.bf16 %v279_v50 }
  0xee   :  { %1815 = vmatpush1.bf16.msra.mxu0 %v861_v31  ;;  %2159 = vmatpush1.bf16.msra.mxu1 %v863_v54  ;;  %v944_v31 = vunpack.c.h.s8.bf16 %v280_v41  ;;  %v286_v54 = vld [vmem:[#allocation6 + $0x4c8] sm:$0xff] }
  0xef   :  { %1816 = vmatprep.subr.bf16.mxu0 %v870_v55  ;;  %2160 = vmatprep.subr.bf16.mxu1 %v872_v56  ;;  %v288_v55 = vld [vmem:[#allocation6 + $0x4d8] sm:$0xff]  ;;  %v941_v56 = vunpack.c.h.s8.bf16 %v277_v49  ;;  %v950_v58 = vunpack.c.l.s8.bf16 %v286_v54  ;;  %v958_v0 = vunpack.c.h.s8.bf16 %v286_v54 }
  0xf2   :  { %1817 = vmatpush1.bf16.msra.mxu0 %v869_v59  ;;  %2161 = vmatpush1.bf16.msra.mxu1 %v871_v60  ;;  %v952_v59 = vunpack.c.l.s8.bf16 %v288_v55  ;;  %v285_v60 = vld [vmem:[#allocation6 + $0x4c0] sm:$0xff] }
  0xf3   :  { %1818 = vmatprep.subr.bf16.mxu0 %v878_v61  ;;  %2162 = vmatprep.subr.bf16.mxu1 %v880_v62  ;;  %v287_v61 = vld [vmem:[#allocation6 + $0x4d0] sm:$0xff]  ;;  %v949_v62 = vunpack.c.l.s8.bf16 %v285_v60 }
  0xf4   :  { %v951_v63 = vunpack.c.l.s8.bf16 %v287_v61  ;;  %v959_v5 = vunpack.c.h.s8.bf16 %v287_v61 }
  0xf6   :  { %1819 = vmatpush1.bf16.msra.mxu0 %v877_v1  ;;  %2163 = vmatpush1.bf16.msra.mxu1 %v879_v2  ;;  %v960_v1 = vunpack.c.h.s8.bf16 %v288_v55  ;;  %v294_v2 = vld [vmem:[#allocation6 + $0x508] sm:$0xff] }
  0xf7   :  { %1820 = vmatprep.subr.bf16.mxu0 %v886_v3  ;;  %2164 = vmatprep.subr.bf16.mxu1 %v888_v4  ;;  %v296_v3 = vld [vmem:[#allocation6 + $0x518] sm:$0xff]  ;;  %v957_v4 = vunpack.c.h.s8.bf16 %v285_v60  ;;  %v966_v6 = vunpack.c.l.s8.bf16 %v294_v2  ;;  %v974_v12 = vunpack.c.h.s8.bf16 %v294_v2 }
  0xf8   :  { %v5934_v2 = vld [vmem:[#allocation3 + $0x18] sm:$0xff] }
  0xfa   :  { %1821 = vmatpush1.bf16.msra.mxu0 %v885_v7  ;;  %2165 = vmatpush1.bf16.msra.mxu1 %v887_v8  ;;  %v968_v7 = vunpack.c.l.s8.bf16 %v296_v3  ;;  %v293_v8 = vld [vmem:[#allocation6 + $0x500] sm:$0xff] }
  0xfb   :  { %1822 = vmatprep.subr.bf16.mxu0 %v894_v9  ;;  %2166 = vmatprep.subr.bf16.mxu1 %v896_v10  ;;  %v295_v9 = vld [vmem:[#allocation6 + $0x510] sm:$0xff]  ;;  %v965_v10 = vunpack.c.l.s8.bf16 %v293_v8 }
  0xfc   :  { %v967_v11 = vunpack.c.l.s8.bf16 %v295_v9  ;;  %v975_v17 = vunpack.c.h.s8.bf16 %v295_v9  ;;  %v336_v9 = vld [vmem:[#allocation6 + $0x658] sm:$0xff] }
  0xfe   :  { %1823 = vmatpush1.bf16.msra.mxu0 %v893_v13  ;;  %2167 = vmatpush1.bf16.msra.mxu1 %v895_v14  ;;  %v976_v13 = vunpack.c.h.s8.bf16 %v296_v3  ;;  %v302_v14 = vld [vmem:[#allocation6 + $0x548] sm:$0xff]  ;;  %v5936_v3 = vld [vmem:[#allocation3 + $0x58] sm:$0xff] }
  0xff   :  { %1835 = vmatprep.subr.bf16.mxu0 %v902_v15  ;;  %2179 = vmatprep.subr.bf16.mxu1 %v904_v16  ;;  %v304_v15 = vld [vmem:[#allocation6 + $0x558] sm:$0xff]  ;;  %v973_v16 = vunpack.c.h.s8.bf16 %v293_v8  ;;  %v982_v18 = vunpack.c.l.s8.bf16 %v302_v14  ;;  %v990_v27 = vunpack.c.h.s8.bf16 %v302_v14  ;;  %v334_v8 = vld [vmem:[#allocation6 + $0x648] sm:$0xff]  ;;  %v335_v14 = vld [vmem:[#allocation6 + $0x650] sm:$0xff] }
 0x101   :  { %1825 = vmatmul.mubr.bf16.vlgmr.msra.gmra.mrb[0].mxu0 %v5916_v19  ;;  %2169 = vmatmul.mubr.bf16.vlgmr.msra.gmra.mrb[0].mxu1 %v5916_v19 }
 0x102   :  { %1836 = vmatpush1.bf16.msra.mxu0 %v901_v22  ;;  %2180 = vmatpush1.bf16.msra.mxu1 %v903_v23  ;;  %v984_v22 = vunpack.c.l.s8.bf16 %v304_v15  ;;  %v301_v23 = vld [vmem:[#allocation6 + $0x540] sm:$0xff] }
 0x103   :  { %1837 = vmatprep.subr.bf16.mxu0 %v910_v24  ;;  %2181 = vmatprep.subr.bf16.mxu1 %v912_v25  ;;  %v303_v24 = vld [vmem:[#allocation6 + $0x550] sm:$0xff]  ;;  %v981_v25 = vunpack.c.l.s8.bf16 %v301_v23 }
 0x104   :  { %1867 = vmatprep.mubr.bf16.mxu0 %v5924_v28  ;;  %2211 = vmatprep.mubr.bf16.mxu1 %v5924_v28  ;;  %v983_v26 = vunpack.c.l.s8.bf16 %v303_v24  ;;  %v991_v33 = vunpack.c.h.s8.bf16 %v303_v24 }
 0x106   :  { %1838 = vmatpush1.bf16.msra.mxu0 %v909_v45  ;;  %2182 = vmatpush1.bf16.msra.mxu1 %v911_v46  ;;  %v992_v45 = vunpack.c.h.s8.bf16 %v304_v15  ;;  %v310_v46 = vld [vmem:[#allocation6 + $0x588] sm:$0xff] }
 0x107   :  { %1839 = vmatprep.subr.bf16.mxu0 %v918_v29  ;;  %2183 = vmatprep.subr.bf16.mxu1 %v920_v32  ;;  %v312_v29 = vld [vmem:[#allocation6 + $0x598] sm:$0xff]  ;;  %v989_v32 = vunpack.c.h.s8.bf16 %v301_v23  ;;  %v998_v34 = vunpack.c.l.s8.bf16 %v310_v46  ;;  %v1006_v41 = vunpack.c.h.s8.bf16 %v310_v46  ;;  %v343_v46 = vld [vmem:[#allocation6 + $0x690] sm:$0xff] }
 0x108   :  { %v344_v23 = vld [vmem:[#allocation6 + $0x698] sm:$0xff] }
 0x10a   :  { %1840 = vmatpush1.bf16.msra.mxu0 %v917_v35  ;;  %2184 = vmatpush1.bf16.msra.mxu1 %v919_v37  ;;  %v1000_v35 = vunpack.c.l.s8.bf16 %v312_v29  ;;  %v309_v37 = vld [vmem:[#allocation6 + $0x580] sm:$0xff] }
 0x10b   :  { %1841 = vmatprep.subr.bf16.mxu0 %v926_v38  ;;  %2185 = vmatprep.subr.bf16.mxu1 %v928_v39  ;;  %v311_v38 = vld [vmem:[#allocation6 + $0x590] sm:$0xff]  ;;  %v997_v39 = vunpack.c.l.s8.bf16 %v309_v37 }
 0x10c   :  { %v999_v40 = vunpack.c.l.s8.bf16 %v311_v38  ;;  %v1007_v49 = vunpack.c.h.s8.bf16 %v311_v38 }
 0x10e   :  { %1842 = vmatpush1.bf16.msra.mxu0 %v925_v42  ;;  %2186 = vmatpush1.bf16.msra.mxu1 %v927_v43  ;;  %v1008_v42 = vunpack.c.h.s8.bf16 %v312_v29  ;;  %v318_v43 = vld [vmem:[#allocation6 + $0x5c8] sm:$0xff] }
 0x10f   :  { %1843 = vmatprep.subr.bf16.mxu0 %v934_v47  ;;  %2187 = vmatprep.subr.bf16.mxu1 %v936_v48  ;;  %v320_v47 = vld [vmem:[#allocation6 + $0x5d8] sm:$0xff]  ;;  %v1005_v48 = vunpack.c.h.s8.bf16 %v309_v37  ;;  %v1014_v50 = vunpack.c.l.s8.bf16 %v318_v43  ;;  %v1022_v55 = vunpack.c.h.s8.bf16 %v318_v43  ;;  %v351_v43 = vld [vmem:[#allocation6 + $0x6d0] sm:$0xff] }
 0x110   :  { %v352_v37 = vld [vmem:[#allocation6 + $0x6d8] sm:$0xff] }
 0x112   :  { %1844 = vmatpush1.bf16.msra.mxu0 %v933_v51  ;;  %2188 = vmatpush1.bf16.msra.mxu1 %v935_v52  ;;  %v1016_v51 = vunpack.c.l.s8.bf16 %v320_v47  ;;  %v317_v52 = vld [vmem:[#allocation6 + $0x5c0] sm:$0xff] }
 0x113   :  { %1845 = vmatprep.subr.bf16.mxu0 %v942_v30  ;;  %2189 = vmatprep.subr.bf16.mxu1 %v944_v31  ;;  %v319_v30 = vld [vmem:[#allocation6 + $0x5d0] sm:$0xff]  ;;  %v1013_v31 = vunpack.c.l.s8.bf16 %v317_v52 }
 0x114   :  { %v1015_v54 = vunpack.c.l.s8.bf16 %v319_v30  ;;  %v1023_v60 = vunpack.c.h.s8.bf16 %v319_v30 }
 0x116   :  { %1846 = vmatpush1.bf16.msra.mxu0 %v941_v56  ;;  %2190 = vmatpush1.bf16.msra.mxu1 %v943_v57  ;;  %v1024_v56 = vunpack.c.h.s8.bf16 %v320_v47  ;;  %v326_v57 = vld [vmem:[#allocation6 + $0x608] sm:$0xff] }
 0x117   :  { %1847 = vmatprep.subr.bf16.mxu0 %v950_v58  ;;  %2191 = vmatprep.subr.bf16.mxu1 %v952_v59  ;;  %v328_v58 = vld [vmem:[#allocation6 + $0x618] sm:$0xff]  ;;  %v1021_v59 = vunpack.c.h.s8.bf16 %v317_v52  ;;  %v1030_v61 = vunpack.c.l.s8.bf16 %v326_v57 }
 0x118   :  { %v360_v52 = vld [vmem:[#allocation6 + $0x718] sm:$0xff] }
 0x11a   :  { %1848 = vmatpush1.bf16.msra.mxu0 %v949_v62  ;;  %2192 = vmatpush1.bf16.msra.mxu1 %v951_v63  ;;  %v1032_v62 = vunpack.c.l.s8.bf16 %v328_v58  ;;  %v325_v63 = vld [vmem:[#allocation6 + $0x600] sm:$0xff] }
 0x11b   :  { %1849 = vmatprep.subr.bf16.mxu0 %v958_v0  ;;  %2193 = vmatprep.subr.bf16.mxu1 %v960_v1  ;;  %v327_v0 = vld [vmem:[#allocation6 + $0x610] sm:$0xff]  ;;  %v5932_v1 = vcombine.low %v5918_v20, %v5920_v21  ;;  %v1037_v20 = vunpack.c.h.s8.bf16 %v325_v63 }
 0x11c   :  { %v1039_v21 = vunpack.c.h.s8.bf16 %v327_v0 }
 0x11e   :  { %1850 = vmatpush1.bf16.msra.mxu0 %v957_v4  ;;  %2194 = vmatpush1.bf16.msra.mxu1 %v959_v5  ;;  %v1029_v4 = vunpack.c.l.s8.bf16 %v325_v63  ;;  %v1031_v5 = vunpack.c.l.s8.bf16 %v327_v0  ;;  %v368_v63 = vld [vmem:[#allocation6 + $0x758] sm:$0xff] }
 0x11f   :  { %1851 = vmatprep.subr.bf16.mxu0 %v966_v6  ;;  %2195 = vmatprep.subr.bf16.mxu1 %v968_v7  ;;  %v1038_v6 = vunpack.c.h.s8.bf16 %v326_v57  ;;  %v1040_v7 = vunpack.c.h.s8.bf16 %v328_v58  ;;  %v359_v57 = vld [vmem:[#allocation6 + $0x710] sm:$0xff] }
 0x122   :  { %1852 = vmatpush1.bf16.msra.mxu0 %v965_v10  ;;  %2196 = vmatpush1.bf16.msra.mxu1 %v967_v11  ;;  %v5940_v10 = vcombine.high %v5934_v2, %v5936_v3  ;;  %v1046_v11 = vunpack.c.l.s8.bf16 %v334_v8 }
 0x123   :  { %1853 = vmatprep.subr.bf16.mxu0 %v974_v12  ;;  %2197 = vmatprep.subr.bf16.mxu1 %v976_v13  ;;  %v1048_v12 = vunpack.c.l.s8.bf16 %v336_v9  ;;  %v333_v13 = vld [vmem:[#allocation6 + $0x640] sm:$0xff] }
 0x124   :  { %v1045_v15 = vunpack.c.l.s8.bf16 %v333_v13  ;;  %v1053_v24 = vunpack.c.h.s8.bf16 %v333_v13  ;;  %v376_v13 = vld [vmem:[#allocation6 + $0x798] sm:$0xff] }
 0x126   :  { %1854 = vmatpush1.bf16.msra.mxu0 %v973_v16  ;;  %2198 = vmatpush1.bf16.msra.mxu1 %v975_v17  ;;  %v1047_v16 = vunpack.c.l.s8.bf16 %v335_v14  ;;  %v1054_v17 = vunpack.c.h.s8.bf16 %v334_v8  ;;  %v367_v8 = vld [vmem:[#allocation6 + $0x750] sm:$0xff] }
 0x127   :  { %1855 = vmatprep.subr.bf16.mxu0 %v982_v18  ;;  %2199 = vmatprep.subr.bf16.mxu1 %v984_v22  ;;  %v1056_v18 = vunpack.c.h.s8.bf16 %v336_v9  ;;  %v342_v22 = vld [vmem:[#allocation6 + $0x688] sm:$0xff] }
 0x12a   :  { %1856 = vmatpush1.bf16.msra.mxu0 %v981_v25  ;;  %2200 = vmatpush1.bf16.msra.mxu1 %v983_v26  ;;  %v1055_v25 = vunpack.c.h.s8.bf16 %v335_v14  ;;  %v1062_v26 = vunpack.c.l.s8.bf16 %v342_v22 }
 0x12b   :  { %1857 = vmatprep.subr.bf16.mxu0 %v990_v27  ;;  %2201 = vmatprep.subr.bf16.mxu1 %v992_v45  ;;  %v1064_v27 = vunpack.c.l.s8.bf16 %v344_v23  ;;  %v341_v45 = vld [vmem:[#allocation6 + $0x680] sm:$0xff] }
 0x12c   :  { %v1061_v29 = vunpack.c.l.s8.bf16 %v341_v45  ;;  %v1069_v38 = vunpack.c.h.s8.bf16 %v341_v45  ;;  %v384_v45 = vld [vmem:[#allocation6 + $0x7d8] sm:$0xff] }
 0x12e   :  { %1858 = vmatpush1.bf16.msra.mxu0 %v989_v32  ;;  %2202 = vmatpush1.bf16.msra.mxu1 %v991_v33  ;;  %v1063_v32 = vunpack.c.l.s8.bf16 %v343_v46  ;;  %v1070_v33 = vunpack.c.h.s8.bf16 %v342_v22  ;;  %v375_v22 = vld [vmem:[#allocation6 + $0x790] sm:$0xff] }
 0x12f   :  { %1859 = vmatprep.subr.bf16.mxu0 %v998_v34  ;;  %2203 = vmatprep.subr.bf16.mxu1 %v1000_v35  ;;  %v1072_v34 = vunpack.c.h.s8.bf16 %v344_v23  ;;  %v350_v35 = vld [vmem:[#allocation6 + $0x6c8] sm:$0xff] }
 0x132   :  { %1860 = vmatpush1.bf16.msra.mxu0 %v997_v39  ;;  %2204 = vmatpush1.bf16.msra.mxu1 %v999_v40  ;;  %v1071_v39 = vunpack.c.h.s8.bf16 %v343_v46  ;;  %v1078_v40 = vunpack.c.l.s8.bf16 %v350_v35 }
 0x133   :  { %1861 = vmatprep.subr.bf16.mxu0 %v1006_v41  ;;  %2205 = vmatprep.subr.bf16.mxu1 %v1008_v42  ;;  %v1080_v41 = vunpack.c.l.s8.bf16 %v352_v37  ;;  %v349_v42 = vld [vmem:[#allocation6 + $0x6c0] sm:$0xff] }
 0x134   :  { %v1077_v47 = vunpack.c.l.s8.bf16 %v349_v42  ;;  %v1085_v30 = vunpack.c.h.s8.bf16 %v349_v42  ;;  %v392_v42 = vld [vmem:[#allocation6 + $0x818] sm:$0xff] }
 0x136   :  { %1862 = vmatpush1.bf16.msra.mxu0 %v1005_v48  ;;  %2206 = vmatpush1.bf16.msra.mxu1 %v1007_v49  ;;  %v1079_v48 = vunpack.c.l.s8.bf16 %v351_v43  ;;  %v1086_v49 = vunpack.c.h.s8.bf16 %v350_v35  ;;  %v383_v35 = vld [vmem:[#allocation6 + $0x7d0] sm:$0xff] }
 0x137   :  { %1863 = vmatprep.subr.bf16.mxu0 %v1014_v50  ;;  %2207 = vmatprep.subr.bf16.mxu1 %v1016_v51  ;;  %v1088_v50 = vunpack.c.h.s8.bf16 %v352_v37  ;;  %v358_v51 = vld [vmem:[#allocation6 + $0x708] sm:$0xff] }
 0x13a   :  { %1864 = vmatpush1.bf16.msra.mxu0 %v1013_v31  ;;  %2208 = vmatpush1.bf16.msra.mxu1 %v1015_v54  ;;  %v1087_v31 = vunpack.c.h.s8.bf16 %v351_v43  ;;  %v1094_v54 = vunpack.c.l.s8.bf16 %v358_v51 }
 0x13b   :  { %1865 = vmatprep.subr.bf16.mxu0 %v1022_v55  ;;  %2209 = vmatprep.subr.bf16.mxu1 %v1024_v56  ;;  %v1096_v55 = vunpack.c.l.s8.bf16 %v360_v52  ;;  %v357_v56 = vld [vmem:[#allocation6 + $0x700] sm:$0xff] }
 0x13c   :  { %v1093_v58 = vunpack.c.l.s8.bf16 %v357_v56  ;;  %v1101_v0 = vunpack.c.h.s8.bf16 %v357_v56 }
 0x13e   :  { %1866 = vmatpush1.bf16.msra.mxu0 %v1021_v59  ;;  %2210 = vmatpush1.bf16.msra.mxu1 %v1023_v60  ;;  %v1095_v59 = vunpack.c.l.s8.bf16 %v359_v57  ;;  %v1102_v60 = vunpack.c.h.s8.bf16 %v358_v51  ;;  %v391_v51 = vld [vmem:[#allocation6 + $0x810] sm:$0xff] }
 0x13f   :  { %1878 = vmatprep.subr.bf16.mxu0 %v1030_v61  ;;  %2222 = vmatprep.subr.bf16.mxu1 %v1032_v62  ;;  %v1104_v61 = vunpack.c.h.s8.bf16 %v360_v52  ;;  %v366_v62 = vld [vmem:[#allocation6 + $0x748] sm:$0xff]  ;;  %v5948_v52 = vcombine.low %v5934_v2, %v5936_v3  ;;  %v1167_v3 = vunpack.c.h.s8.bf16 %v391_v51 }
 0x141   :  { %1868 = vmatmul.mubr.bf16.vlgmr.msra.gmra.mrb[0].mxu0 %v5932_v1  ;;  %2212 = vmatmul.mubr.bf16.vlgmr.msra.gmra.mrb[0].mxu1 %v5932_v1 }
 0x142   :  { %1879 = vmatpush1.bf16.msra.mxu0 %v1029_v4  ;;  %2223 = vmatpush1.bf16.msra.mxu1 %v1031_v5  ;;  %v1103_v4 = vunpack.c.h.s8.bf16 %v359_v57  ;;  %v1110_v5 = vunpack.c.l.s8.bf16 %v366_v62  ;;  %v1168_v57 = vunpack.c.h.s8.bf16 %v392_v42 }
 0x143   :  { %1880 = vmatprep.subr.bf16.mxu0 %v1038_v6  ;;  %2224 = vmatprep.subr.bf16.mxu1 %v1040_v7  ;;  %v1112_v6 = vunpack.c.l.s8.bf16 %v368_v63  ;;  %v365_v7 = vld [vmem:[#allocation6 + $0x740] sm:$0xff] }
 0x144   :  { %1910 = vmatprep.mubr.bf16.mxu0 %v5940_v10  ;;  %2254 = vmatprep.mubr.bf16.mxu1 %v5940_v10  ;;  %v1109_v9 = vunpack.c.l.s8.bf16 %v365_v7  ;;  %v1117_v14 = vunpack.c.h.s8.bf16 %v365_v7 }
 0x146   :  { %1881 = vmatpush1.bf16.msra.mxu0 %v1037_v20  ;;  %2225 = vmatpush1.bf16.msra.mxu1 %v1039_v21  ;;  %v1111_v20 = vunpack.c.l.s8.bf16 %v367_v8  ;;  %v1118_v21 = vunpack.c.h.s8.bf16 %v366_v62 }
 0x147   :  { %1882 = vmatprep.subr.bf16.mxu0 %v1046_v11  ;;  %2226 = vmatprep.subr.bf16.mxu1 %v1048_v12  ;;  %v1120_v11 = vunpack.c.h.s8.bf16 %v368_v63  ;;  %v374_v12 = vld [vmem:[#allocation6 + $0x788] sm:$0xff]  ;;  %v397_v63 = vld [vmem:[#allocation6 + $0x840] sm:$0xff] }
 0x14a   :  { %1883 = vmatpush1.bf16.msra.mxu0 %v1045_v15  ;;  %2227 = vmatpush1.bf16.msra.mxu1 %v1047_v16  ;;  %v1119_v15 = vunpack.c.h.s8.bf16 %v367_v8  ;;  %v1126_v16 = vunpack.c.l.s8.bf16 %v374_v12  ;;  %v406_v8 = vld [vmem:[#allocation6 + $0x888] sm:$0xff] }
 0x14b   :  { %1884 = vmatprep.subr.bf16.mxu0 %v1054_v17  ;;  %2228 = vmatprep.subr.bf16.mxu1 %v1056_v18  ;;  %v1128_v17 = vunpack.c.l.s8.bf16 %v376_v13  ;;  %v373_v18 = vld [vmem:[#allocation6 + $0x780] sm:$0xff] }
 0x14c   :  { %v1125_v23 = vunpack.c.l.s8.bf16 %v373_v18  ;;  %v1133_v46 = vunpack.c.h.s8.bf16 %v373_v18 }
 0x14e   :  { %1885 = vmatpush1.bf16.msra.mxu0 %v1053_v24  ;;  %2229 = vmatpush1.bf16.msra.mxu1 %v1055_v25  ;;  %v1127_v24 = vunpack.c.l.s8.bf16 %v375_v22  ;;  %v1134_v25 = vunpack.c.h.s8.bf16 %v374_v12 }
 0x14f   :  { %1886 = vmatprep.subr.bf16.mxu0 %v1062_v26  ;;  %2230 = vmatprep.subr.bf16.mxu1 %v1064_v27  ;;  %v1136_v26 = vunpack.c.h.s8.bf16 %v376_v13  ;;  %v382_v27 = vld [vmem:[#allocation6 + $0x7c8] sm:$0xff]  ;;  %v405_v13 = vld [vmem:[#allocation6 + $0x880] sm:$0xff] }
 0x152   :  { %1887 = vmatpush1.bf16.msra.mxu0 %v1061_v29  ;;  %2231 = vmatpush1.bf16.msra.mxu1 %v1063_v32  ;;  %v1135_v29 = vunpack.c.h.s8.bf16 %v375_v22  ;;  %v1142_v32 = vunpack.c.l.s8.bf16 %v382_v27  ;;  %v414_v22 = vld [vmem:[#allocation6 + $0x8c8] sm:$0xff] }
 0x153   :  { %1888 = vmatprep.subr.bf16.mxu0 %v1070_v33  ;;  %2232 = vmatprep.subr.bf16.mxu1 %v1072_v34  ;;  %v1144_v33 = vunpack.c.l.s8.bf16 %v384_v45  ;;  %v381_v34 = vld [vmem:[#allocation6 + $0x7c0] sm:$0xff] }
 0x154   :  { %v1141_v37 = vunpack.c.l.s8.bf16 %v381_v34  ;;  %v1149_v43 = vunpack.c.h.s8.bf16 %v381_v34 }
 0x156   :  { %1889 = vmatpush1.bf16.msra.mxu0 %v1069_v38  ;;  %2233 = vmatpush1.bf16.msra.mxu1 %v1071_v39  ;;  %v1143_v38 = vunpack.c.l.s8.bf16 %v383_v35  ;;  %v1150_v39 = vunpack.c.h.s8.bf16 %v382_v27 }
 0x157   :  { %1890 = vmatprep.subr.bf16.mxu0 %v1078_v40  ;;  %2234 = vmatprep.subr.bf16.mxu1 %v1080_v41  ;;  %v1152_v40 = vunpack.c.h.s8.bf16 %v384_v45  ;;  %v390_v41 = vld [vmem:[#allocation6 + $0x808] sm:$0xff]  ;;  %v413_v45 = vld [vmem:[#allocation6 + $0x8c0] sm:$0xff] }
 0x158   :  { %v1166_v56 = vunpack.c.h.s8.bf16 %v390_v41 }
 0x15a   :  { %1891 = vmatpush1.bf16.msra.mxu0 %v1077_v47  ;;  %2235 = vmatpush1.bf16.msra.mxu1 %v1079_v48  ;;  %v1151_v47 = vunpack.c.h.s8.bf16 %v383_v35  ;;  %v1158_v48 = vunpack.c.l.s8.bf16 %v390_v41  ;;  %v422_v35 = vld [vmem:[#allocation6 + $0x908] sm:$0xff] }
 0x15b   :  { %1892 = vmatprep.subr.bf16.mxu0 %v1086_v49  ;;  %2236 = vmatprep.subr.bf16.mxu1 %v1088_v50  ;;  %v1160_v49 = vunpack.c.l.s8.bf16 %v392_v42  ;;  %v389_v50 = vld [vmem:[#allocation6 + $0x800] sm:$0xff] }
 0x15c   :  { %v1165_v2 = vunpack.c.h.s8.bf16 %v389_v50  ;;  %v421_v42 = vld [vmem:[#allocation6 + $0x900] sm:$0xff] }
 0x15e   :  { %1893 = vmatpush1.bf16.msra.mxu0 %v1085_v30  ;;  %2237 = vmatpush1.bf16.msra.mxu1 %v1087_v31  ;;  %v5950_v30 = vld [vmem:[#allocation3 + $0x20] sm:$0xff] }
 0x15f   :  { %1894 = vmatprep.subr.bf16.mxu0 %v1094_v54  ;;  %2238 = vmatprep.subr.bf16.mxu1 %v1096_v55  ;;  %v5952_v31 = vld [vmem:[#allocation3 + $0x60] sm:$0xff]  ;;  %v1157_v54 = vunpack.c.l.s8.bf16 %v389_v50  ;;  %v1159_v55 = vunpack.c.l.s8.bf16 %v391_v51  ;;  %v430_v51 = vld [vmem:[#allocation6 + $0x948] sm:$0xff] }
 0x162   :  { %1895 = vmatpush1.bf16.msra.mxu0 %v1093_v58  ;;  %2239 = vmatpush1.bf16.msra.mxu1 %v1095_v59  ;;  %v398_v58 = vld [vmem:[#allocation6 + $0x848] sm:$0xff]  ;;  %v400_v59 = vld [vmem:[#allocation6 + $0x858] sm:$0xff] }
 0x163   :  { %1896 = vmatprep.subr.bf16.mxu0 %v1102_v60  ;;  %2240 = vmatprep.subr.bf16.mxu1 %v1104_v61  ;;  %v5956_v60 = vcombine.high %v5950_v30, %v5952_v31  ;;  %v1174_v61 = vunpack.c.l.s8.bf16 %v398_v58  ;;  %v1176_v62 = vunpack.c.l.s8.bf16 %v400_v59  ;;  %v1184_v7 = vunpack.c.h.s8.bf16 %v400_v59  ;;  %v429_v59 = vld [vmem:[#allocation6 + $0x940] sm:$0xff] }
 0x166   :  { %1897 = vmatpush1.bf16.msra.mxu0 %v1101_v0  ;;  %2241 = vmatpush1.bf16.msra.mxu1 %v1103_v4  ;;  %v399_v0 = vld [vmem:[#allocation6 + $0x850] sm:$0xff]  ;;  %v1173_v4 = vunpack.c.l.s8.bf16 %v397_v63 }
 0x167   :  { %1898 = vmatprep.subr.bf16.mxu0 %v1110_v5  ;;  %2242 = vmatprep.subr.bf16.mxu1 %v1112_v6  ;;  %v1175_v5 = vunpack.c.l.s8.bf16 %v399_v0  ;;  %v1182_v6 = vunpack.c.h.s8.bf16 %v398_v58 }
 0x16a   :  { %1899 = vmatpush1.bf16.msra.mxu0 %v1109_v9  ;;  %2243 = vmatpush1.bf16.msra.mxu1 %v1111_v20  ;;  %v408_v9 = vld [vmem:[#allocation6 + $0x898] sm:$0xff]  ;;  %v1181_v20 = vunpack.c.h.s8.bf16 %v397_v63 }
 0x16b   :  { %1900 = vmatprep.subr.bf16.mxu0 %v1118_v21  ;;  %2244 = vmatprep.subr.bf16.mxu1 %v1120_v11  ;;  %v1183_v21 = vunpack.c.h.s8.bf16 %v399_v0  ;;  %v1190_v11 = vunpack.c.l.s8.bf16 %v406_v8  ;;  %v1192_v12 = vunpack.c.l.s8.bf16 %v408_v9  ;;  %v1200_v18 = vunpack.c.h.s8.bf16 %v408_v9  ;;  %v438_v0 = vld [vmem:[#allocation6 + $0x988] sm:$0xff]  ;;  %v437_v9 = vld [vmem:[#allocation6 + $0x980] sm:$0xff] }
 0x16e   :  { %1901 = vmatpush1.bf16.msra.mxu0 %v1117_v14  ;;  %2245 = vmatpush1.bf16.msra.mxu1 %v1119_v15  ;;  %v407_v14 = vld [vmem:[#allocation6 + $0x890] sm:$0xff]  ;;  %v1189_v15 = vunpack.c.l.s8.bf16 %v405_v13 }
 0x16f   :  { %1902 = vmatprep.subr.bf16.mxu0 %v1126_v16  ;;  %2246 = vmatprep.subr.bf16.mxu1 %v1128_v17  ;;  %v1191_v16 = vunpack.c.l.s8.bf16 %v407_v14  ;;  %v1198_v17 = vunpack.c.h.s8.bf16 %v406_v8 }
 0x172   :  { %1903 = vmatpush1.bf16.msra.mxu0 %v1125_v23  ;;  %2247 = vmatpush1.bf16.msra.mxu1 %v1127_v24  ;;  %v416_v23 = vld [vmem:[#allocation6 + $0x8d8] sm:$0xff]  ;;  %v1197_v24 = vunpack.c.h.s8.bf16 %v405_v13 }
 0x173   :  { %1904 = vmatprep.subr.bf16.mxu0 %v1134_v25  ;;  %2248 = vmatprep.subr.bf16.mxu1 %v1136_v26  ;;  %v1199_v25 = vunpack.c.h.s8.bf16 %v407_v14  ;;  %v1206_v26 = vunpack.c.l.s8.bf16 %v414_v22  ;;  %v1208_v27 = vunpack.c.l.s8.bf16 %v416_v23  ;;  %v1216_v34 = vunpack.c.h.s8.bf16 %v416_v23  ;;  %v446_v14 = vld [vmem:[#allocation6 + $0x9c8] sm:$0xff]  ;;  %v445_v23 = vld [vmem:[#allocation6 + $0x9c0] sm:$0xff] }
 0x176   :  { %1905 = vmatpush1.bf16.msra.mxu0 %v1133_v46  ;;  %2249 = vmatpush1.bf16.msra.mxu1 %v1135_v29  ;;  %v415_v46 = vld [vmem:[#allocation6 + $0x8d0] sm:$0xff]  ;;  %v1205_v29 = vunpack.c.l.s8.bf16 %v413_v45 }
 0x177   :  { %1906 = vmatprep.subr.bf16.mxu0 %v1142_v32  ;;  %2250 = vmatprep.subr.bf16.mxu1 %v1144_v33  ;;  %v1207_v32 = vunpack.c.l.s8.bf16 %v415_v46  ;;  %v1214_v33 = vunpack.c.h.s8.bf16 %v414_v22 }
 0x17a   :  { %1907 = vmatpush1.bf16.msra.mxu0 %v1141_v37  ;;  %2251 = vmatpush1.bf16.msra.mxu1 %v1143_v38  ;;  %v424_v37 = vld [vmem:[#allocation6 + $0x918] sm:$0xff]  ;;  %v1213_v38 = vunpack.c.h.s8.bf16 %v413_v45 }
 0x17b   :  { %1908 = vmatprep.subr.bf16.mxu0 %v1150_v39  ;;  %2252 = vmatprep.subr.bf16.mxu1 %v1152_v40  ;;  %v1215_v39 = vunpack.c.h.s8.bf16 %v415_v46  ;;  %v1222_v40 = vunpack.c.l.s8.bf16 %v422_v35  ;;  %v1224_v41 = vunpack.c.l.s8.bf16 %v424_v37  ;;  %v1232_v50 = vunpack.c.h.s8.bf16 %v424_v37  ;;  %v454_v46 = vld [vmem:[#allocation6 + $0xa08] sm:$0xff]  ;;  %v453_v37 = vld [vmem:[#allocation6 + $0xa00] sm:$0xff] }
 0x17e   :  { %1909 = vmatpush1.bf16.msra.mxu0 %v1149_v43  ;;  %2253 = vmatpush1.bf16.msra.mxu1 %v1151_v47  ;;  %v423_v43 = vld [vmem:[#allocation6 + $0x910] sm:$0xff]  ;;  %v1221_v47 = vunpack.c.l.s8.bf16 %v421_v42 }
 0x17f   :  { %1921 = vmatprep.subr.bf16.mxu0 %v1158_v48  ;;  %2265 = vmatprep.subr.bf16.mxu1 %v1160_v49  ;;  %v1223_v48 = vunpack.c.l.s8.bf16 %v423_v43  ;;  %v1230_v49 = vunpack.c.h.s8.bf16 %v422_v35 }
 0x181   :  { %1911 = vmatmul.mubr.bf16.vlgmr.msra.gmra.mrb[0].mxu0 %v5948_v52  ;;  %2255 = vmatmul.mubr.bf16.vlgmr.msra.gmra.mrb[0].mxu1 %v5948_v52 }
 0x182   :  { %1922 = vmatpush1.bf16.msra.mxu0 %v1157_v54  ;;  %2266 = vmatpush1.bf16.msra.mxu1 %v1159_v55  ;;  %v432_v54 = vld [vmem:[#allocation6 + $0x958] sm:$0xff]  ;;  %v1229_v55 = vunpack.c.h.s8.bf16 %v421_v42  ;;  %v1285_v42 = vunpack.c.l.s8.bf16 %v453_v37 }
 0x183   :  { %1923 = vmatprep.subr.bf16.mxu0 %v1166_v56  ;;  %2267 = vmatprep.subr.bf16.mxu1 %v1168_v57  ;;  %v1231_v56 = vunpack.c.h.s8.bf16 %v423_v43  ;;  %v1238_v57 = vunpack.c.l.s8.bf16 %v430_v51  ;;  %v1240_v58 = vunpack.c.l.s8.bf16 %v432_v54  ;;  %v1248_v63 = vunpack.c.h.s8.bf16 %v432_v54 }
 0x184   :  { %1953 = vmatprep.mubr.bf16.mxu0 %v5956_v60  ;;  %2297 = vmatprep.mubr.bf16.mxu1 %v5956_v60 }
 0x186   :  { %1924 = vmatpush1.bf16.msra.mxu0 %v1165_v2  ;;  %2268 = vmatpush1.bf16.msra.mxu1 %v1167_v3  ;;  %v431_v2 = vld [vmem:[#allocation6 + $0x950] sm:$0xff]  ;;  %v1237_v3 = vunpack.c.l.s8.bf16 %v429_v59 }
 0x187   :  { %1925 = vmatprep.subr.bf16.mxu0 %v1174_v61  ;;  %2269 = vmatprep.subr.bf16.mxu1 %v1176_v62  ;;  %v1239_v61 = vunpack.c.l.s8.bf16 %v431_v2  ;;  %v1246_v62 = vunpack.c.h.s8.bf16 %v430_v51 }
 0x18a   :  { %1926 = vmatpush1.bf16.msra.mxu0 %v1173_v4  ;;  %2270 = vmatpush1.bf16.msra.mxu1 %v1175_v5  ;;  %v440_v4 = vld [vmem:[#allocation6 + $0x998] sm:$0xff]  ;;  %v1245_v5 = vunpack.c.h.s8.bf16 %v429_v59 }
 0x18b   :  { %1927 = vmatprep.subr.bf16.mxu0 %v1182_v6  ;;  %2271 = vmatprep.subr.bf16.mxu1 %v1184_v7  ;;  %v1247_v6 = vunpack.c.h.s8.bf16 %v431_v2  ;;  %v1254_v7 = vunpack.c.l.s8.bf16 %v438_v0  ;;  %v1256_v8 = vunpack.c.l.s8.bf16 %v440_v4  ;;  %v1264_v13 = vunpack.c.h.s8.bf16 %v440_v4 }
 0x18e   :  { %1928 = vmatpush1.bf16.msra.mxu0 %v1181_v20  ;;  %2272 = vmatpush1.bf16.msra.mxu1 %v1183_v21  ;;  %v439_v20 = vld [vmem:[#allocation6 + $0x990] sm:$0xff]  ;;  %v1253_v21 = vunpack.c.l.s8.bf16 %v437_v9 }
 0x18f   :  { %1929 = vmatprep.subr.bf16.mxu0 %v1190_v11  ;;  %2273 = vmatprep.subr.bf16.mxu1 %v1192_v12  ;;  %v1255_v11 = vunpack.c.l.s8.bf16 %v439_v20  ;;  %v1262_v12 = vunpack.c.h.s8.bf16 %v438_v0 }
 0x192   :  { %1930 = vmatpush1.bf16.msra.mxu0 %v1189_v15  ;;  %2274 = vmatpush1.bf16.msra.mxu1 %v1191_v16  ;;  %v448_v15 = vld [vmem:[#allocation6 + $0x9d8] sm:$0xff]  ;;  %v1261_v16 = vunpack.c.h.s8.bf16 %v437_v9 }
 0x193   :  { %1931 = vmatprep.subr.bf16.mxu0 %v1198_v17  ;;  %2275 = vmatprep.subr.bf16.mxu1 %v1200_v18  ;;  %v1263_v17 = vunpack.c.h.s8.bf16 %v439_v20  ;;  %v1270_v18 = vunpack.c.l.s8.bf16 %v446_v14  ;;  %v1272_v22 = vunpack.c.l.s8.bf16 %v448_v15  ;;  %v1280_v45 = vunpack.c.h.s8.bf16 %v448_v15 }
 0x196   :  { %1932 = vmatpush1.bf16.msra.mxu0 %v1197_v24  ;;  %2276 = vmatpush1.bf16.msra.mxu1 %v1199_v25  ;;  %v447_v24 = vld [vmem:[#allocation6 + $0x9d0] sm:$0xff]  ;;  %v1269_v25 = vunpack.c.l.s8.bf16 %v445_v23 }
 0x197   :  { %1933 = vmatprep.subr.bf16.mxu0 %v1206_v26  ;;  %2277 = vmatprep.subr.bf16.mxu1 %v1208_v27  ;;  %v1271_v26 = vunpack.c.l.s8.bf16 %v447_v24  ;;  %v1278_v27 = vunpack.c.h.s8.bf16 %v446_v14 }
 0x19a   :  { %1934 = vmatpush1.bf16.msra.mxu0 %v1205_v29  ;;  %2278 = vmatpush1.bf16.msra.mxu1 %v1207_v32  ;;  %v456_v29 = vld [vmem:[#allocation6 + $0xa18] sm:$0xff]  ;;  %v1277_v32 = vunpack.c.h.s8.bf16 %v445_v23 }
 0x19b   :  { %1935 = vmatprep.subr.bf16.mxu0 %v1214_v33  ;;  %2279 = vmatprep.subr.bf16.mxu1 %v1216_v34  ;;  %v1279_v33 = vunpack.c.h.s8.bf16 %v447_v24  ;;  %v1286_v34 = vunpack.c.l.s8.bf16 %v454_v46  ;;  %v1288_v35 = vunpack.c.l.s8.bf16 %v456_v29 }
 0x19e   :  { %1936 = vmatpush1.bf16.msra.mxu0 %v1213_v38  ;;  %2280 = vmatpush1.bf16.msra.mxu1 %v1215_v39  ;;  %v455_v38 = vld [vmem:[#allocation6 + $0xa10] sm:$0xff]  ;;  %v5964_v39 = vcombine.low %v5950_v30, %v5952_v31  ;;  %v1293_v30 = vunpack.c.h.s8.bf16 %v453_v37 }
 0x19f   :  { %1937 = vmatprep.subr.bf16.mxu0 %v1222_v40  ;;  %2281 = vmatprep.subr.bf16.mxu1 %v1224_v41  ;;  %v5966_v40 = vld [vmem:[#allocation3 + $0x28] sm:$0xff]  ;;  %v1287_v43 = vunpack.c.l.s8.bf16 %v455_v38  ;;  %v1295_v31 = vunpack.c.h.s8.bf16 %v455_v38 }
 0x1a0   :  { %v5968_v41 = vld [vmem:[#allocation3 + $0x68] sm:$0xff] }
 0x1a1   :  { %v5972_v51 = vcombine.high %v5966_v40, %v5968_v41 }
 0x1a2   :  { %1938 = vmatpush1.bf16.msra.mxu0 %v1221_v47  ;;  %2282 = vmatpush1.bf16.msra.mxu1 %v1223_v48  ;;  %v1294_v47 = vunpack.c.h.s8.bf16 %v454_v46  ;;  %v1296_v48 = vunpack.c.h.s8.bf16 %v456_v29 }
 0x1a3   :  { %1939 = vmatprep.subr.bf16.mxu0 %v1230_v49  ;;  %2283 = vmatprep.subr.bf16.mxu1 %v1232_v50  ;;  %v462_v49 = vld [vmem:[#allocation6 + $0xa48] sm:$0xff]  ;;  %v464_v50 = vld [vmem:[#allocation6 + $0xa58] sm:$0xff] }
 0x1a4   :  { %v1302_v54 = vunpack.c.l.s8.bf16 %v462_v49  ;;  %v1310_v2 = vunpack.c.h.s8.bf16 %v462_v49 }
 0x1a6   :  { %1940 = vmatpush1.bf16.msra.mxu0 %v1229_v55  ;;  %2284 = vmatpush1.bf16.msra.mxu1 %v1231_v56  ;;  %v1304_v55 = vunpack.c.l.s8.bf16 %v464_v50  ;;  %v461_v56 = vld [vmem:[#allocation6 + $0xa40] sm:$0xff] }
 0x1a7   :  { %1941 = vmatprep.subr.bf16.mxu0 %v1238_v57  ;;  %2285 = vmatprep.subr.bf16.mxu1 %v1240_v58  ;;  %v463_v57 = vld [vmem:[#allocation6 + $0xa50] sm:$0xff]  ;;  %v1301_v58 = vunpack.c.l.s8.bf16 %v461_v56 }
 0x1a8   :  { %v1303_v59 = vunpack.c.l.s8.bf16 %v463_v57  ;;  %v1311_v0 = vunpack.c.h.s8.bf16 %v463_v57 }
 0x1aa   :  { %1942 = vmatpush1.bf16.msra.mxu0 %v1237_v3  ;;  %2286 = vmatpush1.bf16.msra.mxu1 %v1239_v61  ;;  %v1312_v3 = vunpack.c.h.s8.bf16 %v464_v50  ;;  %v470_v61 = vld [vmem:[#allocation6 + $0xa88] sm:$0xff] }
 0x1ab   :  { %1943 = vmatprep.subr.bf16.mxu0 %v1246_v62  ;;  %2287 = vmatprep.subr.bf16.mxu1 %v1248_v63  ;;  %v472_v62 = vld [vmem:[#allocation6 + $0xa98] sm:$0xff]  ;;  %v1309_v63 = vunpack.c.h.s8.bf16 %v461_v56  ;;  %v1318_v4 = vunpack.c.l.s8.bf16 %v470_v61  ;;  %v1326_v20 = vunpack.c.h.s8.bf16 %v470_v61 }
 0x1ae   :  { %1944 = vmatpush1.bf16.msra.mxu0 %v1245_v5  ;;  %2288 = vmatpush1.bf16.msra.mxu1 %v1247_v6  ;;  %v1320_v5 = vunpack.c.l.s8.bf16 %v472_v62  ;;  %v469_v6 = vld [vmem:[#allocation6 + $0xa80] sm:$0xff] }
 0x1af   :  { %1945 = vmatprep.subr.bf16.mxu0 %v1254_v7  ;;  %2289 = vmatprep.subr.bf16.mxu1 %v1256_v8  ;;  %v471_v7 = vld [vmem:[#allocation6 + $0xa90] sm:$0xff]  ;;  %v1317_v8 = vunpack.c.l.s8.bf16 %v469_v6 }
 0x1b0   :  { %v1319_v9 = vunpack.c.l.s8.bf16 %v471_v7  ;;  %v1327_v14 = vunpack.c.h.s8.bf16 %v471_v7 }
 0x1b2   :  { %1946 = vmatpush1.bf16.msra.mxu0 %v1253_v21  ;;  %2290 = vmatpush1.bf16.msra.mxu1 %v1255_v11  ;;  %v1328_v21 = vunpack.c.h.s8.bf16 %v472_v62  ;;  %v478_v11 = vld [vmem:[#allocation6 + $0xac8] sm:$0xff] }
 0x1b3   :  { %1947 = vmatprep.subr.bf16.mxu0 %v1262_v12  ;;  %2291 = vmatprep.subr.bf16.mxu1 %v1264_v13  ;;  %v480_v12 = vld [vmem:[#allocation6 + $0xad8] sm:$0xff]  ;;  %v1325_v13 = vunpack.c.h.s8.bf16 %v469_v6  ;;  %v1334_v15 = vunpack.c.l.s8.bf16 %v478_v11  ;;  %v1342_v24 = vunpack.c.h.s8.bf16 %v478_v11 }
 0x1b6   :  { %1948 = vmatpush1.bf16.msra.mxu0 %v1261_v16  ;;  %2292 = vmatpush1.bf16.msra.mxu1 %v1263_v17  ;;  %v1336_v16 = vunpack.c.l.s8.bf16 %v480_v12  ;;  %v477_v17 = vld [vmem:[#allocation6 + $0xac0] sm:$0xff] }
 0x1b7   :  { %1949 = vmatprep.subr.bf16.mxu0 %v1270_v18  ;;  %2293 = vmatprep.subr.bf16.mxu1 %v1272_v22  ;;  %v479_v18 = vld [vmem:[#allocation6 + $0xad0] sm:$0xff]  ;;  %v1333_v22 = vunpack.c.l.s8.bf16 %v477_v17 }
 0x1b8   :  { %v1335_v23 = vunpack.c.l.s8.bf16 %v479_v18  ;;  %v1343_v46 = vunpack.c.h.s8.bf16 %v479_v18 }
 0x1ba   :  { %1950 = vmatpush1.bf16.msra.mxu0 %v1269_v25  ;;  %2294 = vmatpush1.bf16.msra.mxu1 %v1271_v26  ;;  %v1344_v25 = vunpack.c.h.s8.bf16 %v480_v12  ;;  %v486_v26 = vld [vmem:[#allocation6 + $0xb08] sm:$0xff] }
 0x1bb   :  { %1951 = vmatprep.subr.bf16.mxu0 %v1278_v27  ;;  %2295 = vmatprep.subr.bf16.mxu1 %v1280_v45  ;;  %v488_v27 = vld [vmem:[#allocation6 + $0xb18] sm:$0xff]  ;;  %v1341_v45 = vunpack.c.h.s8.bf16 %v477_v17  ;;  %v1350_v29 = vunpack.c.l.s8.bf16 %v486_v26  ;;  %v1358_v38 = vunpack.c.h.s8.bf16 %v486_v26 }
 0x1be   :  { %1952 = vmatpush1.bf16.msra.mxu0 %v1277_v32  ;;  %2296 = vmatpush1.bf16.msra.mxu1 %v1279_v33  ;;  %v1352_v32 = vunpack.c.l.s8.bf16 %v488_v27  ;;  %v485_v33 = vld [vmem:[#allocation6 + $0xb00] sm:$0xff] }
 0x1bf   :  { %1964 = vmatprep.subr.bf16.mxu0 %v1286_v34  ;;  %2308 = vmatprep.subr.bf16.mxu1 %v1288_v35  ;;  %v487_v34 = vld [vmem:[#allocation6 + $0xb10] sm:$0xff]  ;;  %v1349_v35 = vunpack.c.l.s8.bf16 %v485_v33 }
 0x1c0   :  { %v1351_v37 = vunpack.c.l.s8.bf16 %v487_v34  ;;  %v1359_v49 = vunpack.c.h.s8.bf16 %v487_v34  ;;  %v5984_v34 = vld [vmem:[#allocation3 + $0x70] sm:$0xff] }
 0x1c1   :  { %1954 = vmatmul.mubr.bf16.vlgmr.msra.gmra.mrb[0].mxu0 %v5964_v39  ;;  %2298 = vmatmul.mubr.bf16.vlgmr.msra.gmra.mrb[0].mxu1 %v5964_v39 }
 0x1c2   :  { %1965 = vmatpush1.bf16.msra.mxu0 %v1285_v42  ;;  %2309 = vmatpush1.bf16.msra.mxu1 %v1287_v43  ;;  %v1360_v42 = vunpack.c.h.s8.bf16 %v488_v27  ;;  %v494_v43 = vld [vmem:[#allocation6 + $0xb48] sm:$0xff] }
 0x1c3   :  { %1966 = vmatprep.subr.bf16.mxu0 %v1294_v47  ;;  %2310 = vmatprep.subr.bf16.mxu1 %v1296_v48  ;;  %v496_v47 = vld [vmem:[#allocation6 + $0xb58] sm:$0xff]  ;;  %v1357_v48 = vunpack.c.h.s8.bf16 %v485_v33  ;;  %v1366_v50 = vunpack.c.l.s8.bf16 %v494_v43  ;;  %v1374_v57 = vunpack.c.h.s8.bf16 %v494_v43  ;;  %v5982_v33 = vld [vmem:[#allocation3 + $0x30] sm:$0xff]  ;;  %v526_v43 = vld [vmem:[#allocation6 + $0xc48] sm:$0xff] }
 0x1c4   :  { %1996 = vmatprep.mubr.bf16.mxu0 %v5972_v51  ;;  %2340 = vmatprep.mubr.bf16.mxu1 %v5972_v51 }
 0x1c6   :  { %1967 = vmatpush1.bf16.msra.mxu0 %v1293_v30  ;;  %2311 = vmatpush1.bf16.msra.mxu1 %v1295_v31  ;;  %v1368_v30 = vunpack.c.l.s8.bf16 %v496_v47  ;;  %v493_v31 = vld [vmem:[#allocation6 + $0xb40] sm:$0xff] }
 0x1c7   :  { %1968 = vmatprep.subr.bf16.mxu0 %v1302_v54  ;;  %2312 = vmatprep.subr.bf16.mxu1 %v1304_v55  ;;  %v495_v54 = vld [vmem:[#allocation6 + $0xb50] sm:$0xff]  ;;  %v1365_v55 = vunpack.c.l.s8.bf16 %v493_v31 }
 0x1c8   :  { %v1367_v56 = vunpack.c.l.s8.bf16 %v495_v54  ;;  %v1375_v61 = vunpack.c.h.s8.bf16 %v495_v54 }
 0x1ca   :  { %1969 = vmatpush1.bf16.msra.mxu0 %v1301_v58  ;;  %2313 = vmatpush1.bf16.msra.mxu1 %v1303_v59  ;;  %v1376_v58 = vunpack.c.h.s8.bf16 %v496_v47  ;;  %v502_v59 = vld [vmem:[#allocation6 + $0xb88] sm:$0xff]  ;;  %v528_v47 = vld [vmem:[#allocation6 + $0xc58] sm:$0xff] }
 0x1cb   :  { %1970 = vmatprep.subr.bf16.mxu0 %v1310_v2  ;;  %2314 = vmatprep.subr.bf16.mxu1 %v1312_v3  ;;  %v504_v2 = vld [vmem:[#allocation6 + $0xb98] sm:$0xff]  ;;  %v1373_v3 = vunpack.c.h.s8.bf16 %v493_v31  ;;  %v1382_v62 = vunpack.c.l.s8.bf16 %v502_v59  ;;  %v1390_v7 = vunpack.c.h.s8.bf16 %v502_v59  ;;  %v527_v31 = vld [vmem:[#allocation6 + $0xc50] sm:$0xff] }
 0x1cc   :  { %v536_v59 = vld [vmem:[#allocation6 + $0xc98] sm:$0xff] }
 0x1ce   :  { %1971 = vmatpush1.bf16.msra.mxu0 %v1309_v63  ;;  %2315 = vmatpush1.bf16.msra.mxu1 %v1311_v0  ;;  %v1384_v63 = vunpack.c.l.s8.bf16 %v504_v2  ;;  %v501_v0 = vld [vmem:[#allocation6 + $0xb80] sm:$0xff] }
 0x1cf   :  { %1972 = vmatprep.subr.bf16.mxu0 %v1318_v4  ;;  %2316 = vmatprep.subr.bf16.mxu1 %v1320_v5  ;;  %v503_v4 = vld [vmem:[#allocation6 + $0xb90] sm:$0xff]  ;;  %v1381_v5 = vunpack.c.l.s8.bf16 %v501_v0 }
 0x1d0   :  { %v1383_v6 = vunpack.c.l.s8.bf16 %v503_v4  ;;  %v1391_v11 = vunpack.c.h.s8.bf16 %v503_v4 }
 0x1d2   :  { %1973 = vmatpush1.bf16.msra.mxu0 %v1317_v8  ;;  %2317 = vmatpush1.bf16.msra.mxu1 %v1319_v9  ;;  %v1392_v8 = vunpack.c.h.s8.bf16 %v504_v2  ;;  %v510_v9 = vld [vmem:[#allocation6 + $0xbc8] sm:$0xff] }
 0x1d3   :  { %1974 = vmatprep.subr.bf16.mxu0 %v1326_v20  ;;  %2318 = vmatprep.subr.bf16.mxu1 %v1328_v21  ;;  %v512_v20 = vld [vmem:[#allocation6 + $0xbd8] sm:$0xff]  ;;  %v1389_v21 = vunpack.c.h.s8.bf16 %v501_v0  ;;  %v1398_v12 = vunpack.c.l.s8.bf16 %v510_v9  ;;  %v1406_v18 = vunpack.c.h.s8.bf16 %v510_v9  ;;  %v535_v0 = vld [vmem:[#allocation6 + $0xc90] sm:$0xff] }
 0x1d4   :  { %v544_v9 = vld [vmem:[#allocation6 + $0xcd8] sm:$0xff] }
 0x1d6   :  { %1975 = vmatpush1.bf16.msra.mxu0 %v1325_v13  ;;  %2319 = vmatpush1.bf16.msra.mxu1 %v1327_v14  ;;  %v1400_v13 = vunpack.c.l.s8.bf16 %v512_v20  ;;  %v509_v14 = vld [vmem:[#allocation6 + $0xbc0] sm:$0xff] }
 0x1d7   :  { %1976 = vmatprep.subr.bf16.mxu0 %v1334_v15  ;;  %2320 = vmatprep.subr.bf16.mxu1 %v1336_v16  ;;  %v511_v15 = vld [vmem:[#allocation6 + $0xbd0] sm:$0xff]  ;;  %v1397_v16 = vunpack.c.l.s8.bf16 %v509_v14 }
 0x1d8   :  { %v1399_v17 = vunpack.c.l.s8.bf16 %v511_v15  ;;  %v1407_v26 = vunpack.c.h.s8.bf16 %v511_v15 }
 0x1da   :  { %1977 = vmatpush1.bf16.msra.mxu0 %v1333_v22  ;;  %2321 = vmatpush1.bf16.msra.mxu1 %v1335_v23  ;;  %v1408_v22 = vunpack.c.h.s8.bf16 %v512_v20  ;;  %v518_v23 = vld [vmem:[#allocation6 + $0xc08] sm:$0xff] }
 0x1db   :  { %1978 = vmatprep.subr.bf16.mxu0 %v1342_v24  ;;  %2322 = vmatprep.subr.bf16.mxu1 %v1344_v25  ;;  %v520_v24 = vld [vmem:[#allocation6 + $0xc18] sm:$0xff]  ;;  %v1405_v25 = vunpack.c.h.s8.bf16 %v509_v14  ;;  %v1414_v27 = vunpack.c.l.s8.bf16 %v518_v23  ;;  %v543_v14 = vld [vmem:[#allocation6 + $0xcd0] sm:$0xff] }
 0x1de   :  { %1979 = vmatpush1.bf16.msra.mxu0 %v1341_v45  ;;  %2323 = vmatpush1.bf16.msra.mxu1 %v1343_v46  ;;  %v1416_v45 = vunpack.c.l.s8.bf16 %v520_v24  ;;  %v517_v46 = vld [vmem:[#allocation6 + $0xc00] sm:$0xff] }
 0x1df   :  { %1980 = vmatprep.subr.bf16.mxu0 %v1350_v29  ;;  %2324 = vmatprep.subr.bf16.mxu1 %v1352_v32  ;;  %v519_v29 = vld [vmem:[#allocation6 + $0xc10] sm:$0xff]  ;;  %v5980_v32 = vcombine.low %v5966_v40, %v5968_v41  ;;  %v1421_v40 = vunpack.c.h.s8.bf16 %v517_v46 }
 0x1e0   :  { %v1423_v41 = vunpack.c.h.s8.bf16 %v519_v29 }
 0x1e2   :  { %1981 = vmatpush1.bf16.msra.mxu0 %v1349_v35  ;;  %2325 = vmatpush1.bf16.msra.mxu1 %v1351_v37  ;;  %v1413_v35 = vunpack.c.l.s8.bf16 %v517_v46  ;;  %v1415_v37 = vunpack.c.l.s8.bf16 %v519_v29  ;;  %v551_v46 = vld [vmem:[#allocation6 + $0xd10] sm:$0xff] }
 0x1e3   :  { %1982 = vmatprep.subr.bf16.mxu0 %v1358_v38  ;;  %2326 = vmatprep.subr.bf16.mxu1 %v1360_v42  ;;  %v1422_v38 = vunpack.c.h.s8.bf16 %v518_v23  ;;  %v1424_v42 = vunpack.c.h.s8.bf16 %v520_v24  ;;  %v552_v23 = vld [vmem:[#allocation6 + $0xd18] sm:$0xff] }
 0x1e6   :  { %1983 = vmatpush1.bf16.msra.mxu0 %v1357_v48  ;;  %2327 = vmatpush1.bf16.msra.mxu1 %v1359_v49  ;;  %v5988_v48 = vcombine.high %v5982_v33, %v5984_v34  ;;  %v1430_v49 = vunpack.c.l.s8.bf16 %v526_v43 }
 0x1e7   :  { %1984 = vmatprep.subr.bf16.mxu0 %v1366_v50  ;;  %2328 = vmatprep.subr.bf16.mxu1 %v1368_v30  ;;  %v1432_v50 = vunpack.c.l.s8.bf16 %v528_v47  ;;  %v525_v30 = vld [vmem:[#allocation6 + $0xc40] sm:$0xff] }
 0x1e8   :  { %v1429_v54 = vunpack.c.l.s8.bf16 %v525_v30  ;;  %v1437_v2 = vunpack.c.h.s8.bf16 %v525_v30  ;;  %v559_v30 = vld [vmem:[#allocation6 + $0xd50] sm:$0xff] }
 0x1ea   :  { %1985 = vmatpush1.bf16.msra.mxu0 %v1365_v55  ;;  %2329 = vmatpush1.bf16.msra.mxu1 %v1367_v56  ;;  %v1431_v55 = vunpack.c.l.s8.bf16 %v527_v31  ;;  %v1438_v56 = vunpack.c.h.s8.bf16 %v526_v43  ;;  %v560_v43 = vld [vmem:[#allocation6 + $0xd58] sm:$0xff] }
 0x1eb   :  { %1986 = vmatprep.subr.bf16.mxu0 %v1374_v57  ;;  %2330 = vmatprep.subr.bf16.mxu1 %v1376_v58  ;;  %v1440_v57 = vunpack.c.h.s8.bf16 %v528_v47  ;;  %v534_v58 = vld [vmem:[#allocation6 + $0xc88] sm:$0xff] }
 0x1ee   :  { %1987 = vmatpush1.bf16.msra.mxu0 %v1373_v3  ;;  %2331 = vmatpush1.bf16.msra.mxu1 %v1375_v61  ;;  %v1439_v3 = vunpack.c.h.s8.bf16 %v527_v31  ;;  %v1446_v61 = vunpack.c.l.s8.bf16 %v534_v58 }
 0x1ef   :  { %1988 = vmatprep.subr.bf16.mxu0 %v1382_v62  ;;  %2332 = vmatprep.subr.bf16.mxu1 %v1384_v63  ;;  %v1448_v62 = vunpack.c.l.s8.bf16 %v536_v59  ;;  %v533_v63 = vld [vmem:[#allocation6 + $0xc80] sm:$0xff] }
 0x1f0   :  { %v1445_v4 = vunpack.c.l.s8.bf16 %v533_v63  ;;  %v1453_v20 = vunpack.c.h.s8.bf16 %v533_v63  ;;  %v567_v63 = vld [vmem:[#allocation6 + $0xd90] sm:$0xff] }
 0x1f2   :  { %1989 = vmatpush1.bf16.msra.mxu0 %v1381_v5  ;;  %2333 = vmatpush1.bf16.msra.mxu1 %v1383_v6  ;;  %v1447_v5 = vunpack.c.l.s8.bf16 %v535_v0  ;;  %v1454_v6 = vunpack.c.h.s8.bf16 %v534_v58  ;;  %v568_v58 = vld [vmem:[#allocation6 + $0xd98] sm:$0xff] }
 0x1f3   :  { %1990 = vmatprep.subr.bf16.mxu0 %v1390_v7  ;;  %2334 = vmatprep.subr.bf16.mxu1 %v1392_v8  ;;  %v1456_v7 = vunpack.c.h.s8.bf16 %v536_v59  ;;  %v542_v8 = vld [vmem:[#allocation6 + $0xcc8] sm:$0xff] }
 0x1f6   :  { %1991 = vmatpush1.bf16.msra.mxu0 %v1389_v21  ;;  %2335 = vmatpush1.bf16.msra.mxu1 %v1391_v11  ;;  %v1455_v21 = vunpack.c.h.s8.bf16 %v535_v0  ;;  %v1462_v11 = vunpack.c.l.s8.bf16 %v542_v8 }
 0x1f7   :  { %1992 = vmatprep.subr.bf16.mxu0 %v1398_v12  ;;  %2336 = vmatprep.subr.bf16.mxu1 %v1400_v13  ;;  %v1464_v12 = vunpack.c.l.s8.bf16 %v544_v9  ;;  %v541_v13 = vld [vmem:[#allocation6 + $0xcc0] sm:$0xff] }
 0x1f8   :  { %v1461_v15 = vunpack.c.l.s8.bf16 %v541_v13  ;;  %v1469_v24 = vunpack.c.h.s8.bf16 %v541_v13  ;;  %v575_v13 = vld [vmem:[#allocation6 + $0xdd0] sm:$0xff] }
 0x1fa   :  { %1993 = vmatpush1.bf16.msra.mxu0 %v1397_v16  ;;  %2337 = vmatpush1.bf16.msra.mxu1 %v1399_v17  ;;  %v1463_v16 = vunpack.c.l.s8.bf16 %v543_v14  ;;  %v1470_v17 = vunpack.c.h.s8.bf16 %v542_v8  ;;  %v576_v8 = vld [vmem:[#allocation6 + $0xdd8] sm:$0xff] }
 0x1fb   :  { %1994 = vmatprep.subr.bf16.mxu0 %v1406_v18  ;;  %2338 = vmatprep.subr.bf16.mxu1 %v1408_v22  ;;  %v1472_v18 = vunpack.c.h.s8.bf16 %v544_v9  ;;  %v550_v22 = vld [vmem:[#allocation6 + $0xd08] sm:$0xff] }
 0x1fe   :  { %1995 = vmatpush1.bf16.msra.mxu0 %v1405_v25  ;;  %2339 = vmatpush1.bf16.msra.mxu1 %v1407_v26  ;;  %v1471_v25 = vunpack.c.h.s8.bf16 %v543_v14  ;;  %v1478_v26 = vunpack.c.l.s8.bf16 %v550_v22 }
 0x1ff   :  { %2007 = vmatprep.subr.bf16.mxu0 %v1414_v27  ;;  %2351 = vmatprep.subr.bf16.mxu1 %v1416_v45  ;;  %v1480_v27 = vunpack.c.l.s8.bf16 %v552_v23  ;;  %v549_v45 = vld [vmem:[#allocation6 + $0xd00] sm:$0xff] }
 0x200   :  { %v1477_v29 = vunpack.c.l.s8.bf16 %v549_v45  ;;  %v1485_v47 = vunpack.c.h.s8.bf16 %v549_v45  ;;  %v583_v45 = vld [vmem:[#allocation6 + $0xe10] sm:$0xff] }
 0x201   :  { %1997 = vmatmul.mubr.bf16.vlgmr.msra.gmra.mrb[0].mxu0 %v5980_v32  ;;  %2341 = vmatmul.mubr.bf16.vlgmr.msra.gmra.mrb[0].mxu1 %v5980_v32 }
 0x202   :  { %2008 = vmatpush1.bf16.msra.mxu0 %v1413_v35  ;;  %2352 = vmatpush1.bf16.msra.mxu1 %v1415_v37  ;;  %v1479_v35 = vunpack.c.l.s8.bf16 %v551_v46  ;;  %v1486_v37 = vunpack.c.h.s8.bf16 %v550_v22  ;;  %v584_v22 = vld [vmem:[#allocation6 + $0xe18] sm:$0xff] }
 0x203   :  { %2009 = vmatprep.subr.bf16.mxu0 %v1422_v38  ;;  %2353 = vmatprep.subr.bf16.mxu1 %v1424_v42  ;;  %v1488_v38 = vunpack.c.h.s8.bf16 %v552_v23  ;;  %v558_v42 = vld [vmem:[#allocation6 + $0xd48] sm:$0xff] }
 0x204   :  { %2039 = vmatprep.mubr.bf16.mxu0 %v5988_v48  ;;  %2383 = vmatprep.mubr.bf16.mxu1 %v5988_v48 }
 0x206   :  { %2010 = vmatpush1.bf16.msra.mxu0 %v1421_v40  ;;  %2354 = vmatpush1.bf16.msra.mxu1 %v1423_v41  ;;  %v1487_v40 = vunpack.c.h.s8.bf16 %v551_v46  ;;  %v1494_v41 = vunpack.c.l.s8.bf16 %v558_v42  ;;  %v5996_v46 = vcombine.low %v5982_v33, %v5984_v34  ;;  %v1551_v34 = vunpack.c.h.s8.bf16 %v583_v45 }
 0x207   :  { %2011 = vmatprep.subr.bf16.mxu0 %v1430_v49  ;;  %2355 = vmatprep.subr.bf16.mxu1 %v1432_v50  ;;  %v1496_v49 = vunpack.c.l.s8.bf16 %v560_v43  ;;  %v557_v50 = vld [vmem:[#allocation6 + $0xd40] sm:$0xff] }
 0x208   :  { %v1493_v31 = vunpack.c.l.s8.bf16 %v557_v50  ;;  %v1501_v59 = vunpack.c.h.s8.bf16 %v557_v50 }
 0x20a   :  { %2012 = vmatpush1.bf16.msra.mxu0 %v1429_v54  ;;  %2356 = vmatpush1.bf16.msra.mxu1 %v1431_v55  ;;  %v1495_v54 = vunpack.c.l.s8.bf16 %v559_v30  ;;  %v1502_v55 = vunpack.c.h.s8.bf16 %v558_v42 }
 0x20b   :  { %2013 = vmatprep.subr.bf16.mxu0 %v1438_v56  ;;  %2357 = vmatprep.subr.bf16.mxu1 %v1440_v57  ;;  %v1504_v56 = vunpack.c.h.s8.bf16 %v560_v43  ;;  %v566_v57 = vld [vmem:[#allocation6 + $0xd88] sm:$0xff]  ;;  %v1552_v43 = vunpack.c.h.s8.bf16 %v584_v22 }
 0x20e   :  { %2014 = vmatpush1.bf16.msra.mxu0 %v1437_v2  ;;  %2358 = vmatpush1.bf16.msra.mxu1 %v1439_v3  ;;  %v1503_v2 = vunpack.c.h.s8.bf16 %v559_v30  ;;  %v1510_v3 = vunpack.c.l.s8.bf16 %v566_v57  ;;  %v589_v30 = vld [vmem:[#allocation6 + $0xe40] sm:$0xff] }
 0x20f   :  { %2015 = vmatprep.subr.bf16.mxu0 %v1446_v61  ;;  %2359 = vmatprep.subr.bf16.mxu1 %v1448_v62  ;;  %v1512_v61 = vunpack.c.l.s8.bf16 %v568_v58  ;;  %v565_v62 = vld [vmem:[#allocation6 + $0xd80] sm:$0xff] }
 0x210   :  { %v1509_v0 = vunpack.c.l.s8.bf16 %v565_v62  ;;  %v1517_v9 = vunpack.c.h.s8.bf16 %v565_v62 }
 0x212   :  { %2016 = vmatpush1.bf16.msra.mxu0 %v1445_v4  ;;  %2360 = vmatpush1.bf16.msra.mxu1 %v1447_v5  ;;  %v1511_v4 = vunpack.c.l.s8.bf16 %v567_v63  ;;  %v1518_v5 = vunpack.c.h.s8.bf16 %v566_v57 }
 0x213   :  { %2017 = vmatprep.subr.bf16.mxu0 %v1454_v6  ;;  %2361 = vmatprep.subr.bf16.mxu1 %v1456_v7  ;;  %v1520_v6 = vunpack.c.h.s8.bf16 %v568_v58  ;;  %v574_v7 = vld [vmem:[#allocation6 + $0xdc8] sm:$0xff] }
 0x214   :  { %v598_v58 = vld [vmem:[#allocation6 + $0xe88] sm:$0xff] }
 0x216   :  { %2018 = vmatpush1.bf16.msra.mxu0 %v1453_v20  ;;  %2362 = vmatpush1.bf16.msra.mxu1 %v1455_v21  ;;  %v1519_v20 = vunpack.c.h.s8.bf16 %v567_v63  ;;  %v1526_v21 = vunpack.c.l.s8.bf16 %v574_v7  ;;  %v597_v63 = vld [vmem:[#allocation6 + $0xe80] sm:$0xff] }
 0x217   :  { %2019 = vmatprep.subr.bf16.mxu0 %v1462_v11  ;;  %2363 = vmatprep.subr.bf16.mxu1 %v1464_v12  ;;  %v1528_v11 = vunpack.c.l.s8.bf16 %v576_v8  ;;  %v573_v12 = vld [vmem:[#allocation6 + $0xdc0] sm:$0xff] }
 0x218   :  { %v1525_v14 = vunpack.c.l.s8.bf16 %v573_v12  ;;  %v1533_v23 = vunpack.c.h.s8.bf16 %v573_v12 }
 0x21a   :  { %2020 = vmatpush1.bf16.msra.mxu0 %v1461_v15  ;;  %2364 = vmatpush1.bf16.msra.mxu1 %v1463_v16  ;;  %v1527_v15 = vunpack.c.l.s8.bf16 %v575_v13  ;;  %v1534_v16 = vunpack.c.h.s8.bf16 %v574_v7 }
 0x21b   :  { %2021 = vmatprep.subr.bf16.mxu0 %v1470_v17  ;;  %2365 = vmatprep.subr.bf16.mxu1 %v1472_v18  ;;  %v1536_v17 = vunpack.c.h.s8.bf16 %v576_v8  ;;  %v582_v18 = vld [vmem:[#allocation6 + $0xe08] sm:$0xff] }
 0x21c   :  { %v1550_v42 = vunpack.c.h.s8.bf16 %v582_v18  ;;  %v606_v8 = vld [vmem:[#allocation6 + $0xec8] sm:$0xff] }
 0x21e   :  { %2022 = vmatpush1.bf16.msra.mxu0 %v1469_v24  ;;  %2366 = vmatpush1.bf16.msra.mxu1 %v1471_v25  ;;  %v1535_v24 = vunpack.c.h.s8.bf16 %v575_v13  ;;  %v1542_v25 = vunpack.c.l.s8.bf16 %v582_v18  ;;  %v605_v13 = vld [vmem:[#allocation6 + $0xec0] sm:$0xff] }
 0x21f   :  { %2023 = vmatprep.subr.bf16.mxu0 %v1478_v26  ;;  %2367 = vmatprep.subr.bf16.mxu1 %v1480_v27  ;;  %v1544_v26 = vunpack.c.l.s8.bf16 %v584_v22  ;;  %v581_v27 = vld [vmem:[#allocation6 + $0xe00] sm:$0xff]  ;;  %v614_v22 = vld [vmem:[#allocation6 + $0xf08] sm:$0xff] }
 0x220   :  { %v1549_v33 = vunpack.c.h.s8.bf16 %v581_v27 }
 0x222   :  { %2024 = vmatpush1.bf16.msra.mxu0 %v1477_v29  ;;  %2368 = vmatpush1.bf16.msra.mxu1 %v1479_v35  ;;  %v5998_v29 = vld [vmem:[#allocation3 + $0x38] sm:$0xff] }
 0x223   :  { %2025 = vmatprep.subr.bf16.mxu0 %v1486_v37  ;;  %2369 = vmatprep.subr.bf16.mxu1 %v1488_v38  ;;  %v6000_v35 = vld [vmem:[#allocation3 + $0x78] sm:$0xff]  ;;  %v1541_v37 = vunpack.c.l.s8.bf16 %v581_v27  ;;  %v1543_v38 = vunpack.c.l.s8.bf16 %v583_v45  ;;  %v613_v45 = vld [vmem:[#allocation6 + $0xf00] sm:$0xff] }
 0x226   :  { %2026 = vmatpush1.bf16.msra.mxu0 %v1485_v47  ;;  %2370 = vmatpush1.bf16.msra.mxu1 %v1487_v40  ;;  %v590_v47 = vld [vmem:[#allocation6 + $0xe48] sm:$0xff]  ;;  %v592_v40 = vld [vmem:[#allocation6 + $0xe58] sm:$0xff] }
 0x227   :  { %2027 = vmatprep.subr.bf16.mxu0 %v1494_v41  ;;  %2371 = vmatprep.subr.bf16.mxu1 %v1496_v49  ;;  %v6004_v41 = vcombine.high %v5998_v29, %v6000_v35  ;;  %v1558_v49 = vunpack.c.l.s8.bf16 %v590_v47  ;;  %v1560_v50 = vunpack.c.l.s8.bf16 %v592_v40  ;;  %v1568_v57 = vunpack.c.h.s8.bf16 %v592_v40  ;;  %v622_v40 = vld [vmem:[#allocation6 + $0xf48] sm:$0xff] }
 0x22a   :  { %2028 = vmatpush1.bf16.msra.mxu0 %v1493_v31  ;;  %2372 = vmatpush1.bf16.msra.mxu1 %v1495_v54  ;;  %v591_v31 = vld [vmem:[#allocation6 + $0xe50] sm:$0xff]  ;;  %v1557_v54 = vunpack.c.l.s8.bf16 %v589_v30 }
 0x22b   :  { %2029 = vmatprep.subr.bf16.mxu0 %v1502_v55  ;;  %2373 = vmatprep.subr.bf16.mxu1 %v1504_v56  ;;  %v1559_v55 = vunpack.c.l.s8.bf16 %v591_v31  ;;  %v1566_v56 = vunpack.c.h.s8.bf16 %v590_v47 }
 0x22e   :  { %2030 = vmatpush1.bf16.msra.mxu0 %v1501_v59  ;;  %2374 = vmatpush1.bf16.msra.mxu1 %v1503_v2  ;;  %v600_v59 = vld [vmem:[#allocation6 + $0xe98] sm:$0xff]  ;;  %v1565_v2 = vunpack.c.h.s8.bf16 %v589_v30 }
 0x22f   :  { %2031 = vmatprep.subr.bf16.mxu0 %v1510_v3  ;;  %2375 = vmatprep.subr.bf16.mxu1 %v1512_v61  ;;  %v1567_v3 = vunpack.c.h.s8.bf16 %v591_v31  ;;  %v1574_v61 = vunpack.c.l.s8.bf16 %v598_v58  ;;  %v1576_v62 = vunpack.c.l.s8.bf16 %v600_v59  ;;  %v1584_v7 = vunpack.c.h.s8.bf16 %v600_v59  ;;  %v621_v31 = vld [vmem:[#allocation6 + $0xf40] sm:$0xff]  ;;  %v630_v59 = vld [vmem:[#allocation6 + $0xf88] sm:$0xff] }
 0x232   :  { %2032 = vmatpush1.bf16.msra.mxu0 %v1509_v0  ;;  %2376 = vmatpush1.bf16.msra.mxu1 %v1511_v4  ;;  %v599_v0 = vld [vmem:[#allocation6 + $0xe90] sm:$0xff]  ;;  %v1573_v4 = vunpack.c.l.s8.bf16 %v597_v63 }
 0x233   :  { %2033 = vmatprep.subr.bf16.mxu0 %v1518_v5  ;;  %2377 = vmatprep.subr.bf16.mxu1 %v1520_v6  ;;  %v1575_v5 = vunpack.c.l.s8.bf16 %v599_v0  ;;  %v1582_v6 = vunpack.c.h.s8.bf16 %v598_v58 }
 0x236   :  { %2034 = vmatpush1.bf16.msra.mxu0 %v1517_v9  ;;  %2378 = vmatpush1.bf16.msra.mxu1 %v1519_v20  ;;  %v608_v9 = vld [vmem:[#allocation6 + $0xed8] sm:$0xff]  ;;  %v1581_v20 = vunpack.c.h.s8.bf16 %v597_v63 }
 0x237   :  { %2035 = vmatprep.subr.bf16.mxu0 %v1526_v21  ;;  %2379 = vmatprep.subr.bf16.mxu1 %v1528_v11  ;;  %v1583_v21 = vunpack.c.h.s8.bf16 %v599_v0  ;;  %v1590_v11 = vunpack.c.l.s8.bf16 %v606_v8  ;;  %v1592_v12 = vunpack.c.l.s8.bf16 %v608_v9  ;;  %v1600_v18 = vunpack.c.h.s8.bf16 %v608_v9  ;;  %v629_v0 = vld [vmem:[#allocation6 + $0xf80] sm:$0xff]  ;;  %v638_v9 = vld [vmem:[#allocation6 + $0xfc8] sm:$0xff] }
 0x23a   :  { %2036 = vmatpush1.bf16.msra.mxu0 %v1525_v14  ;;  %2380 = vmatpush1.bf16.msra.mxu1 %v1527_v15  ;;  %v607_v14 = vld [vmem:[#allocation6 + $0xed0] sm:$0xff]  ;;  %v1589_v15 = vunpack.c.l.s8.bf16 %v605_v13 }
 0x23b   :  { %2037 = vmatprep.subr.bf16.mxu0 %v1534_v16  ;;  %2381 = vmatprep.subr.bf16.mxu1 %v1536_v17  ;;  %v1591_v16 = vunpack.c.l.s8.bf16 %v607_v14  ;;  %v1598_v17 = vunpack.c.h.s8.bf16 %v606_v8 }
 0x23e   :  { %2038 = vmatpush1.bf16.msra.mxu0 %v1533_v23  ;;  %2382 = vmatpush1.bf16.msra.mxu1 %v1535_v24  ;;  %v616_v23 = vld [vmem:[#allocation6 + $0xf18] sm:$0xff]  ;;  %v1597_v24 = vunpack.c.h.s8.bf16 %v605_v13 }
 0x23f   :  { %2050 = vmatprep.subr.bf16.mxu0 %v1542_v25  ;;  %2394 = vmatprep.subr.bf16.mxu1 %v1544_v26  ;;  %v1599_v25 = vunpack.c.h.s8.bf16 %v607_v14  ;;  %v1606_v26 = vunpack.c.l.s8.bf16 %v614_v22  ;;  %v1608_v27 = vunpack.c.l.s8.bf16 %v616_v23  ;;  %v1616_v47 = vunpack.c.h.s8.bf16 %v616_v23  ;;  %v637_v14 = vld [vmem:[#allocation6 + $0xfc0] sm:$0xff]  ;;  %v138_v23 = vld [vmem:[#allocation6 + $0x28] sm:$0xff] }
 0x241   :  { %2040 = vmatmul.mubr.bf16.vlgmr.msra.gmra.mrb[0].mxu0 %v5996_v46  ;;  %2384 = vmatmul.mubr.bf16.vlgmr.msra.gmra.mrb[0].mxu1 %v5996_v46 }
 0x242   :  { %2051 = vmatpush1.bf16.msra.mxu0 %v1541_v37  ;;  %2395 = vmatpush1.bf16.msra.mxu1 %v1543_v38  ;;  %v615_v37 = vld [vmem:[#allocation6 + $0xf10] sm:$0xff]  ;;  %v1605_v38 = vunpack.c.l.s8.bf16 %v613_v45 }
 0x243   :  { %2052 = vmatprep.subr.bf16.mxu0 %v1550_v42  ;;  %2396 = vmatprep.subr.bf16.mxu1 %v1552_v43  ;;  %v1607_v42 = vunpack.c.l.s8.bf16 %v615_v37  ;;  %v1614_v43 = vunpack.c.h.s8.bf16 %v614_v22 }
 0x244   :  { %2082 = vmatprep.mubr.bf16.mxu0 %v6004_v41  ;;  %2426 = vmatprep.mubr.bf16.mxu1 %v6004_v41 }
 0x246   :  { %2053 = vmatpush1.bf16.msra.mxu0 %v1549_v33  ;;  %2397 = vmatpush1.bf16.msra.mxu1 %v1551_v34  ;;  %v624_v33 = vld [vmem:[#allocation6 + $0xf58] sm:$0xff]  ;;  %v1613_v34 = vunpack.c.h.s8.bf16 %v613_v45 }
 0x247   :  { %2054 = vmatprep.subr.bf16.mxu0 %v1558_v49  ;;  %2398 = vmatprep.subr.bf16.mxu1 %v1560_v50  ;;  %v1615_v49 = vunpack.c.h.s8.bf16 %v615_v37  ;;  %v1622_v50 = vunpack.c.l.s8.bf16 %v622_v40  ;;  %v1624_v30 = vunpack.c.l.s8.bf16 %v624_v33  ;;  %v1632_v58 = vunpack.c.h.s8.bf16 %v624_v33  ;;  %v137_v37 = vld [vmem:[#allocation6 + $0x20] sm:$0xff] }
 0x24a   :  { %2055 = vmatpush1.bf16.msra.mxu0 %v1557_v54  ;;  %2399 = vmatpush1.bf16.msra.mxu1 %v1559_v55  ;;  %v623_v54 = vld [vmem:[#allocation6 + $0xf50] sm:$0xff]  ;;  %v1621_v55 = vunpack.c.l.s8.bf16 %v621_v31 }
 0x24b   :  { %2056 = vmatprep.subr.bf16.mxu0 %v1566_v56  ;;  %2400 = vmatprep.subr.bf16.mxu1 %v1568_v57  ;;  %v1623_v56 = vunpack.c.l.s8.bf16 %v623_v54  ;;  %v1630_v57 = vunpack.c.h.s8.bf16 %v622_v40  ;;  %v658_v40 = vunpack.c.h.s8.bf16 %v138_v23 }
 0x24e   :  { %2057 = vmatpush1.bf16.msra.mxu0 %v1565_v2  ;;  %2401 = vmatpush1.bf16.msra.mxu1 %v1567_v3  ;;  %v632_v2 = vld [vmem:[#allocation6 + $0xf98] sm:$0xff]  ;;  %v1629_v3 = vunpack.c.h.s8.bf16 %v621_v31  ;;  %v145_v31 = vld [vmem:[#allocation6 + $0x60] sm:$0xff] }
 0x24f   :  { %2058 = vmatprep.subr.bf16.mxu0 %v1574_v61  ;;  %2402 = vmatprep.subr.bf16.mxu1 %v1576_v62  ;;  %v1631_v61 = vunpack.c.h.s8.bf16 %v623_v54  ;;  %v1638_v62 = vunpack.c.l.s8.bf16 %v630_v59  ;;  %v1640_v63 = vunpack.c.l.s8.bf16 %v632_v2  ;;  %v1648_v8 = vunpack.c.h.s8.bf16 %v632_v2  ;;  %v147_v54 = vld [vmem:[#allocation6 + $0x70] sm:$0xff]  ;;  %v156_v2 = vld [vmem:[#allocation6 + $0xb8] sm:$0xff] }
 0x252   :  { %2059 = vmatpush1.bf16.msra.mxu0 %v1573_v4  ;;  %2403 = vmatpush1.bf16.msra.mxu1 %v1575_v5  ;;  %v631_v4 = vld [vmem:[#allocation6 + $0xf90] sm:$0xff]  ;;  %v1637_v5 = vunpack.c.l.s8.bf16 %v629_v0 }
 0x253   :  { %2060 = vmatprep.subr.bf16.mxu0 %v1582_v6  ;;  %2404 = vmatprep.subr.bf16.mxu1 %v1584_v7  ;;  %v1639_v6 = vunpack.c.l.s8.bf16 %v631_v4  ;;  %v1646_v7 = vunpack.c.h.s8.bf16 %v630_v59  ;;  %v154_v59 = vld [vmem:[#allocation6 + $0xa8] sm:$0xff] }
 0x256   :  { %2061 = vmatpush1.bf16.msra.mxu0 %v1581_v20  ;;  %2405 = vmatpush1.bf16.msra.mxu1 %v1583_v21  ;;  %v640_v20 = vld [vmem:[#allocation6 + $0xfd8] sm:$0xff]  ;;  %v1645_v21 = vunpack.c.h.s8.bf16 %v629_v0  ;;  %v153_v0 = vld [vmem:[#allocation6 + $0xa0] sm:$0xff] }
 0x257   :  { %2062 = vmatprep.subr.bf16.mxu0 %v1590_v11  ;;  %2406 = vmatprep.subr.bf16.mxu1 %v1592_v12  ;;  %v1647_v11 = vunpack.c.h.s8.bf16 %v631_v4  ;;  %v1654_v12 = vunpack.c.l.s8.bf16 %v638_v9  ;;  %v1656_v13 = vunpack.c.l.s8.bf16 %v640_v20  ;;  %v1664_v22 = vunpack.c.h.s8.bf16 %v640_v20 }
 0x258   :  { %v681_v4 = vunpack.c.l.s8.bf16 %v153_v0  ;;  %v689_v20 = vunpack.c.h.s8.bf16 %v153_v0  ;;  %v187_v0 = vld [vmem:[#allocation6 + $0x1b0] sm:$0xff] }
 0x25a   :  { %2063 = vmatpush1.bf16.msra.mxu0 %v1589_v15  ;;  %2407 = vmatpush1.bf16.msra.mxu1 %v1591_v16  ;;  %v639_v15 = vld [vmem:[#allocation6 + $0xfd0] sm:$0xff]  ;;  %v1653_v16 = vunpack.c.l.s8.bf16 %v637_v14 }
 0x25b   :  { %2064 = vmatprep.subr.bf16.mxu0 %v1598_v17  ;;  %2408 = vmatprep.subr.bf16.mxu1 %v1600_v18  ;;  %v1655_v17 = vunpack.c.l.s8.bf16 %v639_v15  ;;  %v1662_v18 = vunpack.c.h.s8.bf16 %v638_v9  ;;  %v164_v9 = vld [vmem:[#allocation6 + $0xf8] sm:$0xff] }
 0x25e   :  { %2065 = vmatpush1.bf16.msra.mxu0 %v1597_v24  ;;  %2409 = vmatpush1.bf16.msra.mxu1 %v1599_v25  ;;  %v140_v24 = vld [vmem:[#allocation6 + $0x38] sm:$0xff]  ;;  %v1661_v25 = vunpack.c.h.s8.bf16 %v637_v14  ;;  %v163_v14 = vld [vmem:[#allocation6 + $0xf0] sm:$0xff] }
 0x25f   :  { %2066 = vmatprep.subr.bf16.mxu0 %v1606_v26  ;;  %2410 = vmatprep.subr.bf16.mxu1 %v1608_v27  ;;  %v1663_v26 = vunpack.c.h.s8.bf16 %v639_v15  ;;  %v650_v27 = vunpack.c.l.s8.bf16 %v138_v23  ;;  %v652_v45 = vunpack.c.l.s8.bf16 %v140_v24  ;;  %v660_v33 = vunpack.c.h.s8.bf16 %v140_v24  ;;  %v172_v23 = vld [vmem:[#allocation6 + $0x138] sm:$0xff] }
 0x262   :  { %2067 = vmatpush1.bf16.msra.mxu0 %v1605_v38  ;;  %2411 = vmatpush1.bf16.msra.mxu1 %v1607_v42  ;;  %v139_v38 = vld [vmem:[#allocation6 + $0x30] sm:$0xff]  ;;  %v6012_v42 = vcombine.low %v5998_v29, %v6000_v35 }
 0x263   :  { %2068 = vmatprep.subr.bf16.mxu0 %v1614_v43  ;;  %2412 = vmatprep.subr.bf16.mxu1 %v1616_v47  ;;  %v649_v43 = vunpack.c.l.s8.bf16 %v137_v37  ;;  %v651_v47 = vunpack.c.l.s8.bf16 %v139_v38 }
 0x266   :  { %2069 = vmatpush1.bf16.msra.mxu0 %v1613_v34  ;;  %2413 = vmatpush1.bf16.msra.mxu1 %v1615_v49  ;;  %v146_v34 = vld [vmem:[#allocation6 + $0x68] sm:$0xff]  ;;  %v148_v49 = vld [vmem:[#allocation6 + $0x78] sm:$0xff] }
 0x267   :  { %2070 = vmatprep.subr.bf16.mxu0 %v1622_v50  ;;  %2414 = vmatprep.subr.bf16.mxu1 %v1624_v30  ;;  %v657_v50 = vunpack.c.h.s8.bf16 %v137_v37  ;;  %v659_v30 = vunpack.c.h.s8.bf16 %v139_v38  ;;  %v666_v29 = vunpack.c.l.s8.bf16 %v146_v34  ;;  %v668_v35 = vunpack.c.l.s8.bf16 %v148_v49  ;;  %v171_v37 = vld [vmem:[#allocation6 + $0x130] sm:$0xff] }
 0x26a   :  { %2071 = vmatpush1.bf16.msra.mxu0 %v1621_v55  ;;  %2415 = vmatpush1.bf16.msra.mxu1 %v1623_v56  ;;  %v665_v55 = vunpack.c.l.s8.bf16 %v145_v31  ;;  %v667_v56 = vunpack.c.l.s8.bf16 %v147_v54 }
 0x26b   :  { %2072 = vmatprep.subr.bf16.mxu0 %v1630_v57  ;;  %2416 = vmatprep.subr.bf16.mxu1 %v1632_v58  ;;  %v674_v57 = vunpack.c.h.s8.bf16 %v146_v34  ;;  %v676_v58 = vunpack.c.h.s8.bf16 %v148_v49  ;;  %v180_v34 = vld [vmem:[#allocation6 + $0x178] sm:$0xff] }
 0x26e   :  { %2073 = vmatpush1.bf16.msra.mxu0 %v1629_v3  ;;  %2417 = vmatpush1.bf16.msra.mxu1 %v1631_v61  ;;  %v673_v3 = vunpack.c.h.s8.bf16 %v145_v31  ;;  %v675_v61 = vunpack.c.h.s8.bf16 %v147_v54  ;;  %v179_v31 = vld [vmem:[#allocation6 + $0x170] sm:$0xff] }
 0x26f   :  { %2074 = vmatprep.subr.bf16.mxu0 %v1638_v62  ;;  %2418 = vmatprep.subr.bf16.mxu1 %v1640_v63  ;;  %v682_v62 = vunpack.c.l.s8.bf16 %v154_v59  ;;  %v684_v63 = vunpack.c.l.s8.bf16 %v156_v2 }
 0x272   :  { %2075 = vmatpush1.bf16.msra.mxu0 %v1637_v5  ;;  %2419 = vmatpush1.bf16.msra.mxu1 %v1639_v6  ;;  %v690_v6 = vunpack.c.h.s8.bf16 %v154_v59  ;;  %v188_v59 = vld [vmem:[#allocation6 + $0x1b8] sm:$0xff] }
 0x273   :  { %2076 = vmatprep.subr.bf16.mxu0 %v1646_v7  ;;  %2420 = vmatprep.subr.bf16.mxu1 %v1648_v8  ;;  %v692_v7 = vunpack.c.h.s8.bf16 %v156_v2  ;;  %v162_v8 = vld [vmem:[#allocation6 + $0xe8] sm:$0xff] }
 0x276   :  { %2077 = vmatpush1.bf16.msra.mxu0 %v1645_v21  ;;  %2421 = vmatpush1.bf16.msra.mxu1 %v1647_v11  ;;  %v698_v11 = vunpack.c.l.s8.bf16 %v162_v8 }
 0x277   :  { %2078 = vmatprep.subr.bf16.mxu0 %v1654_v12  ;;  %2422 = vmatprep.subr.bf16.mxu1 %v1656_v13  ;;  %v700_v12 = vunpack.c.l.s8.bf16 %v164_v9  ;;  %v161_v13 = vld [vmem:[#allocation6 + $0xe0] sm:$0xff] }
 0x278   :  { %v697_v15 = vunpack.c.l.s8.bf16 %v161_v13  ;;  %v705_v24 = vunpack.c.h.s8.bf16 %v161_v13  ;;  %v195_v13 = vld [vmem:[#allocation6 + $0x1f0] sm:$0xff] }
 0x27a   :  { %2079 = vmatpush1.bf16.msra.mxu0 %v1653_v16  ;;  %2423 = vmatpush1.bf16.msra.mxu1 %v1655_v17  ;;  %v699_v16 = vunpack.c.l.s8.bf16 %v163_v14  ;;  %v706_v17 = vunpack.c.h.s8.bf16 %v162_v8  ;;  %v196_v8 = vld [vmem:[#allocation6 + $0x1f8] sm:$0xff] }
 0x27b   :  { %2080 = vmatprep.subr.bf16.mxu0 %v1662_v18  ;;  %2424 = vmatprep.subr.bf16.mxu1 %v1664_v22  ;;  %v708_v18 = vunpack.c.h.s8.bf16 %v164_v9  ;;  %v170_v22 = vld [vmem:[#allocation6 + $0x128] sm:$0xff] }
 0x27e   :  { %2081 = vmatpush1.bf16.msra.mxu0 %v1661_v25  ;;  %2425 = vmatpush1.bf16.msra.mxu1 %v1663_v26  ;;  %v707_v25 = vunpack.c.h.s8.bf16 %v163_v14  ;;  %v714_v26 = vunpack.c.l.s8.bf16 %v170_v22 }
 0x27f   :  { %2437 = vmatprep.subr.bf16.mxu0 %v650_v27  ;;  %2781 = vmatprep.subr.bf16.mxu1 %v652_v45  ;;  %v716_v27 = vunpack.c.l.s8.bf16 %v172_v23  ;;  %v169_v45 = vld [vmem:[#allocation6 + $0x120] sm:$0xff] }
 0x280   :  { %v713_v38 = vunpack.c.l.s8.bf16 %v169_v45  ;;  %v721_v49 = vunpack.c.h.s8.bf16 %v169_v45  ;;  %v203_v45 = vld [vmem:[#allocation6 + $0x230] sm:$0xff] }
 0x281   :  { %2083 = vmatmul.mubr.bf16.vlgmr.msra.gmra.mrb[0].mxu0 %v6012_v42  ;;  %2427 = vmatmul.mubr.bf16.vlgmr.msra.gmra.mrb[0].mxu1 %v6012_v42 }
 0x282   :  { %2438 = vmatpush1.bf16.msra.mxu0 %v649_v43  ;;  %2782 = vmatpush1.bf16.msra.mxu1 %v651_v47  ;;  %v715_v43 = vunpack.c.l.s8.bf16 %v171_v37  ;;  %v722_v47 = vunpack.c.h.s8.bf16 %v170_v22  ;;  %v204_v22 = vld [vmem:[#allocation6 + $0x238] sm:$0xff] }
 0x283   :  { %2439 = vmatprep.subr.bf16.mxu0 %v658_v40  ;;  %2783 = vmatprep.subr.bf16.mxu1 %v660_v33  ;;  %v724_v40 = vunpack.c.h.s8.bf16 %v172_v23  ;;  %v178_v33 = vld [vmem:[#allocation6 + $0x168] sm:$0xff] }
 0x284   :  { %2469 = vmatprep.mubr.bf16.mxu0 %v5894_v36  ;;  %2813 = vmatprep.mubr.bf16.mxu1 %v5894_v36  ;;  %v155_v36 = vld [vmem:[#allocation6 + $0xb0] sm:$0xff] }
 0x285   :  { %v683_v5 = vunpack.c.l.s8.bf16 %v155_v36  ;;  %v691_v21 = vunpack.c.h.s8.bf16 %v155_v36 }
 0x286   :  { %2440 = vmatpush1.bf16.msra.mxu0 %v657_v50  ;;  %2784 = vmatpush1.bf16.msra.mxu1 %v659_v30  ;;  %v723_v50 = vunpack.c.h.s8.bf16 %v171_v37  ;;  %v730_v30 = vunpack.c.l.s8.bf16 %v178_v33 }
 0x287   :  { %2441 = vmatprep.subr.bf16.mxu0 %v666_v29  ;;  %2785 = vmatprep.subr.bf16.mxu1 %v668_v35  ;;  %v732_v29 = vunpack.c.l.s8.bf16 %v180_v34  ;;  %v177_v35 = vld [vmem:[#allocation6 + $0x160] sm:$0xff] }
 0x288   :  { %v729_v54 = vunpack.c.l.s8.bf16 %v177_v35  ;;  %v737_v2 = vunpack.c.h.s8.bf16 %v177_v35  ;;  %v211_v35 = vld [vmem:[#allocation6 + $0x270] sm:$0xff] }
 0x28a   :  { %2442 = vmatpush1.bf16.msra.mxu0 %v665_v55  ;;  %2786 = vmatpush1.bf16.msra.mxu1 %v667_v56  ;;  %v731_v55 = vunpack.c.l.s8.bf16 %v179_v31  ;;  %v738_v56 = vunpack.c.h.s8.bf16 %v178_v33  ;;  %v212_v33 = vld [vmem:[#allocation6 + $0x278] sm:$0xff] }
 0x28b   :  { %2443 = vmatprep.subr.bf16.mxu0 %v674_v57  ;;  %2787 = vmatprep.subr.bf16.mxu1 %v676_v58  ;;  %v740_v57 = vunpack.c.h.s8.bf16 %v180_v34  ;;  %v186_v58 = vld [vmem:[#allocation6 + $0x1a8] sm:$0xff] }
 0x28e   :  { %2444 = vmatpush1.bf16.msra.mxu0 %v673_v3  ;;  %2788 = vmatpush1.bf16.msra.mxu1 %v675_v61  ;;  %v739_v3 = vunpack.c.h.s8.bf16 %v179_v31  ;;  %v746_v61 = vunpack.c.l.s8.bf16 %v186_v58 }
 0x28f   :  { %2445 = vmatprep.subr.bf16.mxu0 %v682_v62  ;;  %2789 = vmatprep.subr.bf16.mxu1 %v684_v63  ;;  %v748_v62 = vunpack.c.l.s8.bf16 %v188_v59  ;;  %v185_v63 = vld [vmem:[#allocation6 + $0x1a0] sm:$0xff] }
 0x290   :  { %v745_v36 = vunpack.c.l.s8.bf16 %v185_v63  ;;  %v753_v9 = vunpack.c.h.s8.bf16 %v185_v63 }
 0x292   :  { %2446 = vmatpush1.bf16.msra.mxu0 %v681_v4  ;;  %2790 = vmatpush1.bf16.msra.mxu1 %v683_v5  ;;  %v747_v4 = vunpack.c.l.s8.bf16 %v187_v0  ;;  %v754_v5 = vunpack.c.h.s8.bf16 %v186_v58 }
 0x293   :  { %2447 = vmatprep.subr.bf16.mxu0 %v690_v6  ;;  %2791 = vmatprep.subr.bf16.mxu1 %v692_v7  ;;  %v756_v6 = vunpack.c.h.s8.bf16 %v188_v59  ;;  %v194_v7 = vld [vmem:[#allocation6 + $0x1e8] sm:$0xff]  ;;  %v803_v59 = vunpack.c.h.s8.bf16 %v211_v35 }
 0x296   :  { %2448 = vmatpush1.bf16.msra.mxu0 %v689_v20  ;;  %2792 = vmatpush1.bf16.msra.mxu1 %v691_v21  ;;  %v755_v20 = vunpack.c.h.s8.bf16 %v187_v0  ;;  %v762_v21 = vunpack.c.l.s8.bf16 %v194_v7 }
 0x297   :  { %2449 = vmatprep.subr.bf16.mxu0 %v698_v11  ;;  %2793 = vmatprep.subr.bf16.mxu1 %v700_v12  ;;  %v764_v11 = vunpack.c.l.s8.bf16 %v196_v8  ;;  %v193_v12 = vld [vmem:[#allocation6 + $0x1e0] sm:$0xff] }
 0x298   :  { %v761_v14 = vunpack.c.l.s8.bf16 %v193_v12  ;;  %v769_v23 = vunpack.c.h.s8.bf16 %v193_v12 }
 0x29a   :  { %2450 = vmatpush1.bf16.msra.mxu0 %v697_v15  ;;  %2794 = vmatpush1.bf16.msra.mxu1 %v699_v16  ;;  %v763_v15 = vunpack.c.l.s8.bf16 %v195_v13  ;;  %v770_v16 = vunpack.c.h.s8.bf16 %v194_v7 }
 0x29b   :  { %2451 = vmatprep.subr.bf16.mxu0 %v706_v17  ;;  %2795 = vmatprep.subr.bf16.mxu1 %v708_v18  ;;  %v772_v17 = vunpack.c.h.s8.bf16 %v196_v8  ;;  %v202_v18 = vld [vmem:[#allocation6 + $0x228] sm:$0xff] }
 0x29e   :  { %2452 = vmatpush1.bf16.msra.mxu0 %v705_v24  ;;  %2796 = vmatpush1.bf16.msra.mxu1 %v707_v25  ;;  %v771_v24 = vunpack.c.h.s8.bf16 %v195_v13  ;;  %v778_v25 = vunpack.c.l.s8.bf16 %v202_v18 }
 0x29f   :  { %2453 = vmatprep.subr.bf16.mxu0 %v714_v26  ;;  %2797 = vmatprep.subr.bf16.mxu1 %v716_v27  ;;  %v780_v26 = vunpack.c.l.s8.bf16 %v204_v22  ;;  %v201_v27 = vld [vmem:[#allocation6 + $0x220] sm:$0xff] }
 0x2a0   :  { %v777_v37 = vunpack.c.l.s8.bf16 %v201_v27  ;;  %v785_v34 = vunpack.c.h.s8.bf16 %v201_v27 }
 0x2a2   :  { %2454 = vmatpush1.bf16.msra.mxu0 %v713_v38  ;;  %2798 = vmatpush1.bf16.msra.mxu1 %v715_v43  ;;  %v779_v38 = vunpack.c.l.s8.bf16 %v203_v45  ;;  %v786_v43 = vunpack.c.h.s8.bf16 %v202_v18 }
 0x2a3   :  { %2455 = vmatprep.subr.bf16.mxu0 %v722_v47  ;;  %2799 = vmatprep.subr.bf16.mxu1 %v724_v40  ;;  %v788_v47 = vunpack.c.h.s8.bf16 %v204_v22  ;;  %v210_v40 = vld [vmem:[#allocation6 + $0x268] sm:$0xff] }
 0x2a6   :  { %2456 = vmatpush1.bf16.msra.mxu0 %v721_v49  ;;  %2800 = vmatpush1.bf16.msra.mxu1 %v723_v50  ;;  %v787_v49 = vunpack.c.h.s8.bf16 %v203_v45  ;;  %v794_v50 = vunpack.c.l.s8.bf16 %v210_v40 }
 0x2a7   :  { %2457 = vmatprep.subr.bf16.mxu0 %v730_v30  ;;  %2801 = vmatprep.subr.bf16.mxu1 %v732_v29  ;;  %v796_v30 = vunpack.c.l.s8.bf16 %v212_v33  ;;  %v209_v29 = vld [vmem:[#allocation6 + $0x260] sm:$0xff] }
 0x2a8   :  { %v793_v31 = vunpack.c.l.s8.bf16 %v209_v29  ;;  %v801_v58 = vunpack.c.h.s8.bf16 %v209_v29 }
 0x2aa   :  { %2458 = vmatpush1.bf16.msra.mxu0 %v729_v54  ;;  %2802 = vmatpush1.bf16.msra.mxu1 %v731_v55  ;;  %v795_v54 = vunpack.c.l.s8.bf16 %v211_v35  ;;  %v804_v55 = vunpack.c.h.s8.bf16 %v212_v33 }
 0x2ab   :  { %2459 = vmatprep.subr.bf16.mxu0 %v738_v56  ;;  %2803 = vmatprep.subr.bf16.mxu1 %v740_v57  ;;  %v218_v56 = vld [vmem:[#allocation6 + $0x2a8] sm:$0xff]  ;;  %v220_v57 = vld [vmem:[#allocation6 + $0x2b8] sm:$0xff] }
 0x2ac   :  { %v818_v0 = vunpack.c.h.s8.bf16 %v218_v56 }
 0x2ae   :  { %2460 = vmatpush1.bf16.msra.mxu0 %v737_v2  ;;  %2804 = vmatpush1.bf16.msra.mxu1 %v739_v3  ;;  %v810_v2 = vunpack.c.l.s8.bf16 %v218_v56  ;;  %v812_v3 = vunpack.c.l.s8.bf16 %v220_v57 }
 0x2af   :  { %2461 = vmatprep.subr.bf16.mxu0 %v746_v61  ;;  %2805 = vmatprep.subr.bf16.mxu1 %v748_v62  ;;  %v217_v61 = vld [vmem:[#allocation6 + $0x2a0] sm:$0xff] }
 0x2b0   :  { %v809_v62 = vunpack.c.l.s8.bf16 %v217_v61 }
 0x2b2   :  { %2462 = vmatpush1.bf16.msra.mxu0 %v745_v36  ;;  %2806 = vmatpush1.bf16.msra.mxu1 %v747_v4  ;;  %v820_v36 = vunpack.c.h.s8.bf16 %v220_v57  ;;  %v226_v4 = vld [vmem:[#allocation6 + $0x2e8] sm:$0xff] }
 0x2b3   :  { %2463 = vmatprep.subr.bf16.mxu0 %v754_v5  ;;  %2807 = vmatprep.subr.bf16.mxu1 %v756_v6  ;;  %v228_v5 = vld [vmem:[#allocation6 + $0x2f8] sm:$0xff]  ;;  %v817_v6 = vunpack.c.h.s8.bf16 %v217_v61  ;;  %v826_v8 = vunpack.c.l.s8.bf16 %v226_v4  ;;  %v834_v13 = vunpack.c.h.s8.bf16 %v226_v4 }
 0x2b6   :  { %2464 = vmatpush1.bf16.msra.mxu0 %v753_v9  ;;  %2808 = vmatpush1.bf16.msra.mxu1 %v755_v20  ;;  %v828_v9 = vunpack.c.l.s8.bf16 %v228_v5  ;;  %v225_v20 = vld [vmem:[#allocation6 + $0x2e0] sm:$0xff] }
 0x2b7   :  { %2465 = vmatprep.subr.bf16.mxu0 %v762_v21  ;;  %2809 = vmatprep.subr.bf16.mxu1 %v764_v11  ;;  %v227_v21 = vld [vmem:[#allocation6 + $0x2f0] sm:$0xff]  ;;  %v825_v11 = vunpack.c.l.s8.bf16 %v225_v20 }
 0x2b8   :  { %v827_v12 = vunpack.c.l.s8.bf16 %v227_v21  ;;  %v835_v18 = vunpack.c.h.s8.bf16 %v227_v21 }
 0x2ba   :  { %2466 = vmatpush1.bf16.msra.mxu0 %v761_v14  ;;  %2810 = vmatpush1.bf16.msra.mxu1 %v763_v15  ;;  %v836_v14 = vunpack.c.h.s8.bf16 %v228_v5  ;;  %v234_v15 = vld [vmem:[#allocation6 + $0x328] sm:$0xff] }
 0x2bb   :  { %2467 = vmatprep.subr.bf16.mxu0 %v770_v16  ;;  %2811 = vmatprep.subr.bf16.mxu1 %v772_v17  ;;  %v236_v16 = vld [vmem:[#allocation6 + $0x338] sm:$0xff]  ;;  %v833_v17 = vunpack.c.h.s8.bf16 %v225_v20  ;;  %v842_v22 = vunpack.c.l.s8.bf16 %v234_v15  ;;  %v850_v45 = vunpack.c.h.s8.bf16 %v234_v15 }
 0x2be   :  { %2468 = vmatpush1.bf16.msra.mxu0 %v769_v23  ;;  %2812 = vmatpush1.bf16.msra.mxu1 %v771_v24  ;;  %v844_v23 = vunpack.c.l.s8.bf16 %v236_v16  ;;  %v233_v24 = vld [vmem:[#allocation6 + $0x320] sm:$0xff] }
 0x2bf   :  { %2480 = vmatprep.subr.bf16.mxu0 %v778_v25  ;;  %2824 = vmatprep.subr.bf16.mxu1 %v780_v26  ;;  %v235_v25 = vld [vmem:[#allocation6 + $0x330] sm:$0xff]  ;;  %v841_v26 = vunpack.c.l.s8.bf16 %v233_v24 }
 0x2c0   :  { %v843_v27 = vunpack.c.l.s8.bf16 %v235_v25 }
 0x2c1   :  { %2470 = vmatmul.mubr.bf16.vlgmr.msra.gmra.mrb[4].mxu0 %v5900_v44  ;;  %2814 = vmatmul.mubr.bf16.vlgmr.msra.gmra.mrb[4].mxu1 %v5900_v44  ;;  %v802_v44 = vunpack.c.h.s8.bf16 %v210_v40  ;;  %v851_v40 = vunpack.c.h.s8.bf16 %v235_v25 }
 0x2c2   :  { %2481 = vmatpush1.bf16.msra.mxu0 %v777_v37  ;;  %2825 = vmatpush1.bf16.msra.mxu1 %v779_v38  ;;  %v852_v37 = vunpack.c.h.s8.bf16 %v236_v16  ;;  %v242_v38 = vld [vmem:[#allocation6 + $0x368] sm:$0xff] }
 0x2c3   :  { %2482 = vmatprep.subr.bf16.mxu0 %v786_v43  ;;  %2826 = vmatprep.subr.bf16.mxu1 %v788_v47  ;;  %v244_v43 = vld [vmem:[#allocation6 + $0x378] sm:$0xff]  ;;  %v849_v47 = vunpack.c.h.s8.bf16 %v233_v24  ;;  %v858_v33 = vunpack.c.l.s8.bf16 %v242_v38  ;;  %v866_v35 = vunpack.c.h.s8.bf16 %v242_v38 }
 0x2c4   :  { %2512 = vmatprep.mubr.bf16.mxu0 %v5908_v53  ;;  %2856 = vmatprep.mubr.bf16.mxu1 %v5908_v53  ;;  %v219_v53 = vld [vmem:[#allocation6 + $0x2b0] sm:$0xff] }
 0x2c5   :  { %v811_v63 = vunpack.c.l.s8.bf16 %v219_v53  ;;  %v819_v7 = vunpack.c.h.s8.bf16 %v219_v53 }
 0x2c6   :  { %2483 = vmatpush1.bf16.msra.mxu0 %v785_v34  ;;  %2827 = vmatpush1.bf16.msra.mxu1 %v787_v49  ;;  %v860_v34 = vunpack.c.l.s8.bf16 %v244_v43  ;;  %v241_v49 = vld [vmem:[#allocation6 + $0x360] sm:$0xff] }
 0x2c7   :  { %2484 = vmatprep.subr.bf16.mxu0 %v794_v50  ;;  %2828 = vmatprep.subr.bf16.mxu1 %v796_v30  ;;  %v243_v50 = vld [vmem:[#allocation6 + $0x370] sm:$0xff]  ;;  %v857_v30 = vunpack.c.l.s8.bf16 %v241_v49 }
 0x2c8   :  { %v859_v29 = vunpack.c.l.s8.bf16 %v243_v50  ;;  %v867_v56 = vunpack.c.h.s8.bf16 %v243_v50 }
 0x2ca   :  { %2485 = vmatpush1.bf16.msra.mxu0 %v793_v31  ;;  %2829 = vmatpush1.bf16.msra.mxu1 %v795_v54  ;;  %v868_v31 = vunpack.c.h.s8.bf16 %v244_v43  ;;  %v250_v54 = vld [vmem:[#allocation6 + $0x3a8] sm:$0xff] }
 0x2cb   :  { %2486 = vmatprep.subr.bf16.mxu0 %v802_v44  ;;  %2830 = vmatprep.subr.bf16.mxu1 %v804_v55  ;;  %v252_v44 = vld [vmem:[#allocation6 + $0x3b8] sm:$0xff]  ;;  %v865_v55 = vunpack.c.h.s8.bf16 %v241_v49  ;;  %v874_v57 = vunpack.c.l.s8.bf16 %v250_v54  ;;  %v882_v53 = vunpack.c.h.s8.bf16 %v250_v54 }
 0x2ce   :  { %2487 = vmatpush1.bf16.msra.mxu0 %v801_v58  ;;  %2831 = vmatpush1.bf16.msra.mxu1 %v803_v59  ;;  %v876_v58 = vunpack.c.l.s8.bf16 %v252_v44  ;;  %v249_v59 = vld [vmem:[#allocation6 + $0x3a0] sm:$0xff] }
 0x2cf   :  { %2488 = vmatprep.subr.bf16.mxu0 %v810_v2  ;;  %2832 = vmatprep.subr.bf16.mxu1 %v812_v3  ;;  %v251_v2 = vld [vmem:[#allocation6 + $0x3b0] sm:$0xff]  ;;  %v873_v3 = vunpack.c.l.s8.bf16 %v249_v59 }
 0x2d0   :  { %v875_v61 = vunpack.c.l.s8.bf16 %v251_v2  ;;  %v883_v4 = vunpack.c.h.s8.bf16 %v251_v2  ;;  %v290_v2 = vld [vmem:[#allocation6 + $0x4e8] sm:$0xff] }
 0x2d2   :  { %2489 = vmatpush1.bf16.msra.mxu0 %v809_v62  ;;  %2833 = vmatpush1.bf16.msra.mxu1 %v811_v63  ;;  %v884_v62 = vunpack.c.h.s8.bf16 %v252_v44  ;;  %v258_v63 = vld [vmem:[#allocation6 + $0x3e8] sm:$0xff] }
 0x2d3   :  { %2490 = vmatprep.subr.bf16.mxu0 %v818_v0  ;;  %2834 = vmatprep.subr.bf16.mxu1 %v820_v36  ;;  %v260_v0 = vld [vmem:[#allocation6 + $0x3f8] sm:$0xff]  ;;  %v881_v36 = vunpack.c.h.s8.bf16 %v249_v59  ;;  %v890_v5 = vunpack.c.l.s8.bf16 %v258_v63  ;;  %v898_v21 = vunpack.c.h.s8.bf16 %v258_v63 }
 0x2d6   :  { %2491 = vmatpush1.bf16.msra.mxu0 %v817_v6  ;;  %2835 = vmatpush1.bf16.msra.mxu1 %v819_v7  ;;  %v892_v6 = vunpack.c.l.s8.bf16 %v260_v0  ;;  %v257_v7 = vld [vmem:[#allocation6 + $0x3e0] sm:$0xff] }
 0x2d7   :  { %2492 = vmatprep.subr.bf16.mxu0 %v826_v8  ;;  %2836 = vmatprep.subr.bf16.mxu1 %v828_v9  ;;  %v259_v8 = vld [vmem:[#allocation6 + $0x3f0] sm:$0xff]  ;;  %v889_v9 = vunpack.c.l.s8.bf16 %v257_v7 }
 0x2d8   :  { %v891_v20 = vunpack.c.l.s8.bf16 %v259_v8  ;;  %v899_v15 = vunpack.c.h.s8.bf16 %v259_v8  ;;  %v298_v8 = vld [vmem:[#allocation6 + $0x528] sm:$0xff] }
 0x2da   :  { %2493 = vmatpush1.bf16.msra.mxu0 %v825_v11  ;;  %2837 = vmatpush1.bf16.msra.mxu1 %v827_v12  ;;  %v900_v11 = vunpack.c.h.s8.bf16 %v260_v0  ;;  %v266_v12 = vld [vmem:[#allocation6 + $0x428] sm:$0xff]  ;;  %v289_v0 = vld [vmem:[#allocation6 + $0x4e0] sm:$0xff] }
 0x2db   :  { %2494 = vmatprep.subr.bf16.mxu0 %v834_v13  ;;  %2838 = vmatprep.subr.bf16.mxu1 %v836_v14  ;;  %v268_v13 = vld [vmem:[#allocation6 + $0x438] sm:$0xff]  ;;  %v897_v14 = vunpack.c.h.s8.bf16 %v257_v7  ;;  %v906_v16 = vunpack.c.l.s8.bf16 %v266_v12  ;;  %v914_v25 = vunpack.c.h.s8.bf16 %v266_v12 }
 0x2de   :  { %2495 = vmatpush1.bf16.msra.mxu0 %v833_v17  ;;  %2839 = vmatpush1.bf16.msra.mxu1 %v835_v18  ;;  %v908_v17 = vunpack.c.l.s8.bf16 %v268_v13  ;;  %v265_v18 = vld [vmem:[#allocation6 + $0x420] sm:$0xff] }
 0x2df   :  { %2496 = vmatprep.subr.bf16.mxu0 %v842_v22  ;;  %2840 = vmatprep.subr.bf16.mxu1 %v844_v23  ;;  %v267_v22 = vld [vmem:[#allocation6 + $0x430] sm:$0xff]  ;;  %v905_v23 = vunpack.c.l.s8.bf16 %v265_v18 }
 0x2e0   :  { %v907_v24 = vunpack.c.l.s8.bf16 %v267_v22  ;;  %v915_v38 = vunpack.c.h.s8.bf16 %v267_v22  ;;  %v306_v22 = vld [vmem:[#allocation6 + $0x568] sm:$0xff] }
 0x2e2   :  { %2497 = vmatpush1.bf16.msra.mxu0 %v841_v26  ;;  %2841 = vmatpush1.bf16.msra.mxu1 %v843_v27  ;;  %v916_v26 = vunpack.c.h.s8.bf16 %v268_v13  ;;  %v274_v27 = vld [vmem:[#allocation6 + $0x468] sm:$0xff]  ;;  %v297_v13 = vld [vmem:[#allocation6 + $0x520] sm:$0xff] }
 0x2e3   :  { %2498 = vmatprep.subr.bf16.mxu0 %v850_v45  ;;  %2842 = vmatprep.subr.bf16.mxu1 %v852_v37  ;;  %v276_v45 = vld [vmem:[#allocation6 + $0x478] sm:$0xff]  ;;  %v913_v37 = vunpack.c.h.s8.bf16 %v265_v18  ;;  %v922_v43 = vunpack.c.l.s8.bf16 %v274_v27 }
 0x2e4   :  { %v932_v50 = vunpack.c.h.s8.bf16 %v276_v45 }
 0x2e6   :  { %2499 = vmatpush1.bf16.msra.mxu0 %v849_v47  ;;  %2843 = vmatpush1.bf16.msra.mxu1 %v851_v40  ;;  %v924_v47 = vunpack.c.l.s8.bf16 %v276_v45  ;;  %v273_v40 = vld [vmem:[#allocation6 + $0x460] sm:$0xff] }
 0x2e7   :  { %2500 = vmatprep.subr.bf16.mxu0 %v858_v33  ;;  %2844 = vmatprep.subr.bf16.mxu1 %v860_v34  ;;  %v275_v33 = vld [vmem:[#allocation6 + $0x470] sm:$0xff]  ;;  %v921_v34 = vunpack.c.l.s8.bf16 %v273_v40  ;;  %v305_v45 = vld [vmem:[#allocation6 + $0x560] sm:$0xff] }
 0x2e8   :  { %v923_v49 = vunpack.c.l.s8.bf16 %v275_v33 }
 0x2ea   :  { %2501 = vmatpush1.bf16.msra.mxu0 %v857_v30  ;;  %2845 = vmatpush1.bf16.msra.mxu1 %v859_v29  ;;  %v282_v30 = vld [vmem:[#allocation6 + $0x4a8] sm:$0xff]  ;;  %v284_v29 = vld [vmem:[#allocation6 + $0x4b8] sm:$0xff] }
 0x2eb   :  { %2502 = vmatprep.subr.bf16.mxu0 %v866_v35  ;;  %2846 = vmatprep.subr.bf16.mxu1 %v868_v31  ;;  %v929_v35 = vunpack.c.h.s8.bf16 %v273_v40  ;;  %v931_v31 = vunpack.c.h.s8.bf16 %v275_v33  ;;  %v938_v54 = vunpack.c.l.s8.bf16 %v282_v30  ;;  %v940_v44 = vunpack.c.l.s8.bf16 %v284_v29  ;;  %v314_v33 = vld [vmem:[#allocation6 + $0x5a8] sm:$0xff] }
 0x2ec   :  { %v948_v59 = vunpack.c.h.s8.bf16 %v284_v29  ;;  %v313_v29 = vld [vmem:[#allocation6 + $0x5a0] sm:$0xff] }
 0x2ee   :  { %2503 = vmatpush1.bf16.msra.mxu0 %v865_v55  ;;  %2847 = vmatpush1.bf16.msra.mxu1 %v867_v56  ;;  %v281_v55 = vld [vmem:[#allocation6 + $0x4a0] sm:$0xff] }
 0x2ef   :  { %2504 = vmatprep.subr.bf16.mxu0 %v874_v57  ;;  %2848 = vmatprep.subr.bf16.mxu1 %v876_v58  ;;  %v937_v56 = vunpack.c.l.s8.bf16 %v281_v55  ;;  %v946_v58 = vunpack.c.h.s8.bf16 %v282_v30 }
 0x2f2   :  { %2505 = vmatpush1.bf16.msra.mxu0 %v873_v3  ;;  %2849 = vmatpush1.bf16.msra.mxu1 %v875_v61  ;;  %v292_v3 = vld [vmem:[#allocation6 + $0x4f8] sm:$0xff]  ;;  %v945_v61 = vunpack.c.h.s8.bf16 %v281_v55 }
 0x2f3   :  { %2506 = vmatprep.subr.bf16.mxu0 %v882_v53  ;;  %2850 = vmatprep.subr.bf16.mxu1 %v884_v62  ;;  %v954_v62 = vunpack.c.l.s8.bf16 %v290_v2  ;;  %v956_v63 = vunpack.c.l.s8.bf16 %v292_v3  ;;  %v964_v7 = vunpack.c.h.s8.bf16 %v292_v3  ;;  %v321_v3 = vld [vmem:[#allocation6 + $0x5e0] sm:$0xff] }
 0x2f6   :  { %2507 = vmatpush1.bf16.msra.mxu0 %v881_v36  ;;  %2851 = vmatpush1.bf16.msra.mxu1 %v883_v4  ;;  %v291_v36 = vld [vmem:[#allocation6 + $0x4f0] sm:$0xff]  ;;  %v953_v4 = vunpack.c.l.s8.bf16 %v289_v0 }
 0x2f7   :  { %2508 = vmatprep.subr.bf16.mxu0 %v890_v5  ;;  %2852 = vmatprep.subr.bf16.mxu1 %v892_v6  ;;  %v955_v5 = vunpack.c.l.s8.bf16 %v291_v36  ;;  %v962_v6 = vunpack.c.h.s8.bf16 %v290_v2 }
 0x2fa   :  { %2509 = vmatpush1.bf16.msra.mxu0 %v889_v9  ;;  %2853 = vmatpush1.bf16.msra.mxu1 %v891_v20  ;;  %v300_v9 = vld [vmem:[#allocation6 + $0x538] sm:$0xff]  ;;  %v961_v20 = vunpack.c.h.s8.bf16 %v289_v0 }
 0x2fb   :  { %2510 = vmatprep.subr.bf16.mxu0 %v898_v21  ;;  %2854 = vmatprep.subr.bf16.mxu1 %v900_v11  ;;  %v963_v21 = vunpack.c.h.s8.bf16 %v291_v36  ;;  %v970_v11 = vunpack.c.l.s8.bf16 %v298_v8  ;;  %v972_v12 = vunpack.c.l.s8.bf16 %v300_v9  ;;  %v980_v18 = vunpack.c.h.s8.bf16 %v300_v9  ;;  %v330_v36 = vld [vmem:[#allocation6 + $0x628] sm:$0xff]  ;;  %v329_v9 = vld [vmem:[#allocation6 + $0x620] sm:$0xff] }
 0x2fe   :  { %2511 = vmatpush1.bf16.msra.mxu0 %v897_v14  ;;  %2855 = vmatpush1.bf16.msra.mxu1 %v899_v15  ;;  %v299_v14 = vld [vmem:[#allocation6 + $0x530] sm:$0xff]  ;;  %v969_v15 = vunpack.c.l.s8.bf16 %v297_v13 }
 0x2ff   :  { %2523 = vmatprep.subr.bf16.mxu0 %v906_v16  ;;  %2867 = vmatprep.subr.bf16.mxu1 %v908_v17  ;;  %v971_v16 = vunpack.c.l.s8.bf16 %v299_v14  ;;  %v978_v17 = vunpack.c.h.s8.bf16 %v298_v8 }
 0x301   :  { %2513 = vmatmul.mubr.bf16.vlgmr.msra.gmra.mrb[4].mxu0 %v5916_v19  ;;  %2857 = vmatmul.mubr.bf16.vlgmr.msra.gmra.mrb[4].mxu1 %v5916_v19  ;;  %v930_v19 = vunpack.c.h.s8.bf16 %v274_v27 }
 0x302   :  { %2524 = vmatpush1.bf16.msra.mxu0 %v905_v23  ;;  %2868 = vmatpush1.bf16.msra.mxu1 %v907_v24  ;;  %v308_v23 = vld [vmem:[#allocation6 + $0x578] sm:$0xff]  ;;  %v977_v24 = vunpack.c.h.s8.bf16 %v297_v13 }
 0x303   :  { %2525 = vmatprep.subr.bf16.mxu0 %v914_v25  ;;  %2869 = vmatprep.subr.bf16.mxu1 %v916_v26  ;;  %v979_v25 = vunpack.c.h.s8.bf16 %v299_v14  ;;  %v986_v26 = vunpack.c.l.s8.bf16 %v306_v22  ;;  %v988_v27 = vunpack.c.l.s8.bf16 %v308_v23  ;;  %v996_v40 = vunpack.c.h.s8.bf16 %v308_v23  ;;  %v338_v14 = vld [vmem:[#allocation6 + $0x668] sm:$0xff] }
 0x304   :  { %2555 = vmatprep.mubr.bf16.mxu0 %v5924_v28  ;;  %2899 = vmatprep.mubr.bf16.mxu1 %v5924_v28  ;;  %v283_v28 = vld [vmem:[#allocation6 + $0x4b0] sm:$0xff] }
 0x305   :  { %v939_v57 = vunpack.c.l.s8.bf16 %v283_v28  ;;  %v947_v53 = vunpack.c.h.s8.bf16 %v283_v28  ;;  %v322_v28 = vld [vmem:[#allocation6 + $0x5e8] sm:$0xff] }
 0x306   :  { %2526 = vmatpush1.bf16.msra.mxu0 %v913_v37  ;;  %2870 = vmatpush1.bf16.msra.mxu1 %v915_v38  ;;  %v307_v37 = vld [vmem:[#allocation6 + $0x570] sm:$0xff]  ;;  %v985_v38 = vunpack.c.l.s8.bf16 %v305_v45 }
 0x307   :  { %2527 = vmatprep.subr.bf16.mxu0 %v922_v43  ;;  %2871 = vmatprep.subr.bf16.mxu1 %v924_v47  ;;  %v987_v43 = vunpack.c.l.s8.bf16 %v307_v37  ;;  %v994_v47 = vunpack.c.h.s8.bf16 %v306_v22  ;;  %v1050_v22 = vunpack.c.l.s8.bf16 %v338_v14 }
 0x30a   :  { %2528 = vmatpush1.bf16.msra.mxu0 %v921_v34  ;;  %2872 = vmatpush1.bf16.msra.mxu1 %v923_v49  ;;  %v316_v34 = vld [vmem:[#allocation6 + $0x5b8] sm:$0xff]  ;;  %v993_v49 = vunpack.c.h.s8.bf16 %v305_v45  ;;  %v1058_v45 = vunpack.c.h.s8.bf16 %v338_v14 }
 0x30b   :  { %2529 = vmatprep.subr.bf16.mxu0 %v930_v19  ;;  %2873 = vmatprep.subr.bf16.mxu1 %v932_v50  ;;  %v995_v19 = vunpack.c.h.s8.bf16 %v307_v37  ;;  %v1002_v50 = vunpack.c.l.s8.bf16 %v314_v33  ;;  %v1004_v30 = vunpack.c.l.s8.bf16 %v316_v34  ;;  %v1012_v55 = vunpack.c.h.s8.bf16 %v316_v34  ;;  %v6037_v34 = vld [vmem:[#allocation8 + $0x8] sm:$0xff] }
 0x30e   :  { %2530 = vmatpush1.bf16.msra.mxu0 %v929_v35  ;;  %2874 = vmatpush1.bf16.msra.mxu1 %v931_v31  ;;  %v315_v35 = vld [vmem:[#allocation6 + $0x5b0] sm:$0xff]  ;;  %v1001_v31 = vunpack.c.l.s8.bf16 %v313_v29 }
 0x30f   :  { %2531 = vmatprep.subr.bf16.mxu0 %v938_v54  ;;  %2875 = vmatprep.subr.bf16.mxu1 %v940_v44  ;;  %v1003_v54 = vunpack.c.l.s8.bf16 %v315_v35  ;;  %v1010_v44 = vunpack.c.h.s8.bf16 %v314_v33 }
 0x312   :  { %2532 = vmatpush1.bf16.msra.mxu0 %v937_v56  ;;  %2876 = vmatpush1.bf16.msra.mxu1 %v939_v57  ;;  %v324_v56 = vld [vmem:[#allocation6 + $0x5f8] sm:$0xff]  ;;  %v1009_v57 = vunpack.c.h.s8.bf16 %v313_v29  ;;  %v347_v29 = vld [vmem:[#allocation6 + $0x6b0] sm:$0xff] }
 0x313   :  { %2533 = vmatprep.subr.bf16.mxu0 %v946_v58  ;;  %2877 = vmatprep.subr.bf16.mxu1 %v948_v59  ;;  %v1011_v58 = vunpack.c.h.s8.bf16 %v315_v35  ;;  %v1018_v59 = vunpack.c.l.s8.bf16 %v322_v28  ;;  %v1020_v2 = vunpack.c.l.s8.bf16 %v324_v56  ;;  %v1028_v0 = vunpack.c.h.s8.bf16 %v324_v56 }
 0x316   :  { %2534 = vmatpush1.bf16.msra.mxu0 %v945_v61  ;;  %2878 = vmatpush1.bf16.msra.mxu1 %v947_v53  ;;  %v323_v61 = vld [vmem:[#allocation6 + $0x5f0] sm:$0xff]  ;;  %v1017_v53 = vunpack.c.l.s8.bf16 %v321_v3 }
 0x317   :  { %2535 = vmatprep.subr.bf16.mxu0 %v954_v62  ;;  %2879 = vmatprep.subr.bf16.mxu1 %v956_v63  ;;  %v1019_v62 = vunpack.c.l.s8.bf16 %v323_v61  ;;  %v1026_v63 = vunpack.c.h.s8.bf16 %v322_v28  ;;  %v1067_v28 = vunpack.c.l.s8.bf16 %v347_v29 }
 0x31a   :  { %2536 = vmatpush1.bf16.msra.mxu0 %v953_v4  ;;  %2880 = vmatpush1.bf16.msra.mxu1 %v955_v5  ;;  %v332_v4 = vld [vmem:[#allocation6 + $0x638] sm:$0xff]  ;;  %v1025_v5 = vunpack.c.h.s8.bf16 %v321_v3 }
 0x31b   :  { %2537 = vmatprep.subr.bf16.mxu0 %v962_v6  ;;  %2881 = vmatprep.subr.bf16.mxu1 %v964_v7  ;;  %v1027_v6 = vunpack.c.h.s8.bf16 %v323_v61  ;;  %v1034_v7 = vunpack.c.l.s8.bf16 %v330_v36  ;;  %v1036_v8 = vunpack.c.l.s8.bf16 %v332_v4  ;;  %v1044_v13 = vunpack.c.h.s8.bf16 %v332_v4 }
 0x31e   :  { %2538 = vmatpush1.bf16.msra.mxu0 %v961_v20  ;;  %2882 = vmatpush1.bf16.msra.mxu1 %v963_v21  ;;  %v331_v20 = vld [vmem:[#allocation6 + $0x630] sm:$0xff]  ;;  %v1033_v21 = vunpack.c.l.s8.bf16 %v329_v9 }
 0x31f   :  { %2539 = vmatprep.subr.bf16.mxu0 %v970_v11  ;;  %2883 = vmatprep.subr.bf16.mxu1 %v972_v12  ;;  %v1035_v11 = vunpack.c.l.s8.bf16 %v331_v20  ;;  %v1042_v12 = vunpack.c.h.s8.bf16 %v330_v36  ;;  %v356_v36 = vld [vmem:[#allocation6 + $0x6f8] sm:$0xff] }
 0x322   :  { %2540 = vmatpush1.bf16.msra.mxu0 %v969_v15  ;;  %2884 = vmatpush1.bf16.msra.mxu1 %v971_v16  ;;  %v340_v15 = vld [vmem:[#allocation6 + $0x678] sm:$0xff]  ;;  %v3224_v16 = vlaneseq }
 0x323   :  { %2541 = vmatprep.subr.bf16.mxu0 %v978_v17  ;;  %2885 = vmatprep.subr.bf16.mxu1 %v980_v18  ;;  %v1041_v17 = vunpack.c.h.s8.bf16 %v329_v9  ;;  %v1043_v18 = vunpack.c.h.s8.bf16 %v331_v20  ;;  %v1052_v23 = vunpack.c.l.s8.bf16 %v340_v15  ;;  %v1060_v37 = vunpack.c.h.s8.bf16 %v340_v15  ;;  %v6072_v9 = vld [vmem:[#allocation6 + $0x6f0] sm:$0xff] }
 0x326   :  { %2542 = vmatpush1.bf16.msra.mxu0 %v977_v24  ;;  %2886 = vmatpush1.bf16.msra.mxu1 %v979_v25  ;;  %v337_v24 = vld [vmem:[#allocation6 + $0x660] sm:$0xff]  ;;  %v339_v25 = vld [vmem:[#allocation6 + $0x670] sm:$0xff] }
 0x327   :  { %2543 = vmatprep.subr.bf16.mxu0 %v986_v26  ;;  %2887 = vmatprep.subr.bf16.mxu1 %v988_v27  ;;  %v6030_v26 = vshrl.u32 %v3224_v16, 7  ;;  %v1051_v27 = vunpack.c.l.s8.bf16 %v339_v25  ;;  %v1059_v33 = vunpack.c.h.s8.bf16 %v339_v25  ;;  %v1084_v16 = vunpack.c.l.s8.bf16 %v356_v36 }
 0x328   :  { %v1083_v25 = vunpack.c.l.s8.bf16 %v6072_v9 }
 0x329   :  { %v6043_v35 = vsub.s32 1, %v6030_v26 }
 0x32a   :  { %2544 = vmatpush1.bf16.msra.mxu0 %v985_v38  ;;  %2888 = vmatpush1.bf16.msra.mxu1 %v987_v43  ;;  %v346_v38 = vld [vmem:[#allocation6 + $0x6a8] sm:$0xff]  ;;  %v348_v43 = vld [vmem:[#allocation6 + $0x6b8] sm:$0xff] }
 0x32b   :  { %2545 = vmatprep.subr.bf16.mxu0 %v994_v47  ;;  %2889 = vmatprep.subr.bf16.mxu1 %v996_v40  ;;  %v6033_v47 = vsub.s32 0, %v6030_v26  ;;  %v1057_v40 = vunpack.c.h.s8.bf16 %v337_v24  ;;  %v1076_v3 = vunpack.c.h.s8.bf16 %v348_v43 }
 0x32e   :  { %2546 = vmatpush1.bf16.msra.mxu0 %v993_v49  ;;  %2890 = vmatpush1.bf16.msra.mxu1 %v995_v19  ;;  %v6040_v49 = vsub.s32 4, %v6030_v26  ;;  %v1066_v19 = vunpack.c.l.s8.bf16 %v346_v38 }
 0x32f   :  { %2547 = vmatprep.subr.bf16.mxu0 %v1002_v50  ;;  %2891 = vmatprep.subr.bf16.mxu1 %v1004_v30  ;;  %v1068_v50 = vunpack.c.l.s8.bf16 %v348_v43  ;;  %v345_v30 = vld [vmem:[#allocation6 + $0x6a0] sm:$0xff]  ;;  %v1092_v43 = vunpack.c.h.s8.bf16 %v356_v36 }
 0x332   :  { %2548 = vmatpush1.bf16.msra.mxu0 %v1001_v31  ;;  %2892 = vmatpush1.bf16.msra.mxu1 %v1003_v54  ;;  %v6046_v31 = vsub.s32 5, %v6030_v26 }
 0x333   :  { %2549 = vmatprep.subr.bf16.mxu0 %v1010_v44  ;;  %2893 = vmatprep.subr.bf16.mxu1 %v1012_v55  ;;  %v3235_v44 = vrot.slane %v6037_v34, %v6033_v47  ;;  %v1065_v55 = vunpack.c.l.s8.bf16 %v345_v30 }
 0x336   :  { %2550 = vmatpush1.bf16.msra.mxu0 %v1009_v57  ;;  %2894 = vmatpush1.bf16.msra.mxu1 %v1011_v58  ;;  %v3239_v57 = vrot.slane %v6037_v34, %v6040_v49 }
 0x337   :  { %2551 = vmatprep.subr.bf16.mxu0 %v1018_v59  ;;  %2895 = vmatprep.subr.bf16.mxu1 %v1020_v2  ;;  %v3323_v59 = vrot.slane %v6037_v34, %v6043_v35  ;;  %v1074_v2 = vunpack.c.h.s8.bf16 %v346_v38 }
 0x33a   :  { %2552 = vmatpush1.bf16.msra.mxu0 %v1017_v53  ;;  %2896 = vmatpush1.bf16.msra.mxu1 %v1019_v62  ;;  %v3327_v53 = vrot.slane %v6037_v34, %v6046_v31  ;;  %v6064_v62 = vld [vmem:[#allocation6 + $0x6e8] sm:$0xff] }
 0x33b   :  { %2553 = vmatprep.subr.bf16.mxu0 %v1026_v63  ;;  %2897 = vmatprep.subr.bf16.mxu1 %v1028_v0  ;;  %v3275_v0 = vrot.slane %v3235_v44, %v6033_v47  ;;  %v1090_v38 = vunpack.c.h.s8.bf16 %v6064_v62  ;;  %v364_v44 = vld [vmem:[#allocation6 + $0x738] sm:$0xff] }
 0x33c   :  { %v3367_v15 = vrot.slane %v3327_v53, %v6043_v35 }
 0x33e   :  { %2554 = vmatpush1.bf16.msra.mxu0 %v1025_v5  ;;  %2898 = vmatpush1.bf16.msra.mxu1 %v1027_v6  ;;  %v3279_v5 = vrot.slane %v3239_v57, %v6033_v47  ;;  %v1073_v6 = vunpack.c.h.s8.bf16 %v345_v30 }
 0x33f   :  { %2566 = vmatprep.subr.bf16.mxu0 %v1034_v7  ;;  %2910 = vmatprep.subr.bf16.mxu1 %v1036_v8  ;;  %v1075_v7 = vunpack.c.h.s8.bf16 %v347_v29  ;;  %v6070_v8 = vld [vmem:[#allocation6 + $0x6e0] sm:$0xff] }
 0x341   :  { %2556 = vmatmul.mubr.bf16.vlgmr.msra.gmra.mrb[4].mxu0 %v5932_v1  ;;  %2900 = vmatmul.mubr.bf16.vlgmr.msra.gmra.mrb[4].mxu1 %v5932_v1  ;;  %v1049_v1 = vunpack.c.l.s8.bf16 %v337_v24  ;;  %v1081_v24 = vunpack.c.l.s8.bf16 %v6070_v8 }
 0x342   :  { %2567 = vmatpush1.bf16.msra.mxu0 %v1033_v21  ;;  %2911 = vmatpush1.bf16.msra.mxu1 %v1035_v11  ;;  %v3363_v21 = vrot.slane %v3323_v59, %v6043_v35  ;;  %v1082_v11 = vunpack.c.l.s8.bf16 %v6064_v62 }
 0x343   :  { %2568 = vmatprep.subr.bf16.mxu0 %v1042_v12  ;;  %2912 = vmatprep.subr.bf16.mxu1 %v1044_v13 }
 0x344   :  { %2598 = vmatprep.mubr.bf16.mxu0 %v5940_v10  ;;  %2942 = vmatprep.mubr.bf16.mxu1 %v5940_v10  ;;  %v6035_v10 = vld [vmem:[#allocation8] sm:$0xff] }
 0x345   :  { %v3227_v54 = vrot.slane %v6035_v10, %v6033_v47  ;;  %v3231_v56 = vrot.slane %v6035_v10, %v6040_v49  ;;  %v3315_v58 = vrot.slane %v6035_v10, %v6043_v35  ;;  %v3319_v61 = vrot.slane %v6035_v10, %v6046_v31 }
 0x346   :  { %2569 = vmatpush1.bf16.msra.mxu0 %v1041_v17  ;;  %2913 = vmatpush1.bf16.msra.mxu1 %v1043_v18 }
 0x347   :  { %2570 = vmatprep.subr.bf16.mxu0 %v1050_v22  ;;  %2914 = vmatprep.subr.bf16.mxu1 %v1052_v23  ;;  %v3267_v63 = vrot.slane %v3227_v54, %v6033_v47  ;;  %v3271_v4 = vrot.slane %v3231_v56, %v6033_v47  ;;  %v3355_v20 = vrot.slane %v3315_v58, %v6043_v35  ;;  %v362_v54 = vld [vmem:[#allocation6 + $0x728] sm:$0xff] }
 0x348   :  { %v3359_v14 = vrot.slane %v3319_v61, %v6043_v35  ;;  %v1098_v62 = vunpack.c.l.s8.bf16 %v362_v54 }
 0x34a   :  { %2571 = vmatpush1.bf16.msra.mxu0 %v1049_v1  ;;  %2915 = vmatpush1.bf16.msra.mxu1 %v1051_v27 }
 0x34b   :  { %2572 = vmatprep.subr.bf16.mxu0 %v1058_v45  ;;  %2916 = vmatprep.subr.bf16.mxu1 %v1060_v37 }
 0x34e   :  { %2573 = vmatpush1.bf16.msra.mxu0 %v1057_v40  ;;  %2917 = vmatpush1.bf16.msra.mxu1 %v1059_v33 }
 0x34f   :  { %2574 = vmatprep.subr.bf16.mxu0 %v1066_v19  ;;  %2918 = vmatprep.subr.bf16.mxu1 %v1068_v50 }
 0x352   :  { %2575 = vmatpush1.bf16.msra.mxu0 %v1065_v55  ;;  %2919 = vmatpush1.bf16.msra.mxu1 %v1067_v28 }
 0x353   :  { %2576 = vmatprep.subr.bf16.mxu0 %v1074_v2  ;;  %2920 = vmatprep.subr.bf16.mxu1 %v1076_v3  ;;  %v1089_v2 = vunpack.c.h.s8.bf16 %v6070_v8  ;;  %v1091_v3 = vunpack.c.h.s8.bf16 %v6072_v9 }
 0x354   :  { %v2084_v12 = vpop.f32.mrb[0].mxu0  ;;  %v2428_v13 = vpop.f32.mrb[0].mxu1 }
 0x355   :  { %v3296_v17 = vmul.f32 %v3267_v63, %v2084_v12  ;;  %v3298_v18 = vmul.f32 %v3275_v0, %v2428_v13  ;;  %v2086_v22 = vpop.f32.mrb[1].mxu0  ;;  %v2430_v23 = vpop.f32.mrb[1].mxu1 }
 0x356   :  { %v3297_v1 = vmul.f32 %v3271_v4, %v2086_v22  ;;  %v3299_v27 = vmul.f32 %v3279_v5, %v2430_v23  ;;  %v2088_v45 = vpop.f32.mrb[2].mxu0  ;;  %v2432_v37 = vpop.f32.mrb[2].mxu1  ;;  %2577 = vmatpush1.bf16.msra.mxu0 %v1073_v6  ;;  %2921 = vmatpush1.bf16.msra.mxu1 %v1075_v7  ;;  %v363_v7 = vld [vmem:[#allocation6 + $0x730] sm:$0xff]  ;;  %v1106_v22 = vunpack.c.h.s8.bf16 %v362_v54  ;;  %v1108_v23 = vunpack.c.h.s8.bf16 %v364_v44  ;;  %v369_v54 = vld [vmem:[#allocation6 + $0x760] sm:$0xff] }
 0x357   :  { %v3384_v40 = vadd.f32 %v3355_v20, %v3296_v17  ;;  %v3386_v33 = vadd.f32 %v3363_v21, %v3298_v18  ;;  %v3304_v19 = vmul.f32 %v3267_v63, %v2088_v45  ;;  %v3306_v50 = vmul.f32 %v3275_v0, %v2432_v37  ;;  %v2090_v30 = vpop.f32.mrb[3].mxu0  ;;  %v2434_v29 = vpop.f32.mrb[3].mxu1  ;;  %2578 = vmatprep.subr.bf16.mxu0 %v1082_v11 }
 0x358   :  { %v3385_v55 = vadd.f32 %v3359_v14, %v3297_v1  ;;  %v3387_v28 = vadd.f32 %v3367_v15, %v3299_v27  ;;  %v3305_v56 = vmul.f32 %v3271_v4, %v2090_v30  ;;  %v3307_v57 = vmul.f32 %v3279_v5, %v2434_v29  ;;  %2922 = vmatprep.subr.bf16.mxu1 %v1084_v16  ;;  %v361_v5 = vld [vmem:[#allocation6 + $0x720] sm:$0xff]  ;;  %v370_v1 = vld [vmem:[#allocation6 + $0x768] sm:$0xff]  ;;  %v372_v27 = vld [vmem:[#allocation6 + $0x778] sm:$0xff] }
 0x359   :  { %v3392_v58 = vadd.f32 %v3355_v20, %v3304_v19  ;;  %v3394_v59 = vadd.f32 %v3363_v21, %v3306_v50  ;;  %v1100_v63 = vunpack.c.l.s8.bf16 %v364_v44  ;;  %v6084_v0 = vmax.f32 %v3384_v40, 0.0  ;;  %v371_v44 = vld [vmem:[#allocation6 + $0x770] sm:$0xff] }
 0x35a   :  { %v3393_v61 = vadd.f32 %v3359_v14, %v3305_v56  ;;  %v3395_v53 = vadd.f32 %v3367_v15, %v3307_v57  ;;  %2579 = vmatpush1.bf16.msra.mxu0 %v1081_v24  ;;  %2923 = vmatpush1.bf16.msra.mxu1 %v1083_v25  ;;  %v6086_v36 = vmax.f32 %v3386_v33, 0.0  ;;  %v6092_v8 = vmax.f32 %v3385_v55, 0.0 }
 0x35b   :  { %v6088_v6 = vmax.f32 %v3392_v58, 0.0  ;;  %v6090_v4 = vmax.f32 %v3394_v59, 0.0  ;;  %2580 = vmatprep.subr.bf16.mxu0 %v1090_v38  ;;  %2924 = vmatprep.subr.bf16.mxu1 %v1092_v43  ;;  %v6094_v9 = vmax.f32 %v3387_v28, 0.0  ;;  %v1097_v15 = vunpack.c.l.s8.bf16 %v361_v5 }
 0x35c   :  { %v6096_v20 = vmax.f32 %v3393_v61, 0.0  ;;  %v6098_v21 = vmax.f32 %v3395_v53, 0.0  ;;  %v1099_v16 = vunpack.c.l.s8.bf16 %v363_v7  ;;  %v1105_v40 = vunpack.c.h.s8.bf16 %v361_v5  ;;  %v378_v5 = vld [vmem:[#allocation6 + $0x7a8] sm:$0xff] }
 0x35d   :  { %v3416_v11 = vadd.f32 %v6088_v6, %v6084_v0  ;;  %v3430_v12 = vadd.f32 %v6090_v4, %v6086_v36  ;;  %v1107_v33 = vunpack.c.h.s8.bf16 %v363_v7  ;;  %v1114_v30 = vunpack.c.l.s8.bf16 %v370_v1  ;;  %v380_v7 = vld [vmem:[#allocation6 + $0x7b8] sm:$0xff] }
 0x35e   :  { %v3423_v13 = vadd.f32 %v6096_v20, %v6092_v8  ;;  %v3437_v14 = vadd.f32 %v6098_v21, %v6094_v9  ;;  %2581 = vmatpush1.bf16.msra.mxu0 %v1089_v2  ;;  %2925 = vmatpush1.bf16.msra.mxu1 %v1091_v3  ;;  %v1116_v29 = vunpack.c.l.s8.bf16 %v372_v27  ;;  %v1113_v2 = vunpack.c.l.s8.bf16 %v369_v54 }
 0x35f   :  { %v3417_v17 = vrot.slane %v3416_v11, 4  ;;  %v3431_v18 = vrot.slane %v3430_v12, 4  ;;  %2582 = vmatprep.subr.bf16.mxu0 %v1098_v62  ;;  %2926 = vmatprep.subr.bf16.mxu1 %v1100_v63  ;;  %v1115_v3 = vunpack.c.l.s8.bf16 %v371_v44  ;;  %v1122_v62 = vunpack.c.h.s8.bf16 %v370_v1 }
 0x360   :  { %v3424_v24 = vrot.slane %v3423_v13, 4  ;;  %v3438_v25 = vrot.slane %v3437_v14, 4  ;;  %v1124_v63 = vunpack.c.h.s8.bf16 %v372_v27 }
 0x361   :  { %v3418_v45 = vadd.f32 %v3417_v17, %v3416_v11  ;;  %v3432_v37 = vadd.f32 %v3431_v18, %v3430_v12  ;;  %v1121_v17 = vunpack.c.h.s8.bf16 %v369_v54  ;;  %v1123_v18 = vunpack.c.h.s8.bf16 %v371_v44 }
 0x362   :  { %v3425_v38 = vadd.f32 %v3424_v24, %v3423_v13  ;;  %v3439_v43 = vadd.f32 %v3438_v25, %v3437_v14  ;;  %2583 = vmatpush1.bf16.msra.mxu0 %v1097_v15  ;;  %2927 = vmatpush1.bf16.msra.mxu1 %v1099_v16  ;;  %v6108_v13 = vld [vmem:[#allocation6 + $0x7a0] sm:$0xff]  ;;  %v6110_v14 = vld [vmem:[#allocation6 + $0x7b0] sm:$0xff]  ;;  %v1130_v24 = vunpack.c.l.s8.bf16 %v378_v5  ;;  %v1132_v25 = vunpack.c.l.s8.bf16 %v380_v7 }
 0x363   :  { %v3419_v19 = vrot.slane %v3418_v45, 2  ;;  %v3433_v50 = vrot.slane %v3432_v37, 2  ;;  %2584 = vmatprep.subr.bf16.mxu0 %v1106_v22  ;;  %2928 = vmatprep.subr.bf16.mxu1 %v1108_v23 }
 0x364   :  { %v3426_v55 = vrot.slane %v3425_v38, 2  ;;  %v3440_v28 = vrot.slane %v3439_v43, 2 }
 0x365   :  { %v3420_v56 = vadd.f32 %v3419_v19, %v3418_v45  ;;  %v3434_v57 = vadd.f32 %v3433_v50, %v3432_v37  ;;  %v1129_v45 = vunpack.c.l.s8.bf16 %v6108_v13  ;;  %v1131_v37 = vunpack.c.l.s8.bf16 %v6110_v14 }
 0x366   :  { %v3427_v58 = vadd.f32 %v3426_v55, %v3425_v38  ;;  %v3441_v59 = vadd.f32 %v3440_v28, %v3439_v43  ;;  %2585 = vmatpush1.bf16.msra.mxu0 %v1105_v40  ;;  %2929 = vmatpush1.bf16.msra.mxu1 %v1107_v33  ;;  %v1138_v40 = vunpack.c.h.s8.bf16 %v378_v5  ;;  %v1140_v33 = vunpack.c.h.s8.bf16 %v380_v7  ;;  %v388_v7 = vld [vmem:[#allocation6 + $0x7f8] sm:$0xff] }
 0x367   :  { %v3421_v61 = vrot.slane %v3420_v56, 1  ;;  %v3435_v53 = vrot.slane %v3434_v57, 1  ;;  %2586 = vmatprep.subr.bf16.mxu0 %v1114_v30  ;;  %2930 = vmatprep.subr.bf16.mxu1 %v1116_v29 }
 0x368   :  { %v3428_v11 = vrot.slane %v3427_v58, 1  ;;  %v3442_v12 = vrot.slane %v3441_v59, 1 }
 0x369   :  { %v3422_v15 = vadd.f32 %v3421_v61, %v3420_v56  ;;  %v3436_v16 = vadd.f32 %v3435_v53, %v3434_v57 }
 0x36a   :  { %v3429_v22 = vadd.f32 %v3428_v11, %v3427_v58  ;;  %v3443_v23 = vadd.f32 %v3442_v12, %v3441_v59  ;;  %2587 = vmatpush1.bf16.msra.mxu0 %v1113_v2  ;;  %2931 = vmatpush1.bf16.msra.mxu1 %v1115_v3 }
 0x36b   :  { %v6112_v1 = vmul.f32 0.0625, %v3422_v15  ;;  %v6114_v27 = vmul.f32 0.0625, %v3436_v16  ;;  %2588 = vmatprep.subr.bf16.mxu0 %v1122_v62  ;;  %2932 = vmatprep.subr.bf16.mxu1 %v1124_v63  ;;  %v386_v62 = vld [vmem:[#allocation6 + $0x7e8] sm:$0xff]  ;;  %v1137_v15 = vunpack.c.h.s8.bf16 %v6108_v13 }
 0x36c   :  { %v6118_v38 = vmul.f32 0.0625, %v3429_v22  ;;  %v6120_v43 = vmul.f32 0.0625, %v3443_v23  ;;  %v1146_v22 = vunpack.c.l.s8.bf16 %v386_v62  ;;  %v385_v23 = vld [vmem:[#allocation6 + $0x7e0] sm:$0xff] }
 0x36d   :  { %v3481_v19 = vsub.f32 %v6084_v0, %v6112_v1  ;;  %v3489_v50 = vsub.f32 %v6088_v6, %v6112_v1  ;;  %v3483_v30 = vsub.f32 %v6086_v36, %v6114_v27  ;;  %v3491_v29 = vsub.f32 %v6090_v4, %v6114_v27 }
 0x36e   :  { %v3482_v54 = vsub.f32 %v6092_v8, %v6118_v38  ;;  %v3490_v44 = vsub.f32 %v6096_v20, %v6118_v38  ;;  %v3484_v55 = vsub.f32 %v6094_v9, %v6120_v43  ;;  %v3492_v28 = vsub.f32 %v6098_v21, %v6120_v43  ;;  %2589 = vmatpush1.bf16.msra.mxu0 %v1121_v17 }
 0x36f   :  { %v3497_v56 = vmul.f32 %v3481_v19, %v3481_v19  ;;  %v3505_v57 = vmul.f32 %v3489_v50, %v3489_v50  ;;  %v3499_v58 = vmul.f32 %v3483_v30, %v3483_v30  ;;  %v3507_v59 = vmul.f32 %v3491_v29, %v3491_v29  ;;  %2933 = vmatpush1.bf16.msra.mxu1 %v1123_v18  ;;  %v387_v30 = vld [vmem:[#allocation6 + $0x7f0] sm:$0xff] }
 0x370   :  { %v3498_v2 = vmul.f32 %v3482_v54, %v3482_v54  ;;  %v3506_v3 = vmul.f32 %v3490_v44, %v3490_v44  ;;  %v3500_v61 = vmul.f32 %v3484_v55, %v3484_v55  ;;  %v3508_v53 = vmul.f32 %v3492_v28, %v3492_v28  ;;  %2590 = vmatprep.subr.bf16.mxu0 %v1130_v24 }
 0x371   :  { %v3513_v63 = vadd.f32 %v3505_v57, %v3497_v56  ;;  %v3527_v5 = vadd.f32 %v3507_v59, %v3499_v58  ;;  %2934 = vmatprep.subr.bf16.mxu1 %v1132_v25  ;;  %v1139_v18 = vunpack.c.h.s8.bf16 %v6110_v14  ;;  %v1148_v50 = vunpack.c.l.s8.bf16 %v388_v7  ;;  %v394_v57 = vld [vmem:[#allocation6 + $0x828] sm:$0xff]  ;;  %v396_v59 = vld [vmem:[#allocation6 + $0x838] sm:$0xff] }
 0x372   :  { %v3520_v11 = vadd.f32 %v3506_v3, %v3498_v2  ;;  %v3534_v12 = vadd.f32 %v3508_v53, %v3500_v61  ;;  %2591 = vmatpush1.bf16.msra.mxu0 %v1129_v45  ;;  %v1145_v45 = vunpack.c.l.s8.bf16 %v385_v23  ;;  %v1156_v56 = vunpack.c.h.s8.bf16 %v388_v7  ;;  %v395_v7 = vld [vmem:[#allocation6 + $0x830] sm:$0xff] }
 0x373   :  { %v3514_v16 = vrot.slane %v3513_v63, 4  ;;  %v3528_v17 = vrot.slane %v3527_v5, 4  ;;  %2935 = vmatpush1.bf16.msra.mxu1 %v1131_v37  ;;  %2592 = vmatprep.subr.bf16.mxu0 %v1138_v40  ;;  %v1147_v37 = vunpack.c.l.s8.bf16 %v387_v30  ;;  %v1154_v40 = vunpack.c.h.s8.bf16 %v386_v62 }
 0x374   :  { %v3521_v19 = vrot.slane %v3520_v11, 4  ;;  %v3535_v24 = vrot.slane %v3534_v12, 4  ;;  %2936 = vmatprep.subr.bf16.mxu1 %v1140_v33  ;;  %v1153_v61 = vunpack.c.h.s8.bf16 %v385_v23 }
 0x375   :  { %v3515_v25 = vadd.f32 %v3514_v16, %v3513_v63  ;;  %v3529_v29 = vadd.f32 %v3528_v17, %v3527_v5  ;;  %v1155_v5 = vunpack.c.h.s8.bf16 %v387_v30  ;;  %v1164_v16 = vunpack.c.l.s8.bf16 %v396_v59 }
 0x376   :  { %v3522_v54 = vadd.f32 %v3521_v19, %v3520_v11  ;;  %v3536_v44 = vadd.f32 %v3535_v24, %v3534_v12  ;;  %2593 = vmatpush1.bf16.msra.mxu0 %v1137_v15  ;;  %v1162_v11 = vunpack.c.l.s8.bf16 %v394_v57  ;;  %v393_v12 = vld [vmem:[#allocation6 + $0x820] sm:$0xff] }
 0x377   :  { %v3516_v13 = vrot.slane %v3515_v25, 2  ;;  %v3530_v55 = vrot.slane %v3529_v29, 2  ;;  %2937 = vmatpush1.bf16.msra.mxu1 %v1139_v18  ;;  %2594 = vmatprep.subr.bf16.mxu0 %v1146_v22  ;;  %v1161_v24 = vunpack.c.l.s8.bf16 %v393_v12 }
 0x378   :  { %v3523_v14 = vrot.slane %v3522_v54, 2  ;;  %v3537_v28 = vrot.slane %v3536_v44, 2  ;;  %2938 = vmatprep.subr.bf16.mxu1 %v1148_v50 }
 0x379   :  { %v3517_v33 = vadd.f32 %v3516_v13, %v3515_v25  ;;  %v3531_v58 = vadd.f32 %v3530_v55, %v3529_v29  ;;  %v1163_v25 = vunpack.c.l.s8.bf16 %v395_v7  ;;  %v1170_v29 = vunpack.c.h.s8.bf16 %v394_v57 }
 0x37a   :  { %v3524_v2 = vadd.f32 %v3523_v14, %v3522_v54  ;;  %v3538_v3 = vadd.f32 %v3537_v28, %v3536_v44  ;;  %2595 = vmatpush1.bf16.msra.mxu0 %v1145_v45  ;;  %v1172_v44 = vunpack.c.h.s8.bf16 %v396_v59  ;;  %v402_v45 = vld [vmem:[#allocation6 + $0x868] sm:$0xff]  ;;  %v1169_v28 = vunpack.c.h.s8.bf16 %v393_v12  ;;  %v403_v59 = vld [vmem:[#allocation6 + $0x870] sm:$0xff] }
 0x37b   :  { %v3518_v53 = vrot.slane %v3517_v33, 1  ;;  %v3532_v63 = vrot.slane %v3531_v58, 1  ;;  %2939 = vmatpush1.bf16.msra.mxu1 %v1147_v37  ;;  %2596 = vmatprep.subr.bf16.mxu0 %v1154_v40  ;;  %v404_v37 = vld [vmem:[#allocation6 + $0x878] sm:$0xff]  ;;  %v1178_v57 = vunpack.c.l.s8.bf16 %v402_v45 }
 0x37c   :  { %v3525_v62 = vrot.slane %v3524_v2, 1  ;;  %v3539_v15 = vrot.slane %v3538_v3, 1  ;;  %2940 = vmatprep.subr.bf16.mxu1 %v1156_v56  ;;  %v1171_v56 = vunpack.c.h.s8.bf16 %v395_v7 }
 0x37d   :  { %v3519_v17 = vadd.f32 %v3518_v53, %v3517_v33  ;;  %v3533_v18 = vadd.f32 %v3532_v63, %v3531_v58  ;;  %v401_v33 = vld [vmem:[#allocation6 + $0x860] sm:$0xff]  ;;  %v1180_v58 = vunpack.c.l.s8.bf16 %v404_v37  ;;  %v410_v53 = vld [vmem:[#allocation6 + $0x8a8] sm:$0xff]  ;;  %v412_v63 = vld [vmem:[#allocation6 + $0x8b8] sm:$0xff] }
 0x37e   :  { %v3526_v22 = vadd.f32 %v3525_v62, %v3524_v2  ;;  %v3540_v19 = vadd.f32 %v3539_v15, %v3538_v3  ;;  %2597 = vmatpush1.bf16.msra.mxu0 %v1153_v61  ;;  %v1177_v2 = vunpack.c.l.s8.bf16 %v401_v33  ;;  %v1186_v3 = vunpack.c.h.s8.bf16 %v402_v45  ;;  %v409_v62 = vld [vmem:[#allocation6 + $0x8a0] sm:$0xff]  ;;  %v411_v15 = vld [vmem:[#allocation6 + $0x8b0] sm:$0xff] }
 0x37f   :  { %v3569_v50 = vmul.f32 0.0625, %v3519_v17  ;;  %v3571_v23 = vmul.f32 0.0625, %v3533_v18  ;;  %2941 = vmatpush1.bf16.msra.mxu1 %v1155_v5  ;;  %2609 = vmatprep.subr.bf16.mxu0 %v1162_v11  ;;  %v1188_v61 = vunpack.c.h.s8.bf16 %v404_v37  ;;  %v1185_v5 = vunpack.c.h.s8.bf16 %v401_v33 }
 0x380   :  { %v3570_v30 = vmul.f32 0.0625, %v3526_v22  ;;  %v3572_v54 = vmul.f32 0.0625, %v3540_v19  ;;  %2953 = vmatprep.subr.bf16.mxu1 %v1164_v16  ;;  %v1187_v11 = vunpack.c.h.s8.bf16 %v403_v59  ;;  %v1194_v12 = vunpack.c.l.s8.bf16 %v410_v53 }
 0x381   :  { %v3577_v13 = vadd.f32 1e-05, %v3569_v50  ;;  %v3579_v55 = vadd.f32 1e-05, %v3571_v23  ;;  %2599 = vmatmul.mubr.bf16.vlgmr.msra.gmra.mrb[4].mxu0 %v5948_v52  ;;  %v1193_v17 = vunpack.c.l.s8.bf16 %v409_v62  ;;  %v1195_v22 = vunpack.c.l.s8.bf16 %v411_v15 }
 0x382   :  { %v3578_v40 = vadd.f32 1e-05, %v3570_v30  ;;  %v3580_v14 = vadd.f32 1e-05, %v3572_v54  ;;  %2610 = vmatpush1.bf16.msra.mxu0 %v1161_v24  ;;  %2943 = vmatmul.mubr.bf16.vlgmr.msra.gmra.mrb[4].mxu1 %v5948_v52  ;;  %v1179_v52 = vunpack.c.l.s8.bf16 %v403_v59  ;;  %v1202_v19 = vunpack.c.h.s8.bf16 %v410_v53  ;;  %v420_v30 = vld [vmem:[#allocation6 + $0x8f8] sm:$0xff] }
 0x383   :  { %5524 = vrsqrt.f32 %v3577_v13  ;;  %2954 = vmatpush1.bf16.msra.mxu1 %v1163_v25  ;;  %2611 = vmatprep.subr.bf16.mxu0 %v1170_v29  ;;  %v1204_v23 = vunpack.c.h.s8.bf16 %v412_v63  ;;  %v418_v25 = vld [vmem:[#allocation6 + $0x8e8] sm:$0xff]  ;;  %v6145_v54 = vsub.s32 2, %v6030_v26  ;;  %v6148_v45 = vsub.s32 6, %v6030_v26 }
 0x384   :  { %5526 = vrsqrt.f32 %v3579_v55  ;;  %2955 = vmatprep.subr.bf16.mxu1 %v1172_v44  ;;  %2641 = vmatprep.mubr.bf16.mxu0 %v5956_v60  ;;  %v1201_v13 = vunpack.c.h.s8.bf16 %v409_v62  ;;  %v1203_v37 = vunpack.c.h.s8.bf16 %v411_v15  ;;  %v428_v15 = vld [vmem:[#allocation6 + $0x938] sm:$0xff] }
 0x385   :  { %5528 = vrsqrt.f32 %v3578_v40  ;;  %2985 = vmatprep.mubr.bf16.mxu1 %v5956_v60  ;;  %v1196_v60 = vunpack.c.l.s8.bf16 %v412_v63  ;;  %v1210_v40 = vunpack.c.l.s8.bf16 %v418_v25 }
 0x386   :  { %5530 = vrsqrt.f32 %v3580_v14  ;;  %2612 = vmatpush1.bf16.msra.mxu0 %v1169_v28  ;;  %v417_v14 = vld [vmem:[#allocation6 + $0x8e0] sm:$0xff] }
 0x387   :  { %2956 = vmatpush1.bf16.msra.mxu1 %v1171_v56  ;;  %2613 = vmatprep.subr.bf16.mxu0 %v1178_v57  ;;  %v1212_v56 = vunpack.c.l.s8.bf16 %v420_v30  ;;  %v419_v57 = vld [vmem:[#allocation6 + $0x8f0] sm:$0xff] }
 0x388   :  { %2957 = vmatprep.subr.bf16.mxu1 %v1180_v58 }
 0x38a   :  { %2614 = vmatpush1.bf16.msra.mxu0 %v1177_v2  ;;  %v1209_v2 = vunpack.c.l.s8.bf16 %v417_v14 }
 0x38b   :  { %2958 = vmatpush1.bf16.msra.mxu1 %v1179_v52  ;;  %2615 = vmatprep.subr.bf16.mxu0 %v1186_v3  ;;  %v1211_v3 = vunpack.c.l.s8.bf16 %v419_v57 }
 0x38c   :  { %2959 = vmatprep.subr.bf16.mxu1 %v1188_v61  ;;  %v1218_v61 = vunpack.c.h.s8.bf16 %v418_v25 }
 0x38d   :  { %v5525_v16 = vpop.eup %5524 }
 0x38e   :  { %v5527_v7 = vpop.eup %5526  ;;  %2616 = vmatpush1.bf16.msra.mxu0 %v1185_v5  ;;  %v1220_v5 = vunpack.c.h.s8.bf16 %v420_v30  ;;  %v6174_v30 = vsub.s32 7, %v6030_v26 }
 0x38f   :  { %v5529_v18 = vpop.eup %5528  ;;  %2960 = vmatpush1.bf16.msra.mxu1 %v1187_v11  ;;  %2617 = vmatprep.subr.bf16.mxu0 %v1194_v12  ;;  %v426_v11 = vld [vmem:[#allocation6 + $0x928] sm:$0xff] }
 0x390   :  { %v5531_v24 = vpop.eup %5530  ;;  %v3601_v50 = vcombine.low %v5525_v16, %v5529_v18  ;;  %2961 = vmatprep.subr.bf16.mxu1 %v1196_v60 }
 0x391   :  { %v3602_v29 = vcombine.low %v5527_v7, %v5531_v24  ;;  %v1226_v24 = vunpack.c.l.s8.bf16 %v426_v11 }
 0x392   :  { %v3605_v44 = vrot.slane %v3601_v50, 6  ;;  %2618 = vmatpush1.bf16.msra.mxu0 %v1193_v17  ;;  %v1217_v17 = vunpack.c.h.s8.bf16 %v417_v14  ;;  %v425_v50 = vld [vmem:[#allocation6 + $0x920] sm:$0xff]  ;;  %v436_v14 = vld [vmem:[#allocation6 + $0x978] sm:$0xff] }
 0x393   :  { %v3606_v55 = vrot.slane %v3602_v29, 6  ;;  %2962 = vmatpush1.bf16.msra.mxu1 %v1195_v22  ;;  %2619 = vmatprep.subr.bf16.mxu0 %v1202_v19  ;;  %v1219_v19 = vunpack.c.h.s8.bf16 %v419_v57  ;;  %v6171_v29 = vsub.s32 3, %v6030_v26 }
 0x394   :  { %v3613_v28 = vmul.f32 %v3605_v44, %v6035_v10  ;;  %2963 = vmatprep.subr.bf16.mxu1 %v1204_v23  ;;  %v1228_v23 = vunpack.c.l.s8.bf16 %v428_v15 }
 0x395   :  { %v3614_v33 = vmul.f32 %v3606_v55, %v6037_v34 }
 0x396   :  { %v3624_v58 = vrot.slane %v3613_v28, %v6145_v54  ;;  %v3628_v59 = vrot.slane %v3613_v28, %v6148_v45  ;;  %2620 = vmatpush1.bf16.msra.mxu0 %v1201_v13  ;;  %v1225_v13 = vunpack.c.l.s8.bf16 %v425_v50 }
 0x397   :  { %v3636_v52 = vrot.slane %v3614_v33, %v6148_v45  ;;  %2964 = vmatpush1.bf16.msra.mxu1 %v1203_v37  ;;  %2621 = vmatprep.subr.bf16.mxu0 %v1210_v40  ;;  %v3632_v12 = vrot.slane %v3614_v33, %v6145_v54  ;;  %v1234_v37 = vunpack.c.h.s8.bf16 %v426_v11  ;;  %v434_v40 = vld [vmem:[#allocation6 + $0x968] sm:$0xff] }
 0x398   :  { %v3668_v53 = vrot.slane %v3628_v59, %v6145_v54  ;;  %v3710_v63 = vmul.f32 %v3628_v59, %v6118_v38  ;;  %2965 = vmatprep.subr.bf16.mxu1 %v1212_v56  ;;  %v3709_v16 = vmul.f32 %v3624_v58, %v6112_v1  ;;  %v3664_v38 = vrot.slane %v3624_v58, %v6145_v54  ;;  %v427_v1 = vld [vmem:[#allocation6 + $0x930] sm:$0xff]  ;;  %v433_v58 = vld [vmem:[#allocation6 + $0x960] sm:$0xff] }
 0x399   :  { %v3676_v62 = vrot.slane %v3636_v52, %v6145_v54  ;;  %v3712_v60 = vmul.f32 %v3636_v52, %v6120_v43  ;;  %v3711_v44 = vmul.f32 %v3632_v12, %v6114_v27  ;;  %v1227_v55 = vunpack.c.l.s8.bf16 %v427_v1  ;;  %v435_v52 = vld [vmem:[#allocation6 + $0x970] sm:$0xff] }
 0x39a   :  { %v3702_v7 = vmul.f32 %v3668_v53, %v6096_v20  ;;  %2622 = vmatpush1.bf16.msra.mxu0 %v1209_v2  ;;  %v3694_v18 = vmul.f32 %v3668_v53, %v6092_v8  ;;  %v3725_v43 = vcombine.low %v3709_v16, %v3710_v63  ;;  %v3693_v20 = vmul.f32 %v3664_v38, %v6084_v0 }
 0x39b   :  { %v6165_v22 = vmul.f32 %v3676_v62, %v6098_v21  ;;  %2966 = vmatpush1.bf16.msra.mxu1 %v1211_v3  ;;  %2623 = vmatprep.subr.bf16.mxu0 %v1218_v61  ;;  %v3701_v25 = vmul.f32 %v3664_v38, %v6088_v6  ;;  %v3696_v8 = vmul.f32 %v3676_v62, %v6094_v9  ;;  %v1236_v9 = vunpack.c.h.s8.bf16 %v428_v15 }
 0x39c   :  { %2967 = vmatprep.subr.bf16.mxu1 %v1220_v5  ;;  %v3729_v21 = vrot.slane %v3725_v43, 5  ;;  %v3726_v6 = vcombine.low %v3711_v44, %v3712_v60  ;;  %v1233_v27 = vunpack.c.h.s8.bf16 %v425_v50  ;;  %v1235_v57 = vunpack.c.h.s8.bf16 %v427_v1  ;;  %v444_v50 = vld [vmem:[#allocation6 + $0x9b8] sm:$0xff] }
 0x39d   :  { %v1242_v33 = vunpack.c.l.s8.bf16 %v434_v40  ;;  %v1244_v2 = vunpack.c.l.s8.bf16 %v436_v14  ;;  %v3672_v61 = vrot.slane %v3632_v12, %v6145_v54  ;;  %v1241_v62 = vunpack.c.l.s8.bf16 %v433_v58  ;;  %v442_v12 = vld [vmem:[#allocation6 + $0x9a8] sm:$0xff] }
 0x39e   :  { %2624 = vmatpush1.bf16.msra.mxu0 %v1217_v17  ;;  %v3737_v0 = vsub.f32 %v6035_v10, %v3729_v21  ;;  %v3730_v56 = vrot.slane %v3726_v6, 5  ;;  %v1243_v16 = vunpack.c.l.s8.bf16 %v435_v52  ;;  %v1250_v17 = vunpack.c.h.s8.bf16 %v434_v40  ;;  %v450_v40 = vld [vmem:[#allocation6 + $0x9e8] sm:$0xff] }
 0x39f   :  { %2968 = vmatpush1.bf16.msra.mxu1 %v1219_v19  ;;  %2625 = vmatprep.subr.bf16.mxu0 %v1226_v24  ;;  %v3703_v43 = vmul.f32 %v3672_v61, %v6090_v4  ;;  %v1251_v21 = vunpack.c.h.s8.bf16 %v435_v52  ;;  %v1258_v44 = vunpack.c.l.s8.bf16 %v442_v12  ;;  %v458_v52 = vld [vmem:[#allocation6 + $0xa28] sm:$0xff] }
 0x3a0   :  { %2969 = vmatprep.subr.bf16.mxu1 %v1228_v23  ;;  %v3752_v28 = vrot.slane %v3737_v0, %v6174_v30  ;;  %v3748_v26 = vrot.slane %v3737_v0, %v6171_v29  ;;  %v3738_v3 = vsub.f32 %v6037_v34, %v3730_v56  ;;  %v1252_v34 = vunpack.c.h.s8.bf16 %v436_v14  ;;  %v452_v14 = vld [vmem:[#allocation6 + $0x9f8] sm:$0xff] }
 0x3a1   :  { %v1249_v23 = vunpack.c.h.s8.bf16 %v433_v58  ;;  %v1274_v56 = vunpack.c.l.s8.bf16 %v450_v40 }
 0x3a2   :  { %2626 = vmatpush1.bf16.msra.mxu0 %v1225_v13  ;;  %v3792_v59 = vrot.slane %v3752_v28, %v6171_v29  ;;  %v3788_v10 = vrot.slane %v3748_v26, %v6171_v29  ;;  %v3760_v60 = vrot.slane %v3738_v3, %v6174_v30  ;;  %v3756_v15 = vrot.slane %v3738_v3, %v6171_v29  ;;  %v441_v13 = vld [vmem:[#allocation6 + $0x9a0] sm:$0xff]  ;;  %v460_v3 = vld [vmem:[#allocation6 + $0xa38] sm:$0xff] }
 0x3a3   :  { %2970 = vmatpush1.bf16.msra.mxu1 %v1227_v55  ;;  %2627 = vmatprep.subr.bf16.mxu0 %v1234_v37  ;;  %v1260_v37 = vunpack.c.l.s8.bf16 %v444_v50  ;;  %v1257_v4 = vunpack.c.l.s8.bf16 %v441_v13  ;;  %v1265_v28 = vunpack.c.h.s8.bf16 %v441_v13 }
 0x3a4   :  { %2971 = vmatprep.subr.bf16.mxu1 %v1236_v9  ;;  %v3818_v53 = vadd.f32 %v3792_v59, %v3694_v18  ;;  %v3826_v63 = vadd.f32 %v3792_v59, %v3702_v7  ;;  %v3817_v5 = vadd.f32 %v3788_v10, %v3693_v20  ;;  %v3825_v11 = vadd.f32 %v3788_v10, %v3701_v25 }
 0x3a5   :  { %v3800_v7 = vrot.slane %v3760_v60, %v6171_v29  ;;  %v3695_v18 = vmul.f32 %v3672_v61, %v6086_v36  ;;  %v3796_v24 = vrot.slane %v3756_v15, %v6171_v29  ;;  %v443_v36 = vld [vmem:[#allocation6 + $0x9b0] sm:$0xff]  ;;  %v1268_v9 = vunpack.c.h.s8.bf16 %v444_v50  ;;  %v465_v50 = vld [vmem:[#allocation6 + $0xa60] sm:$0xff] }
 0x3a6   :  { %2628 = vmatpush1.bf16.msra.mxu0 %v1233_v27  ;;  %v6186_v38 = vpack.c.bf16 %v3826_v63, %v3818_v53  ;;  %v6188_v19 = vpack.c.bf16 %v3825_v11, %v3817_v5  ;;  %v1267_v26 = vunpack.c.h.s8.bf16 %v443_v36  ;;  %v449_v27 = vld [vmem:[#allocation6 + $0x9e0] sm:$0xff]  ;;  %v1282_v10 = vunpack.c.h.s8.bf16 %v450_v40 }
 0x3a7   :  { %2972 = vmatpush1.bf16.msra.mxu1 %v1235_v57  ;;  %2629 = vmatprep.subr.bf16.mxu0 %v1242_v33  ;;  %v3820_v1 = vadd.f32 %v3800_v7, %v3696_v8  ;;  %v3828_v20 = vadd.f32 %v3800_v7, %v6165_v22  ;;  %v3819_v25 = vadd.f32 %v3796_v24, %v3695_v18  ;;  %v1259_v8 = vunpack.c.l.s8.bf16 %v443_v36  ;;  %v451_v33 = vld [vmem:[#allocation6 + $0x9f0] sm:$0xff]  ;;  %v457_v5 = vld [vmem:[#allocation6 + $0xa20] sm:$0xff] }
 0x3a8   :  { %2973 = vmatprep.subr.bf16.mxu1 %v1244_v2  ;;  %v3827_v55 = vadd.f32 %v3796_v24, %v3703_v43  ;;  %v1266_v22 = vunpack.c.h.s8.bf16 %v442_v12  ;;  %v1276_v57 = vunpack.c.l.s8.bf16 %v452_v14  ;;  %v1273_v58 = vunpack.c.l.s8.bf16 %v449_v27  ;;  %v468_v12 = vld [vmem:[#allocation6 + $0xa78] sm:$0xff]  ;;  %v473_v36 = vld [vmem:[#allocation6 + $0xaa0] sm:$0xff] }
 0x3a9   :  { %v6195_v0 = vpack.c.bf16 %v3828_v20, %v3820_v1  ;;  %v1275_v59 = vunpack.c.l.s8.bf16 %v451_v33  ;;  %v1284_v2 = vunpack.c.h.s8.bf16 %v452_v14  ;;  %v1281_v61 = vunpack.c.h.s8.bf16 %v449_v27  ;;  %v482_v14 = vld [vmem:[#allocation6 + $0xae8] sm:$0xff] }
 0x3aa   :  { %2630 = vmatpush1.bf16.msra.mxu0 %v1241_v62  ;;  %v6197_v6 = vpack.c.bf16 %v3827_v55, %v3819_v25  ;;  %v1283_v53 = vunpack.c.h.s8.bf16 %v451_v33  ;;  %v1290_v63 = vunpack.c.l.s8.bf16 %v458_v52  ;;  %v1292_v11 = vunpack.c.l.s8.bf16 %v460_v3  ;;  %v459_v62 = vld [vmem:[#allocation6 + $0xa30] sm:$0xff] }
 0x3ab   :  { %2974 = vmatpush1.bf16.msra.mxu1 %v1243_v16  ;;  %2631 = vmatprep.subr.bf16.mxu0 %v1250_v17  ;;  %v1289_v60 = vunpack.c.l.s8.bf16 %v457_v5  ;;  %v1291_v15 = vunpack.c.l.s8.bf16 %v459_v62  ;;  %v1298_v16 = vunpack.c.h.s8.bf16 %v458_v52  ;;  %v1300_v17 = vunpack.c.h.s8.bf16 %v460_v3  ;;  %v490_v3 = vld [vmem:[#allocation6 + $0xb28] sm:$0xff] }
 0x3ac   :  { %2975 = vmatprep.subr.bf16.mxu1 %v1252_v34  ;;  %v466_v34 = vld [vmem:[#allocation6 + $0xa68] sm:$0xff]  ;;  %v1297_v7 = vunpack.c.h.s8.bf16 %v457_v5  ;;  %v1299_v18 = vunpack.c.h.s8.bf16 %v459_v62  ;;  %v1308_v43 = vunpack.c.l.s8.bf16 %v468_v12  ;;  %v1305_v1 = vunpack.c.l.s8.bf16 %v465_v50 }
 0x3ad   :  { %v1306_v24 = vunpack.c.l.s8.bf16 %v466_v34  ;;  %v1314_v25 = vunpack.c.h.s8.bf16 %v466_v34  ;;  %v1313_v13 = vunpack.c.h.s8.bf16 %v465_v50  ;;  %v1338_v27 = vunpack.c.l.s8.bf16 %v482_v14 }
 0x3ae   :  { %2632 = vmatpush1.bf16.msra.mxu0 %v1249_v23  ;;  %v467_v23 = vld [vmem:[#allocation6 + $0xa70] sm:$0xff]  ;;  %v1354_v5 = vunpack.c.l.s8.bf16 %v490_v3 }
 0x3af   :  { %2976 = vmatpush1.bf16.msra.mxu1 %v1251_v21  ;;  %2633 = vmatprep.subr.bf16.mxu0 %v1258_v44  ;;  %v1307_v20 = vunpack.c.l.s8.bf16 %v467_v23  ;;  %v474_v21 = vld [vmem:[#allocation6 + $0xaa8] sm:$0xff]  ;;  %v476_v44 = vld [vmem:[#allocation6 + $0xab8] sm:$0xff]  ;;  %v1315_v55 = vunpack.c.h.s8.bf16 %v467_v23 }
 0x3b0   :  { %2977 = vmatprep.subr.bf16.mxu1 %v1260_v37  ;;  %v1322_v37 = vunpack.c.l.s8.bf16 %v474_v21  ;;  %v1332_v40 = vunpack.c.h.s8.bf16 %v476_v44 }
 0x3b2   :  { %2634 = vmatpush1.bf16.msra.mxu0 %v1257_v4  ;;  %v1324_v4 = vunpack.c.l.s8.bf16 %v476_v44  ;;  %v506_v44 = vld [vmem:[#allocation6 + $0xba8] sm:$0xff] }
 0x3b3   :  { %2978 = vmatpush1.bf16.msra.mxu1 %v1259_v8  ;;  %2635 = vmatprep.subr.bf16.mxu0 %v1266_v22  ;;  %v1321_v8 = vunpack.c.l.s8.bf16 %v473_v36 }
 0x3b4   :  { %2979 = vmatprep.subr.bf16.mxu1 %v1268_v9  ;;  %v1330_v9 = vunpack.c.h.s8.bf16 %v474_v21 }
 0x3b6   :  { %2636 = vmatpush1.bf16.msra.mxu0 %v1265_v28  ;;  %v484_v28 = vld [vmem:[#allocation6 + $0xaf8] sm:$0xff] }
 0x3b7   :  { %2980 = vmatpush1.bf16.msra.mxu1 %v1267_v26  ;;  %2637 = vmatprep.subr.bf16.mxu0 %v1274_v56  ;;  %v1329_v26 = vunpack.c.h.s8.bf16 %v473_v36  ;;  %v1340_v33 = vunpack.c.l.s8.bf16 %v484_v28  ;;  %v1348_v52 = vunpack.c.h.s8.bf16 %v484_v28  ;;  %v1386_v36 = vunpack.c.l.s8.bf16 %v506_v44  ;;  %v514_v28 = vld [vmem:[#allocation6 + $0xbe8] sm:$0xff] }
 0x3b8   :  { %2981 = vmatprep.subr.bf16.mxu1 %v1276_v57  ;;  %v481_v57 = vld [vmem:[#allocation6 + $0xae0] sm:$0xff] }
 0x3ba   :  { %2638 = vmatpush1.bf16.msra.mxu0 %v1273_v58  ;;  %v483_v58 = vld [vmem:[#allocation6 + $0xaf0] sm:$0xff] }
 0x3bb   :  { %2982 = vmatpush1.bf16.msra.mxu1 %v1275_v59  ;;  %2639 = vmatprep.subr.bf16.mxu0 %v1282_v10  ;;  %v1337_v59 = vunpack.c.l.s8.bf16 %v481_v57  ;;  %v1339_v10 = vunpack.c.l.s8.bf16 %v483_v58 }
 0x3bc   :  { %2983 = vmatprep.subr.bf16.mxu1 %v1284_v2  ;;  %v1346_v2 = vunpack.c.h.s8.bf16 %v482_v14 }
 0x3be   :  { %2640 = vmatpush1.bf16.msra.mxu0 %v1281_v61  ;;  %v492_v61 = vld [vmem:[#allocation6 + $0xb38] sm:$0xff] }
 0x3bf   :  { %2984 = vmatpush1.bf16.msra.mxu1 %v1283_v53  ;;  %2652 = vmatprep.subr.bf16.mxu0 %v1290_v63  ;;  %v1345_v53 = vunpack.c.h.s8.bf16 %v481_v57  ;;  %v1347_v63 = vunpack.c.h.s8.bf16 %v483_v58  ;;  %v1356_v62 = vunpack.c.l.s8.bf16 %v492_v61  ;;  %v1364_v34 = vunpack.c.h.s8.bf16 %v492_v61  ;;  %v522_v61 = vld [vmem:[#allocation6 + $0xc28] sm:$0xff] }
 0x3c0   :  { %2996 = vmatprep.subr.bf16.mxu1 %v1292_v11  ;;  %v489_v11 = vld [vmem:[#allocation6 + $0xb20] sm:$0xff]  ;;  %v1402_v57 = vunpack.c.l.s8.bf16 %v514_v28 }
 0x3c1   :  { %2642 = vmatmul.mubr.bf16.vlgmr.msra.gmra.mrb[4].mxu0 %v5964_v39 }
 0x3c2   :  { %2653 = vmatpush1.bf16.msra.mxu0 %v1289_v60  ;;  %2986 = vmatmul.mubr.bf16.vlgmr.msra.gmra.mrb[4].mxu1 %v5964_v39  ;;  %v1316_v39 = vunpack.c.h.s8.bf16 %v468_v12  ;;  %v491_v60 = vld [vmem:[#allocation6 + $0xb30] sm:$0xff]  ;;  %v498_v12 = vld [vmem:[#allocation6 + $0xb68] sm:$0xff] }
 0x3c3   :  { %2997 = vmatpush1.bf16.msra.mxu1 %v1291_v15  ;;  %2654 = vmatprep.subr.bf16.mxu0 %v1298_v16  ;;  %v1353_v15 = vunpack.c.l.s8.bf16 %v489_v11  ;;  %v1355_v16 = vunpack.c.l.s8.bf16 %v491_v60  ;;  %v1370_v50 = vunpack.c.l.s8.bf16 %v498_v12 }
 0x3c4   :  { %2998 = vmatprep.subr.bf16.mxu1 %v1300_v17  ;;  %2684 = vmatprep.mubr.bf16.mxu0 %v5972_v51  ;;  %v1362_v17 = vunpack.c.h.s8.bf16 %v490_v3 }
 0x3c5   :  { %3028 = vmatprep.mubr.bf16.mxu1 %v5972_v51  ;;  %v475_v51 = vld [vmem:[#allocation6 + $0xab0] sm:$0xff] }
 0x3c6   :  { %2655 = vmatpush1.bf16.msra.mxu0 %v1297_v7  ;;  %v1323_v22 = vunpack.c.l.s8.bf16 %v475_v51  ;;  %v1331_v56 = vunpack.c.h.s8.bf16 %v475_v51  ;;  %v500_v7 = vld [vmem:[#allocation6 + $0xb78] sm:$0xff] }
 0x3c7   :  { %2999 = vmatpush1.bf16.msra.mxu1 %v1299_v18  ;;  %2656 = vmatprep.subr.bf16.mxu0 %v1306_v24  ;;  %v1361_v18 = vunpack.c.h.s8.bf16 %v489_v11  ;;  %v1363_v24 = vunpack.c.h.s8.bf16 %v491_v60  ;;  %v1372_v23 = vunpack.c.l.s8.bf16 %v500_v7  ;;  %v1380_v21 = vunpack.c.h.s8.bf16 %v500_v7  ;;  %v530_v7 = vld [vmem:[#allocation6 + $0xc68] sm:$0xff] }
 0x3c8   :  { %3000 = vmatprep.subr.bf16.mxu1 %v1308_v43  ;;  %v497_v43 = vld [vmem:[#allocation6 + $0xb60] sm:$0xff]  ;;  %v1418_v11 = vunpack.c.l.s8.bf16 %v522_v61 }
 0x3ca   :  { %2657 = vmatpush1.bf16.msra.mxu0 %v1305_v1  ;;  %v499_v1 = vld [vmem:[#allocation6 + $0xb70] sm:$0xff] }
 0x3cb   :  { %3001 = vmatpush1.bf16.msra.mxu1 %v1307_v20  ;;  %2658 = vmatprep.subr.bf16.mxu0 %v1314_v25  ;;  %v1369_v20 = vunpack.c.l.s8.bf16 %v497_v43  ;;  %v1371_v25 = vunpack.c.l.s8.bf16 %v499_v1 }
 0x3cc   :  { %3002 = vmatprep.subr.bf16.mxu1 %v1316_v39  ;;  %v1378_v39 = vunpack.c.h.s8.bf16 %v498_v12 }
 0x3ce   :  { %2659 = vmatpush1.bf16.msra.mxu0 %v1313_v13  ;;  %v508_v13 = vld [vmem:[#allocation6 + $0xbb8] sm:$0xff] }
 0x3cf   :  { %3003 = vmatpush1.bf16.msra.mxu1 %v1315_v55  ;;  %2660 = vmatprep.subr.bf16.mxu0 %v1322_v37  ;;  %v1377_v55 = vunpack.c.h.s8.bf16 %v497_v43  ;;  %v1379_v37 = vunpack.c.h.s8.bf16 %v499_v1  ;;  %v1388_v51 = vunpack.c.l.s8.bf16 %v508_v13  ;;  %v1396_v14 = vunpack.c.h.s8.bf16 %v508_v13  ;;  %v540_v13 = vld [vmem:[#allocation6 + $0xcb8] sm:$0xff] }
 0x3d0   :  { %3004 = vmatprep.subr.bf16.mxu1 %v1324_v4  ;;  %v505_v4 = vld [vmem:[#allocation6 + $0xba0] sm:$0xff]  ;;  %v1434_v43 = vunpack.c.l.s8.bf16 %v530_v7 }
 0x3d2   :  { %2661 = vmatpush1.bf16.msra.mxu0 %v1321_v8  ;;  %v507_v8 = vld [vmem:[#allocation6 + $0xbb0] sm:$0xff] }
 0x3d3   :  { %3005 = vmatpush1.bf16.msra.mxu1 %v1323_v22  ;;  %2662 = vmatprep.subr.bf16.mxu0 %v1330_v9  ;;  %v1385_v22 = vunpack.c.l.s8.bf16 %v505_v4  ;;  %v1387_v9 = vunpack.c.l.s8.bf16 %v507_v8 }
 0x3d4   :  { %3006 = vmatprep.subr.bf16.mxu1 %v1332_v40  ;;  %v1394_v40 = vunpack.c.h.s8.bf16 %v506_v44  ;;  %v538_v44 = vld [vmem:[#allocation6 + $0xca8] sm:$0xff] }
 0x3d6   :  { %2663 = vmatpush1.bf16.msra.mxu0 %v1329_v26  ;;  %v516_v26 = vld [vmem:[#allocation6 + $0xbf8] sm:$0xff] }
 0x3d7   :  { %3007 = vmatpush1.bf16.msra.mxu1 %v1331_v56  ;;  %2664 = vmatprep.subr.bf16.mxu0 %v1338_v27  ;;  %v1393_v56 = vunpack.c.h.s8.bf16 %v505_v4  ;;  %v1395_v27 = vunpack.c.h.s8.bf16 %v507_v8  ;;  %v1404_v58 = vunpack.c.l.s8.bf16 %v516_v26  ;;  %v1412_v3 = vunpack.c.h.s8.bf16 %v516_v26  ;;  %v537_v4 = vld [vmem:[#allocation6 + $0xca0] sm:$0xff] }
 0x3d8   :  { %3008 = vmatprep.subr.bf16.mxu1 %v1340_v33  ;;  %v513_v33 = vld [vmem:[#allocation6 + $0xbe0] sm:$0xff]  ;;  %v1449_v8 = vunpack.c.l.s8.bf16 %v537_v4  ;;  %v1457_v26 = vunpack.c.h.s8.bf16 %v537_v4 }
 0x3da   :  { %2665 = vmatpush1.bf16.msra.mxu0 %v1337_v59  ;;  %v515_v59 = vld [vmem:[#allocation6 + $0xbf0] sm:$0xff] }
 0x3db   :  { %3009 = vmatpush1.bf16.msra.mxu1 %v1339_v10  ;;  %2666 = vmatprep.subr.bf16.mxu0 %v1346_v2  ;;  %v1401_v10 = vunpack.c.l.s8.bf16 %v513_v33  ;;  %v1403_v2 = vunpack.c.l.s8.bf16 %v515_v59 }
 0x3dc   :  { %3010 = vmatprep.subr.bf16.mxu1 %v1348_v52  ;;  %v1410_v52 = vunpack.c.h.s8.bf16 %v514_v28  ;;  %v548_v28 = vld [vmem:[#allocation6 + $0xcf8] sm:$0xff] }
 0x3de   :  { %2667 = vmatpush1.bf16.msra.mxu0 %v1345_v53  ;;  %v524_v53 = vld [vmem:[#allocation6 + $0xc38] sm:$0xff] }
 0x3df   :  { %3011 = vmatpush1.bf16.msra.mxu1 %v1347_v63  ;;  %2668 = vmatprep.subr.bf16.mxu0 %v1354_v5  ;;  %v1409_v63 = vunpack.c.h.s8.bf16 %v513_v33  ;;  %v1411_v5 = vunpack.c.h.s8.bf16 %v515_v59  ;;  %v1420_v60 = vunpack.c.l.s8.bf16 %v524_v53  ;;  %v1428_v12 = vunpack.c.h.s8.bf16 %v524_v53 }
 0x3e0   :  { %3012 = vmatprep.subr.bf16.mxu1 %v1356_v62  ;;  %v521_v62 = vld [vmem:[#allocation6 + $0xc20] sm:$0xff]  ;;  %v1468_v33 = vunpack.c.l.s8.bf16 %v548_v28 }
 0x3e2   :  { %2669 = vmatpush1.bf16.msra.mxu0 %v1353_v15  ;;  %v523_v15 = vld [vmem:[#allocation6 + $0xc30] sm:$0xff] }
 0x3e3   :  { %3013 = vmatpush1.bf16.msra.mxu1 %v1355_v16  ;;  %2670 = vmatprep.subr.bf16.mxu0 %v1362_v17  ;;  %v1417_v16 = vunpack.c.l.s8.bf16 %v521_v62  ;;  %v1419_v17 = vunpack.c.l.s8.bf16 %v523_v15 }
 0x3e4   :  { %3014 = vmatprep.subr.bf16.mxu1 %v1364_v34  ;;  %v1426_v34 = vunpack.c.h.s8.bf16 %v522_v61  ;;  %v556_v61 = vld [vmem:[#allocation6 + $0xd38] sm:$0xff] }
 0x3e6   :  { %2671 = vmatpush1.bf16.msra.mxu0 %v1361_v18  ;;  %v532_v18 = vld [vmem:[#allocation6 + $0xc78] sm:$0xff] }
 0x3e7   :  { %3015 = vmatpush1.bf16.msra.mxu1 %v1363_v24  ;;  %2672 = vmatprep.subr.bf16.mxu0 %v1370_v50  ;;  %v1425_v24 = vunpack.c.h.s8.bf16 %v521_v62  ;;  %v1427_v50 = vunpack.c.h.s8.bf16 %v523_v15  ;;  %v1436_v1 = vunpack.c.l.s8.bf16 %v532_v18  ;;  %v1484_v62 = vunpack.c.l.s8.bf16 %v556_v61 }
 0x3e8   :  { %3016 = vmatprep.subr.bf16.mxu1 %v1372_v23  ;;  %v529_v23 = vld [vmem:[#allocation6 + $0xc60] sm:$0xff] }
 0x3ea   :  { %2673 = vmatpush1.bf16.msra.mxu0 %v1369_v20  ;;  %v531_v20 = vld [vmem:[#allocation6 + $0xc70] sm:$0xff] }
 0x3eb   :  { %3017 = vmatpush1.bf16.msra.mxu1 %v1371_v25  ;;  %2674 = vmatprep.subr.bf16.mxu0 %v1378_v39  ;;  %v1433_v25 = vunpack.c.l.s8.bf16 %v529_v23  ;;  %v1435_v39 = vunpack.c.l.s8.bf16 %v531_v20 }
 0x3ec   :  { %3018 = vmatprep.subr.bf16.mxu1 %v1380_v21  ;;  %v1442_v21 = vunpack.c.h.s8.bf16 %v530_v7  ;;  %v564_v7 = vld [vmem:[#allocation6 + $0xd78] sm:$0xff] }
 0x3ee   :  { %2675 = vmatpush1.bf16.msra.mxu0 %v1377_v55  ;;  %v1441_v55 = vunpack.c.h.s8.bf16 %v529_v23  ;;  %v1500_v23 = vunpack.c.l.s8.bf16 %v564_v7 }
 0x3ef   :  { %3019 = vmatpush1.bf16.msra.mxu1 %v1379_v37  ;;  %2676 = vmatprep.subr.bf16.mxu0 %v1386_v36  ;;  %v1443_v37 = vunpack.c.h.s8.bf16 %v531_v20  ;;  %v1450_v36 = vunpack.c.l.s8.bf16 %v538_v44 }
 0x3f0   :  { %3020 = vmatprep.subr.bf16.mxu1 %v1388_v51  ;;  %v1452_v51 = vunpack.c.l.s8.bf16 %v540_v13 }
 0x3f2   :  { %2677 = vmatpush1.bf16.msra.mxu0 %v1385_v22 }
 0x3f3   :  { %3021 = vmatpush1.bf16.msra.mxu1 %v1387_v9  ;;  %2678 = vmatprep.subr.bf16.mxu0 %v1394_v40  ;;  %v1458_v9 = vunpack.c.h.s8.bf16 %v538_v44  ;;  %v1460_v40 = vunpack.c.h.s8.bf16 %v540_v13  ;;  %v572_v44 = vld [vmem:[#allocation6 + $0xdb8] sm:$0xff] }
 0x3f4   :  { %3022 = vmatprep.subr.bf16.mxu1 %v1396_v14  ;;  %v546_v14 = vld [vmem:[#allocation6 + $0xce8] sm:$0xff]  ;;  %v1516_v4 = vunpack.c.l.s8.bf16 %v572_v44 }
 0x3f6   :  { %2679 = vmatpush1.bf16.msra.mxu0 %v1393_v56 }
 0x3f7   :  { %3023 = vmatpush1.bf16.msra.mxu1 %v1395_v27  ;;  %2680 = vmatprep.subr.bf16.mxu0 %v1402_v57  ;;  %v1466_v27 = vunpack.c.l.s8.bf16 %v546_v14  ;;  %v545_v57 = vld [vmem:[#allocation6 + $0xce0] sm:$0xff] }
 0x3f8   :  { %3024 = vmatprep.subr.bf16.mxu1 %v1404_v58  ;;  %v547_v58 = vld [vmem:[#allocation6 + $0xcf0] sm:$0xff]  ;;  %v1465_v59 = vunpack.c.l.s8.bf16 %v545_v57  ;;  %v1473_v53 = vunpack.c.h.s8.bf16 %v545_v57 }
 0x3fa   :  { %2681 = vmatpush1.bf16.msra.mxu0 %v1401_v10  ;;  %v1467_v10 = vunpack.c.l.s8.bf16 %v547_v58 }
 0x3fb   :  { %3025 = vmatpush1.bf16.msra.mxu1 %v1403_v2  ;;  %2682 = vmatprep.subr.bf16.mxu0 %v1410_v52  ;;  %v1474_v2 = vunpack.c.h.s8.bf16 %v546_v14  ;;  %v1476_v52 = vunpack.c.h.s8.bf16 %v548_v28  ;;  %v580_v14 = vld [vmem:[#allocation6 + $0xdf8] sm:$0xff] }
 0x3fc   :  { %3026 = vmatprep.subr.bf16.mxu1 %v1412_v3  ;;  %v554_v3 = vld [vmem:[#allocation6 + $0xd28] sm:$0xff]  ;;  %v1532_v57 = vunpack.c.l.s8.bf16 %v580_v14 }
 0x3fe   :  { %2683 = vmatpush1.bf16.msra.mxu0 %v1409_v63  ;;  %v1475_v63 = vunpack.c.h.s8.bf16 %v547_v58 }
 0x3ff   :  { %3027 = vmatpush1.bf16.msra.mxu1 %v1411_v5  ;;  %2695 = vmatprep.subr.bf16.mxu0 %v1418_v11  ;;  %v1482_v5 = vunpack.c.l.s8.bf16 %v554_v3  ;;  %v553_v11 = vld [vmem:[#allocation6 + $0xd20] sm:$0xff] }
 0x400   :  { %3039 = vmatprep.subr.bf16.mxu1 %v1420_v60  ;;  %v555_v60 = vld [vmem:[#allocation6 + $0xd30] sm:$0xff]  ;;  %v1481_v15 = vunpack.c.l.s8.bf16 %v553_v11 }
 0x401   :  { %2685 = vmatmul.mubr.bf16.vlgmr.msra.gmra.mrb[4].mxu0 %v5980_v32 }
 0x402   :  { %2696 = vmatpush1.bf16.msra.mxu0 %v1417_v16  ;;  %3029 = vmatmul.mubr.bf16.vlgmr.msra.gmra.mrb[4].mxu1 %v5980_v32  ;;  %v1444_v32 = vunpack.c.h.s8.bf16 %v532_v18  ;;  %v1483_v16 = vunpack.c.l.s8.bf16 %v555_v60  ;;  %v1489_v18 = vunpack.c.h.s8.bf16 %v553_v11 }
 0x403   :  { %3040 = vmatpush1.bf16.msra.mxu1 %v1419_v17  ;;  %2697 = vmatprep.subr.bf16.mxu0 %v1426_v34  ;;  %v1490_v17 = vunpack.c.h.s8.bf16 %v554_v3  ;;  %v1492_v34 = vunpack.c.h.s8.bf16 %v556_v61  ;;  %v588_v3 = vld [vmem:[#allocation6 + $0xe38] sm:$0xff] }
 0x404   :  { %3041 = vmatprep.subr.bf16.mxu1 %v1428_v12  ;;  %2727 = vmatprep.mubr.bf16.mxu0 %v5988_v48  ;;  %v562_v12 = vld [vmem:[#allocation6 + $0xd68] sm:$0xff]  ;;  %v1548_v11 = vunpack.c.l.s8.bf16 %v588_v3 }
 0x405   :  { %3071 = vmatprep.mubr.bf16.mxu1 %v5988_v48  ;;  %v539_v48 = vld [vmem:[#allocation6 + $0xcb0] sm:$0xff] }
 0x406   :  { %2698 = vmatpush1.bf16.msra.mxu0 %v1425_v24  ;;  %v1451_v22 = vunpack.c.l.s8.bf16 %v539_v48  ;;  %v1459_v56 = vunpack.c.h.s8.bf16 %v539_v48  ;;  %v1491_v24 = vunpack.c.h.s8.bf16 %v555_v60 }
 0x407   :  { %3042 = vmatpush1.bf16.msra.mxu1 %v1427_v50  ;;  %2699 = vmatprep.subr.bf16.mxu0 %v1434_v43  ;;  %v1498_v50 = vunpack.c.l.s8.bf16 %v562_v12  ;;  %v561_v43 = vld [vmem:[#allocation6 + $0xd60] sm:$0xff] }
 0x408   :  { %3043 = vmatprep.subr.bf16.mxu1 %v1436_v1  ;;  %v563_v1 = vld [vmem:[#allocation6 + $0xd70] sm:$0xff]  ;;  %v1497_v20 = vunpack.c.l.s8.bf16 %v561_v43  ;;  %v1505_v13 = vunpack.c.h.s8.bf16 %v561_v43 }
 0x40a   :  { %2700 = vmatpush1.bf16.msra.mxu0 %v1433_v25  ;;  %v1499_v25 = vunpack.c.l.s8.bf16 %v563_v1 }
 0x40b   :  { %3044 = vmatpush1.bf16.msra.mxu1 %v1435_v39  ;;  %2701 = vmatprep.subr.bf16.mxu0 %v1442_v21  ;;  %v1506_v39 = vunpack.c.h.s8.bf16 %v562_v12  ;;  %v1508_v21 = vunpack.c.h.s8.bf16 %v564_v7  ;;  %v596_v12 = vld [vmem:[#allocation6 + $0xe78] sm:$0xff] }
 0x40c   :  { %3045 = vmatprep.subr.bf16.mxu1 %v1444_v32  ;;  %v570_v32 = vld [vmem:[#allocation6 + $0xda8] sm:$0xff]  ;;  %v1564_v43 = vunpack.c.l.s8.bf16 %v596_v12 }
 0x40e   :  { %2702 = vmatpush1.bf16.msra.mxu0 %v1441_v55  ;;  %v1507_v55 = vunpack.c.h.s8.bf16 %v563_v1 }
 0x40f   :  { %3046 = vmatpush1.bf16.msra.mxu1 %v1443_v37  ;;  %2703 = vmatprep.subr.bf16.mxu0 %v1450_v36  ;;  %v1514_v37 = vunpack.c.l.s8.bf16 %v570_v32  ;;  %v569_v36 = vld [vmem:[#allocation6 + $0xda0] sm:$0xff] }
 0x410   :  { %3047 = vmatprep.subr.bf16.mxu1 %v1452_v51  ;;  %v571_v51 = vld [vmem:[#allocation6 + $0xdb0] sm:$0xff]  ;;  %v1513_v48 = vunpack.c.l.s8.bf16 %v569_v36  ;;  %v1521_v28 = vunpack.c.h.s8.bf16 %v569_v36 }
 0x412   :  { %2704 = vmatpush1.bf16.msra.mxu0 %v1449_v8  ;;  %v1515_v8 = vunpack.c.l.s8.bf16 %v571_v51 }
 0x413   :  { %3048 = vmatpush1.bf16.msra.mxu1 %v1451_v22  ;;  %2705 = vmatprep.subr.bf16.mxu0 %v1458_v9  ;;  %v1522_v22 = vunpack.c.h.s8.bf16 %v570_v32  ;;  %v1524_v9 = vunpack.c.h.s8.bf16 %v572_v44 }
 0x414   :  { %3049 = vmatprep.subr.bf16.mxu1 %v1460_v40  ;;  %v578_v40 = vld [vmem:[#allocation6 + $0xde8] sm:$0xff] }
 0x416   :  { %2706 = vmatpush1.bf16.msra.mxu0 %v1457_v26  ;;  %v1523_v26 = vunpack.c.h.s8.bf16 %v571_v51 }
 0x417   :  { %3050 = vmatpush1.bf16.msra.mxu1 %v1459_v56  ;;  %2707 = vmatprep.subr.bf16.mxu0 %v1466_v27  ;;  %v1530_v56 = vunpack.c.l.s8.bf16 %v578_v40  ;;  %v577_v27 = vld [vmem:[#allocation6 + $0xde0] sm:$0xff] }
 0x418   :  { %3051 = vmatprep.subr.bf16.mxu1 %v1468_v33  ;;  %v579_v33 = vld [vmem:[#allocation6 + $0xdf0] sm:$0xff]  ;;  %v1529_v58 = vunpack.c.l.s8.bf16 %v577_v27  ;;  %v1537_v61 = vunpack.c.h.s8.bf16 %v577_v27 }
 0x41a   :  { %2708 = vmatpush1.bf16.msra.mxu0 %v1465_v59  ;;  %v1531_v59 = vunpack.c.l.s8.bf16 %v579_v33 }
 0x41b   :  { %3052 = vmatpush1.bf16.msra.mxu1 %v1467_v10  ;;  %2709 = vmatprep.subr.bf16.mxu0 %v1474_v2  ;;  %v1538_v10 = vunpack.c.h.s8.bf16 %v578_v40  ;;  %v1540_v2 = vunpack.c.h.s8.bf16 %v580_v14 }
 0x41c   :  { %3053 = vmatprep.subr.bf16.mxu1 %v1476_v52  ;;  %v586_v52 = vld [vmem:[#allocation6 + $0xe28] sm:$0xff] }
 0x41e   :  { %2710 = vmatpush1.bf16.msra.mxu0 %v1473_v53  ;;  %v1539_v53 = vunpack.c.h.s8.bf16 %v579_v33 }
 0x41f   :  { %3054 = vmatpush1.bf16.msra.mxu1 %v1475_v63  ;;  %2711 = vmatprep.subr.bf16.mxu0 %v1482_v5  ;;  %v1546_v63 = vunpack.c.l.s8.bf16 %v586_v52  ;;  %v585_v5 = vld [vmem:[#allocation6 + $0xe20] sm:$0xff] }
 0x420   :  { %3055 = vmatprep.subr.bf16.mxu1 %v1484_v62  ;;  %v587_v62 = vld [vmem:[#allocation6 + $0xe30] sm:$0xff]  ;;  %v1545_v60 = vunpack.c.l.s8.bf16 %v585_v5  ;;  %v1553_v7 = vunpack.c.h.s8.bf16 %v585_v5 }
 0x422   :  { %2712 = vmatpush1.bf16.msra.mxu0 %v1481_v15  ;;  %v1547_v15 = vunpack.c.l.s8.bf16 %v587_v62 }
 0x423   :  { %3056 = vmatpush1.bf16.msra.mxu1 %v1483_v16  ;;  %2713 = vmatprep.subr.bf16.mxu0 %v1490_v17  ;;  %v1554_v16 = vunpack.c.h.s8.bf16 %v586_v52  ;;  %v1556_v17 = vunpack.c.h.s8.bf16 %v588_v3 }
 0x424   :  { %3057 = vmatprep.subr.bf16.mxu1 %v1492_v34  ;;  %v594_v34 = vld [vmem:[#allocation6 + $0xe68] sm:$0xff] }
 0x426   :  { %2714 = vmatpush1.bf16.msra.mxu0 %v1489_v18  ;;  %v1555_v18 = vunpack.c.h.s8.bf16 %v587_v62 }
 0x427   :  { %3058 = vmatpush1.bf16.msra.mxu1 %v1491_v24  ;;  %2715 = vmatprep.subr.bf16.mxu0 %v1498_v50  ;;  %v1562_v24 = vunpack.c.l.s8.bf16 %v594_v34  ;;  %v593_v50 = vld [vmem:[#allocation6 + $0xe60] sm:$0xff] }
 0x428   :  { %3059 = vmatprep.subr.bf16.mxu1 %v1500_v23  ;;  %v595_v23 = vld [vmem:[#allocation6 + $0xe70] sm:$0xff]  ;;  %v1561_v1 = vunpack.c.l.s8.bf16 %v593_v50  ;;  %v1569_v32 = vunpack.c.h.s8.bf16 %v593_v50 }
 0x429   :  { %v1571_v44 = vunpack.c.h.s8.bf16 %v595_v23 }
 0x42a   :  { %2716 = vmatpush1.bf16.msra.mxu0 %v1497_v20  ;;  %v1563_v20 = vunpack.c.l.s8.bf16 %v595_v23 }
 0x42b   :  { %3060 = vmatpush1.bf16.msra.mxu1 %v1499_v25  ;;  %2717 = vmatprep.subr.bf16.mxu0 %v1506_v39  ;;  %v1570_v25 = vunpack.c.h.s8.bf16 %v594_v34  ;;  %v602_v39 = vld [vmem:[#allocation6 + $0xea8] sm:$0xff] }
 0x42c   :  { %3061 = vmatprep.subr.bf16.mxu1 %v1508_v21  ;;  %v604_v21 = vld [vmem:[#allocation6 + $0xeb8] sm:$0xff]  ;;  %v1586_v51 = vunpack.c.h.s8.bf16 %v602_v39 }
 0x42e   :  { %2718 = vmatpush1.bf16.msra.mxu0 %v1505_v13  ;;  %v1578_v13 = vunpack.c.l.s8.bf16 %v602_v39 }
 0x42f   :  { %3062 = vmatpush1.bf16.msra.mxu1 %v1507_v55  ;;  %2719 = vmatprep.subr.bf16.mxu0 %v1514_v37  ;;  %v601_v55 = vld [vmem:[#allocation6 + $0xea0] sm:$0xff]  ;;  %v1580_v37 = vunpack.c.l.s8.bf16 %v604_v21 }
 0x430   :  { %3063 = vmatprep.subr.bf16.mxu1 %v1516_v4  ;;  %v1577_v36 = vunpack.c.l.s8.bf16 %v601_v55 }
 0x432   :  { %2720 = vmatpush1.bf16.msra.mxu0 %v1513_v48  ;;  %v1588_v48 = vunpack.c.h.s8.bf16 %v604_v21 }
 0x433   :  { %3064 = vmatpush1.bf16.msra.mxu1 %v1515_v8  ;;  %2721 = vmatprep.subr.bf16.mxu0 %v1522_v22  ;;  %v610_v8 = vld [vmem:[#allocation6 + $0xee8] sm:$0xff]  ;;  %v612_v22 = vld [vmem:[#allocation6 + $0xef8] sm:$0xff] }
 0x434   :  { %3065 = vmatprep.subr.bf16.mxu1 %v1524_v9  ;;  %v1585_v9 = vunpack.c.h.s8.bf16 %v601_v55  ;;  %v1594_v14 = vunpack.c.l.s8.bf16 %v610_v8  ;;  %v1602_v33 = vunpack.c.h.s8.bf16 %v610_v8 }
 0x436   :  { %2722 = vmatpush1.bf16.msra.mxu0 %v1521_v28  ;;  %v609_v28 = vld [vmem:[#allocation6 + $0xee0] sm:$0xff] }
 0x437   :  { %3066 = vmatpush1.bf16.msra.mxu1 %v1523_v26  ;;  %2723 = vmatprep.subr.bf16.mxu0 %v1530_v56  ;;  %v1596_v26 = vunpack.c.l.s8.bf16 %v612_v22  ;;  %v611_v56 = vld [vmem:[#allocation6 + $0xef0] sm:$0xff]  ;;  %v1593_v27 = vunpack.c.l.s8.bf16 %v609_v28 }
 0x438   :  { %3067 = vmatprep.subr.bf16.mxu1 %v1532_v57  ;;  %v1595_v57 = vunpack.c.l.s8.bf16 %v611_v56  ;;  %v1603_v52 = vunpack.c.h.s8.bf16 %v611_v56 }
 0x43a   :  { %2724 = vmatpush1.bf16.msra.mxu0 %v1529_v58  ;;  %v1604_v58 = vunpack.c.h.s8.bf16 %v612_v22 }
 0x43b   :  { %3068 = vmatpush1.bf16.msra.mxu1 %v1531_v59  ;;  %2725 = vmatprep.subr.bf16.mxu0 %v1538_v10  ;;  %v618_v59 = vld [vmem:[#allocation6 + $0xf28] sm:$0xff]  ;;  %v620_v10 = vld [vmem:[#allocation6 + $0xf38] sm:$0xff] }
 0x43c   :  { %3069 = vmatprep.subr.bf16.mxu1 %v1540_v2  ;;  %v1601_v2 = vunpack.c.h.s8.bf16 %v609_v28  ;;  %v1610_v3 = vunpack.c.l.s8.bf16 %v618_v59  ;;  %v1618_v62 = vunpack.c.h.s8.bf16 %v618_v59 }
 0x43e   :  { %2726 = vmatpush1.bf16.msra.mxu0 %v1537_v61  ;;  %v617_v61 = vld [vmem:[#allocation6 + $0xf20] sm:$0xff] }
 0x43f   :  { %3070 = vmatpush1.bf16.msra.mxu1 %v1539_v53  ;;  %2738 = vmatprep.subr.bf16.mxu0 %v1546_v63  ;;  %v1612_v53 = vunpack.c.l.s8.bf16 %v620_v10  ;;  %v619_v63 = vld [vmem:[#allocation6 + $0xf30] sm:$0xff]  ;;  %v1609_v5 = vunpack.c.l.s8.bf16 %v617_v61 }
 0x440   :  { %3082 = vmatprep.subr.bf16.mxu1 %v1548_v11  ;;  %v1611_v11 = vunpack.c.l.s8.bf16 %v619_v63  ;;  %v1619_v34 = vunpack.c.h.s8.bf16 %v619_v63 }
 0x441   :  { %2728 = vmatmul.mubr.bf16.vlgmr.msra.gmra.mrb[4].mxu0 %v5996_v46 }
 0x442   :  { %2739 = vmatpush1.bf16.msra.mxu0 %v1545_v60  ;;  %3072 = vmatmul.mubr.bf16.vlgmr.msra.gmra.mrb[4].mxu1 %v5996_v46  ;;  %v1572_v46 = vunpack.c.h.s8.bf16 %v596_v12  ;;  %v1620_v60 = vunpack.c.h.s8.bf16 %v620_v10 }
 0x443   :  { %3083 = vmatpush1.bf16.msra.mxu1 %v1547_v15  ;;  %2740 = vmatprep.subr.bf16.mxu0 %v1554_v16  ;;  %v626_v15 = vld [vmem:[#allocation6 + $0xf68] sm:$0xff]  ;;  %v628_v16 = vld [vmem:[#allocation6 + $0xf78] sm:$0xff] }
 0x444   :  { %3084 = vmatprep.subr.bf16.mxu1 %v1556_v17  ;;  %2770 = vmatprep.mubr.bf16.mxu0 %v6004_v41  ;;  %v1617_v17 = vunpack.c.h.s8.bf16 %v617_v61  ;;  %v1626_v12 = vunpack.c.l.s8.bf16 %v626_v15  ;;  %v1634_v23 = vunpack.c.h.s8.bf16 %v626_v15 }
 0x445   :  { %3114 = vmatprep.mubr.bf16.mxu1 %v6004_v41  ;;  %v603_v41 = vld [vmem:[#allocation6 + $0xeb0] sm:$0xff] }
 0x446   :  { %2741 = vmatpush1.bf16.msra.mxu0 %v1553_v7  ;;  %v1579_v4 = vunpack.c.l.s8.bf16 %v603_v41  ;;  %v1587_v40 = vunpack.c.h.s8.bf16 %v603_v41  ;;  %v625_v7 = vld [vmem:[#allocation6 + $0xf60] sm:$0xff] }
 0x447   :  { %3085 = vmatpush1.bf16.msra.mxu1 %v1555_v18  ;;  %2742 = vmatprep.subr.bf16.mxu0 %v1562_v24  ;;  %v1628_v18 = vunpack.c.l.s8.bf16 %v628_v16  ;;  %v627_v24 = vld [vmem:[#allocation6 + $0xf70] sm:$0xff]  ;;  %v1625_v50 = vunpack.c.l.s8.bf16 %v625_v7 }
 0x448   :  { %3086 = vmatprep.subr.bf16.mxu1 %v1564_v43  ;;  %v1627_v43 = vunpack.c.l.s8.bf16 %v627_v24  ;;  %v1635_v39 = vunpack.c.h.s8.bf16 %v627_v24 }
 0x44a   :  { %2743 = vmatpush1.bf16.msra.mxu0 %v1561_v1  ;;  %v1636_v1 = vunpack.c.h.s8.bf16 %v628_v16 }
 0x44b   :  { %3087 = vmatpush1.bf16.msra.mxu1 %v1563_v20  ;;  %2744 = vmatprep.subr.bf16.mxu0 %v1570_v25  ;;  %v634_v20 = vld [vmem:[#allocation6 + $0xfa8] sm:$0xff]  ;;  %v636_v25 = vld [vmem:[#allocation6 + $0xfb8] sm:$0xff] }
 0x44c   :  { %3088 = vmatprep.subr.bf16.mxu1 %v1572_v46  ;;  %v1633_v46 = vunpack.c.h.s8.bf16 %v625_v7  ;;  %v1642_v21 = vunpack.c.l.s8.bf16 %v634_v20  ;;  %v1650_v41 = vunpack.c.h.s8.bf16 %v634_v20  ;;  %v3851_v20 = vld [vmem:[#allocation9 + $0x40] sm:$0xff] }
 0x44e   :  { %2745 = vmatpush1.bf16.msra.mxu0 %v1569_v32  ;;  %v633_v32 = vld [vmem:[#allocation6 + $0xfa0] sm:$0xff] }
 0x44f   :  { %3089 = vmatpush1.bf16.msra.mxu1 %v1571_v44  ;;  %2746 = vmatprep.subr.bf16.mxu0 %v1578_v13  ;;  %v1644_v44 = vunpack.c.l.s8.bf16 %v636_v25  ;;  %v635_v13 = vld [vmem:[#allocation6 + $0xfb0] sm:$0xff]  ;;  %v1641_v55 = vunpack.c.l.s8.bf16 %v633_v32 }
 0x450   :  { %3090 = vmatprep.subr.bf16.mxu1 %v1580_v37  ;;  %v1643_v37 = vunpack.c.l.s8.bf16 %v635_v13  ;;  %v1651_v8 = vunpack.c.h.s8.bf16 %v635_v13  ;;  %v3856_v13 = vld [vmem:[#allocation9 + $0x68] sm:$0xff] }
 0x452   :  { %2747 = vmatpush1.bf16.msra.mxu0 %v1577_v36  ;;  %v1652_v36 = vunpack.c.h.s8.bf16 %v636_v25 }
 0x453   :  { %3091 = vmatpush1.bf16.msra.mxu1 %v1579_v4  ;;  %2748 = vmatprep.subr.bf16.mxu0 %v1586_v51  ;;  %v642_v4 = vld [vmem:[#allocation6 + $0xfe8] sm:$0xff]  ;;  %v644_v51 = vld [vmem:[#allocation6 + $0xff8] sm:$0xff] }
 0x454   :  { %3092 = vmatprep.subr.bf16.mxu1 %v1588_v48  ;;  %v1649_v48 = vunpack.c.h.s8.bf16 %v633_v32  ;;  %v1658_v22 = vunpack.c.l.s8.bf16 %v642_v4  ;;  %v1666_v56 = vunpack.c.h.s8.bf16 %v642_v4  ;;  %v3855_v4 = vld [vmem:[#allocation9 + $0x60] sm:$0xff] }
 0x456   :  { %2749 = vmatpush1.bf16.msra.mxu0 %v1585_v9  ;;  %v641_v9 = vld [vmem:[#allocation6 + $0xfe0] sm:$0xff] }
 0x457   :  { %3093 = vmatpush1.bf16.msra.mxu1 %v1587_v40  ;;  %2750 = vmatprep.subr.bf16.mxu0 %v1594_v14  ;;  %v1660_v40 = vunpack.c.l.s8.bf16 %v644_v51  ;;  %v643_v14 = vld [vmem:[#allocation6 + $0xff0] sm:$0xff]  ;;  %v1657_v28 = vunpack.c.l.s8.bf16 %v641_v9 }
 0x458   :  { %3094 = vmatprep.subr.bf16.mxu1 %v1596_v26  ;;  %v1659_v26 = vunpack.c.l.s8.bf16 %v643_v14  ;;  %v1667_v59 = vunpack.c.h.s8.bf16 %v643_v14  ;;  %v3860_v14 = vld [vmem:[#allocation9 + $0x88] sm:$0xff] }
 0x45a   :  { %2751 = vmatpush1.bf16.msra.mxu0 %v1593_v27  ;;  %v1668_v27 = vunpack.c.h.s8.bf16 %v644_v51 }
 0x45b   :  { %3095 = vmatpush1.bf16.msra.mxu1 %v1595_v57  ;;  %2752 = vmatprep.subr.bf16.mxu0 %v1602_v33  ;;  %v3844_v57 = vld [vmem:[#allocation9 + $0x8] sm:$0xff]  ;;  %v3846_v33 = vld [vmem:[#allocation9 + $0x18] sm:$0xff] }
 0x45c   :  { %3096 = vmatprep.subr.bf16.mxu1 %v1604_v58  ;;  %v1665_v58 = vunpack.c.h.s8.bf16 %v641_v9  ;;  %v3972_v10 = vunpack.c.l.s8.bf16 %v3844_v57  ;;  %v3976_v63 = vunpack.c.h.s8.bf16 %v3844_v57  ;;  %v4000_v9 = vunpack.c.h.s8.bf16 %v3856_v13  ;;  %v3859_v57 = vld [vmem:[#allocation9 + $0x80] sm:$0xff] }
 0x45e   :  { %2753 = vmatpush1.bf16.msra.mxu0 %v1601_v2  ;;  %v3843_v2 = vld [vmem:[#allocation9] sm:$0xff] }
 0x45f   :  { %3097 = vmatpush1.bf16.msra.mxu1 %v1603_v52  ;;  %2754 = vmatprep.subr.bf16.mxu0 %v1610_v3  ;;  %v3974_v52 = vunpack.c.l.s8.bf16 %v3846_v33  ;;  %v3845_v3 = vld [vmem:[#allocation9 + $0x10] sm:$0xff]  ;;  %v3971_v61 = vunpack.c.l.s8.bf16 %v3843_v2 }
 0x460   :  { %3098 = vmatprep.subr.bf16.mxu1 %v1612_v53  ;;  %v3973_v53 = vunpack.c.l.s8.bf16 %v3845_v3  ;;  %v3977_v15 = vunpack.c.h.s8.bf16 %v3845_v3  ;;  %v3864_v3 = vld [vmem:[#allocation9 + $0xa8] sm:$0xff] }
 0x462   :  { %2755 = vmatpush1.bf16.msra.mxu0 %v1609_v5  ;;  %v3848_v5 = vld [vmem:[#allocation9 + $0x28] sm:$0xff] }
 0x463   :  { %3099 = vmatpush1.bf16.msra.mxu1 %v1611_v11  ;;  %2756 = vmatprep.subr.bf16.mxu0 %v1618_v62  ;;  %v3978_v11 = vunpack.c.h.s8.bf16 %v3846_v33  ;;  %v3850_v62 = vld [vmem:[#allocation9 + $0x38] sm:$0xff]  ;;  %v3980_v16 = vunpack.c.l.s8.bf16 %v3848_v5 }
 0x464   :  { %3100 = vmatprep.subr.bf16.mxu1 %v1620_v60  ;;  %v3975_v60 = vunpack.c.h.s8.bf16 %v3843_v2  ;;  %v3986_v24 = vunpack.c.h.s8.bf16 %v3850_v62  ;;  %v4008_v2 = vunpack.c.h.s8.bf16 %v3860_v14 }
 0x466   :  { %2757 = vmatpush1.bf16.msra.mxu0 %v1617_v17  ;;  %v3847_v17 = vld [vmem:[#allocation9 + $0x20] sm:$0xff] }
 0x467   :  { %3101 = vmatpush1.bf16.msra.mxu1 %v1619_v34  ;;  %2758 = vmatprep.subr.bf16.mxu0 %v1626_v12  ;;  %v3982_v34 = vunpack.c.l.s8.bf16 %v3850_v62  ;;  %v3849_v12 = vld [vmem:[#allocation9 + $0x30] sm:$0xff]  ;;  %v3979_v7 = vunpack.c.l.s8.bf16 %v3847_v17 }
 0x468   :  { %3102 = vmatprep.subr.bf16.mxu1 %v1628_v18  ;;  %v3981_v18 = vunpack.c.l.s8.bf16 %v3849_v12 }
 0x46a   :  { %2759 = vmatpush1.bf16.msra.mxu0 %v1625_v50  ;;  %v3852_v50 = vld [vmem:[#allocation9 + $0x48] sm:$0xff] }
 0x46b   :  { %3103 = vmatpush1.bf16.msra.mxu1 %v1627_v43  ;;  %2760 = vmatprep.subr.bf16.mxu0 %v1634_v23  ;;  %v3854_v43 = vld [vmem:[#allocation9 + $0x58] sm:$0xff]  ;;  %v3983_v23 = vunpack.c.h.s8.bf16 %v3847_v17  ;;  %v3992_v32 = vunpack.c.h.s8.bf16 %v3852_v50  ;;  %v4016_v17 = vunpack.c.h.s8.bf16 %v3864_v3 }
 0x46c   :  { %3104 = vmatprep.subr.bf16.mxu1 %v1636_v1  ;;  %v3985_v1 = vunpack.c.h.s8.bf16 %v3849_v12  ;;  %v3990_v25 = vunpack.c.l.s8.bf16 %v3854_v43  ;;  %v3868_v12 = vld [vmem:[#allocation9 + $0xc8] sm:$0xff] }
 0x46e   :  { %2761 = vmatpush1.bf16.msra.mxu0 %v1633_v46  ;;  %v3853_v46 = vld [vmem:[#allocation9 + $0x50] sm:$0xff] }
 0x46f   :  { %3105 = vmatpush1.bf16.msra.mxu1 %v1635_v39  ;;  %2762 = vmatprep.subr.bf16.mxu0 %v1642_v21  ;;  %v3987_v39 = vunpack.c.l.s8.bf16 %v3851_v20  ;;  %v3989_v21 = vunpack.c.l.s8.bf16 %v3853_v46 }
 0x470   :  { %3106 = vmatprep.subr.bf16.mxu1 %v1644_v44  ;;  %v3994_v44 = vunpack.c.h.s8.bf16 %v3854_v43 }
 0x472   :  { %2763 = vmatpush1.bf16.msra.mxu0 %v1641_v55  ;;  %v3858_v55 = vld [vmem:[#allocation9 + $0x78] sm:$0xff] }
 0x473   :  { %3107 = vmatpush1.bf16.msra.mxu1 %v1643_v37  ;;  %2764 = vmatprep.subr.bf16.mxu0 %v1650_v41  ;;  %v3991_v37 = vunpack.c.h.s8.bf16 %v3851_v20  ;;  %v3993_v41 = vunpack.c.h.s8.bf16 %v3853_v46  ;;  %v3998_v51 = vunpack.c.l.s8.bf16 %v3858_v55  ;;  %v4024_v20 = vunpack.c.h.s8.bf16 %v3868_v12  ;;  %v3872_v46 = vld [vmem:[#allocation9 + $0xe8] sm:$0xff] }
 0x474   :  { %3108 = vmatprep.subr.bf16.mxu1 %v1652_v36  ;;  %v3996_v36 = vunpack.c.l.s8.bf16 %v3856_v13  ;;  %v3871_v13 = vld [vmem:[#allocation9 + $0xe0] sm:$0xff] }
 0x476   :  { %2765 = vmatpush1.bf16.msra.mxu0 %v1649_v48  ;;  %v3857_v48 = vld [vmem:[#allocation9 + $0x70] sm:$0xff] }
 0x477   :  { %3109 = vmatpush1.bf16.msra.mxu1 %v1651_v8  ;;  %2766 = vmatprep.subr.bf16.mxu0 %v1658_v22  ;;  %v3995_v8 = vunpack.c.l.s8.bf16 %v3855_v4  ;;  %v3997_v22 = vunpack.c.l.s8.bf16 %v3857_v48 }
 0x478   :  { %3110 = vmatprep.subr.bf16.mxu1 %v1660_v40  ;;  %v4002_v40 = vunpack.c.h.s8.bf16 %v3858_v55 }
 0x47a   :  { %2767 = vmatpush1.bf16.msra.mxu0 %v1657_v28  ;;  %v3862_v28 = vld [vmem:[#allocation9 + $0x98] sm:$0xff] }
 0x47b   :  { %3111 = vmatpush1.bf16.msra.mxu1 %v1659_v26  ;;  %2768 = vmatprep.subr.bf16.mxu0 %v1666_v56  ;;  %v3999_v26 = vunpack.c.h.s8.bf16 %v3855_v4  ;;  %v4001_v56 = vunpack.c.h.s8.bf16 %v3857_v48  ;;  %v4006_v33 = vunpack.c.l.s8.bf16 %v3862_v28  ;;  %v4032_v4 = vunpack.c.h.s8.bf16 %v3872_v46  ;;  %v3876_v48 = vld [vmem:[#allocation9 + $0x108] sm:$0xff] }
 0x47c   :  { %3112 = vmatprep.subr.bf16.mxu1 %v1668_v27  ;;  %v4004_v27 = vunpack.c.l.s8.bf16 %v3860_v14  ;;  %v3875_v14 = vld [vmem:[#allocation9 + $0x100] sm:$0xff] }
 0x47e   :  { %2769 = vmatpush1.bf16.msra.mxu0 %v1665_v58  ;;  %v3861_v58 = vld [vmem:[#allocation9 + $0x90] sm:$0xff] }
 0x47f   :  { %3113 = vmatpush1.bf16.msra.mxu1 %v1667_v59  ;;  %4227 = vmatprep.subr.bf16.mxu0 %v3972_v10  ;;  %v4003_v59 = vunpack.c.l.s8.bf16 %v3859_v57  ;;  %v4005_v10 = vunpack.c.l.s8.bf16 %v3861_v58 }
 0x480   :  { %4399 = vmatprep.subr.bf16.mxu1 %v3974_v52  ;;  %v4010_v52 = vunpack.c.h.s8.bf16 %v3862_v28 }
 0x481   :  { %2771 = vmatmul.mubr.bf16.vlgmr.msra.gmra.mrb[4].mxu0 %v6012_v42 }
 0x482   :  { %3115 = vmatmul.mubr.bf16.vlgmr.msra.gmra.mrb[4].mxu1 %v6012_v42  ;;  %4228 = vmatpush1.bf16.msra.mxu0 %v3971_v61  ;;  %v3984_v42 = vunpack.c.h.s8.bf16 %v3848_v5  ;;  %v3866_v61 = vld [vmem:[#allocation9 + $0xb8] sm:$0xff]  ;;  %v4012_v5 = vunpack.c.l.s8.bf16 %v3864_v3  ;;  %v3879_v3 = vld [vmem:[#allocation9 + $0x120] sm:$0xff] }
 0x483   :  { %4259 = vmatprep.mubr.bf16.mxu0 %v6186_v38  ;;  %4400 = vmatpush1.bf16.msra.mxu1 %v3973_v53  ;;  %v4007_v53 = vunpack.c.h.s8.bf16 %v3859_v57  ;;  %v4014_v62 = vunpack.c.l.s8.bf16 %v3866_v61  ;;  %v4040_v57 = vunpack.c.h.s8.bf16 %v3876_v48 }
 0x484   :  { %4431 = vmatprep.mubr.bf16.mxu1 %v6186_v38  ;;  %4229 = vmatprep.subr.bf16.mxu0 %v3976_v63  ;;  %v3988_v38 = vunpack.c.l.s8.bf16 %v3852_v50  ;;  %v4009_v63 = vunpack.c.h.s8.bf16 %v3861_v58  ;;  %v3867_v50 = vld [vmem:[#allocation9 + $0xc0] sm:$0xff] }
 0x485   :  { %4401 = vmatprep.subr.bf16.mxu1 %v3978_v11  ;;  %v3863_v11 = vld [vmem:[#allocation9 + $0xa0] sm:$0xff] }
 0x486   :  { %4230 = vmatpush1.bf16.msra.mxu0 %v3975_v60  ;;  %v3865_v60 = vld [vmem:[#allocation9 + $0xb0] sm:$0xff] }
 0x487   :  { %4402 = vmatpush1.bf16.msra.mxu1 %v3977_v15  ;;  %4231 = vmatprep.subr.bf16.mxu0 %v3980_v16  ;;  %v4011_v15 = vunpack.c.l.s8.bf16 %v3863_v11  ;;  %v4013_v16 = vunpack.c.l.s8.bf16 %v3865_v60 }
 0x488   :  { %4403 = vmatprep.subr.bf16.mxu1 %v3982_v34  ;;  %v4018_v34 = vunpack.c.h.s8.bf16 %v3866_v61 }
 0x48a   :  { %4232 = vmatpush1.bf16.msra.mxu0 %v3979_v7  ;;  %v3870_v7 = vld [vmem:[#allocation9 + $0xd8] sm:$0xff] }
 0x48b   :  { %4404 = vmatpush1.bf16.msra.mxu1 %v3981_v18  ;;  %4233 = vmatprep.subr.bf16.mxu0 %v3984_v42  ;;  %v4015_v18 = vunpack.c.h.s8.bf16 %v3863_v11  ;;  %v4017_v42 = vunpack.c.h.s8.bf16 %v3865_v60  ;;  %v4022_v43 = vunpack.c.l.s8.bf16 %v3870_v7  ;;  %v3886_v60 = vld [vmem:[#allocation9 + $0x158] sm:$0xff] }
 0x48c   :  { %4405 = vmatprep.subr.bf16.mxu1 %v3986_v24  ;;  %v4020_v24 = vunpack.c.l.s8.bf16 %v3868_v12  ;;  %v3885_v12 = vld [vmem:[#allocation9 + $0x150] sm:$0xff] }
 0x48e   :  { %4234 = vmatpush1.bf16.msra.mxu0 %v3983_v23  ;;  %v3869_v23 = vld [vmem:[#allocation9 + $0xd0] sm:$0xff] }
 0x48f   :  { %4406 = vmatpush1.bf16.msra.mxu1 %v3985_v1  ;;  %4235 = vmatprep.subr.bf16.mxu0 %v3988_v38  ;;  %v4019_v1 = vunpack.c.l.s8.bf16 %v3867_v50  ;;  %v4021_v38 = vunpack.c.l.s8.bf16 %v3869_v23 }
 0x490   :  { %4407 = vmatprep.subr.bf16.mxu1 %v3990_v25  ;;  %v4026_v25 = vunpack.c.h.s8.bf16 %v3870_v7 }
 0x492   :  { %4236 = vmatpush1.bf16.msra.mxu0 %v3987_v39  ;;  %v3874_v39 = vld [vmem:[#allocation9 + $0xf8] sm:$0xff] }
 0x493   :  { %4408 = vmatpush1.bf16.msra.mxu1 %v3989_v21  ;;  %4237 = vmatprep.subr.bf16.mxu0 %v3992_v32  ;;  %v4023_v21 = vunpack.c.h.s8.bf16 %v3867_v50  ;;  %v4025_v32 = vunpack.c.h.s8.bf16 %v3869_v23  ;;  %v4030_v55 = vunpack.c.l.s8.bf16 %v3874_v39  ;;  %v3888_v50 = vld [vmem:[#allocation9 + $0x168] sm:$0xff] }
 0x494   :  { %4409 = vmatprep.subr.bf16.mxu1 %v3994_v44  ;;  %v4028_v44 = vunpack.c.l.s8.bf16 %v3872_v46  ;;  %v3889_v46 = vld [vmem:[#allocation9 + $0x170] sm:$0xff] }
 0x496   :  { %4238 = vmatpush1.bf16.msra.mxu0 %v3991_v37  ;;  %v3873_v37 = vld [vmem:[#allocation9 + $0xf0] sm:$0xff] }
 0x497   :  { %4410 = vmatpush1.bf16.msra.mxu1 %v3993_v41  ;;  %4239 = vmatprep.subr.bf16.mxu0 %v3996_v36  ;;  %v4027_v41 = vunpack.c.l.s8.bf16 %v3871_v13  ;;  %v4029_v36 = vunpack.c.l.s8.bf16 %v3873_v37 }
 0x498   :  { %4411 = vmatprep.subr.bf16.mxu1 %v3998_v51  ;;  %v4034_v51 = vunpack.c.h.s8.bf16 %v3874_v39 }
 0x49a   :  { %4240 = vmatpush1.bf16.msra.mxu0 %v3995_v8  ;;  %v3878_v8 = vld [vmem:[#allocation9 + $0x118] sm:$0xff] }
 0x49b   :  { %4412 = vmatpush1.bf16.msra.mxu1 %v3997_v22  ;;  %4241 = vmatprep.subr.bf16.mxu0 %v4000_v9  ;;  %v4031_v22 = vunpack.c.h.s8.bf16 %v3871_v13  ;;  %v4033_v9 = vunpack.c.h.s8.bf16 %v3873_v37  ;;  %v4038_v28 = vunpack.c.l.s8.bf16 %v3878_v8  ;;  %v4042_v58 = vunpack.c.h.s8.bf16 %v3878_v8  ;;  %v3892_v13 = vld [vmem:[#allocation9 + $0x188] sm:$0xff] }
 0x49c   :  { %4413 = vmatprep.subr.bf16.mxu1 %v4002_v40  ;;  %v4036_v40 = vunpack.c.l.s8.bf16 %v3876_v48  ;;  %v3893_v48 = vld [vmem:[#allocation9 + $0x190] sm:$0xff] }
 0x49e   :  { %4242 = vmatpush1.bf16.msra.mxu0 %v3999_v26  ;;  %v3877_v26 = vld [vmem:[#allocation9 + $0x110] sm:$0xff] }
 0x49f   :  { %4414 = vmatpush1.bf16.msra.mxu1 %v4001_v56  ;;  %4243 = vmatprep.subr.bf16.mxu0 %v4004_v27  ;;  %v4035_v56 = vunpack.c.l.s8.bf16 %v3875_v14  ;;  %v4037_v27 = vunpack.c.l.s8.bf16 %v3877_v26 }
 0x4a0   :  { %4415 = vmatprep.subr.bf16.mxu1 %v4006_v33  ;;  %v3880_v33 = vld [vmem:[#allocation9 + $0x128] sm:$0xff] }
 0x4a2   :  { %4244 = vmatpush1.bf16.msra.mxu0 %v4003_v59  ;;  %v3882_v59 = vld [vmem:[#allocation9 + $0x138] sm:$0xff] }
 0x4a3   :  { %4416 = vmatpush1.bf16.msra.mxu1 %v4005_v10  ;;  %4245 = vmatprep.subr.bf16.mxu0 %v4008_v2  ;;  %v4039_v10 = vunpack.c.h.s8.bf16 %v3875_v14  ;;  %v4041_v2 = vunpack.c.h.s8.bf16 %v3877_v26  ;;  %v4046_v61 = vunpack.c.l.s8.bf16 %v3882_v59  ;;  %v4050_v11 = vunpack.c.h.s8.bf16 %v3882_v59  ;;  %v3896_v14 = vld [vmem:[#allocation9 + $0x1a8] sm:$0xff] }
 0x4a4   :  { %4417 = vmatprep.subr.bf16.mxu1 %v4010_v52  ;;  %v4044_v52 = vunpack.c.l.s8.bf16 %v3880_v33 }
 0x4a6   :  { %4246 = vmatpush1.bf16.msra.mxu0 %v4007_v53  ;;  %v3881_v53 = vld [vmem:[#allocation9 + $0x130] sm:$0xff] }
 0x4a7   :  { %4418 = vmatpush1.bf16.msra.mxu1 %v4009_v63  ;;  %4247 = vmatprep.subr.bf16.mxu0 %v4012_v5  ;;  %v4043_v63 = vunpack.c.l.s8.bf16 %v3879_v3  ;;  %v4045_v5 = vunpack.c.l.s8.bf16 %v3881_v53 }
 0x4a8   :  { %4419 = vmatprep.subr.bf16.mxu1 %v4014_v62  ;;  %v3884_v62 = vld [vmem:[#allocation9 + $0x148] sm:$0xff] }
 0x4aa   :  { %4248 = vmatpush1.bf16.msra.mxu0 %v4011_v15  ;;  %v4047_v15 = vunpack.c.h.s8.bf16 %v3879_v3  ;;  %v3900_v3 = vld [vmem:[#allocation9 + $0x1c8] sm:$0xff] }
 0x4ab   :  { %4420 = vmatpush1.bf16.msra.mxu1 %v4013_v16  ;;  %4249 = vmatprep.subr.bf16.mxu0 %v4016_v17  ;;  %v4049_v16 = vunpack.c.h.s8.bf16 %v3881_v53  ;;  %v3883_v17 = vld [vmem:[#allocation9 + $0x140] sm:$0xff] }
 0x4ac   :  { %4421 = vmatprep.subr.bf16.mxu1 %v4018_v34  ;;  %v4054_v34 = vunpack.c.l.s8.bf16 %v3886_v60  ;;  %v4051_v7 = vunpack.c.l.s8.bf16 %v3883_v17  ;;  %v4055_v23 = vunpack.c.h.s8.bf16 %v3883_v17  ;;  %v3904_v17 = vld [vmem:[#allocation9 + $0x1e8] sm:$0xff] }
 0x4ae   :  { %4250 = vmatpush1.bf16.msra.mxu0 %v4015_v18  ;;  %v4053_v18 = vunpack.c.l.s8.bf16 %v3885_v12 }
 0x4af   :  { %4422 = vmatpush1.bf16.msra.mxu1 %v4017_v42  ;;  %4251 = vmatprep.subr.bf16.mxu0 %v4020_v24  ;;  %v4056_v42 = vunpack.c.h.s8.bf16 %v3884_v62  ;;  %v4058_v24 = vunpack.c.h.s8.bf16 %v3886_v60 }
 0x4b0   :  { %4423 = vmatprep.subr.bf16.mxu1 %v4022_v43  ;;  %v3890_v43 = vld [vmem:[#allocation9 + $0x178] sm:$0xff] }
 0x4b2   :  { %4252 = vmatpush1.bf16.msra.mxu0 %v4019_v1  ;;  %v4057_v1 = vunpack.c.h.s8.bf16 %v3885_v12 }
 0x4b3   :  { %4424 = vmatpush1.bf16.msra.mxu1 %v4021_v38  ;;  %4253 = vmatprep.subr.bf16.mxu0 %v4024_v20  ;;  %v4060_v38 = vunpack.c.l.s8.bf16 %v3888_v50  ;;  %v3887_v20 = vld [vmem:[#allocation9 + $0x160] sm:$0xff] }
 0x4b4   :  { %4425 = vmatprep.subr.bf16.mxu1 %v4026_v25  ;;  %v4062_v25 = vunpack.c.l.s8.bf16 %v3890_v43  ;;  %v4059_v39 = vunpack.c.l.s8.bf16 %v3887_v20  ;;  %v4063_v37 = vunpack.c.h.s8.bf16 %v3887_v20  ;;  %v3908_v20 = vld [vmem:[#allocation9 + $0x208] sm:$0xff] }
 0x4b6   :  { %4254 = vmatpush1.bf16.msra.mxu0 %v4023_v21  ;;  %v4061_v21 = vunpack.c.l.s8.bf16 %v3889_v46 }
 0x4b7   :  { %4426 = vmatpush1.bf16.msra.mxu1 %v4025_v32  ;;  %4255 = vmatprep.subr.bf16.mxu0 %v4028_v44  ;;  %v4064_v32 = vunpack.c.h.s8.bf16 %v3888_v50  ;;  %v4066_v44 = vunpack.c.h.s8.bf16 %v3890_v43  ;;  %v3905_v50 = vld [vmem:[#allocation9 + $0x1f0] sm:$0xff] }
 0x4b8   :  { %4427 = vmatprep.subr.bf16.mxu1 %v4030_v55  ;;  %v3894_v55 = vld [vmem:[#allocation9 + $0x198] sm:$0xff] }
 0x4ba   :  { %4256 = vmatpush1.bf16.msra.mxu0 %v4027_v41  ;;  %v4065_v41 = vunpack.c.h.s8.bf16 %v3889_v46 }
 0x4bb   :  { %4428 = vmatpush1.bf16.msra.mxu1 %v4029_v36  ;;  %4257 = vmatprep.subr.bf16.mxu0 %v4032_v4  ;;  %v4068_v36 = vunpack.c.l.s8.bf16 %v3892_v13  ;;  %v3891_v4 = vld [vmem:[#allocation9 + $0x180] sm:$0xff] }
 0x4bc   :  { %4429 = vmatprep.subr.bf16.mxu1 %v4034_v51  ;;  %v4070_v51 = vunpack.c.l.s8.bf16 %v3894_v55  ;;  %v4067_v8 = vunpack.c.l.s8.bf16 %v3891_v4  ;;  %v4071_v26 = vunpack.c.h.s8.bf16 %v3891_v4  ;;  %v3912_v4 = vld [vmem:[#allocation9 + $0x228] sm:$0xff] }
 0x4be   :  { %4258 = vmatpush1.bf16.msra.mxu0 %v4031_v22  ;;  %v4069_v22 = vunpack.c.l.s8.bf16 %v3893_v48 }
 0x4bf   :  { %4430 = vmatpush1.bf16.msra.mxu1 %v4033_v9  ;;  %4270 = vmatprep.subr.bf16.mxu0 %v4036_v40  ;;  %v4072_v9 = vunpack.c.h.s8.bf16 %v3892_v13  ;;  %v4074_v40 = vunpack.c.h.s8.bf16 %v3894_v55  ;;  %v3909_v13 = vld [vmem:[#allocation9 + $0x210] sm:$0xff] }
 0x4c0   :  { %4442 = vmatprep.subr.bf16.mxu1 %v4038_v28  ;;  %v3898_v28 = vld [vmem:[#allocation9 + $0x1b8] sm:$0xff] }
 0x4c1   :  { %4260 = vmatmul.mubr.bf16.vlgmr.msra.gmra.mrb[8].mxu0 %v6188_v19 }
 0x4c2   :  { %4432 = vmatmul.mubr.bf16.vlgmr.msra.gmra.mrb[8].mxu1 %v6188_v19  ;;  %4271 = vmatpush1.bf16.msra.mxu0 %v4035_v56  ;;  %v4048_v19 = vunpack.c.h.s8.bf16 %v3880_v33  ;;  %v4073_v56 = vunpack.c.h.s8.bf16 %v3893_v48  ;;  %v4078_v33 = vunpack.c.l.s8.bf16 %v3898_v28 }
 0x4c3   :  { %4302 = vmatprep.mubr.bf16.mxu0 %v6195_v0  ;;  %4443 = vmatpush1.bf16.msra.mxu1 %v4037_v27  ;;  %v4076_v27 = vunpack.c.l.s8.bf16 %v3896_v14 }
 0x4c4   :  { %4474 = vmatprep.mubr.bf16.mxu1 %v6195_v0  ;;  %4272 = vmatprep.subr.bf16.mxu0 %v4040_v57  ;;  %v4052_v0 = vunpack.c.l.s8.bf16 %v3884_v62  ;;  %v3895_v57 = vld [vmem:[#allocation9 + $0x1a0] sm:$0xff]  ;;  %v3901_v62 = vld [vmem:[#allocation9 + $0x1d0] sm:$0xff] }
 0x4c5   :  { %4444 = vmatprep.subr.bf16.mxu1 %v4042_v58  ;;  %v3897_v58 = vld [vmem:[#allocation9 + $0x1b0] sm:$0xff]  ;;  %v4075_v59 = vunpack.c.l.s8.bf16 %v3895_v57  ;;  %v4079_v53 = vunpack.c.h.s8.bf16 %v3895_v57  ;;  %v3916_v57 = vld [vmem:[#allocation9 + $0x248] sm:$0xff] }
 0x4c6   :  { %4273 = vmatpush1.bf16.msra.mxu0 %v4039_v10  ;;  %v4077_v10 = vunpack.c.l.s8.bf16 %v3897_v58 }
 0x4c7   :  { %4445 = vmatpush1.bf16.msra.mxu1 %v4041_v2  ;;  %4274 = vmatprep.subr.bf16.mxu0 %v4044_v52  ;;  %v4080_v2 = vunpack.c.h.s8.bf16 %v3896_v14  ;;  %v4082_v52 = vunpack.c.h.s8.bf16 %v3898_v28  ;;  %v3913_v14 = vld [vmem:[#allocation9 + $0x230] sm:$0xff] }
 0x4c8   :  { %4446 = vmatprep.subr.bf16.mxu1 %v4046_v61  ;;  %v3902_v61 = vld [vmem:[#allocation9 + $0x1d8] sm:$0xff] }
 0x4ca   :  { %4275 = vmatpush1.bf16.msra.mxu0 %v4043_v63  ;;  %v4081_v63 = vunpack.c.h.s8.bf16 %v3897_v58  ;;  %v4113_v58 = vunpack.c.h.s8.bf16 %v3913_v14 }
 0x4cb   :  { %4447 = vmatpush1.bf16.msra.mxu1 %v4045_v5  ;;  %4276 = vmatprep.subr.bf16.mxu0 %v4048_v19  ;;  %v4084_v5 = vunpack.c.l.s8.bf16 %v3900_v3  ;;  %v3899_v19 = vld [vmem:[#allocation9 + $0x1c0] sm:$0xff] }
 0x4cc   :  { %4448 = vmatprep.subr.bf16.mxu1 %v4050_v11  ;;  %v4086_v11 = vunpack.c.l.s8.bf16 %v3902_v61  ;;  %v4083_v60 = vunpack.c.l.s8.bf16 %v3899_v19  ;;  %v4087_v12 = vunpack.c.h.s8.bf16 %v3899_v19  ;;  %v3922_v19 = vld [vmem:[#allocation9 + $0x278] sm:$0xff] }
 0x4ce   :  { %4277 = vmatpush1.bf16.msra.mxu0 %v4047_v15  ;;  %v4085_v15 = vunpack.c.l.s8.bf16 %v3901_v62 }
 0x4cf   :  { %4449 = vmatpush1.bf16.msra.mxu1 %v4049_v16  ;;  %4278 = vmatprep.subr.bf16.mxu0 %v4052_v0  ;;  %v4088_v16 = vunpack.c.h.s8.bf16 %v3900_v3  ;;  %v4090_v0 = vunpack.c.h.s8.bf16 %v3902_v61 }
 0x4d0   :  { %4450 = vmatprep.subr.bf16.mxu1 %v4054_v34  ;;  %v3906_v34 = vld [vmem:[#allocation9 + $0x1f8] sm:$0xff] }
 0x4d2   :  { %4279 = vmatpush1.bf16.msra.mxu0 %v4051_v7  ;;  %v4089_v7 = vunpack.c.h.s8.bf16 %v3901_v62 }
 0x4d3   :  { %4451 = vmatpush1.bf16.msra.mxu1 %v4053_v18  ;;  %4280 = vmatprep.subr.bf16.mxu0 %v4056_v42  ;;  %v4092_v18 = vunpack.c.l.s8.bf16 %v3904_v17  ;;  %v3903_v42 = vld [vmem:[#allocation9 + $0x1e0] sm:$0xff] }
 0x4d4   :  { %4452 = vmatprep.subr.bf16.mxu1 %v4058_v24  ;;  %v4094_v24 = vunpack.c.l.s8.bf16 %v3906_v34  ;;  %v4091_v43 = vunpack.c.l.s8.bf16 %v3903_v42  ;;  %v4095_v46 = vunpack.c.h.s8.bf16 %v3903_v42  ;;  %v3926_v42 = vld [vmem:[#allocation9 + $0x298] sm:$0xff] }
 0x4d6   :  { %4281 = vmatpush1.bf16.msra.mxu0 %v4055_v23  ;;  %v4093_v23 = vunpack.c.l.s8.bf16 %v3905_v50 }
 0x4d7   :  { %4453 = vmatpush1.bf16.msra.mxu1 %v4057_v1  ;;  %4282 = vmatprep.subr.bf16.mxu0 %v4060_v38  ;;  %v4096_v1 = vunpack.c.h.s8.bf16 %v3904_v17  ;;  %v4098_v38 = vunpack.c.h.s8.bf16 %v3906_v34 }
 0x4d8   :  { %4454 = vmatprep.subr.bf16.mxu1 %v4062_v25  ;;  %v3910_v25 = vld [vmem:[#allocation9 + $0x218] sm:$0xff] }
 0x4da   :  { %4283 = vmatpush1.bf16.msra.mxu0 %v4059_v39  ;;  %v4097_v39 = vunpack.c.h.s8.bf16 %v3905_v50 }
 0x4db   :  { %4455 = vmatpush1.bf16.msra.mxu1 %v4061_v21  ;;  %4284 = vmatprep.subr.bf16.mxu0 %v4064_v32  ;;  %v4100_v21 = vunpack.c.l.s8.bf16 %v3908_v20  ;;  %v3907_v32 = vld [vmem:[#allocation9 + $0x200] sm:$0xff] }
 0x4dc   :  { %4456 = vmatprep.subr.bf16.mxu1 %v4066_v44  ;;  %v4102_v44 = vunpack.c.l.s8.bf16 %v3910_v25  ;;  %v4099_v55 = vunpack.c.l.s8.bf16 %v3907_v32  ;;  %v4103_v48 = vunpack.c.h.s8.bf16 %v3907_v32  ;;  %v3930_v32 = vld [vmem:[#allocation9 + $0x2b8] sm:$0xff] }
 0x4de   :  { %4285 = vmatpush1.bf16.msra.mxu0 %v4063_v37  ;;  %v4101_v37 = vunpack.c.l.s8.bf16 %v3909_v13 }
 0x4df   :  { %4457 = vmatpush1.bf16.msra.mxu1 %v4065_v41  ;;  %4286 = vmatprep.subr.bf16.mxu0 %v4068_v36  ;;  %v4104_v41 = vunpack.c.h.s8.bf16 %v3908_v20  ;;  %v4106_v36 = vunpack.c.h.s8.bf16 %v3910_v25 }
 0x4e0   :  { %4458 = vmatprep.subr.bf16.mxu1 %v4070_v51  ;;  %v3914_v51 = vld [vmem:[#allocation9 + $0x238] sm:$0xff] }
 0x4e2   :  { %4287 = vmatpush1.bf16.msra.mxu0 %v4067_v8  ;;  %v4105_v8 = vunpack.c.h.s8.bf16 %v3909_v13 }
 0x4e3   :  { %4459 = vmatpush1.bf16.msra.mxu1 %v4069_v22  ;;  %4288 = vmatprep.subr.bf16.mxu0 %v4072_v9  ;;  %v4108_v22 = vunpack.c.l.s8.bf16 %v3912_v4  ;;  %v3911_v9 = vld [vmem:[#allocation9 + $0x220] sm:$0xff] }
 0x4e4   :  { %4460 = vmatprep.subr.bf16.mxu1 %v4074_v40  ;;  %v4110_v40 = vunpack.c.l.s8.bf16 %v3914_v51  ;;  %v4107_v28 = vunpack.c.l.s8.bf16 %v3911_v9 }
 0x4e6   :  { %4289 = vmatpush1.bf16.msra.mxu0 %v4071_v26  ;;  %v4109_v26 = vunpack.c.l.s8.bf16 %v3913_v14 }
 0x4e7   :  { %4461 = vmatpush1.bf16.msra.mxu1 %v4073_v56  ;;  %4290 = vmatprep.subr.bf16.mxu0 %v4076_v27  ;;  %v4112_v56 = vunpack.c.h.s8.bf16 %v3912_v4  ;;  %v4114_v27 = vunpack.c.h.s8.bf16 %v3914_v51 }
 0x4e8   :  { %4462 = vmatprep.subr.bf16.mxu1 %v4078_v33  ;;  %v4111_v33 = vunpack.c.h.s8.bf16 %v3911_v9  ;;  %v3934_v9 = vld [vmem:[#allocation9 + $0x2d8] sm:$0xff] }
 0x4ea   :  { %4291 = vmatpush1.bf16.msra.mxu0 %v4075_v59  ;;  %v4116_v59 = vunpack.c.l.s8.bf16 %v3916_v57 }
 0x4eb   :  { %4463 = vmatpush1.bf16.msra.mxu1 %v4077_v10  ;;  %4292 = vmatprep.subr.bf16.mxu0 %v4080_v2  ;;  %v3915_v10 = vld [vmem:[#allocation9 + $0x240] sm:$0xff] }
 0x4ec   :  { %4464 = vmatprep.subr.bf16.mxu1 %v4082_v52  ;;  %v3917_v52 = vld [vmem:[#allocation9 + $0x250] sm:$0xff]  ;;  %v4115_v3 = vunpack.c.l.s8.bf16 %v3915_v10 }
 0x4ed   :  { %v4117_v61 = vunpack.c.l.s8.bf16 %v3917_v52  ;;  %v4121_v62 = vunpack.c.h.s8.bf16 %v3917_v52 }
 0x4ee   :  { %4293 = vmatpush1.bf16.msra.mxu0 %v4079_v53  ;;  %v4120_v53 = vunpack.c.h.s8.bf16 %v3916_v57 }
 0x4ef   :  { %4465 = vmatpush1.bf16.msra.mxu1 %v4081_v63  ;;  %4294 = vmatprep.subr.bf16.mxu0 %v4084_v5  ;;  %v3920_v5 = vld [vmem:[#allocation9 + $0x268] sm:$0xff] }
 0x4f0   :  { %4466 = vmatprep.subr.bf16.mxu1 %v4086_v11  ;;  %v4119_v11 = vunpack.c.h.s8.bf16 %v3915_v10  ;;  %v3938_v10 = vld [vmem:[#allocation9 + $0x2f8] sm:$0xff] }
 0x4f2   :  { %4295 = vmatpush1.bf16.msra.mxu0 %v4083_v60  ;;  %v4124_v60 = vunpack.c.l.s8.bf16 %v3920_v5 }
 0x4f3   :  { %4467 = vmatpush1.bf16.msra.mxu1 %v4085_v15  ;;  %4296 = vmatprep.subr.bf16.mxu0 %v4088_v16  ;;  %v3919_v15 = vld [vmem:[#allocation9 + $0x260] sm:$0xff]  ;;  %v4126_v16 = vunpack.c.l.s8.bf16 %v3922_v19 }
 0x4f4   :  { %4468 = vmatprep.subr.bf16.mxu1 %v4090_v0  ;;  %v3921_v0 = vld [vmem:[#allocation9 + $0x270] sm:$0xff]  ;;  %v4123_v17 = vunpack.c.l.s8.bf16 %v3919_v15 }
 0x4f5   :  { %v4125_v34 = vunpack.c.l.s8.bf16 %v3921_v0  ;;  %v4129_v50 = vunpack.c.h.s8.bf16 %v3921_v0 }
 0x4f6   :  { %4297 = vmatpush1.bf16.msra.mxu0 %v4087_v12  ;;  %v4128_v12 = vunpack.c.h.s8.bf16 %v3920_v5 }
 0x4f7   :  { %4469 = vmatpush1.bf16.msra.mxu1 %v4089_v7  ;;  %4298 = vmatprep.subr.bf16.mxu0 %v4092_v18  ;;  %v4130_v7 = vunpack.c.h.s8.bf16 %v3922_v19  ;;  %v3924_v18 = vld [vmem:[#allocation9 + $0x288] sm:$0xff] }
 0x4f8   :  { %4470 = vmatprep.subr.bf16.mxu1 %v4094_v24  ;;  %v4127_v24 = vunpack.c.h.s8.bf16 %v3919_v15  ;;  %v6223_v15 = vld [vmem:[#allocation9 + $0x318] sm:$0xff] }
 0x4fa   :  { %4299 = vmatpush1.bf16.msra.mxu0 %v4091_v43  ;;  %v4132_v43 = vunpack.c.l.s8.bf16 %v3924_v18 }
 0x4fb   :  { %4471 = vmatpush1.bf16.msra.mxu1 %v4093_v23  ;;  %4300 = vmatprep.subr.bf16.mxu0 %v4096_v1  ;;  %v3923_v23 = vld [vmem:[#allocation9 + $0x280] sm:$0xff]  ;;  %v4134_v1 = vunpack.c.l.s8.bf16 %v3926_v42 }
 0x4fc   :  { %4472 = vmatprep.subr.bf16.mxu1 %v4098_v38  ;;  %v3925_v38 = vld [vmem:[#allocation9 + $0x290] sm:$0xff]  ;;  %v4131_v20 = vunpack.c.l.s8.bf16 %v3923_v23 }
 0x4fd   :  { %v4133_v25 = vunpack.c.l.s8.bf16 %v3925_v38  ;;  %v4137_v13 = vunpack.c.h.s8.bf16 %v3925_v38 }
 0x4fe   :  { %4301 = vmatpush1.bf16.msra.mxu0 %v4095_v46  ;;  %v4136_v46 = vunpack.c.h.s8.bf16 %v3924_v18 }
 0x4ff   :  { %4473 = vmatpush1.bf16.msra.mxu1 %v4097_v39  ;;  %4313 = vmatprep.subr.bf16.mxu0 %v4100_v21  ;;  %v4138_v39 = vunpack.c.h.s8.bf16 %v3926_v42  ;;  %v3928_v21 = vld [vmem:[#allocation9 + $0x2a8] sm:$0xff] }
 0x500   :  { %4485 = vmatprep.subr.bf16.mxu1 %v4102_v44  ;;  %v4135_v44 = vunpack.c.h.s8.bf16 %v3923_v23 }
 0x501   :  { %4303 = vmatmul.mubr.bf16.vlgmr.msra.gmra.mrb[8].mxu0 %v6197_v6 }
 0x502   :  { %4475 = vmatmul.mubr.bf16.vlgmr.msra.gmra.mrb[8].mxu1 %v6197_v6  ;;  %4314 = vmatpush1.bf16.msra.mxu0 %v4099_v55  ;;  %v3918_v6 = vld [vmem:[#allocation9 + $0x258] sm:$0xff]  ;;  %v4140_v55 = vunpack.c.l.s8.bf16 %v3928_v21 }
 0x503   :  { %4486 = vmatpush1.bf16.msra.mxu1 %v4101_v37  ;;  %4315 = vmatprep.subr.bf16.mxu0 %v4104_v41  ;;  %v4118_v2 = vunpack.c.l.s8.bf16 %v3918_v6  ;;  %v4122_v63 = vunpack.c.h.s8.bf16 %v3918_v6  ;;  %v3927_v37 = vld [vmem:[#allocation9 + $0x2a0] sm:$0xff]  ;;  %v4142_v41 = vunpack.c.l.s8.bf16 %v3930_v32 }
 0x504   :  { %4487 = vmatprep.subr.bf16.mxu1 %v4106_v36  ;;  %v3929_v36 = vld [vmem:[#allocation9 + $0x2b0] sm:$0xff]  ;;  %v4139_v4 = vunpack.c.l.s8.bf16 %v3927_v37 }
 0x505   :  { %v4141_v51 = vunpack.c.l.s8.bf16 %v3929_v36  ;;  %v4145_v14 = vunpack.c.h.s8.bf16 %v3929_v36 }
 0x506   :  { %4316 = vmatpush1.bf16.msra.mxu0 %v4103_v48  ;;  %v4144_v48 = vunpack.c.h.s8.bf16 %v3928_v21 }
 0x507   :  { %4488 = vmatpush1.bf16.msra.mxu1 %v4105_v8  ;;  %4317 = vmatprep.subr.bf16.mxu0 %v4108_v22  ;;  %v4146_v8 = vunpack.c.h.s8.bf16 %v3930_v32  ;;  %v3932_v22 = vld [vmem:[#allocation9 + $0x2c8] sm:$0xff] }
 0x508   :  { %4489 = vmatprep.subr.bf16.mxu1 %v4110_v40  ;;  %v4143_v40 = vunpack.c.h.s8.bf16 %v3927_v37 }
 0x50a   :  { %4318 = vmatpush1.bf16.msra.mxu0 %v4107_v28  ;;  %v4148_v28 = vunpack.c.l.s8.bf16 %v3932_v22 }
 0x50b   :  { %4490 = vmatpush1.bf16.msra.mxu1 %v4109_v26  ;;  %4319 = vmatprep.subr.bf16.mxu0 %v4112_v56  ;;  %v3931_v26 = vld [vmem:[#allocation9 + $0x2c0] sm:$0xff]  ;;  %v4150_v56 = vunpack.c.l.s8.bf16 %v3934_v9 }
 0x50c   :  { %4491 = vmatprep.subr.bf16.mxu1 %v4114_v27  ;;  %v3933_v27 = vld [vmem:[#allocation9 + $0x2d0] sm:$0xff]  ;;  %v4147_v57 = vunpack.c.l.s8.bf16 %v3931_v26 }
 0x50d   :  { %v4149_v6 = vunpack.c.l.s8.bf16 %v3933_v27  ;;  %v4153_v52 = vunpack.c.h.s8.bf16 %v3933_v27 }
 0x50e   :  { %4320 = vmatpush1.bf16.msra.mxu0 %v4111_v33  ;;  %v4152_v33 = vunpack.c.h.s8.bf16 %v3932_v22 }
 0x50f   :  { %4492 = vmatpush1.bf16.msra.mxu1 %v4113_v58  ;;  %4321 = vmatprep.subr.bf16.mxu0 %v4116_v59  ;;  %v4154_v58 = vunpack.c.h.s8.bf16 %v3934_v9  ;;  %v3936_v59 = vld [vmem:[#allocation9 + $0x2e8] sm:$0xff] }
 0x510   :  { %4493 = vmatprep.subr.bf16.mxu1 %v4118_v2  ;;  %v4151_v2 = vunpack.c.h.s8.bf16 %v3931_v26 }
 0x512   :  { %4322 = vmatpush1.bf16.msra.mxu0 %v4115_v3  ;;  %v4156_v3 = vunpack.c.l.s8.bf16 %v3936_v59 }
 0x513   :  { %4494 = vmatpush1.bf16.msra.mxu1 %v4117_v61  ;;  %4323 = vmatprep.subr.bf16.mxu0 %v4120_v53  ;;  %v3935_v61 = vld [vmem:[#allocation9 + $0x2e0] sm:$0xff]  ;;  %v4158_v53 = vunpack.c.l.s8.bf16 %v3938_v10 }
 0x514   :  { %4495 = vmatprep.subr.bf16.mxu1 %v4122_v63  ;;  %v3937_v63 = vld [vmem:[#allocation9 + $0x2f0] sm:$0xff]  ;;  %v4155_v5 = vunpack.c.l.s8.bf16 %v3935_v61 }
 0x515   :  { %v4157_v19 = vunpack.c.l.s8.bf16 %v3937_v63  ;;  %v4161_v0 = vunpack.c.h.s8.bf16 %v3937_v63 }
 0x516   :  { %4324 = vmatpush1.bf16.msra.mxu0 %v4119_v11  ;;  %v4160_v11 = vunpack.c.h.s8.bf16 %v3936_v59 }
 0x517   :  { %4496 = vmatpush1.bf16.msra.mxu1 %v4121_v62  ;;  %4325 = vmatprep.subr.bf16.mxu0 %v4124_v60  ;;  %v4162_v62 = vunpack.c.h.s8.bf16 %v3938_v10  ;;  %v6221_v60 = vld [vmem:[#allocation9 + $0x308] sm:$0xff] }
 0x518   :  { %4497 = vmatprep.subr.bf16.mxu1 %v4126_v16  ;;  %v4159_v16 = vunpack.c.h.s8.bf16 %v3935_v61 }
 0x51a   :  { %4326 = vmatpush1.bf16.msra.mxu0 %v4123_v17  ;;  %v4164_v17 = vunpack.c.l.s8.bf16 %v6221_v60 }
 0x51b   :  { %4498 = vmatpush1.bf16.msra.mxu1 %v4125_v34  ;;  %4327 = vmatprep.subr.bf16.mxu0 %v4128_v12  ;;  %v4166_v34 = vunpack.c.l.s8.bf16 %v6223_v15  ;;  %v6227_v12 = vld [vmem:[#allocation8 + $0x10] sm:$0xff] }
 0x51c   :  { %4499 = vmatprep.subr.bf16.mxu1 %v4130_v7  ;;  %v6229_v7 = vld [vmem:[#allocation8 + $0x18] sm:$0xff]  ;;  %v3243_v18 = vrot.slane %v6227_v12, %v6033_v47 }
 0x51d   :  { %v3251_v42 = vrot.slane %v6229_v7, %v6033_v47  ;;  %v3339_v23 = vrot.slane %v6229_v7, %v6043_v35 }
 0x51e   :  { %4328 = vmatpush1.bf16.msra.mxu0 %v4127_v24  ;;  %v3247_v24 = vrot.slane %v6227_v12, %v6040_v49  ;;  %v3283_v38 = vrot.slane %v3243_v18, %v6033_v47 }
 0x51f   :  { %4500 = vmatpush1.bf16.msra.mxu1 %v4129_v50  ;;  %4329 = vmatprep.subr.bf16.mxu0 %v4132_v43  ;;  %v3331_v50 = vrot.slane %v6227_v12, %v6043_v35  ;;  %v3255_v43 = vrot.slane %v6229_v7, %v6040_v49 }
 0x520   :  { %4501 = vmatprep.subr.bf16.mxu1 %v4134_v1  ;;  %v3335_v1 = vrot.slane %v6227_v12, %v6046_v31 }
 0x521   :  { %v3295_v21 = vrot.slane %v3255_v43, %v6033_v47 }
 0x522   :  { %4330 = vmatpush1.bf16.msra.mxu0 %v4131_v20  ;;  %v3343_v20 = vrot.slane %v6229_v7, %v6046_v31 }
 0x523   :  { %4502 = vmatpush1.bf16.msra.mxu1 %v4133_v25  ;;  %4331 = vmatprep.subr.bf16.mxu0 %v4136_v46  ;;  %v3291_v25 = vrot.slane %v3251_v42, %v6033_v47  ;;  %v3287_v46 = vrot.slane %v3247_v24, %v6033_v47 }
 0x524   :  { %4503 = vmatprep.subr.bf16.mxu1 %v4138_v39  ;;  %v3371_v39 = vrot.slane %v3331_v50, %v6043_v35  ;;  %v3383_v36 = vrot.slane %v3343_v20, %v6043_v35 }
 0x526   :  { %4332 = vmatpush1.bf16.msra.mxu0 %v4135_v44  ;;  %v3379_v44 = vrot.slane %v3339_v23, %v6043_v35 }
 0x527   :  { %4504 = vmatpush1.bf16.msra.mxu1 %v4137_v13  ;;  %4333 = vmatprep.subr.bf16.mxu0 %v4140_v55  ;;  %v3375_v13 = vrot.slane %v3335_v1, %v6043_v35 }
 0x528   :  { %4505 = vmatprep.subr.bf16.mxu1 %v4142_v41 }
 0x52a   :  { %4334 = vmatpush1.bf16.msra.mxu0 %v4139_v4 }
 0x52b   :  { %4506 = vmatpush1.bf16.msra.mxu1 %v4141_v51  ;;  %4335 = vmatprep.subr.bf16.mxu0 %v4144_v48 }
 0x52c   :  { %4507 = vmatprep.subr.bf16.mxu1 %v4146_v8 }
 0x52e   :  { %4336 = vmatpush1.bf16.msra.mxu0 %v4143_v40 }
 0x52f   :  { %4508 = vmatpush1.bf16.msra.mxu1 %v4145_v14  ;;  %4337 = vmatprep.subr.bf16.mxu0 %v4148_v28 }
 0x530   :  { %4509 = vmatprep.subr.bf16.mxu1 %v4150_v56 }
 0x532   :  { %4338 = vmatpush1.bf16.msra.mxu0 %v4147_v57 }
 0x533   :  { %4510 = vmatpush1.bf16.msra.mxu1 %v4149_v6  ;;  %4339 = vmatprep.subr.bf16.mxu0 %v4152_v33 }
 0x534   :  { %4511 = vmatprep.subr.bf16.mxu1 %v4154_v58 }
 0x536   :  { %4340 = vmatpush1.bf16.msra.mxu0 %v4151_v2 }
 0x537   :  { %4512 = vmatpush1.bf16.msra.mxu1 %v4153_v52  ;;  %4341 = vmatprep.subr.bf16.mxu0 %v4156_v3 }
 0x538   :  { %4513 = vmatprep.subr.bf16.mxu1 %v4158_v53 }
 0x53a   :  { %4342 = vmatpush1.bf16.msra.mxu0 %v4155_v5 }
 0x53b   :  { %4514 = vmatpush1.bf16.msra.mxu1 %v4157_v19  ;;  %4343 = vmatprep.subr.bf16.mxu0 %v4160_v11 }
 0x53c   :  { %4515 = vmatprep.subr.bf16.mxu1 %v4162_v62 }
 0x53e   :  { %4344 = vmatpush1.bf16.msra.mxu0 %v4159_v16 }
 0x53f   :  { %4516 = vmatpush1.bf16.msra.mxu1 %v4161_v0  ;;  %4356 = vmatprep.subr.bf16.mxu0 %v4164_v17 }
 0x540   :  { %4528 = vmatprep.subr.bf16.mxu1 %v4166_v34 }
 0x554   :  { %v2772_v32 = vpop.f32.mrb[4].mxu0 }
 0x555   :  { %v3300_v55 = vmul.f32 %v3283_v38, %v2772_v32  ;;  %v3116_v37 = vpop.f32.mrb[4].mxu1  ;;  %v2774_v41 = vpop.f32.mrb[5].mxu0 }
 0x556   :  { %v3302_v4 = vmul.f32 %v3291_v25, %v3116_v37  ;;  %v3301_v51 = vmul.f32 %v3287_v46, %v2774_v41  ;;  %v3118_v48 = vpop.f32.mrb[5].mxu1  ;;  %v2776_v8 = vpop.f32.mrb[6].mxu0 }
 0x557   :  { %v3388_v22 = vadd.f32 %v3371_v39, %v3300_v55  ;;  %v3303_v9 = vmul.f32 %v3295_v21, %v3118_v48  ;;  %v3308_v40 = vmul.f32 %v3283_v38, %v2776_v8  ;;  %v3120_v14 = vpop.f32.mrb[6].mxu1  ;;  %v2778_v28 = vpop.f32.mrb[7].mxu0 }
 0x558   :  { %v3390_v26 = vadd.f32 %v3379_v44, %v3302_v4  ;;  %v3389_v56 = vadd.f32 %v3375_v13, %v3301_v51  ;;  %v3310_v27 = vmul.f32 %v3291_v25, %v3120_v14  ;;  %v3309_v57 = vmul.f32 %v3287_v46, %v2778_v28  ;;  %v3122_v6 = vpop.f32.mrb[7].mxu1 }
 0x559   :  { %v3391_v33 = vadd.f32 %v3383_v36, %v3303_v9  ;;  %v3396_v58 = vadd.f32 %v3371_v39, %v3308_v40  ;;  %v3311_v59 = vmul.f32 %v3295_v21, %v3122_v6  ;;  %v6255_v52 = vmax.f32 %v3388_v22, 0.0 }
 0x55a   :  { %v3398_v10 = vadd.f32 %v3379_v44, %v3310_v27  ;;  %v3397_v2 = vadd.f32 %v3375_v13, %v3309_v57  ;;  %v6259_v53 = vmax.f32 %v3390_v26, 0.0  ;;  %v6261_v63 = vmax.f32 %v3389_v56, 0.0 }
 0x55b   :  { %v6257_v3 = vmax.f32 %v3396_v58, 0.0  ;;  %v3399_v61 = vadd.f32 %v3383_v36, %v3311_v59  ;;  %v6267_v11 = vmax.f32 %v3391_v33, 0.0 }
 0x55c   :  { %v6263_v5 = vmax.f32 %v3398_v10, 0.0  ;;  %v6265_v19 = vmax.f32 %v3397_v2, 0.0 }
 0x55d   :  { %v3444_v62 = vadd.f32 %v6257_v3, %v6255_v52  ;;  %v6271_v16 = vmax.f32 %v3399_v61, 0.0 }
 0x55e   :  { %v3458_v0 = vadd.f32 %v6263_v5, %v6259_v53  ;;  %v3451_v17 = vadd.f32 %v6265_v19, %v6261_v63 }
 0x55f   :  { %v3445_v34 = vrot.slane %v3444_v62, 4  ;;  %v3465_v18 = vadd.f32 %v6271_v16, %v6267_v11 }
 0x560   :  { %v3459_v42 = vrot.slane %v3458_v0, 4  ;;  %v3452_v24 = vrot.slane %v3451_v17, 4 }
 0x561   :  { %v3446_v50 = vadd.f32 %v3445_v34, %v3444_v62  ;;  %v3466_v43 = vrot.slane %v3465_v18, 4 }
 0x562   :  { %v3460_v23 = vadd.f32 %v3459_v42, %v3458_v0  ;;  %v3453_v1 = vadd.f32 %v3452_v24, %v3451_v17 }
 0x563   :  { %v3447_v38 = vrot.slane %v3446_v50, 2  ;;  %v3467_v20 = vadd.f32 %v3466_v43, %v3465_v18 }
 0x564   :  { %v3461_v25 = vrot.slane %v3460_v23, 2  ;;  %v3454_v46 = vrot.slane %v3453_v1, 2 }
 0x565   :  { %v3448_v39 = vadd.f32 %v3447_v38, %v3446_v50  ;;  %v3468_v21 = vrot.slane %v3467_v20, 2 }
 0x566   :  { %v3462_v32 = vadd.f32 %v3461_v25, %v3460_v23  ;;  %v3455_v44 = vadd.f32 %v3454_v46, %v3453_v1 }
 0x567   :  { %v3449_v13 = vrot.slane %v3448_v39, 1  ;;  %v3469_v55 = vadd.f32 %v3468_v21, %v3467_v20 }
 0x568   :  { %v3463_v37 = vrot.slane %v3462_v32, 1  ;;  %v3456_v41 = vrot.slane %v3455_v44, 1 }
 0x569   :  { %v3450_v36 = vadd.f32 %v3449_v13, %v3448_v39  ;;  %v3470_v4 = vrot.slane %v3469_v55, 1 }
 0x56a   :  { %v3464_v51 = vadd.f32 %v3463_v37, %v3462_v32  ;;  %v3457_v48 = vadd.f32 %v3456_v41, %v3455_v44 }
 0x56b   :  { %v6279_v8 = vmul.f32 0.0625, %v3450_v36  ;;  %v3471_v22 = vadd.f32 %v3470_v4, %v3469_v55 }
 0x56c   :  { %v6281_v9 = vmul.f32 0.0625, %v3464_v51  ;;  %v6283_v40 = vmul.f32 0.0625, %v3457_v48 }
 0x56d   :  { %v3485_v14 = vsub.f32 %v6255_v52, %v6279_v8  ;;  %v3493_v28 = vsub.f32 %v6257_v3, %v6279_v8  ;;  %v6289_v26 = vmul.f32 0.0625, %v3471_v22 }
 0x56e   :  { %v3487_v56 = vsub.f32 %v6259_v53, %v6281_v9  ;;  %v3495_v27 = vsub.f32 %v6263_v5, %v6281_v9  ;;  %v3486_v57 = vsub.f32 %v6261_v63, %v6283_v40  ;;  %v3494_v6 = vsub.f32 %v6265_v19, %v6283_v40 }
 0x56f   :  { %v3501_v33 = vmul.f32 %v3485_v14, %v3485_v14  ;;  %v3509_v58 = vmul.f32 %v3493_v28, %v3493_v28  ;;  %v3488_v59 = vsub.f32 %v6267_v11, %v6289_v26  ;;  %v3496_v10 = vsub.f32 %v6271_v16, %v6289_v26 }
 0x570   :  { %v3503_v2 = vmul.f32 %v3487_v56, %v3487_v56  ;;  %v3511_v61 = vmul.f32 %v3495_v27, %v3495_v27  ;;  %v3502_v62 = vmul.f32 %v3486_v57, %v3486_v57  ;;  %v3510_v0 = vmul.f32 %v3494_v6, %v3494_v6 }
 0x571   :  { %v3541_v17 = vadd.f32 %v3509_v58, %v3501_v33  ;;  %v3504_v34 = vmul.f32 %v3488_v59, %v3488_v59  ;;  %v3512_v18 = vmul.f32 %v3496_v10, %v3496_v10 }
 0x572   :  { %v3555_v42 = vadd.f32 %v3511_v61, %v3503_v2  ;;  %v3548_v24 = vadd.f32 %v3510_v0, %v3502_v62 }
 0x573   :  { %v3542_v50 = vrot.slane %v3541_v17, 4  ;;  %v3562_v43 = vadd.f32 %v3512_v18, %v3504_v34 }
 0x574   :  { %v3556_v23 = vrot.slane %v3555_v42, 4  ;;  %v3549_v1 = vrot.slane %v3548_v24, 4 }
 0x575   :  { %v3543_v38 = vadd.f32 %v3542_v50, %v3541_v17  ;;  %v3563_v20 = vrot.slane %v3562_v43, 4 }
 0x576   :  { %v3557_v25 = vadd.f32 %v3556_v23, %v3555_v42  ;;  %v3550_v46 = vadd.f32 %v3549_v1, %v3548_v24 }
 0x577   :  { %v3544_v39 = vrot.slane %v3543_v38, 2  ;;  %v3564_v21 = vadd.f32 %v3563_v20, %v3562_v43 }
 0x578   :  { %v3558_v32 = vrot.slane %v3557_v25, 2  ;;  %v3551_v44 = vrot.slane %v3550_v46, 2 }
 0x579   :  { %v3545_v13 = vadd.f32 %v3544_v39, %v3543_v38  ;;  %v3565_v55 = vrot.slane %v3564_v21, 2 }
 0x57a   :  { %v3559_v37 = vadd.f32 %v3558_v32, %v3557_v25  ;;  %v3552_v41 = vadd.f32 %v3551_v44, %v3550_v46 }
 0x57b   :  { %v3546_v36 = vrot.slane %v3545_v13, 1  ;;  %v3566_v4 = vadd.f32 %v3565_v55, %v3564_v21 }
 0x57c   :  { %v3560_v51 = vrot.slane %v3559_v37, 1  ;;  %v3553_v48 = vrot.slane %v3552_v41, 1 }
 0x57d   :  { %v3547_v22 = vadd.f32 %v3546_v36, %v3545_v13  ;;  %v3567_v14 = vrot.slane %v3566_v4, 1 }
 0x57e   :  { %v3561_v28 = vadd.f32 %v3560_v51, %v3559_v37  ;;  %v3554_v56 = vadd.f32 %v3553_v48, %v3552_v41 }
 0x57f   :  { %v3573_v27 = vmul.f32 0.0625, %v3547_v22  ;;  %v3568_v57 = vadd.f32 %v3567_v14, %v3566_v4 }
 0x580   :  { %v3575_v6 = vmul.f32 0.0625, %v3561_v28  ;;  %v3574_v33 = vmul.f32 0.0625, %v3554_v56 }
 0x581   :  { %v3581_v58 = vadd.f32 1e-05, %v3573_v27  ;;  %v3576_v59 = vmul.f32 0.0625, %v3568_v57  ;;  %v3941_v57 = vld [vmem:[#allocation9 + $0x310] sm:$0xff] }
 0x582   :  { %v3583_v10 = vadd.f32 1e-05, %v3575_v6  ;;  %v3582_v2 = vadd.f32 1e-05, %v3574_v33 }
 0x583   :  { %5532 = vrsqrt.f32 %v3581_v58  ;;  %v3584_v61 = vadd.f32 1e-05, %v3576_v59 }
 0x584   :  { %5534 = vrsqrt.f32 %v3583_v10 }
 0x585   :  { %5536 = vrsqrt.f32 %v3582_v2 }
 0x586   :  { %5538 = vrsqrt.f32 %v3584_v61 }
 0x58d   :  { %v5533_v62 = vpop.eup %5532 }
 0x58e   :  { %v5535_v0 = vpop.eup %5534 }
 0x58f   :  { %v5537_v17 = vpop.eup %5536 }
 0x590   :  { %v5539_v34 = vpop.eup %5538  ;;  %v3603_v18 = vcombine.low %v5533_v62, %v5537_v17 }
 0x591   :  { %v3604_v42 = vcombine.low %v5535_v0, %v5539_v34  ;;  %v4165_v34 = vunpack.c.l.s8.bf16 %v3941_v57 }
 0x592   :  { %v3607_v24 = vrot.slane %v3603_v18, 6 }
 0x593   :  { %v3608_v50 = vrot.slane %v3604_v42, 6 }
 0x594   :  { %v3615_v43 = vmul.f32 %v3607_v24, %v6227_v12  ;;  %v4168_v24 = vunpack.c.h.s8.bf16 %v6221_v60 }
 0x595   :  { %v3616_v23 = vmul.f32 %v3608_v50, %v6229_v7  ;;  %v4170_v50 = vunpack.c.h.s8.bf16 %v6223_v15 }
 0x596   :  { %v3640_v1 = vrot.slane %v3615_v43, %v6145_v54  ;;  %v3644_v38 = vrot.slane %v3615_v43, %v6148_v45  ;;  %v3944_v43 = vld [vmem:[#allocation9 + $0x328] sm:$0xff] }
 0x597   :  { %v3648_v20 = vrot.slane %v3616_v23, %v6145_v54  ;;  %v3652_v25 = vrot.slane %v3616_v23, %v6148_v45  ;;  %v3946_v23 = vld [vmem:[#allocation9 + $0x338] sm:$0xff] }
 0x598   :  { %v3684_v46 = vrot.slane %v3644_v38, %v6145_v54  ;;  %v3714_v39 = vmul.f32 %v3644_v38, %v6283_v40  ;;  %v3713_v21 = vmul.f32 %v3640_v1, %v6279_v8  ;;  %v3680_v32 = vrot.slane %v3640_v1, %v6145_v54 }
 0x599   :  { %v3692_v44 = vrot.slane %v3652_v25, %v6145_v54  ;;  %v3716_v13 = vmul.f32 %v3652_v25, %v6289_v26  ;;  %v3715_v55 = vmul.f32 %v3648_v20, %v6281_v9  ;;  %v3688_v37 = vrot.slane %v3648_v20, %v6145_v54 }
 0x59a   :  { %v3706_v41 = vmul.f32 %v3684_v46, %v6265_v19  ;;  %v3698_v36 = vmul.f32 %v3684_v46, %v6261_v63  ;;  %v3727_v4 = vcombine.low %v3713_v21, %v3714_v39  ;;  %v3697_v51 = vmul.f32 %v3680_v32, %v6255_v52  ;;  %v3943_v46 = vld [vmem:[#allocation9 + $0x320] sm:$0xff]  ;;  %v3945_v39 = vld [vmem:[#allocation9 + $0x330] sm:$0xff] }
 0x59b   :  { %v3708_v40 = vmul.f32 %v3692_v44, %v6271_v16  ;;  %v3705_v8 = vmul.f32 %v3680_v32, %v6257_v3  ;;  %v3700_v48 = vmul.f32 %v3692_v44, %v6267_v11  ;;  %v3728_v22 = vcombine.low %v3715_v55, %v3716_v13  ;;  %v3948_v44 = vld [vmem:[#allocation9 + $0x348] sm:$0xff]  ;;  %v3950_v13 = vld [vmem:[#allocation9 + $0x358] sm:$0xff] }
 0x59c   :  { %v3731_v14 = vrot.slane %v3727_v4, 5  ;;  %v3699_v26 = vmul.f32 %v3688_v37, %v6259_v53  ;;  %v3707_v9 = vmul.f32 %v3688_v37, %v6263_v5  ;;  %v3939_v53 = vld [vmem:[#allocation9 + $0x300] sm:$0xff]  ;;  %v4169_v38 = vunpack.c.h.s8.bf16 %v3941_v57  ;;  %v3958_v57 = vld [vmem:[#allocation9 + $0x398] sm:$0xff] }
 0x59d   :  { %v3732_v28 = vrot.slane %v3728_v22, 5  ;;  %v4163_v17 = vunpack.c.l.s8.bf16 %v3939_v53  ;;  %v4167_v1 = vunpack.c.h.s8.bf16 %v3939_v53  ;;  %v4172_v20 = vunpack.c.l.s8.bf16 %v3944_v43  ;;  %v3947_v4 = vld [vmem:[#allocation9 + $0x340] sm:$0xff]  ;;  %v3956_v53 = vld [vmem:[#allocation9 + $0x388] sm:$0xff] }
 0x59e   :  { %v3739_v19 = vsub.f32 %v6227_v12, %v3731_v14  ;;  %v4174_v25 = vunpack.c.l.s8.bf16 %v3946_v23  ;;  %v4171_v60 = vunpack.c.l.s8.bf16 %v3943_v46  ;;  %v4173_v15 = vunpack.c.l.s8.bf16 %v3945_v39  ;;  %v3952_v14 = vld [vmem:[#allocation9 + $0x368] sm:$0xff] }
 0x59f   :  { %v3740_v63 = vsub.f32 %v6229_v7, %v3732_v28  ;;  %v4176_v21 = vunpack.c.h.s8.bf16 %v3944_v43  ;;  %v4178_v32 = vunpack.c.h.s8.bf16 %v3946_v23  ;;  %v4175_v55 = vunpack.c.h.s8.bf16 %v3943_v46  ;;  %v3961_v43 = vld [vmem:[#allocation9 + $0x3b0] sm:$0xff]  ;;  %v3966_v46 = vld [vmem:[#allocation9 + $0x3d8] sm:$0xff] }
 0x5a0   :  { %v3768_v56 = vrot.slane %v3739_v19, %v6174_v30  ;;  %v3764_v52 = vrot.slane %v3739_v19, %v6171_v29  ;;  %v4177_v37 = vunpack.c.h.s8.bf16 %v3945_v39  ;;  %v4186_v22 = vunpack.c.h.s8.bf16 %v3950_v13 }
 0x5a1   :  { %v3776_v16 = vrot.slane %v3740_v63, %v6174_v30  ;;  %v3772_v3 = vrot.slane %v3740_v63, %v6171_v29  ;;  %v4188_v19 = vunpack.c.l.s8.bf16 %v3952_v14 }
 0x5a2   :  { %v3808_v11 = vrot.slane %v3768_v56, %v6171_v29  ;;  %v3804_v27 = vrot.slane %v3764_v52, %v6171_v29  ;;  %v3951_v56 = vld [vmem:[#allocation9 + $0x360] sm:$0xff]  ;;  %v3953_v52 = vld [vmem:[#allocation9 + $0x370] sm:$0xff] }
 0x5a3   :  { %v3816_v5 = vrot.slane %v3776_v16, %v6171_v29  ;;  %v3812_v12 = vrot.slane %v3772_v3, %v6171_v29  ;;  %v4187_v16 = vunpack.c.l.s8.bf16 %v3951_v56  ;;  %v4189_v3 = vunpack.c.l.s8.bf16 %v3953_v52 }
 0x5a4   :  { %v3822_v6 = vadd.f32 %v3808_v11, %v3698_v36  ;;  %v3830_v7 = vadd.f32 %v3808_v11, %v3706_v41  ;;  %v3821_v33 = vadd.f32 %v3804_v27, %v3697_v51  ;;  %v3829_v58 = vadd.f32 %v3804_v27, %v3705_v8  ;;  %v3949_v51 = vld [vmem:[#allocation9 + $0x350] sm:$0xff] }
 0x5a5   :  { %v3824_v59 = vadd.f32 %v3816_v5, %v3700_v48  ;;  %v3832_v10 = vadd.f32 %v3816_v5, %v3708_v40  ;;  %v3823_v2 = vadd.f32 %v3812_v12, %v3699_v26  ;;  %v3831_v61 = vadd.f32 %v3812_v12, %v3707_v9  ;;  %v3954_v26 = vld [vmem:[#allocation9 + $0x378] sm:$0xff] }
 0x5a6   :  { %v3840_v62 = vpack.c.bf16 %v3830_v7, %v3822_v6  ;;  %v3839_v0 = vpack.c.bf16 %v3829_v58, %v3821_v33  ;;  %v4180_v41 = vunpack.c.l.s8.bf16 %v3948_v44  ;;  %v4182_v36 = vunpack.c.l.s8.bf16 %v3950_v13  ;;  %v3955_v33 = vld [vmem:[#allocation9 + $0x380] sm:$0xff]  ;;  %v3957_v58 = vld [vmem:[#allocation9 + $0x390] sm:$0xff] }
 0x5a7   :  { %v3842_v18 = vpack.c.bf16 %v3832_v10, %v3824_v59  ;;  %v6335_v42 = vpack.c.bf16 %v3831_v61, %v3823_v2  ;;  %v4179_v40 = vunpack.c.l.s8.bf16 %v3947_v4  ;;  %v4181_v8 = vunpack.c.l.s8.bf16 %v3949_v51 }
 0x5a8   :  { %4345 = vmatprep.mubr.bf16.mxu0 %v3840_v62  ;;  %4517 = vmatprep.mubr.bf16.mxu1 %v3840_v62  ;;  %v4184_v48 = vunpack.c.h.s8.bf16 %v3948_v44  ;;  %v4183_v9 = vunpack.c.h.s8.bf16 %v3947_v4  ;;  %v4185_v28 = vunpack.c.h.s8.bf16 %v3949_v51  ;;  %v4190_v63 = vunpack.c.l.s8.bf16 %v3954_v26  ;;  %v3960_v62 = vld [vmem:[#allocation9 + $0x3a8] sm:$0xff]  ;;  %v3965_v44 = vld [vmem:[#allocation9 + $0x3d0] sm:$0xff]  ;;  %v3970_v4 = vld [vmem:[#allocation9 + $0x3f8] sm:$0xff] }
 0x5a9   :  { %4346 = vmatmul.mubr.bf16.vlgmr.msra.gmra.mrb[8].mxu0 %v3839_v0  ;;  %4518 = vmatmul.mubr.bf16.vlgmr.msra.gmra.mrb[8].mxu1 %v3839_v0  ;;  %v4192_v11 = vunpack.c.h.s8.bf16 %v3952_v14  ;;  %v4194_v27 = vunpack.c.h.s8.bf16 %v3954_v26  ;;  %v4191_v5 = vunpack.c.h.s8.bf16 %v3951_v56  ;;  %v4193_v12 = vunpack.c.h.s8.bf16 %v3953_v52  ;;  %v3962_v0 = vld [vmem:[#allocation9 + $0x3b8] sm:$0xff]  ;;  %v3969_v14 = vld [vmem:[#allocation9 + $0x3f0] sm:$0xff] }
 0x5aa   :  { %4357 = vmatpush1.bf16.msra.mxu0 %v4163_v17  ;;  %4529 = vmatpush1.bf16.msra.mxu1 %v4165_v34  ;;  %v4196_v6 = vunpack.c.l.s8.bf16 %v3956_v53  ;;  %v4198_v7 = vunpack.c.l.s8.bf16 %v3958_v57  ;;  %v4195_v59 = vunpack.c.l.s8.bf16 %v3955_v33  ;;  %v4197_v10 = vunpack.c.l.s8.bf16 %v3957_v58  ;;  %v5492_v52 = vld [vmem:[#allocation12 + $0x40] sm:$0xff]  }
 0x5ab   :  { %4388 = vmatprep.mubr.bf16.mxu0 %v3842_v18  ;;  %4560 = vmatprep.mubr.bf16.mxu1 %v3842_v18  ;;  %v4200_v2 = vunpack.c.h.s8.bf16 %v3956_v53  ;;  %v4202_v61 = vunpack.c.h.s8.bf16 %v3958_v57  ;;  %v4199_v17 = vunpack.c.h.s8.bf16 %v3955_v33  ;;  %v4201_v34 = vunpack.c.h.s8.bf16 %v3957_v58  ;;  %v5497_v53 = vld [vmem:[#allocation12 + $0xc8] sm:$0xff]   ;;  %v5504_v33 = vld [vmem:[#allocation12 + $0x58] sm:$0xff]  }
 0x5ac   :  { %4358 = vmatprep.subr.bf16.mxu0 %v4168_v24  ;;  %4530 = vmatprep.subr.bf16.mxu1 %v4170_v50  ;;  %v4204_v18 = vunpack.c.l.s8.bf16 %v3960_v62  ;;  %v4206_v24 = vunpack.c.l.s8.bf16 %v3962_v0  ;;  %v3959_v50 = vld [vmem:[#allocation9 + $0x3a0] sm:$0xff]  ;;  %v4225_v56 = vunpack.c.h.s8.bf16 %v3969_v14  ;;  %v5498_v57 = vld [vmem:[#allocation12 + $0x8] sm:$0xff]   ;;  %v5505_v58 = vld [vmem:[#allocation12 + $0xd8] sm:$0xff]  }
 0x5ad   :  { %v4203_v23 = vunpack.c.l.s8.bf16 %v3959_v50  ;;  %v4207_v39 = vunpack.c.h.s8.bf16 %v3959_v50  ;;  %v5516_v50 = vld [vmem:[#allocation12 + $0x70] sm:$0xff]  }
 0x5ae   :  { %4359 = vmatpush1.bf16.msra.mxu0 %v4167_v1  ;;  %4531 = vmatpush1.bf16.msra.mxu1 %v4169_v38  ;;  %v4205_v1 = vunpack.c.l.s8.bf16 %v3961_v43  ;;  %v4208_v38 = vunpack.c.h.s8.bf16 %v3960_v62  ;;  %v5510_v62 = vld [vmem:[#allocation12 + $0x20] sm:$0xff]  }
 0x5af   :  { %4360 = vmatprep.subr.bf16.mxu0 %v4172_v20  ;;  %4532 = vmatprep.subr.bf16.mxu1 %v4174_v25  ;;  %v4210_v20 = vunpack.c.h.s8.bf16 %v3962_v0  ;;  %v3964_v25 = vld [vmem:[#allocation9 + $0x3c8] sm:$0xff]  ;;  %v5511_v0 = vld [vmem:[#allocation12 + $0xa0] sm:$0xff]  }
 0x5b2   :  { %4361 = vmatpush1.bf16.msra.mxu0 %v4171_v60  ;;  %4533 = vmatpush1.bf16.msra.mxu1 %v4173_v15  ;;  %v4209_v60 = vunpack.c.h.s8.bf16 %v3961_v43  ;;  %v4212_v15 = vunpack.c.l.s8.bf16 %v3964_v25  ;;  %v5517_v43 = vld [vmem:[#allocation12 + $0xf0] sm:$0xff]  }
 0x5b3   :  { %4362 = vmatprep.subr.bf16.mxu0 %v4176_v21  ;;  %4534 = vmatprep.subr.bf16.mxu1 %v4178_v32  ;;  %v4214_v21 = vunpack.c.l.s8.bf16 %v3966_v46  ;;  %v3963_v32 = vld [vmem:[#allocation9 + $0x3c0] sm:$0xff] }
 0x5b4   :  { %v4211_v13 = vunpack.c.l.s8.bf16 %v3963_v32  ;;  %v4215_v51 = vunpack.c.h.s8.bf16 %v3963_v32 }
 0x5b6   :  { %4363 = vmatpush1.bf16.msra.mxu0 %v4175_v55  ;;  %4535 = vmatpush1.bf16.msra.mxu1 %v4177_v37  ;;  %v4213_v55 = vunpack.c.l.s8.bf16 %v3965_v44  ;;  %v4216_v37 = vunpack.c.h.s8.bf16 %v3964_v25  ;;  %v5522_v25 = vld [vmem:[#allocation12 + $0x38] sm:$0xff]  }
 0x5b7   :  { %4364 = vmatprep.subr.bf16.mxu0 %v4180_v41  ;;  %4536 = vmatprep.subr.bf16.mxu1 %v4182_v36  ;;  %v4218_v41 = vunpack.c.h.s8.bf16 %v3966_v46  ;;  %v3968_v36 = vld [vmem:[#allocation9 + $0x3e8] sm:$0xff] }
 0x5b8   :  { %v5523_v46 = vld [vmem:[#allocation12 + $0xb8] sm:$0xff]  }
 0x5ba   :  { %4365 = vmatpush1.bf16.msra.mxu0 %v4179_v40  ;;  %4537 = vmatpush1.bf16.msra.mxu1 %v4181_v8  ;;  %v4217_v40 = vunpack.c.h.s8.bf16 %v3965_v44  ;;  %v4220_v8 = vunpack.c.l.s8.bf16 %v3968_v36 }
 0x5bb   :  { %4366 = vmatprep.subr.bf16.mxu0 %v4184_v48  ;;  %4538 = vmatprep.subr.bf16.mxu1 %v4186_v22  ;;  %v4222_v48 = vunpack.c.l.s8.bf16 %v3970_v4  ;;  %v3967_v22 = vld [vmem:[#allocation9 + $0x3e0] sm:$0xff] }
 0x5bc   :  { %v4219_v26 = vunpack.c.l.s8.bf16 %v3967_v22 }
 0x5be   :  { %4367 = vmatpush1.bf16.msra.mxu0 %v4183_v9  ;;  %4539 = vmatpush1.bf16.msra.mxu1 %v4185_v28  ;;  %v4221_v9 = vunpack.c.l.s8.bf16 %v3969_v14  ;;  %v4224_v28 = vunpack.c.h.s8.bf16 %v3968_v36 }
 0x5bf   :  { %4368 = vmatprep.subr.bf16.mxu0 %v4188_v19  ;;  %4540 = vmatprep.subr.bf16.mxu1 %v4190_v63  ;;  %v4226_v19 = vunpack.c.h.s8.bf16 %v3970_v4  ;;  %v4223_v63 = vunpack.c.h.s8.bf16 %v3967_v22 }
 0x5c2   :  { %4369 = vmatpush1.bf16.msra.mxu0 %v4187_v16  ;;  %4541 = vmatpush1.bf16.msra.mxu1 %v4189_v3  ;;  %v5493_v16 = vld [vmem:[#allocation12 + $0xc0] sm:$0xff]  }
 0x5c3   :  { %4370 = vmatprep.subr.bf16.mxu0 %v4192_v11  ;;  %4542 = vmatprep.subr.bf16.mxu1 %v4194_v27  ;;  %v5494_v3 = vld [vmem:[#allocation12] sm:$0xff]   ;;  %v5496_v27 = vld [vmem:[#allocation12 + $0x48] sm:$0xff]  }
 0x5c4   :  { %v5495_v11 = vld [vmem:[#allocation12 + $0x80] sm:$0xff]  }
 0x5c6   :  { %4371 = vmatpush1.bf16.msra.mxu0 %v4191_v5  ;;  %4543 = vmatpush1.bf16.msra.mxu1 %v4193_v12  ;;  %v5499_v5 = vld [vmem:[#allocation12 + $0x88] sm:$0xff]   ;;  %v5500_v12 = vld [vmem:[#allocation12 + $0x50] sm:$0xff]  }
 0x5c7   :  { %4372 = vmatprep.subr.bf16.mxu0 %v4196_v6  ;;  %4544 = vmatprep.subr.bf16.mxu1 %v4198_v7  ;;  %v5501_v6 = vld [vmem:[#allocation12 + $0xd0] sm:$0xff]  }
 0x5c8   :  { %v5502_v7 = vld [vmem:[#allocation12 + $0x10] sm:$0xff]  }
 0x5ca   :  { %4373 = vmatpush1.bf16.msra.mxu0 %v4195_v59  ;;  %4545 = vmatpush1.bf16.msra.mxu1 %v4197_v10  ;;  %v5506_v59 = vld [vmem:[#allocation12 + $0x18] sm:$0xff]  }
 0x5cb   :  { %4374 = vmatprep.subr.bf16.mxu0 %v4200_v2  ;;  %4546 = vmatprep.subr.bf16.mxu1 %v4202_v61  ;;  %v5507_v10 = vld [vmem:[#allocation12 + $0x98] sm:$0xff]   ;;  %v5508_v2 = vld [vmem:[#allocation12 + $0x60] sm:$0xff]  }
 0x5cc   :  { %v5509_v61 = vld [vmem:[#allocation12 + $0xe0] sm:$0xff]  }
 0x5ce   :  { %4375 = vmatpush1.bf16.msra.mxu0 %v4199_v17  ;;  %4547 = vmatpush1.bf16.msra.mxu1 %v4201_v34  ;;  %v5512_v17 = vld [vmem:[#allocation12 + $0x68] sm:$0xff]  }
 0x5cf   :  { %4376 = vmatprep.subr.bf16.mxu0 %v4204_v18  ;;  %4548 = vmatprep.subr.bf16.mxu1 %v4206_v24  ;;  %v5513_v34 = vld [vmem:[#allocation12 + $0xe8] sm:$0xff]  }
 0x5d0   :  { %v5514_v18 = vld [vmem:[#allocation12 + $0x28] sm:$0xff]  }
 0x5d1   :  { %v5515_v24 = vld [vmem:[#allocation12 + $0xa8] sm:$0xff]  }
 0x5d2   :  { %4377 = vmatpush1.bf16.msra.mxu0 %v4203_v23  ;;  %4549 = vmatpush1.bf16.msra.mxu1 %v4205_v1  ;;  %v5518_v23 = vld [vmem:[#allocation12 + $0x30] sm:$0xff]  }
 0x5d3   :  { %4378 = vmatprep.subr.bf16.mxu0 %v4208_v38  ;;  %4550 = vmatprep.subr.bf16.mxu1 %v4210_v20  ;;  %v5519_v1 = vld [vmem:[#allocation12 + $0xb0] sm:$0xff]   ;;  %v5520_v38 = vld [vmem:[#allocation12 + $0x78] sm:$0xff]  }
 0x5d4   :  { %v5521_v20 = vld [vmem:[#allocation12 + $0xf8] sm:$0xff]  }
 0x5d6   :  { %4379 = vmatpush1.bf16.msra.mxu0 %v4207_v39  ;;  %4551 = vmatpush1.bf16.msra.mxu1 %v4209_v60  ;;  %v6341_v39 = vld [vmem:[#allocation11] sm:$0xff]  ;;  %v6343_v60 = vld [vmem:[#allocation11 + $0x8] sm:$0xff] }
 0x5d7   :  { %4380 = vmatprep.subr.bf16.mxu0 %v4212_v15  ;;  %4552 = vmatprep.subr.bf16.mxu1 %v4214_v21  ;;  %v4576_v15 = vrot.slane %v6341_v39, %v6033_v47  ;;  %v4584_v21 = vrot.slane %v6343_v60, %v6033_v47  ;;  %v4580_v32 = vrot.slane %v6341_v39, %v6040_v49 }
 0x5d8   :  { %v4588_v44 = vrot.slane %v6343_v60, %v6040_v49 }
 0x5d9   :  { %v4596_v36 = vrot.slane %v4576_v15, %v6033_v47  ;;  %v4604_v4 = vrot.slane %v4584_v21, %v6033_v47 }
 0x5da   :  { %4381 = vmatpush1.bf16.msra.mxu0 %v4211_v13  ;;  %4553 = vmatpush1.bf16.msra.mxu1 %v4213_v55  ;;  %v4620_v13 = vrot.slane %v6341_v39, %v6043_v35  ;;  %v4628_v55 = vrot.slane %v6343_v60, %v6043_v35  ;;  %v4608_v49 = vrot.slane %v4588_v44, %v6033_v47 }
 0x5db   :  { %4382 = vmatprep.subr.bf16.mxu0 %v4216_v37  ;;  %4554 = vmatprep.subr.bf16.mxu1 %v4218_v41  ;;  %v4624_v37 = vrot.slane %v6341_v39, %v6046_v31  ;;  %v4632_v41 = vrot.slane %v6343_v60, %v6046_v31 }
 0x5dd   :  { %v4644_v14 = vrot.slane %v4624_v37, %v6043_v35 }
 0x5de   :  { %4383 = vmatpush1.bf16.msra.mxu0 %v4215_v51  ;;  %4555 = vmatpush1.bf16.msra.mxu1 %v4217_v40  ;;  %v4600_v51 = vrot.slane %v4580_v32, %v6033_v47  ;;  %v4640_v40 = vrot.slane %v4620_v13, %v6043_v35 }
 0x5df   :  { %4384 = vmatprep.subr.bf16.mxu0 %v4220_v8  ;;  %4556 = vmatprep.subr.bf16.mxu1 %v4222_v48  ;;  %v4648_v8 = vrot.slane %v4628_v55, %v6043_v35 }
 0x5e2   :  { %4385 = vmatpush1.bf16.msra.mxu0 %v4219_v26  ;;  %4557 = vmatpush1.bf16.msra.mxu1 %v4221_v9  ;;  %v4652_v26 = vrot.slane %v4632_v41, %v6043_v35 }
 0x5e3   :  { %4386 = vmatprep.subr.bf16.mxu0 %v4224_v28  ;;  %4558 = vmatprep.subr.bf16.mxu1 %v4226_v19 }
 0x5e6   :  { %4387 = vmatpush1.bf16.msra.mxu0 %v4223_v63  ;;  %4559 = vmatpush1.bf16.msra.mxu1 %v4225_v56 }
 0x5e7   :  { %5297 = vmatprep.subr.bf16.mxu0 %v5492_v52  ;;  %5319 = vmatprep.subr.bf16.mxu1 %v5493_v16 }
 0x5e9   :  { %4389 = vmatmul.mubr.bf16.vlgmr.msra.gmra.mrb[8].mxu0 %v6335_v42  ;;  %4561 = vmatmul.mubr.bf16.vlgmr.msra.gmra.mrb[8].mxu1 %v6335_v42  ;;  %v5503_v42 = vld [vmem:[#allocation12 + $0x90] sm:$0xff]  }
 0x5ea   :  { %5298 = vmatpush3.bf16.msra.mxu0 %v5494_v3  ;;  %5320 = vmatpush3.bf16.msra.mxu1 %v5495_v11 }
 0x5eb   :  { %5299 = vmatprep.subr.bf16.mxu0 %v5496_v27  ;;  %5321 = vmatprep.subr.bf16.mxu1 %v5497_v53 }
 0x5ee   :  { %5300 = vmatpush3.bf16.msra.mxu0 %v5498_v57  ;;  %5322 = vmatpush3.bf16.msra.mxu1 %v5499_v5 }
 0x5ef   :  { %5301 = vmatprep.subr.bf16.mxu0 %v5500_v12  ;;  %5323 = vmatprep.subr.bf16.mxu1 %v5501_v6 }
 0x5f2   :  { %5302 = vmatpush3.bf16.msra.mxu0 %v5502_v7  ;;  %5324 = vmatpush3.bf16.msra.mxu1 %v5503_v42 }
 0x5f3   :  { %5303 = vmatprep.subr.bf16.mxu0 %v5504_v33  ;;  %5325 = vmatprep.subr.bf16.mxu1 %v5505_v58 }
 0x5f6   :  { %5304 = vmatpush3.bf16.msra.mxu0 %v5506_v59  ;;  %5326 = vmatpush3.bf16.msra.mxu1 %v5507_v10 }
 0x5f7   :  { %5305 = vmatprep.subr.bf16.mxu0 %v5508_v2  ;;  %5327 = vmatprep.subr.bf16.mxu1 %v5509_v61 }
 0x5fa   :  { %5306 = vmatpush3.bf16.msra.mxu0 %v5510_v62  ;;  %5328 = vmatpush3.bf16.msra.mxu1 %v5511_v0 }
 0x5fb   :  { %5307 = vmatprep.subr.bf16.mxu0 %v5512_v17  ;;  %5329 = vmatprep.subr.bf16.mxu1 %v5513_v34 }
 0x5fe   :  { %5308 = vmatpush3.bf16.msra.mxu0 %v5514_v18  ;;  %5330 = vmatpush3.bf16.msra.mxu1 %v5515_v24 }
 0x5ff   :  { %5309 = vmatprep.subr.bf16.mxu0 %v5516_v50  ;;  %5331 = vmatprep.subr.bf16.mxu1 %v5517_v43 }
 0x602   :  { %5310 = vmatpush3.bf16.msra.mxu0 %v5518_v23  ;;  %5332 = vmatpush3.bf16.msra.mxu1 %v5519_v1 }
 0x603   :  { %5311 = vmatprep.subr.bf16.mxu0 %v5520_v38  ;;  %5333 = vmatprep.subr.bf16.mxu1 %v5521_v20 }
 0x606   :  { %5312 = vmatpush3.bf16.msra.mxu0 %v5522_v25  ;;  %5334 = vmatpush3.bf16.msra.mxu1 %v5523_v46 }
 0x6bc   :  { %v4390_v48 = vpop.f32.mrb[8].mxu0  ;;  %v4562_v22 = vpop.f32.mrb[8].mxu1 }
 0x6bd   :  { %v4609_v9 = vmul.f32 %v4596_v36, %v4390_v48  ;;  %v4611_v31 = vmul.f32 %v4604_v4, %v4562_v22  ;;  %v4392_v28 = vpop.f32.mrb[9].mxu0  ;;  %v4564_v19 = vpop.f32.mrb[9].mxu1 }
 0x6be   :  { %v4610_v63 = vmul.f32 %v4600_v51, %v4392_v28  ;;  %v4612_v56 = vmul.f32 %v4608_v49, %v4564_v19  ;;  %v4394_v52 = vpop.f32.mrb[10].mxu0  ;;  %v4566_v16 = vpop.f32.mrb[10].mxu1 }
 0x6bf   :  { %v4653_v3 = vadd.f32 %v4640_v40, %v4609_v9  ;;  %v4655_v47 = vadd.f32 %v4648_v8, %v4611_v31  ;;  %v4613_v11 = vmul.f32 %v4596_v36, %v4394_v52  ;;  %v4615_v27 = vmul.f32 %v4604_v4, %v4566_v16  ;;  %v4396_v53 = vpop.f32.mrb[11].mxu0  ;;  %v4568_v57 = vpop.f32.mrb[11].mxu1 }
 0x6c0   :  { %v4654_v5 = vadd.f32 %v4644_v14, %v4610_v63  ;;  %v4656_v12 = vadd.f32 %v4652_v26, %v4612_v56  ;;  %v4614_v6 = vmul.f32 %v4600_v51, %v4396_v53  ;;  %v4616_v7 = vmul.f32 %v4608_v49, %v4568_v57 }
 0x6c1   :  { %v4657_v42 = vadd.f32 %v4640_v40, %v4613_v11  ;;  %v4659_v35 = vadd.f32 %v4648_v8, %v4615_v27  ;;  %v6369_v59 = vmax.f32 %v4653_v3, 0.0  ;;  %v6371_v10 = vmax.f32 %v4655_v47, 0.0 }
 0x6c2   :  { %v4658_v33 = vadd.f32 %v4644_v14, %v4614_v6  ;;  %v4660_v58 = vadd.f32 %v4652_v26, %v4616_v7  ;;  %v6377_v62 = vmax.f32 %v4654_v5, 0.0  ;;  %v6379_v0 = vmax.f32 %v4656_v12, 0.0 }
 0x6c3   :  { %v6373_v2 = vmax.f32 %v4657_v42, 0.0  ;;  %v6375_v61 = vmax.f32 %v4659_v35, 0.0 }
 0x6c4   :  { %v6381_v17 = vmax.f32 %v4658_v33, 0.0  ;;  %v6383_v34 = vmax.f32 %v4660_v58, 0.0 }
 0x6c5   :  { %v4669_v18 = vadd.f32 %v6373_v2, %v6369_v59  ;;  %v4683_v24 = vadd.f32 %v6375_v61, %v6371_v10 }
 0x6c6   :  { %v4676_v50 = vadd.f32 %v6381_v17, %v6377_v62  ;;  %v4690_v43 = vadd.f32 %v6383_v34, %v6379_v0 }
 0x6c7   :  { %v4670_v23 = vrot.slane %v4669_v18, 4  ;;  %v4684_v1 = vrot.slane %v4683_v24, 4 }
 0x6c8   :  { %v4677_v38 = vrot.slane %v4676_v50, 4  ;;  %v4691_v20 = vrot.slane %v4690_v43, 4 }
 0x6c9   :  { %v4671_v25 = vadd.f32 %v4670_v23, %v4669_v18  ;;  %v4685_v46 = vadd.f32 %v4684_v1, %v4683_v24 }
 0x6ca   :  { %v4678_v15 = vadd.f32 %v4677_v38, %v4676_v50  ;;  %v4692_v21 = vadd.f32 %v4691_v20, %v4690_v43 }
 0x6cb   :  { %v4672_v32 = vrot.slane %v4671_v25, 2  ;;  %v4686_v44 = vrot.slane %v4685_v46, 2 }
 0x6cc   :  { %v4679_v13 = vrot.slane %v4678_v15, 2  ;;  %v4693_v55 = vrot.slane %v4692_v21, 2 }
 0x6cd   :  { %v4673_v37 = vadd.f32 %v4672_v32, %v4671_v25  ;;  %v4687_v41 = vadd.f32 %v4686_v44, %v4685_v46 }
 0x6ce   :  { %v4680_v36 = vadd.f32 %v4679_v13, %v4678_v15  ;;  %v4694_v4 = vadd.f32 %v4693_v55, %v4692_v21 }
 0x6cf   :  { %v4674_v51 = vrot.slane %v4673_v37, 1  ;;  %v4688_v49 = vrot.slane %v4687_v41, 1 }
 0x6d0   :  { %v4681_v40 = vrot.slane %v4680_v36, 1  ;;  %v4695_v8 = vrot.slane %v4694_v4, 1 }
 0x6d1   :  { %v4675_v48 = vadd.f32 %v4674_v51, %v4673_v37  ;;  %v4689_v22 = vadd.f32 %v4688_v49, %v4687_v41 }
 0x6d2   :  { %v4682_v14 = vadd.f32 %v4681_v40, %v4680_v36  ;;  %v4696_v26 = vadd.f32 %v4695_v8, %v4694_v4 }
 0x6d3   :  { %v6393_v9 = vmul.f32 0.0625, %v4675_v48  ;;  %v6395_v31 = vmul.f32 0.0625, %v4689_v22 }
 0x6d4   :  { %v6397_v28 = vmul.f32 0.0625, %v4682_v14  ;;  %v6399_v19 = vmul.f32 0.0625, %v4696_v26 }
 0x6d5   :  { %v4701_v63 = vsub.f32 %v6369_v59, %v6393_v9  ;;  %v4705_v56 = vsub.f32 %v6373_v2, %v6393_v9  ;;  %v4703_v52 = vsub.f32 %v6371_v10, %v6395_v31  ;;  %v4707_v16 = vsub.f32 %v6375_v61, %v6395_v31 }
 0x6d6   :  { %v4702_v3 = vsub.f32 %v6377_v62, %v6397_v28  ;;  %v4706_v47 = vsub.f32 %v6381_v17, %v6397_v28  ;;  %v4704_v11 = vsub.f32 %v6379_v0, %v6399_v19  ;;  %v4708_v27 = vsub.f32 %v6383_v34, %v6399_v19 }
 0x6d7   :  { %v4709_v53 = vmul.f32 %v4701_v63, %v4701_v63  ;;  %v4713_v57 = vmul.f32 %v4705_v56, %v4705_v56  ;;  %v4711_v5 = vmul.f32 %v4703_v52, %v4703_v52  ;;  %v4715_v12 = vmul.f32 %v4707_v16, %v4707_v16 }
 0x6d8   :  { %v4710_v6 = vmul.f32 %v4702_v3, %v4702_v3  ;;  %v4714_v7 = vmul.f32 %v4706_v47, %v4706_v47  ;;  %v4712_v42 = vmul.f32 %v4704_v11, %v4704_v11  ;;  %v4716_v35 = vmul.f32 %v4708_v27, %v4708_v27 }
 0x6d9   :  { %v4717_v33 = vadd.f32 %v4713_v57, %v4709_v53  ;;  %v4731_v58 = vadd.f32 %v4715_v12, %v4711_v5 }
 0x6da   :  { %v4724_v18 = vadd.f32 %v4714_v7, %v4710_v6  ;;  %v4738_v24 = vadd.f32 %v4716_v35, %v4712_v42 }
 0x6db   :  { %v4718_v50 = vrot.slane %v4717_v33, 4  ;;  %v4732_v43 = vrot.slane %v4731_v58, 4 }
 0x6dc   :  { %v4725_v23 = vrot.slane %v4724_v18, 4  ;;  %v4739_v1 = vrot.slane %v4738_v24, 4 }
 0x6dd   :  { %v4719_v38 = vadd.f32 %v4718_v50, %v4717_v33  ;;  %v4733_v20 = vadd.f32 %v4732_v43, %v4731_v58 }
 0x6de   :  { %v4726_v25 = vadd.f32 %v4725_v23, %v4724_v18  ;;  %v4740_v46 = vadd.f32 %v4739_v1, %v4738_v24 }
 0x6df   :  { %v4720_v15 = vrot.slane %v4719_v38, 2  ;;  %v4734_v21 = vrot.slane %v4733_v20, 2 }
 0x6e0   :  { %v4727_v32 = vrot.slane %v4726_v25, 2  ;;  %v4741_v44 = vrot.slane %v4740_v46, 2 }
 0x6e1   :  { %v4721_v13 = vadd.f32 %v4720_v15, %v4719_v38  ;;  %v4735_v55 = vadd.f32 %v4734_v21, %v4733_v20 }
 0x6e2   :  { %v4728_v37 = vadd.f32 %v4727_v32, %v4726_v25  ;;  %v4742_v41 = vadd.f32 %v4741_v44, %v4740_v46 }
 0x6e3   :  { %v4722_v36 = vrot.slane %v4721_v13, 1  ;;  %v4736_v4 = vrot.slane %v4735_v55, 1 }
 0x6e4   :  { %v4729_v51 = vrot.slane %v4728_v37, 1  ;;  %v4743_v49 = vrot.slane %v4742_v41, 1 }
 0x6e5   :  { %v4723_v40 = vadd.f32 %v4722_v36, %v4721_v13  ;;  %v4737_v8 = vadd.f32 %v4736_v4, %v4735_v55 }
 0x6e6   :  { %v4730_v48 = vadd.f32 %v4729_v51, %v4728_v37  ;;  %v4744_v22 = vadd.f32 %v4743_v49, %v4742_v41 }
 0x6e7   :  { %v4745_v14 = vmul.f32 0.0625, %v4723_v40  ;;  %v4747_v26 = vmul.f32 0.0625, %v4737_v8 }
 0x6e8   :  { %v4746_v63 = vmul.f32 0.0625, %v4730_v48  ;;  %v4748_v56 = vmul.f32 0.0625, %v4744_v22 }
 0x6e9   :  { %v4749_v52 = vadd.f32 1e-05, %v4745_v14  ;;  %v4751_v16 = vadd.f32 1e-05, %v4747_v26 }
 0x6ea   :  { %v4750_v3 = vadd.f32 1e-05, %v4746_v63  ;;  %v4752_v47 = vadd.f32 1e-05, %v4748_v56  ;;  %v5264_v56 = vld [vmem:[#allocation14] ss:$0 sm:$0xff] }
 0x6eb   :  { %5540 = vrsqrt.f32 %v4749_v52 }
 0x6ec   :  { %5542 = vrsqrt.f32 %v4751_v16 }
 0x6ed   :  { %5544 = vrsqrt.f32 %v4750_v3 }
 0x6ee   :  { %5546 = vrsqrt.f32 %v4752_v47 }
 0x6f5   :  { %v5541_v11 = vpop.eup %5540 }
 0x6f6   :  { %v5543_v27 = vpop.eup %5542 }
 0x6f7   :  { %v5545_v53 = vpop.eup %5544 }
 0x6f8   :  { %v5547_v57 = vpop.eup %5546  ;;  %v4761_v5 = vcombine.low %v5541_v11, %v5545_v53 }
 0x6f9   :  { %v4762_v12 = vcombine.low %v5543_v27, %v5547_v57 }
 0x6fa   :  { %v4763_v6 = vrot.slane %v4761_v5, 6 }
 0x6fb   :  { %v4764_v7 = vrot.slane %v4762_v12, 6 }
 0x6fc   :  { %v4767_v42 = vmul.f32 %v4763_v6, %v6341_v39 }
 0x6fd   :  { %v4768_v35 = vmul.f32 %v4764_v7, %v6343_v60 }
 0x6fe   :  { %v4774_v33 = vrot.slane %v4767_v42, %v6145_v54  ;;  %v4778_v58 = vrot.slane %v4767_v42, %v6148_v45 }
 0x6ff   :  { %v4782_v18 = vrot.slane %v4768_v35, %v6145_v54  ;;  %v4786_v24 = vrot.slane %v4768_v35, %v6148_v45 }
 0x700   :  { %v4798_v50 = vrot.slane %v4778_v58, %v6145_v54  ;;  %v4816_v43 = vmul.f32 %v4778_v58, %v6397_v28  ;;  %v4815_v23 = vmul.f32 %v4774_v33, %v6393_v9  ;;  %v4794_v1 = vrot.slane %v4774_v33, %v6145_v54 }
 0x701   :  { %v4806_v38 = vrot.slane %v4786_v24, %v6145_v54  ;;  %v4818_v20 = vmul.f32 %v4786_v24, %v6399_v19  ;;  %v4817_v25 = vmul.f32 %v4782_v18, %v6395_v31  ;;  %v4802_v46 = vrot.slane %v4782_v18, %v6145_v54 }
 0x702   :  { %v4812_v15 = vmul.f32 %v4798_v50, %v6381_v17  ;;  %v4808_v45 = vmul.f32 %v4798_v50, %v6377_v62  ;;  %v4823_v21 = vcombine.low %v4815_v23, %v4816_v43  ;;  %v4807_v32 = vmul.f32 %v4794_v1, %v6369_v59 }
 0x703   :  { %v4814_v28 = vmul.f32 %v4806_v38, %v6383_v34  ;;  %v4810_v9 = vmul.f32 %v4806_v38, %v6379_v0  ;;  %v4824_v44 = vcombine.low %v4817_v25, %v4818_v20  ;;  %v4811_v13 = vmul.f32 %v4794_v1, %v6373_v2 }
 0x704   :  { %v4825_v55 = vrot.slane %v4823_v21, 5  ;;  %v4809_v19 = vmul.f32 %v4802_v46, %v6371_v10  ;;  %v4813_v31 = vmul.f32 %v4802_v46, %v6375_v61 }
 0x705   :  { %v4826_v54 = vrot.slane %v4824_v44, 5 }
 0x706   :  { %v4829_v17 = vsub.f32 %v6341_v39, %v4825_v55 }
 0x707   :  { %v4830_v62 = vsub.f32 %v6343_v60, %v4826_v54 }
 0x708   :  { %v4840_v37 = vrot.slane %v4829_v17, %v6174_v30  ;;  %v4836_v59 = vrot.slane %v4829_v17, %v6171_v29 }
 0x709   :  { %v4848_v34 = vrot.slane %v4830_v62, %v6174_v30  ;;  %v4844_v0 = vrot.slane %v4830_v62, %v6171_v29 }
 0x70a   :  { %v4860_v2 = vrot.slane %v4840_v37, %v6171_v29  ;;  %v4856_v41 = vrot.slane %v4836_v59, %v6171_v29 }
 0x70b   :  { %v4868_v10 = vrot.slane %v4848_v34, %v6171_v29  ;;  %v4864_v61 = vrot.slane %v4844_v0, %v6171_v29 }
 0x70c   :  { %v4870_v36 = vadd.f32 %v4860_v2, %v4808_v45  ;;  %v4874_v39 = vadd.f32 %v4860_v2, %v4812_v15  ;;  %v4869_v4 = vadd.f32 %v4856_v41, %v4807_v32  ;;  %v4873_v60 = vadd.f32 %v4856_v41, %v4811_v13 }
 0x70d   :  { %v4872_v51 = vadd.f32 %v4868_v10, %v4810_v9  ;;  %v4876_v49 = vadd.f32 %v4868_v10, %v4814_v28  ;;  %v4871_v40 = vadd.f32 %v4864_v61, %v4809_v19  ;;  %v4875_v8 = vadd.f32 %v4864_v61, %v4813_v31 }
 0x70e   :  { %v4878_v48 = vpack.c.bf16 %v4874_v39, %v4870_v36  ;;  %v4877_v30 = vpack.c.bf16 %v4873_v60, %v4869_v4 }
 0x70f   :  { %v4880_v22 = vpack.c.bf16 %v4876_v49, %v4872_v51  ;;  %v4879_v14 = vpack.c.bf16 %v4875_v8, %v4871_v40 }
 0x710   :  { %5176 = vmatprep.mubr.bf16.mxu0 %v4878_v48 }
 0x711   :  { %5217 = vmatprep.mubr.bf16.mxu1 %v4880_v22  ;;  %5177 = vmatmul.mubr.bf16.vlgmr.msra.gmra.mrb[12].mxu0 %v4877_v30 }
 0x712   :  { %5218 = vmatmul.mubr.bf16.vlgmr.msra.gmra.mrb[12].mxu1 %v4879_v14 }
 0x7e4   :  { %v5313_v26 = vpop.f32.mrb[12].mxu0 }
 0x7e5   :  { %v5335_v63 = vpop.f32.mrb[12].mxu1  ;;  %v5314_v29 = vpop.f32.mrb[13].mxu0 }
 0x7e6   :  { %v5315_v52 = vadd.f32 %v5314_v29, %v5313_v26  ;;  %v5336_v16 = vpop.f32.mrb[13].mxu1  ;;  %v5316_v3 = vpop.f32.mrb[14].mxu0 }
 0x7e7   :  { %v5337_v47 = vadd.f32 %v5336_v16, %v5335_v63  ;;  %v5338_v11 = vpop.f32.mrb[14].mxu1  ;;  %v5317_v27 = vpop.f32.mrb[15].mxu0 }
 0x7e8   :  { %v5179_v53 = vadd.f32 %v5315_v52, %v5264_v56  ;;  %v5318_v57 = vadd.f32 %v5317_v27, %v5316_v3  ;;  %v5339_v5 = vpop.f32.mrb[15].mxu1 }
 0x7e9   :  { %v5340_v12 = vadd.f32 %v5339_v5, %v5338_v11 }
 0x7ea   :  { %v5220_v6 = vadd.f32 %v5337_v47, %v5179_v53  ;;  %v5182_v7 = vadd.f32 %v5318_v57, %v5264_v56 }
 0x7ec   :  { %5226 = vst [vmem:[#allocation15] sm:$0xff] %v5220_v6  ;;  %v5223_v42 = vadd.f32 %v5340_v12, %v5182_v7 }
 0x7ee   :  { %5227 = vst [vmem:[#allocation15 + $0x8] sm:$0xff] %v5223_v42 }
 0x7ef   :  { %5713 = shalt.err (!%p5710_p4)
}
 0x7f0   :  { %s5714_s13 = scalar_lea.hbm %s6468_s7, 256 }
 0x7f1   :  { %p5715_p5 = scmp.ne.s32.totalorder %s6468_s7, %s5714_s13  ;;  %p5718_p6 = scmp.lt.u32.totalorder %s5714_s13, %s6468_s7 }
 0x7f3   :  { %p5720_p7 = pnand %p5718_p6, %p5715_p5 }
 0x7f5   :  { %5723 = shalt.err (!%p5720_p7)
}
 0x7f6   :  { %s5747_s21 = smov 128   ;;  %s5748_s22 = smov 8  }
 0x7f7   :  { %5239 = dma.vmem_to_hbm [thread:$0]  %s5234_s18, 256, %s6468_s7, [#allocation5], %s5747_s21, %s5747_s21, %s5748_s22  }
 0x7f8   :  { %5732 = dma.done.wait [#allocation5], 256  }
 0x7f9   :  { %5733 = vsyncadd [#allocation5], 4294967040 }
 0x7fa   :  { %5243 = vsyncpa [#allocation4], 1 }
 0x7fb   :  { %5244 = vsyncpa [#allocation7], 1 }
 0x7fc   :  { %5245 = vsyncpa [#allocation10], 1 }
 0x7fd   :  { %5246 = vsyncpa [#allocation13], 1 }
 0x7fe   :  { %5247 = vsyncpa [#allocation5], 1 }

</bundles_post_ra>
